<compile_context>
chip_gen: v7x
topology: tpu7x:2x2x1
jax: 0.10.0
libtpu: 0.0.40
codegen_flags: <defaults>
</compile_context>

<pallas_src>
import math

import numpy as np
import jax
import jax.numpy as jnp
from jax.experimental import pallas as pl
from jax.experimental.pallas import tpu as pltpu

# ----------------------------- problem / model config -----------------------------
PROBLEM_DIM = 4            # problem.dim
DIM_IN = PROBLEM_DIM + 1   # x concat t
DIM_OUT = 1                # grad_model=False
HIDDEN = 32                # `dim` argument of LevelNet
LEVEL = 2                  # -> 2**level - 1 = 3 hidden Linear(H,H) layers

GROUPS = 4                 # batch rows lane-packed per kernel row
WIDE = GROUPS * HIDDEN     # 128 lanes -> lane-dense activations everywhere

INTERVAL = (-1.0, 1.0)         # problem.interval
TERMINAL_TIME = 1.0            # problem.terminal_time
MEAN_X = sum(INTERVAL) / 2.0
STD_X = (INTERVAL[1] - INTERVAL[0]) / math.sqrt(12.0)
MEAN_T = TERMINAL_TIME / 2.0
STD_T = TERMINAL_TIME / math.sqrt(12.0)

_HP = jax.lax.Precision.HIGHEST


# ----------------------------- Pallas kernel -----------------------------
def levelnet_kernel(x_ref, t_ref, w0x_ref, w0t_ref, wh_ref, aux_ref,
                    out1_ref, out2_ref):
    """One batch tile of the full LevelNet forward, 4 batch rows packed per lane-row.

    x_ref   : (TBp, 16)   4 packed raw x rows (standardization folded into weights)
    t_ref   : (TBp, 4)    4 packed raw t values
    w0x_ref : (16, 128)   block-diag folded first-layer weight (x part)
    w0t_ref : (4, 128)    block-diag folded first-layer weight (t part)
    wh_ref  : (3,128,128) block-diag stacked dense_layers[1..3] weights
    aux_ref : (8, 128)    rows: [b0', b1, b2, b3, w4_row, b4, 0, 0] (each tiled x4)
    out1_ref: (TBp, 128)  out_tensors[0], 4 groups x 32 lanes (lane-dense store)
    out2_ref: (TBp, 4)    out_tensors[1], one value per packed group
    """
    f32 = jnp.float32

    # dense_layers[0] (standardization folded in): lane-packed (TBp,128)
    h = (jnp.dot(x_ref[...], w0x_ref[...], precision=_HP, preferred_element_type=f32)
         + jnp.dot(t_ref[...], w0t_ref[...], precision=_HP, preferred_element_type=f32)
         + aux_ref[0:1, :])

    # i = 0: act -> dense_layers[1]
    h = jnp.tanh(h)
    h = jnp.dot(h, wh_ref[0], precision=_HP, preferred_element_type=f32) + aux_ref[1:2, :]

    # i = 1: act -> dense_layers[2]   (recorded as out_tensors[0], pre-activation)
    h = jnp.tanh(h)
    h = jnp.dot(h, wh_ref[1], precision=_HP, preferred_element_type=f32) + aux_ref[2:3, :]
    out1_ref[...] = h                                    # full 128-lane store

    # i = 2: act -> dense_layers[3]
    h = jnp.tanh(h)
    h = jnp.dot(h, wh_ref[2], precision=_HP, preferred_element_type=f32) + aux_ref[3:4, :]

    # i = 3: act -> dense_layers[4] (Linear(H,1)) on the VPU:
    # full-width multiply against the tiled w4 row, then a 32-lane segment reduce
    # per packed group (no degenerate-N MXU matmul, no redundant lane broadcast).
    h = jnp.tanh(h)
    p = h * aux_ref[4:5, :]                              # (TBp, 128)
    y = jnp.concatenate(
        [jnp.sum(p[:, g * HIDDEN:(g + 1) * HIDDEN], axis=-1, keepdims=True)
         for g in range(GROUPS)],
        axis=-1)                                          # (TBp, 4)
    out2_ref[...] = y + aux_ref[5:6, 0:GROUPS]            # + b4


# ----------------------------- wrapper -----------------------------
def _round_up(n, m):
    return ((n + m - 1) // m) * m


def _choose_tile_rows(batch, tile_rows):
    """Tile size in *original* batch rows: multiple of 32 (so packed rows are x8),
    big enough to amortize per-step overhead, small enough to keep >=4 grid steps
    (2 per v7x TensorCore) when the batch allows."""
    tr = _round_up(max(32, min(int(tile_rows), _round_up(batch, 32))), 32)
    while tr >= 1024 and _round_up(batch, tr) // tr < 4:
        tr = _round_up(tr // 2, 32)
    return tr


def levelnet_forward(x, t, packed, tile_rows=2048):
    """Runs the whole LevelNet forward batched over a grid on the batch axis.

    x: (B, PROBLEM_DIM) f32, t: (B, 1) f32, packed = pack_params(raw_params).
    Returns (out_tensors[0] (B, HIDDEN), out_tensors[1] (B, DIM_OUT)).
    """
    w0x, w0t, wh, aux = packed
    B = x.shape[0]

    tr = _choose_tile_rows(B, tile_rows)
    Bp = _round_up(B, tr)

    x = x.astype(jnp.float32)
    t = t.astype(jnp.float32)
    if Bp != B:
        x = jnp.pad(x, ((0, Bp - B), (0, 0)))
        t = jnp.pad(t, ((0, Bp - B), (0, 0)))

    # Lane-pack GROUPS consecutive rows per packed row (row-major reshapes -> free).
    xp = x.reshape(Bp // GROUPS, GROUPS * PROBLEM_DIM)    # (Bp/4, 16)
    tp = t.reshape(Bp // GROUPS, GROUPS)                  # (Bp/4, 4)

    tbp = tr // GROUPS                                    # packed rows per grid step
    grid = (Bp // tr,)

    n_packed = Bp // GROUPS
    flops = 2 * n_packed * (GROUPS * PROBLEM_DIM * WIDE + GROUPS * WIDE
                            + 3 * WIDE * WIDE + WIDE)
    bytes_accessed = 4 * (n_packed * (GROUPS * DIM_IN + WIDE + GROUPS)
                          + GROUPS * PROBLEM_DIM * WIDE + GROUPS * WIDE
                          + 3 * WIDE * WIDE + 8 * WIDE)

    out1_p, out2_p = pl.pallas_call(
        levelnet_kernel,
        out_shape=(jax.ShapeDtypeStruct((n_packed, WIDE), jnp.float32),
                   jax.ShapeDtypeStruct((n_packed, GROUPS), jnp.float32)),
        grid=grid,
        in_specs=[
            # streaming activations
            pl.BlockSpec((tbp, GROUPS * PROBLEM_DIM), lambda i: (i, 0)),
            pl.BlockSpec((tbp, GROUPS), lambda i: (i, 0)),
            # weights/biases: constant index maps + full-array blocks -> resident in VMEM
            pl.BlockSpec((GROUPS * PROBLEM_DIM, WIDE), lambda i: (0, 0)),
            pl.BlockSpec((GROUPS, WIDE), lambda i: (0, 0)),
            pl.BlockSpec((3, WIDE, WIDE), lambda i: (0, 0, 0)),
            pl.BlockSpec((8, WIDE), lambda i: (0, 0)),
        ],
        out_specs=(
            pl.BlockSpec((tbp, WIDE), lambda i: (i, 0)),     # lane-dense out1
            pl.BlockSpec((tbp, GROUPS), lambda i: (i, 0)),   # compact scalar head
        ),
        compiler_params=pltpu.CompilerParams(
            dimension_semantics=("parallel",)),
        cost_estimate=pl.CostEstimate(
            flops=flops,
            transcendentals=4 * Bp * HIDDEN,
            bytes_accessed=bytes_accessed),
    )(xp, tp, w0x, w0t, wh, aux)

    out1 = out1_p.reshape(Bp, HIDDEN)[:B]      # free row-major un-pack
    out2 = out2_p.reshape(Bp, DIM_OUT)[:B]
    return out1, out2


# ----------------------------- parameter init / packing -----------------------------
def init_raw_params(key):
    """Deterministic init mimicking nn.Linear (uniform +-1/sqrt(fan_in)).

    Weights stored as (in_features, out_features) (transpose of PyTorch layout).
    """
    def linear(k, fan_in, fan_out):
        kw, kb = jax.random.split(k)
        bound = 1.0 / math.sqrt(fan_in)
        w = jax.random.uniform(kw, (fan_in, fan_out), jnp.float32, -bound, bound)
        b = jax.random.uniform(kb, (fan_out,), jnp.float32, -bound, bound)
        return w, b

    keys = jax.random.split(key, 5)
    w0, b0 = linear(keys[0], DIM_IN, HIDDEN)     # dense_layers[0]
    w1, b1 = linear(keys[1], HIDDEN, HIDDEN)     # dense_layers[1]
    w2, b2 = linear(keys[2], HIDDEN, HIDDEN)     # dense_layers[2]
    w3, b3 = linear(keys[3], HIDDEN, HIDDEN)     # dense_layers[3]
    w4, b4 = linear(keys[4], HIDDEN, DIM_OUT)    # dense_layers[4]
    return (w0, b0, w1, b1, w2, b2, w3, b3, w4, b4)


def pack_params(raw):
    """Host-side packing (done once, in float64 to preserve f32 accuracy):

      * fold standardization into the first layer:
          ((u - mean)/std) @ W0 + b0 == u @ (W0 / std_per_row) + (b0 - mean @ (W0/std))
      * build block-diagonal weights replicating each layer GROUPS=4 times so 4 batch
        rows run side-by-side in the 128 lanes (zeros keep groups exactly independent)
      * pack all small vectors (biases, last-layer row, tiled x4) into one (8,128) slab
    """
    w0, b0, w1, b1, w2, b2, w3, b3, w4, b4 = [np.asarray(p, np.float64) for p in raw]

    inv_std = np.array([1.0 / STD_X] * PROBLEM_DIM + [1.0 / STD_T], np.float64)[:, None]
    mean = np.array([MEAN_X] * PROBLEM_DIM + [MEAN_T], np.float64)

    w0f = w0 * inv_std                 # (DIM_IN, H) with standardization folded in
    b0f = b0 - mean @ w0f              # (H,)

    w0x_blk = np.zeros((GROUPS * PROBLEM_DIM, WIDE), np.float64)
    w0t_blk = np.zeros((GROUPS, WIDE), np.float64)
    wh_blk = np.zeros((3, WIDE, WIDE), np.float64)
    for g in range(GROUPS):
        c = g * HIDDEN
        w0x_blk[g * PROBLEM_DIM:(g + 1) * PROBLEM_DIM, c:c + HIDDEN] = w0f[:PROBLEM_DIM]
        w0t_blk[g, c:c + HIDDEN] = w0f[PROBLEM_DIM]
        for l, wl in enumerate((w1, w2, w3)):
            wh_blk[l, c:c + HIDDEN, c:c + HIDDEN] = wl

    aux = np.zeros((8, WIDE), np.float64)
    aux[0] = np.tile(b0f, GROUPS)
    aux[1] = np.tile(b1, GROUPS)
    aux[2] = np.tile(b2, GROUPS)
    aux[3] = np.tile(b3, GROUPS)
    aux[4] = np.tile(w4[:, 0], GROUPS)  # last-layer weight as a tiled lane row
    aux[5] = b4[0]                      # b4 broadcast across the row

    return (jnp.asarray(w0x_blk, jnp.float32),
            jnp.asarray(w0t_blk, jnp.float32),
            jnp.asarray(wh_blk, jnp.float32),
            jnp.asarray(aux, jnp.float32))


# ----------------------------- pure-JAX reference (faithful to the module) -----------------------------
def reference_forward(x, t, raw):
    w0, b0, w1, b1, w2, b2, w3, b3, w4, b4 = raw
    hp = jax.lax.Precision.HIGHEST
    xs = (x - MEAN_X) / STD_X
    ts = (t - MEAN_T) / STD_T
    inp = jnp.concatenate([xs, ts], axis=1)
    h = jnp.dot(inp, w0, precision=hp) + b0
    h = jnp.dot(jnp.tanh(h), w1, precision=hp) + b1         # i = 0
    h = jnp.dot(jnp.tanh(h), w2, precision=hp) + b2         # i = 1 -> out_tensors[0]
    o1 = h
    h = jnp.dot(jnp.tanh(h), w3, precision=hp) + b3         # i = 2
    o2 = jnp.dot(jnp.tanh(h), w4, precision=hp) + b4        # i = 3 -> out_tensors[1]
    return o1, o2


# ----------------------------- main -----------------------------
if __name__ == "__main__":
    key = jax.random.PRNGKey(0)
    kx, kt, kp = jax.random.split(key, 3)

    BATCH = 4096   # -> 4 grid steps of 1024 rows: exercises the grid, resident weights,
                   #    and gives both v7x TensorCores >= 2 steps each.
    x = jax.random.uniform(kx, (BATCH, PROBLEM_DIM), jnp.float32,
                           INTERVAL[0], INTERVAL[1])
    t = jax.random.uniform(kt, (BATCH, 1), jnp.float32, 0.0, TERMINAL_TIME)

    raw_params = init_raw_params(kp)
    packed_params = pack_params(raw_params)

    out1, out2 = levelnet_forward(x, t, packed_params)
    jax.block_until_ready((out1, out2))

    ref1, ref2 = reference_forward(x, t, raw_params)
    assert out1.shape == (BATCH, HIDDEN) and out2.shape == (BATCH, DIM_OUT)
    assert jnp.allclose(out1, ref1, atol=2e-5, rtol=2e-5), \
        float(jnp.max(jnp.abs(out1 - ref1)))
    assert jnp.allclose(out2, ref2, atol=2e-5, rtol=2e-5), \
        float(jnp.max(jnp.abs(out2 - ref2)))

    print("KERNEL_OK")
</pallas_src>

<mosaic_0001>
module attributes {stable_mosaic.version = 11 : i64} {
  func.func @levelnet_kernel(%arg0: i32, %arg1: memref<256x16xf32, #tpu.memory_space<vmem>>, %arg2: memref<256x4xf32, #tpu.memory_space<vmem>>, %arg3: memref<16x128xf32, #tpu.memory_space<vmem>>, %arg4: memref<4x128xf32, #tpu.memory_space<vmem>>, %arg5: memref<3x128x128xf32, #tpu.memory_space<vmem>>, %arg6: memref<8x128xf32, #tpu.memory_space<vmem>>, %arg7: memref<256x128xf32, #tpu.memory_space<vmem>>, %arg8: memref<256x4xf32, #tpu.memory_space<vmem>>) attributes {dimension_semantics = [#tpu.dimension_semantics<parallel>], iteration_bounds = array<i64: 4>, scalar_prefetch = 0 : i64, scratch_operands = 0 : i64, tpu.core_type = #tpu.core_type<tc>, window_params = [{transform_indices = @transform_0, window_bounds = array<i64: 256, 16>}, {transform_indices = @transform_1, window_bounds = array<i64: 256, 4>}, {pipeline_mode = #tpu.pipeline_mode<synchronous>, transform_indices = @transform_2, window_bounds = array<i64: 16, 128>}, {pipeline_mode = #tpu.pipeline_mode<synchronous>, transform_indices = @transform_3, window_bounds = array<i64: 4, 128>}, {pipeline_mode = #tpu.pipeline_mode<synchronous>, transform_indices = @transform_4, window_bounds = array<i64: 3, 128, 128>}, {pipeline_mode = #tpu.pipeline_mode<synchronous>, transform_indices = @transform_5, window_bounds = array<i64: 8, 128>}, {transform_indices = @transform_6, window_bounds = array<i64: 256, 128>}, {transform_indices = @transform_7, window_bounds = array<i64: 256, 4>}]} {
    %c0 = arith.constant 0 : index
    %c0_0 = arith.constant 0 : index
    %0 = vector.load %arg1[%c0, %c0_0] : memref<256x16xf32, #tpu.memory_space<vmem>>, vector<256x16xf32>
    %c0_1 = arith.constant 0 : index
    %c0_2 = arith.constant 0 : index
    %1 = vector.load %arg3[%c0_1, %c0_2] : memref<16x128xf32, #tpu.memory_space<vmem>>, vector<16x128xf32>
    %cst = arith.constant dense<0.000000e+00> : vector<256x128xf32>
    %2 = tpu.matmul %0, %1, %cst {dimension_numbers = #tpu.dot_dimension_numbers<[1], [0], [0], [1], [0, 0, 1, 1], [], []>, precision = #tpu.contract_precision<fp32>} : vector<256x16xf32>, vector<16x128xf32>, vector<256x128xf32> -> vector<256x128xf32>
    %c0_3 = arith.constant 0 : index
    %c0_4 = arith.constant 0 : index
    %3 = vector.load %arg2[%c0_3, %c0_4] : memref<256x4xf32, #tpu.memory_space<vmem>>, vector<256x4xf32>
    %c0_5 = arith.constant 0 : index
    %c0_6 = arith.constant 0 : index
    %4 = vector.load %arg4[%c0_5, %c0_6] : memref<4x128xf32, #tpu.memory_space<vmem>>, vector<4x128xf32>
    %cst_7 = arith.constant dense<0.000000e+00> : vector<256x128xf32>
    %5 = tpu.matmul %3, %4, %cst_7 {dimension_numbers = #tpu.dot_dimension_numbers<[1], [0], [0], [1], [0, 0, 1, 1], [], []>, precision = #tpu.contract_precision<fp32>} : vector<256x4xf32>, vector<4x128xf32>, vector<256x128xf32> -> vector<256x128xf32>
    %6 = arith.addf %2, %5 : vector<256x128xf32>
    %c0_8 = arith.constant 0 : index
    %c0_9 = arith.constant 0 : index
    %7 = vector.load %arg6[%c0_8, %c0_9] : memref<8x128xf32, #tpu.memory_space<vmem>>, vector<1x128xf32>
    %8 = vector.broadcast %7 : vector<1x128xf32> to vector<256x128xf32>
    %9 = arith.addf %6, %8 : vector<256x128xf32>
    %10 = math.tanh %9 : vector<256x128xf32>
    %c0_10 = arith.constant 0 : index
    %c0_11 = arith.constant 0 : index
    %c0_12 = arith.constant 0 : index
    %11 = vector.load %arg5[%c0_10, %c0_11, %c0_12] : memref<3x128x128xf32, #tpu.memory_space<vmem>>, vector<1x128x128xf32>
    %12 = vector.shape_cast %11 : vector<1x128x128xf32> to vector<128x128xf32>
    %cst_13 = arith.constant dense<0.000000e+00> : vector<256x128xf32>
    %13 = tpu.matmul %10, %12, %cst_13 {dimension_numbers = #tpu.dot_dimension_numbers<[1], [0], [0], [1], [0, 0, 1, 1], [], []>, precision = #tpu.contract_precision<fp32>} : vector<256x128xf32>, vector<128x128xf32>, vector<256x128xf32> -> vector<256x128xf32>
    %c1 = arith.constant 1 : index
    %c0_14 = arith.constant 0 : index
    %14 = vector.load %arg6[%c1, %c0_14] : memref<8x128xf32, #tpu.memory_space<vmem>>, vector<1x128xf32>
    %15 = vector.broadcast %14 : vector<1x128xf32> to vector<256x128xf32>
    %16 = arith.addf %13, %15 : vector<256x128xf32>
    %17 = math.tanh %16 : vector<256x128xf32>
    %c1_15 = arith.constant 1 : index
    %c0_16 = arith.constant 0 : index
    %c0_17 = arith.constant 0 : index
    %18 = vector.load %arg5[%c1_15, %c0_16, %c0_17] : memref<3x128x128xf32, #tpu.memory_space<vmem>>, vector<1x128x128xf32>
    %19 = vector.shape_cast %18 : vector<1x128x128xf32> to vector<128x128xf32>
    %cst_18 = arith.constant dense<0.000000e+00> : vector<256x128xf32>
    %20 = tpu.matmul %17, %19, %cst_18 {dimension_numbers = #tpu.dot_dimension_numbers<[1], [0], [0], [1], [0, 0, 1, 1], [], []>, precision = #tpu.contract_precision<fp32>} : vector<256x128xf32>, vector<128x128xf32>, vector<256x128xf32> -> vector<256x128xf32>
    %c2 = arith.constant 2 : index
    %c0_19 = arith.constant 0 : index
    %21 = vector.load %arg6[%c2, %c0_19] : memref<8x128xf32, #tpu.memory_space<vmem>>, vector<1x128xf32>
    %22 = vector.broadcast %21 : vector<1x128xf32> to vector<256x128xf32>
    %23 = arith.addf %20, %22 : vector<256x128xf32>
    %c0_20 = arith.constant 0 : index
    %c0_21 = arith.constant 0 : index
    %24 = vector.load %arg7[%c0_20, %c0_21] : memref<256x128xf32, #tpu.memory_space<vmem>>, vector<256x128xf32>
    tpu.vector_store %arg7[%c0_20, %c0_21], %23 {strides = array<i32>} : memref<256x128xf32, #tpu.memory_space<vmem>>, vector<256x128xf32>,
    %25 = math.tanh %23 : vector<256x128xf32>
    %c2_22 = arith.constant 2 : index
    %c0_23 = arith.constant 0 : index
    %c0_24 = arith.constant 0 : index
    %26 = vector.load %arg5[%c2_22, %c0_23, %c0_24] : memref<3x128x128xf32, #tpu.memory_space<vmem>>, vector<1x128x128xf32>
    %27 = vector.shape_cast %26 : vector<1x128x128xf32> to vector<128x128xf32>
    %cst_25 = arith.constant dense<0.000000e+00> : vector<256x128xf32>
    %28 = tpu.matmul %25, %27, %cst_25 {dimension_numbers = #tpu.dot_dimension_numbers<[1], [0], [0], [1], [0, 0, 1, 1], [], []>, precision = #tpu.contract_precision<fp32>} : vector<256x128xf32>, vector<128x128xf32>, vector<256x128xf32> -> vector<256x128xf32>
    %c3 = arith.constant 3 : index
    %c0_26 = arith.constant 0 : index
    %29 = vector.load %arg6[%c3, %c0_26] : memref<8x128xf32, #tpu.memory_space<vmem>>, vector<1x128xf32>
    %30 = vector.broadcast %29 : vector<1x128xf32> to vector<256x128xf32>
    %31 = arith.addf %28, %30 : vector<256x128xf32>
    %32 = math.tanh %31 : vector<256x128xf32>
    %c4 = arith.constant 4 : index
    %c0_27 = arith.constant 0 : index
    %33 = vector.load %arg6[%c4, %c0_27] : memref<8x128xf32, #tpu.memory_space<vmem>>, vector<1x128xf32>
    %34 = vector.broadcast %33 : vector<1x128xf32> to vector<256x128xf32>
    %35 = arith.mulf %32, %34 : vector<256x128xf32>
    %36 = vector.extract_strided_slice %35 {offsets = [0, 0], sizes = [256, 32], strides = [1, 1]} : vector<256x128xf32> to vector<256x32xf32>
    %cst_28 = arith.constant dense<0.000000e+00> : vector<256xf32>
    %37 = vector.multi_reduction <add>, %36, %cst_28 [1] : vector<256x32xf32> to vector<256xf32>
    %38 = vector.shape_cast %37 : vector<256xf32> to vector<256x1xf32>
    %39 = vector.extract_strided_slice %35 {offsets = [0, 32], sizes = [256, 32], strides = [1, 1]} : vector<256x128xf32> to vector<256x32xf32>
    %cst_29 = arith.constant dense<0.000000e+00> : vector<256xf32>
    %40 = vector.multi_reduction <add>, %39, %cst_29 [1] : vector<256x32xf32> to vector<256xf32>
    %41 = vector.shape_cast %40 : vector<256xf32> to vector<256x1xf32>
    %42 = vector.extract_strided_slice %35 {offsets = [0, 64], sizes = [256, 32], strides = [1, 1]} : vector<256x128xf32> to vector<256x32xf32>
    %cst_30 = arith.constant dense<0.000000e+00> : vector<256xf32>
    %43 = vector.multi_reduction <add>, %42, %cst_30 [1] : vector<256x32xf32> to vector<256xf32>
    %44 = vector.shape_cast %43 : vector<256xf32> to vector<256x1xf32>
    %45 = vector.extract_strided_slice %35 {offsets = [0, 96], sizes = [256, 32], strides = [1, 1]} : vector<256x128xf32> to vector<256x32xf32>
    %cst_31 = arith.constant dense<0.000000e+00> : vector<256xf32>
    %46 = vector.multi_reduction <add>, %45, %cst_31 [1] : vector<256x32xf32> to vector<256xf32>
    %47 = vector.shape_cast %46 : vector<256xf32> to vector<256x1xf32>
    %48 = tpu.concatenate %38, %41, %44, %47 in 1 : vector<256x1xf32>, vector<256x1xf32>, vector<256x1xf32>, vector<256x1xf32> -> vector<256x4xf32>
    %c5 = arith.constant 5 : index
    %c0_32 = arith.constant 0 : index
    %49 = vector.load %arg6[%c5, %c0_32] : memref<8x128xf32, #tpu.memory_space<vmem>>, vector<1x4xf32>
    %50 = vector.broadcast %49 : vector<1x4xf32> to vector<256x4xf32>
    %51 = arith.addf %48, %50 : vector<256x4xf32>
    %c0_33 = arith.constant 0 : index
    %c0_34 = arith.constant 0 : index
    %52 = vector.load %arg8[%c0_33, %c0_34] : memref<256x4xf32, #tpu.memory_space<vmem>>, vector<256x4xf32>
    tpu.vector_store %arg8[%c0_33, %c0_34], %51 {strides = array<i32>} : memref<256x4xf32, #tpu.memory_space<vmem>>, vector<256x4xf32>,
    return
  }
  func.func @transform_0(%arg0: i32) -> (i32, i32) {
    %c0_i32 = arith.constant 0 : i32
    %c0_i32_0 = arith.constant 0 : i32
    return %arg0, %c0_i32 : i32, i32
  }
  func.func @transform_1(%arg0: i32) -> (i32, i32) {
    %c0_i32 = arith.constant 0 : i32
    %c0_i32_0 = arith.constant 0 : i32
    return %arg0, %c0_i32 : i32, i32
  }
  func.func @transform_2(%arg0: i32) -> (i32, i32) {
    %c0_i32 = arith.constant 0 : i32
    %c0_i32_0 = arith.constant 0 : i32
    %c0_i32_1 = arith.constant 0 : i32
    return %c0_i32, %c0_i32_0 : i32, i32
  }
  func.func @transform_3(%arg0: i32) -> (i32, i32) {
    %c0_i32 = arith.constant 0 : i32
    %c0_i32_0 = arith.constant 0 : i32
    %c0_i32_1 = arith.constant 0 : i32
    return %c0_i32, %c0_i32_0 : i32, i32
  }
  func.func @transform_4(%arg0: i32) -> (i32, i32, i32) {
    %c0_i32 = arith.constant 0 : i32
    %c0_i32_0 = arith.constant 0 : i32
    %c0_i32_1 = arith.constant 0 : i32
    %c0_i32_2 = arith.constant 0 : i32
    return %c0_i32, %c0_i32_0, %c0_i32_1 : i32, i32, i32
  }
  func.func @transform_5(%arg0: i32) -> (i32, i32) {
    %c0_i32 = arith.constant 0 : i32
    %c0_i32_0 = arith.constant 0 : i32
    %c0_i32_1 = arith.constant 0 : i32
    return %c0_i32, %c0_i32_0 : i32, i32
  }
  func.func @transform_6(%arg0: i32) -> (i32, i32) {
    %c0_i32 = arith.constant 0 : i32
    %c0_i32_0 = arith.constant 0 : i32
    return %arg0, %c0_i32 : i32, i32
  }
  func.func @transform_7(%arg0: i32) -> (i32, i32) {
    %c0_i32 = arith.constant 0 : i32
    %c0_i32_0 = arith.constant 0 : i32
    return %arg0, %c0_i32 : i32, i32
  }
}

</mosaic_0001>

<bundles_post_ra>
// kernel: tpu_custom_call.1
= control target key start
LH: loop header
LB: loop body
LE: loop exit
PB: predicated region body
PF: predicated region fallthrough
CT: control target
= control target key end

     0   :  { %13 = vsyncpa [#allocation3], 0  ;;  %s21894_s0 = inlined_call_operand.vmem [shape: f32[1024,16], index: 0, kind: input, shape index: {}]   ;;  %s21895_s1 = inlined_call_operand.vmem [shape: f32[1024,4], index: 1, kind: input, shape index: {}]   ;;  %s21896_s2 = inlined_call_operand.vmem [shape: f32[16,128], index: 2, kind: input, shape index: {}]   ;;  %s21897_s3 = inlined_call_operand.vmem [shape: f32[4,128], index: 3, kind: input, shape index: {}]   ;;  %s21898_s4 = inlined_call_operand.vmem [shape: f32[3,128,128], index: 4, kind: input, shape index: {}]   ;;  %s21899_s5 = inlined_call_operand.vmem [shape: f32[8,128], index: 5, kind: input, shape index: {}]   ;;  %s21900_s6 = inlined_call_operand.hbm [shape: f32[1024,128], index: 6, kind: output, shape index: {0}]   ;;  %s21901_s7 = inlined_call_operand.vmem [shape: f32[1024,4], index: 7, kind: output, shape index: {1}]  }
   0x1   :  { %15 = vsyncpa [#allocation3 + $0x1], 0  ;;  %s16679_s24 = smov 0   ;;  %s16681_s25 = smov 0  }
   0x2   :  { %s16683_s26 = smov 0   ;;  %s16685_s27 = smov 0  }
   0x3 LB: > { %s16700_s28 = sadd.s32 4294967295, %s16631_s27   ;;  %s11368_s29 = sadd.s32 4294967294, %s16631_s27   ;;  %s16631_s27 = sphi %s16685_s27, %s23410_s27   ;;  %s16627_s26 = sphi %s16683_s26, %s23409_s26   ;;  %s16623_s25 = sphi %s16681_s25, %s23408_s25   ;;  %s16619_s24 = sphi %s16679_s24, %s23407_s24  }
   0x4   : > { %s16704_s30 = sadd.s32 1, %s16631_s27   ;;  %s164_s8 = sadd.s32 1, %s16627_s26 }
   0x5   : > { %s161_s9 = ssub.s32 %s16631_s27, %s16704_s30  ;;  %p174_p0 = scmp.ne.s32.totalorder %s16627_s26, %s16623_s25 }
   0x6   : > { %p162_p1 = scmp.eq.s32.totalorder %s161_s9, 0  ;;  %p175_p2 = scmp.eq.s32.totalorder %s16700_s28, 3 }
   0x7   : > { %p180_p3 = scmp.ne.s32.totalorder %s16623_s25, %s16619_s24  ;;  %p181_p4 = scmp.eq.s32.totalorder %s11368_s29, 3 }
   0x8   : > { %s16715_s10 = scalar_select %p162_p1, %s16627_s26, %s164_s8  }
   0x9   : > { %p16717_p5 = por %p175_p2, %p174_p0  ;;  %p16721_p6 = por %p181_p4, %p180_p3 }
   0xa   : > { %p11371_p7 = scmp.ge.s32.totalorder %s16631_s27, 1  ;;  %p255_p8 = scmp.lt.s32.totalorder %s16631_s27, 5 }
   0xc   : > { %p256_p9 = pnand %p11371_p7, %p255_p8 }
   0xe   : > { %259 = sbr.rel (%p256_p9) target bundleno = 3758 (0xeae), region = 44 }
  0x15   : > { %v382_v0 = vld [vmem:[%s21897_s3] sm:$0xf]  ;;  %vm480_vm0 = vcmask 1043456   ;;  %s11373_s15 = sshll.u32 %s16700_s28, 5  ;;  %vm383_vm1 = vcmask 31744   ;;  %vm2263_vm2 = vcmask 130048  }
  0x16   : > { %v482_v1 = vsel %vm480_vm0, %v382_v0, 0  ;;  %p298_p10 = scmp.lt.s32.totalorder %s11373_s15, 127  ;;  %s287_s23 = sand.u32 1, %s16623_s25   ;;  %vm10373_vm3 = vcmask 261120   ;;  %vm11078_vm4 = vcmask 7168   ;;  %vm11111_vm5 = vcmask 15360  }
  0x17   : > { %v16731_v2 = vand.u32 4294901760, %v482_v1  ;;  %s11372_s29 = sshll.u32 %s287_s23, 8  ;;  %s16634_s20 = smov 64   ;;  %vm11144_vm6 = vcmask 23552  }
  0x18   : > { %s23412_s15 = smov (!%p298_p10, %s11373_s15), 127  ;;  %s20088_s13 = scalar_lea.vmem [#allocation2], %s11372_s29 }
  0x19   : > { %12839 = vmatprep.subr.mxu0 %v16731_v2  ;;  %v16735_v3 = vsub.f32 %v482_v1, %v16731_v2  ;;  %12689 = vmatprep.subr.mxu1 %v16731_v2  ;;  %s16739_s16 = sshll.u32 %s23412_s15, 3  ;;  %s16635_s21 = smov 32  }
  0x1a   : > { %12840 = vmatpush3.msra.mxu0 %v16731_v2  ;;  %12690 = vmatpush3.msra.mxu1 %v16731_v2  ;;  %s16746_s19 = scalar_lea.vmem %s21895_s1, %s16739_s16  ;;  %s17211_s9 = scalar_lea.vmem %s21894_s0, %s16739_s16 }
  0x1b   : > { %22566 = vst [vmem:[#allocation5_spill] sm:$0xff] %v16735_v3  ;;  %v16749_v4 = vand.u32 4294901760, %v16735_v3  ;;  %v350_v5 = vld [vmem:[%s16746_s19] sm:$0xff]  ;;  %v351_v6 = vld [vmem:[%s16746_s19 + $0x8] sm:$0xff]  ;;  %v352_v7 = vld [vmem:[%s16746_s19 + $0x10] sm:$0xff]  ;;  %s21535_s14 = scalar_lea.vmem %s21901_s7, %s16739_s16  ;;  %s11422_s16 = sshll.u32 %s16700_s28, 12 }
  0x1c   : > { %v385_v8 = vsel %vm383_vm1, %v350_v5, 0  ;;  %v388_v9 = vsel %vm383_vm1, %v351_v6, 0  ;;  %v391_v10 = vsel %vm383_vm1, %v352_v7, 0  ;;  %v353_v11 = vld [vmem:[%s16746_s19 + $0x18] sm:$0xff]  ;;  %v354_v12 = vld [vmem:[%s16746_s19 + $0x20] sm:$0xff]  ;;  %v355_v13 = vld [vmem:[%s16746_s19 + $0x28] sm:$0xff]  ;;  %s21713_s18 = scalar_lea.hbm %s21900_s6, %s11422_s16 }
  0x1d   : > { %22567 = vst [vmem:[#allocation6_spill] sm:$0xff] %v16749_v4  ;;  %12889 = vmatprep.subr.mxu0 %v16749_v4  ;;  %v16761_v14 = vand.u32 4294901760, %v385_v8  ;;  %v16763_v15 = vand.u32 4294901760, %v388_v9  ;;  %v16765_v16 = vand.u32 4294901760, %v391_v10  ;;  %v394_v17 = vsel %vm383_vm1, %v353_v11, 0  ;;  %v356_v18 = vld [vmem:[%s16746_s19 + $0x30] sm:$0xff] }
  0x1e   : > { %v357_v19 = vld [vmem:[%s16746_s19 + $0x38] sm:$0xff]  ;;  %v16770_v20 = vand.u32 4294901760, %v394_v17  ;;  %v397_v21 = vsel %vm383_vm1, %v354_v12, 0  ;;  %v400_v22 = vsel %vm383_vm1, %v355_v13, 0  ;;  %v403_v23 = vsel %vm383_vm1, %v356_v18, 0  ;;  %v358_v32 = vld [vmem:[%s16746_s19 + $0x40] sm:$0xff] }
  0x1f   : > { %v16776_v24 = vsub.f32 %v385_v8, %v16761_v14  ;;  %v16779_v25 = vsub.f32 %v388_v9, %v16763_v15  ;;  %v16782_v26 = vsub.f32 %v391_v10, %v16765_v16  ;;  %v16784_v27 = vand.u32 4294901760, %v397_v21  ;;  %v359_v37 = vld [vmem:[%s16746_s19 + $0x48] sm:$0xff]  ;;  %v360_v39 = vld [vmem:[%s16746_s19 + $0x50] sm:$0xff]  ;;  %v361_v48 = vld [vmem:[%s16746_s19 + $0x58] sm:$0xff]  ;;  %s21723_s28 = scalar_lea.sflag [#allocation3], %s287_s23 }
  0x20   : > { %v16787_v28 = vsub.f32 %v394_v17, %v16770_v20  ;;  %v16789_v29 = vand.u32 4294901760, %v400_v22  ;;  %v16791_v30 = vand.u32 4294901760, %v403_v23  ;;  %v406_v31 = vsel %vm383_vm1, %v357_v19, 0  ;;  %v362_v49 = vld [vmem:[%s16746_s19 + $0x60] sm:$0xff]  ;;  %v363_v58 = vld [vmem:[%s16746_s19 + $0x68] sm:$0xff]  ;;  %v364_v59 = vld [vmem:[%s16746_s19 + $0x70] sm:$0xff] }
  0x21   : > { %22568 = vst [vmem:[#allocation7_spill] sm:$0xff] %v16779_v25  ;;  %22569 = vst [vmem:[#allocation8_spill] sm:$0xff] %v16782_v26  ;;  %v21920_v33 = vand.u32 4294901760, %v16776_v24  ;;  %v21918_v34 = vand.u32 4294901760, %v16779_v25  ;;  %v21917_v35 = vand.u32 4294901760, %v16782_v26  ;;  %v16799_v36 = vsub.f32 %v397_v21, %v16784_v27  ;;  %v365_v7 = vld [vmem:[%s16746_s19 + $0x78] sm:$0xff] }
  0x22   : > { %22570 = vst [vmem:[#allocation9_spill] sm:$0xff] %v16787_v28  ;;  %v409_v38 = vsel %vm383_vm1, %v358_v32, 0  ;;  %v21915_v40 = vand.u32 4294901760, %v16787_v28  ;;  %v16810_v41 = vsub.f32 %v400_v22, %v16789_v29  ;;  %v16812_v42 = vand.u32 4294901760, %v406_v31  ;;  %v366_v8 = vld [vmem:[%s16746_s19 + $0x80] sm:$0xff]  ;;  %v367_v21 = vld [vmem:[%s16746_s19 + $0x88] sm:$0xff] }
  0x23   : > { %22571 = vst [vmem:[#allocation10_spill] sm:$0xff] %v16799_v36  ;;  %12841 = vmatprep.mubr.f32.mxu0 %v21920_v33  ;;  %v21914_v43 = vand.u32 4294901760, %v16799_v36  ;;  %v16819_v44 = vsub.f32 %v403_v23, %v16791_v30  ;;  %v16821_v45 = vand.u32 4294901760, %v409_v38  ;;  %v412_v46 = vsel %vm383_vm1, %v359_v37, 0  ;;  %v368_v22 = vld [vmem:[%s16746_s19 + $0x90] sm:$0xff] }
  0x24   : > { %12842 = vmatmul.mubr.f32.vlgmr.msra.gmra.mrb[0].mxu0 %v21918_v34  ;;  %22572 = vst [vmem:[#allocation11_spill] sm:$0xff] %v16810_v41  ;;  %v415_v47 = vsel %vm383_vm1, %v360_v39, 0  ;;  %v21912_v50 = vand.u32 4294901760, %v16810_v41  ;;  %v16832_v51 = vsub.f32 %v406_v31, %v16812_v42  ;;  %v16834_v52 = vand.u32 4294901760, %v412_v46  ;;  %v378_v34 = vld [vmem:[%s16746_s19 + $0xe0] sm:$0xff] }
  0x25   : > { %12890 = vmatpush3.msra.mxu0 %v16749_v4  ;;  %12844 = vmatprep.mubr.f32.mxu0 %v21917_v35  ;;  %22573 = vst [vmem:[#allocation12_spill] sm:$0xff] %v16819_v44  ;;  %v21911_v53 = vand.u32 4294901760, %v16819_v44  ;;  %v16840_v54 = vsub.f32 %v409_v38, %v16821_v45  ;;  %v16842_v55 = vand.u32 4294901760, %v415_v47  ;;  %v418_v56 = vsel %vm383_vm1, %v361_v48, 0  ;;  %v369_v48 = vld [vmem:[%s16746_s19 + $0x98] sm:$0xff]  ;;  %v379_v4 = vld [vmem:[%s16746_s19 + $0xe8] sm:$0xff] }
  0x26   : > { %12939 = vmatprep.subr.mxu0 %v16731_v2  ;;  %22574 = vst [vmem:[#allocation13_spill] sm:$0xff] %v16832_v51  ;;  %v421_v57 = vsel %vm383_vm1, %v362_v49, 0  ;;  %v21909_v60 = vand.u32 4294901760, %v16832_v51  ;;  %v16852_v61 = vsub.f32 %v412_v46, %v16834_v52  ;;  %v16854_v62 = vand.u32 4294901760, %v418_v56  ;;  %v370_v49 = vld [vmem:[%s16746_s19 + $0xa0] sm:$0xff] }
  0x27   : > { %22575 = vst [vmem:[#allocation14_spill] sm:$0xff] %v16840_v54  ;;  %v21908_v63 = vand.u32 4294901760, %v16840_v54  ;;  %v16860_v0 = vsub.f32 %v415_v47, %v16842_v55  ;;  %v16862_v1 = vand.u32 4294901760, %v421_v57  ;;  %v424_v5 = vsel %vm383_vm1, %v363_v58, 0 }
  0x28   : > { %12845 = vmatmul.mubr.f32.gmra.mrb[2].mxu0 %v21915_v40  ;;  %22576 = vst [vmem:[#allocation15_spill] sm:$0xff] %v16852_v61  ;;  %v427_v6 = vsel %vm383_vm1, %v364_v59, 0  ;;  %v21906_v9 = vand.u32 4294901760, %v16852_v61  ;;  %v16872_v10 = vsub.f32 %v418_v56, %v16854_v62  ;;  %v16874_v11 = vand.u32 4294901760, %v424_v5 }
  0x29   : > { %12847 = vmatprep.mubr.f32.mxu0 %v21914_v43  ;;  %22577 = vst [vmem:[#allocation16_spill] sm:$0xff] %v16860_v0  ;;  %v21905_v12 = vand.u32 4294901760, %v16860_v0  ;;  %v16880_v13 = vsub.f32 %v421_v57, %v16862_v1  ;;  %v16882_v17 = vand.u32 4294901760, %v427_v6  ;;  %v430_v18 = vsel %vm383_vm1, %v365_v7, 0 }
  0x2a   : > { %22578 = vst [vmem:[#allocation17_spill] sm:$0xff] %v16872_v10  ;;  %v433_v19 = vsel %vm383_vm1, %v366_v8, 0  ;;  %v21903_v23 = vand.u32 4294901760, %v16872_v10  ;;  %v16892_v31 = vsub.f32 %v424_v5, %v16874_v11  ;;  %v16894_v32 = vand.u32 4294901760, %v430_v18 }
  0x2b   : > { %22579 = vst [vmem:[#allocation18_spill] sm:$0xff] %v16880_v13  ;;  %v21902_v37 = vand.u32 4294901760, %v16880_v13  ;;  %v16900_v38 = vsub.f32 %v427_v6, %v16882_v17  ;;  %v16902_v39 = vand.u32 4294901760, %v433_v19  ;;  %v436_v46 = vsel %vm383_vm1, %v367_v21, 0  ;;  %v372_v21 = vld [vmem:[%s16746_s19 + $0xb0] sm:$0xff] }
  0x2c   : > { %12848 = vmatmul.mubr.f32.gmra.mrb[4].mxu0 %v21912_v50  ;;  %22580 = vst [vmem:[#allocation19_spill] sm:$0xff] %v16892_v31  ;;  %v439_v47 = vsel %vm383_vm1, %v368_v22, 0  ;;  %v21904_v56 = vand.u32 4294901760, %v16892_v31  ;;  %v16912_v57 = vsub.f32 %v430_v18, %v16894_v32  ;;  %v16914_v58 = vand.u32 4294901760, %v436_v46  ;;  %v371_v18 = vld [vmem:[%s16746_s19 + $0xa8] sm:$0xff]  ;;  %v376_v50 = vld [vmem:[%s16746_s19 + $0xd0] sm:$0xff] }
  0x2d   : > { %12850 = vmatprep.mubr.f32.mxu0 %v21911_v53  ;;  %22581 = vst [vmem:[#allocation20_spill] sm:$0xff] %v16900_v38  ;;  %v21907_v59 = vand.u32 4294901760, %v16900_v38  ;;  %v16920_v5 = vsub.f32 %v433_v19, %v16902_v39  ;;  %v16922_v6 = vand.u32 4294901760, %v439_v47  ;;  %v442_v7 = vsel %vm383_vm1, %v369_v48, 0 }
  0x2e   : > { %22582 = vst [vmem:[#allocation21_spill] sm:$0xff] %v16912_v57  ;;  %v445_v8 = vsel %vm383_vm1, %v370_v49, 0  ;;  %v21910_v22 = vand.u32 4294901760, %v16912_v57  ;;  %v16934_v19 = vand.u32 4294901760, %v442_v7  ;;  %v463_v35 = vsel %vm383_vm1, %v376_v50, 0 }
  0x2f   : > { %22583 = vst [vmem:[#allocation22_spill] sm:$0xff] %v16920_v5  ;;  %v16940_v48 = vsub.f32 %v439_v47, %v16922_v6  ;;  %v16942_v49 = vand.u32 4294901760, %v445_v8  ;;  %v17002_v50 = vand.u32 4294901760, %v463_v35 }
  0x30   : > { %12851 = vmatmul.mubr.f32.gmra.mrb[6].mxu0 %v21909_v60 }
  0x31   : > { %12853 = vmatprep.mubr.f32.mxu0 %v21908_v63  ;;  %22585 = vst [vmem:[#allocation24_spill] sm:$0xff] %v16940_v48  ;;  %v16952_v63 = vsub.f32 %v442_v7, %v16934_v19  ;;  %v21919_v60 = vand.u32 4294901760, %v16940_v48  ;;  %v375_v7 = vld [vmem:[%s16746_s19 + $0xc8] sm:$0xff] }
  0x33   : > { %22586 = vst [vmem:[#allocation25_spill] sm:$0xff] %v16952_v63 }
  0x34   : > { %12854 = vmatmul.mubr.f32.gmra.mrb[8].mxu0 %v21906_v9  ;;  %v374_v9 = vld [vmem:[%s16746_s19 + $0xc0] sm:$0xff] }
  0x35   : > { %12856 = vmatprep.mubr.f32.mxu0 %v21905_v12  ;;  %v451_v12 = vsel %vm383_vm1, %v372_v21, 0  ;;  %v457_v53 = vsel %vm383_vm1, %v374_v9, 0 }
  0x36   : > { %v16962_v21 = vand.u32 4294901760, %v451_v12  ;;  %v16982_v9 = vand.u32 4294901760, %v457_v53 }
  0x38   : > { %12857 = vmatmul.mubr.f32.gmra.mrb[10].mxu0 %v21903_v23  ;;  %v21913_v23 = vand.u32 4294901760, %v16920_v5 }
  0x39   : > { %12859 = vmatprep.mubr.f32.mxu0 %v21902_v37  ;;  %v16932_v37 = vsub.f32 %v436_v46, %v16914_v58  ;;  %v373_v46 = vld [vmem:[%s16746_s19 + $0xb8] sm:$0xff] }
  0x3b   : > { %22584 = vst [vmem:[#allocation23_spill] sm:$0xff] %v16932_v37 }
  0x3c   : > { %12860 = vmatmul.mubr.f32.gmra.mrb[12].mxu0 %v21904_v56  ;;  %v448_v56 = vsel %vm383_vm1, %v371_v18, 0  ;;  %v16960_v18 = vsub.f32 %v445_v8, %v16942_v49 }
  0x3d   : > { %12862 = vmatprep.mubr.f32.mxu0 %v21907_v59  ;;  %v21916_v59 = vand.u32 4294901760, %v16932_v37  ;;  %v16954_v47 = vand.u32 4294901760, %v448_v56 }
  0x3e   : > { %22587 = vst [vmem:[#allocation26_spill] sm:$0xff] %v16960_v18  ;;  %v21929_v40 = vand.u32 4294901760, %v16960_v18  ;;  %v381_v18 = vld [vmem:[%s16746_s19 + $0xf8] sm:$0xff] }
  0x3f   : > { %v16972_v43 = vsub.f32 %v448_v56, %v16954_v47  ;;  %v377_v56 = vld [vmem:[%s16746_s19 + $0xd8] sm:$0xff] }
  0x40   : > { %12863 = vmatmul.mubr.f32.gmra.mrb[14].mxu0 %v21910_v22  ;;  %v454_v22 = vsel %vm383_vm1, %v373_v46, 0  ;;  %v16980_v46 = vsub.f32 %v451_v12, %v16962_v21 }
  0x41   : > { %12865 = vmatprep.mubr.f32.mxu0 %v21913_v23  ;;  %v21923_v23 = vand.u32 4294901760, %v16952_v63  ;;  %22588 = vst [vmem:[#allocation27_spill] sm:$0xff] %v16972_v43  ;;  %v16974_v8 = vand.u32 4294901760, %v454_v22  ;;  %v22592_v63 = vand.u32 4294901760, %v16972_v43  ;;  %v472_v43 = vsel %vm383_vm1, %v379_v4, 0 }
  0x42   : > { %22589 = vst [vmem:[#allocation28_spill] sm:$0xff] %v16980_v46 }
  0x43   : > { %v16992_v33 = vsub.f32 %v454_v22, %v16974_v8  ;;  %v380_v22 = vld [vmem:[%s16746_s19 + $0xf0] sm:$0xff]  ;;  %s16633_s19 = smov 96  }
  0x44   : > { %12866 = vmatmul.mubr.f32.gmra.mrb[16].mxu0 %v21916_v59  ;;  %v460_v59 = vsel %vm383_vm1, %v375_v7, 0  ;;  %v17000_v7 = vsub.f32 %v457_v53, %v16982_v9  ;;  %v22595_v53 = vand.u32 4294901760, %v16980_v46 }
  0x45   : > { %12868 = vmatprep.mubr.f32.mxu0 %v21919_v60  ;;  %22590 = vst [vmem:[#allocation29_spill] sm:$0xff] %v16992_v33  ;;  %v16994_v12 = vand.u32 4294901760, %v460_v59  ;;  %v469_v60 = vsel %vm383_vm1, %v378_v34, 0 }
  0x46   : > { %22591 = vst [vmem:[#allocation30_spill] sm:$0xff] %v17000_v7  ;;  %v21942_v48 = vand.u32 4294901760, %v17000_v7  ;;  %v17022_v34 = vand.u32 4294901760, %v469_v60 }
  0x48   : > { %12869 = vmatmul.mubr.f32.gmra.mrb[18].mxu0 %v21923_v23  ;;  %v466_v23 = vsel %vm383_vm1, %v377_v56, 0  ;;  %v17020_v56 = vsub.f32 %v463_v35, %v17002_v50  ;;  %22597 = vst [vmem:[#allocation34_spill] sm:$0xff] %v17022_v34  ;;  %v17039_v4 = vsub.f32 %v469_v60, %v17022_v34 }
  0x49   : > { %12871 = vmatprep.mubr.f32.mxu0 %v21929_v40  ;;  %v17012_v40 = vsub.f32 %v460_v59, %v16994_v12  ;;  %v17014_v3 = vand.u32 4294901760, %v466_v23  ;;  %v22598_v59 = vand.u32 4294901760, %v16992_v33  ;;  %v478_v33 = vsel %vm383_vm1, %v381_v18, 0 }
  0x4a   : > { %22596 = vst [vmem:[#allocation33_spill] sm:$0xff] %v17020_v56  ;;  %v21944_v35 = vand.u32 4294901760, %v17020_v56  ;;  %22601 = vst [vmem:[#allocation37_spill] sm:$0xff] %v17039_v4  ;;  %v17050_v5 = vand.u32 4294901760, %v478_v33  ;;  %v21946_v60 = vand.u32 4294901760, %v17039_v4 }
  0x4b   : > { %22593 = vst [vmem:[#allocation31_spill] sm:$0xff] %v17012_v40  ;;  %22594 = vst [vmem:[#allocation32_spill] sm:$0xff] %v17014_v3  ;;  %v21943_v37 = vand.u32 4294901760, %v17012_v40  ;;  %v17031_v46 = vsub.f32 %v466_v23, %v17014_v3 }
  0x4c   : > { %12872 = vmatmul.mubr.f32.gmra.mrb[20].mxu0 %v22592_v63  ;;  %v475_v63 = vsel %vm383_vm1, %v380_v22, 0 }
  0x4d   : > { %12874 = vmatprep.mubr.f32.mxu0 %v22595_v53  ;;  %22599 = vst [vmem:[#allocation35_spill] sm:$0xff] %v17031_v46  ;;  %v17033_v53 = vand.u32 4294901760, %v472_v43  ;;  %v17041_v22 = vand.u32 4294901760, %v475_v63  ;;  %v21945_v23 = vand.u32 4294901760, %v17031_v46 }
  0x4f   : > { %22600 = vst [vmem:[#allocation36_spill] sm:$0xff] %v17033_v53 }
  0x50   : > { %12875 = vmatmul.mubr.f32.gmra.mrb[22].mxu0 %v22598_v59  ;;  %v17048_v59 = vsub.f32 %v472_v43, %v17033_v53 }
  0x51   : > { %12877 = vmatprep.mubr.f32.mxu0 %v21942_v48  ;;  %v17056_v48 = vsub.f32 %v475_v63, %v17041_v22  ;;  %v349_v63 = vld [vmem:[%s21896_s2 + $0x8] sm:$0xff] }
  0x52   : > { %22602 = vst [vmem:[#allocation38_spill] sm:$0xff] %v17048_v59  ;;  %v21951_v18 = vand.u32 4294901760, %v17048_v59 }
  0x53   : > { %22603 = vst [vmem:[#allocation39_spill] sm:$0xff] %v17056_v48  ;;  %v21950_v43 = vand.u32 4294901760, %v17056_v48 }
  0x54   : > { %12878 = vmatmul.mubr.f32.gmra.mrb[24].mxu0 %v21943_v37  ;;  %v17062_v37 = vsub.f32 %v478_v33, %v17050_v5 }
  0x55   : > { %12880 = vmatprep.mubr.f32.mxu0 %v21944_v35  ;;  %v348_v35 = vld [vmem:[%s21896_s2] sm:$0xff] }
  0x56   : > { %22604 = vst [vmem:[#allocation40_spill] sm:$0xff] %v17062_v37  ;;  %v2361_v33 = vand.u32 4294901760, %v348_v35 }
  0x58   : > { %12881 = vmatmul.mubr.f32.gmra.mrb[26].mxu0 %v21945_v23  ;;  %v21949_v23 = vand.u32 4294901760, %v17062_v37 }
  0x59   : > { %12883 = vmatprep.mubr.f32.mxu0 %v21946_v60  ;;  %v2364_v60 = vand.u32 4294901760, %v349_v63 }
  0x5b   : > { %v17081_v4 = vpack.c.bf16 %v2364_v60, %v2361_v33 }
  0x5c   : > { %12884 = vmatmul.mubr.f32.gmra.mrb[28].mxu0 %v21951_v18 }
  0x5d   : > { %12886 = vmatprep.mubr.f32.mxu0 %v21950_v43  ;;  %22605 = vst [vmem:[#allocation41_spill] sm:$0xff] %v17081_v4 }
  0x60   : > { %12887 = vmatmul.mubr.f32.gmra.mrb[30].mxu0 %v21949_v23  ;;  %v17111_v23 = vsub.f32 %v349_v63, %v2364_v60 }
  0x61   : > { %12891 = vmatprep.mubr.f32.mxu0 %v16761_v14 }
  0x62   : > { %22607 = vst [vmem:[#allocation43_spill] sm:$0xff] %v17111_v23  ;;  %v21961_v18 = vand.u32 4294901760, %v17111_v23 }
  0x64   : > { %12892 = vmatmul.mubr.f32.vlgmr.msra.gmra.mrb[0].mxu0 %v16763_v15 }
  0x65   : > { %12940 = vmatpush3.msra.mxu0 %v16731_v2  ;;  %12894 = vmatprep.mubr.f32.mxu0 %v16765_v16  ;;  %v17109_v2 = vsub.f32 %v348_v35, %v2361_v33  ;;  %v2758_v35 = vsub.f32 %v17111_v23, %v21961_v18  ;;  %v22608_v33 = vand.u32 4294901760, %v16776_v24 }
  0x66   : > { %14742 = vmatprep.subr.bf16.mxu0 %v17081_v4 }
  0x67   : > { %22606 = vst [vmem:[#allocation42_spill] sm:$0xff] %v17109_v2  ;;  %v21960_v43 = vand.u32 4294901760, %v17109_v2  ;;  %v2759_v63 = vand.u32 4294901760, %v2758_v35  ;;  %v553_v48 = vsub.f32 %v16776_v24, %v22608_v33  ;;  %v22610_v35 = vand.u32 4294901760, %v16782_v26 }
  0x68   : > { %12895 = vmatmul.mubr.f32.gmra.mrb[2].mxu0 %v16770_v20 }
  0x69   : > { %12897 = vmatprep.mubr.f32.mxu0 %v16784_v27  ;;  %v2751_v37 = vsub.f32 %v17109_v2, %v21960_v43  ;;  %v554_v43 = vand.u32 4294901760, %v553_v48  ;;  %v573_v33 = vsub.f32 %v16782_v26, %v22610_v35 }
  0x6b   : > { %v2752_v60 = vand.u32 4294901760, %v2751_v37  ;;  %12691 = vmatprep.mubr.f32.mxu1 %v554_v43  ;;  %v574_v48 = vand.u32 4294901760, %v573_v33  ;;  %v22612_v43 = vand.u32 4294901760, %v16799_v36 }
  0x6c   : > { %12898 = vmatmul.mubr.f32.gmra.mrb[4].mxu0 %v16789_v29 }
  0x6d   : > { %12900 = vmatprep.mubr.f32.mxu0 %v16791_v30  ;;  %v17139_v37 = vpack.c.bf16 %v2759_v63, %v2752_v60  ;;  %v593_v60 = vsub.f32 %v16799_v36, %v22612_v43 }
  0x6f   : > { %v594_v35 = vand.u32 4294901760, %v593_v60  ;;  %v22616_v60 = vand.u32 4294901760, %v16840_v54 }
  0x70   : > { %12901 = vmatmul.mubr.f32.gmra.mrb[6].mxu0 %v16812_v42 }
  0x71   : > { %12903 = vmatprep.mubr.f32.mxu0 %v16821_v45 }
  0x74   : > { %12904 = vmatmul.mubr.f32.gmra.mrb[8].mxu0 %v16834_v52 }
  0x75   : > { %12906 = vmatprep.mubr.f32.mxu0 %v16842_v55 }
  0x78   : > { %12907 = vmatmul.mubr.f32.gmra.mrb[10].mxu0 %v16854_v62 }
  0x79   : > { %12909 = vmatprep.mubr.f32.mxu0 %v16862_v1 }
  0x7c   : > { %12910 = vmatmul.mubr.f32.gmra.mrb[12].mxu0 %v16874_v11 }
  0x7d   : > { %12912 = vmatprep.mubr.f32.mxu0 %v16882_v17 }
  0x80   : > { %12913 = vmatmul.mubr.f32.gmra.mrb[14].mxu0 %v16894_v32 }
  0x81   : > { %12915 = vmatprep.mubr.f32.mxu0 %v16902_v39 }
  0x84   : > { %12916 = vmatmul.mubr.f32.gmra.mrb[16].mxu0 %v16914_v58 }
  0x85   : > { %12918 = vmatprep.mubr.f32.mxu0 %v16922_v6 }
  0x88   : > { %12919 = vmatmul.mubr.f32.gmra.mrb[18].mxu0 %v16934_v19 }
  0x89   : > { %12921 = vmatprep.mubr.f32.mxu0 %v16942_v49 }
  0x8c   : > { %12922 = vmatmul.mubr.f32.gmra.mrb[20].mxu0 %v16954_v47 }
  0x8d   : > { %12924 = vmatprep.mubr.f32.mxu0 %v16962_v21 }
  0x90   : > { %12925 = vmatmul.mubr.f32.gmra.mrb[22].mxu0 %v16974_v8 }
  0x91   : > { %12927 = vmatprep.mubr.f32.mxu0 %v16982_v9 }
  0x94   : > { %12928 = vmatmul.mubr.f32.gmra.mrb[24].mxu0 %v16994_v12 }
  0x95   : > { %12930 = vmatprep.mubr.f32.mxu0 %v17002_v50 }
  0x98   : > { %12931 = vmatmul.mubr.f32.gmra.mrb[26].mxu0 %v17014_v3 }
  0x99   : > { %12933 = vmatprep.mubr.f32.mxu0 %v17022_v34  ;;  %v22609_v34 = vand.u32 4294901760, %v16779_v25 }
  0x9b   : > { %v563_v3 = vsub.f32 %v16779_v25, %v22609_v34  ;;  %v22611_v34 = vand.u32 4294901760, %v16787_v28 }
  0x9c   : > { %12934 = vmatmul.mubr.f32.gmra.mrb[28].mxu0 %v17033_v53  ;;  %v17137_v53 = vpack.c.bf16 %v17111_v23, %v17109_v2  ;;  %v22626_v23 = vld [vmem:[#allocation23_spill] sm:$0xff] }
  0x9d   : > { %12936 = vmatprep.mubr.f32.mxu0 %v17041_v22  ;;  %v564_v18 = vand.u32 4294901760, %v563_v3  ;;  %v583_v25 = vsub.f32 %v16787_v28, %v22611_v34  ;;  %v22627_v2 = vand.u32 4294901760, %v22626_v23 }
  0x9f   : > { %12692 = vmatmul.mubr.f32.vlgmr.msra.gmra.mrb[0].mxu1 %v564_v18  ;;  %v584_v3 = vand.u32 4294901760, %v583_v25  ;;  %v22613_v18 = vand.u32 4294901760, %v16810_v41  ;;  %v22614_v25 = vand.u32 4294901760, %v16819_v44 }
  0xa0   : > { %12937 = vmatmul.mubr.f32.gmra.mrb[30].mxu0 %v17050_v5  ;;  %12694 = vmatprep.mubr.f32.mxu1 %v574_v48  ;;  %v22615_v48 = vand.u32 4294901760, %v16832_v51 }
  0xa1   : > { %12941 = vmatprep.mubr.f32.mxu0 %v16761_v14  ;;  %v603_v63 = vsub.f32 %v16810_v41, %v22613_v18  ;;  %v613_v34 = vsub.f32 %v16819_v44, %v22614_v25  ;;  %v22658_v44 = vld [vmem:[#allocation34_spill] sm:$0xff] }
  0xa3   : > { %12695 = vmatmul.mubr.f32.gmra.mrb[2].mxu1 %v584_v3  ;;  %v604_v33 = vand.u32 4294901760, %v603_v63  ;;  %v623_v3 = vsub.f32 %v16832_v51, %v22615_v48  ;;  %v614_v43 = vand.u32 4294901760, %v613_v34  ;;  %v633_v63 = vsub.f32 %v16840_v54, %v22616_v60  ;;  %v22652_v51 = vld [vmem:[#allocation37_spill] sm:$0xff] }
  0xa4   : > { %12942 = vmatmul.mubr.f32.vlgmr.msra.gmra.mrb[0].mxu0 %v16763_v15  ;;  %12697 = vmatprep.mubr.f32.mxu1 %v594_v35  ;;  %v22617_v35 = vand.u32 4294901760, %v16852_v61  ;;  %v22618_v34 = vand.u32 4294901760, %v16860_v0 }
  0xa5   : > { %14744 = vmatpush3.bf16.msra.mxu0 %v17081_v4  ;;  %12944 = vmatprep.mubr.f32.mxu0 %v16765_v16  ;;  %v624_v18 = vand.u32 4294901760, %v623_v3  ;;  %v634_v25 = vand.u32 4294901760, %v633_v63  ;;  %v22620_v63 = vand.u32 4294901760, %v16880_v13  ;;  %v22666_v4 = vld [vmem:[#allocation36_spill] sm:$0xff] }
  0xa6   : > { %14746 = vmatprep.subr.bf16.mxu0 %v17139_v37  ;;  %v653_v3 = vsub.f32 %v16860_v0, %v22618_v34 }
  0xa7   : > { %12698 = vmatmul.mubr.f32.gmra.mrb[4].mxu1 %v604_v33  ;;  %v643_v33 = vsub.f32 %v16852_v61, %v22617_v35 }
  0xa8   : > { %12945 = vmatmul.mubr.f32.gmra.mrb[2].mxu0 %v16770_v20  ;;  %12700 = vmatprep.mubr.f32.mxu1 %v614_v43  ;;  %v22619_v43 = vand.u32 4294901760, %v16872_v10  ;;  %v654_v60 = vand.u32 4294901760, %v653_v3  ;;  %v22622_v3 = vand.u32 4294901760, %v16900_v38 }
  0xa9   : > { %12947 = vmatprep.mubr.f32.mxu0 %v16784_v27  ;;  %v644_v48 = vand.u32 4294901760, %v643_v33  ;;  %v673_v33 = vsub.f32 %v16880_v13, %v22620_v63  ;;  %v319_v13 = vld [vmem:[%s17211_s9 + $0x18] sm:$0xff] }
  0xab   : > { %12701 = vmatmul.mubr.f32.gmra.mrb[6].mxu1 %v624_v18  ;;  %v663_v18 = vsub.f32 %v16872_v10, %v22619_v43  ;;  %v674_v34 = vand.u32 4294901760, %v673_v33 }
  0xac   : > { %12948 = vmatmul.mubr.f32.gmra.mrb[4].mxu0 %v16789_v29  ;;  %12703 = vmatprep.mubr.f32.mxu1 %v634_v25  ;;  %v22621_v25 = vand.u32 4294901760, %v16892_v31 }
  0xad   : > { %12950 = vmatprep.mubr.f32.mxu0 %v16791_v30  ;;  %v664_v35 = vand.u32 4294901760, %v663_v18  ;;  %v693_v18 = vsub.f32 %v16900_v38, %v22622_v3 }
  0xaf   : > { %12704 = vmatmul.mubr.f32.gmra.mrb[8].mxu1 %v644_v48  ;;  %v683_v48 = vsub.f32 %v16892_v31, %v22621_v25  ;;  %v694_v63 = vand.u32 4294901760, %v693_v18  ;;  %v22624_v25 = vld [vmem:[#allocation22_spill] sm:$0xff] }
  0xb0   : > { %12951 = vmatmul.mubr.f32.gmra.mrb[6].mxu0 %v16812_v42  ;;  %12706 = vmatprep.mubr.f32.mxu1 %v654_v60  ;;  %v22623_v60 = vand.u32 4294901760, %v16912_v57 }
  0xb1   : > { %12953 = vmatprep.mubr.f32.mxu0 %v16821_v45  ;;  %v684_v43 = vand.u32 4294901760, %v683_v48  ;;  %v22625_v48 = vand.u32 4294901760, %v22624_v25 }
  0xb3   : > { %12707 = vmatmul.mubr.f32.gmra.mrb[10].mxu1 %v664_v35  ;;  %v703_v35 = vsub.f32 %v16912_v57, %v22623_v60  ;;  %v22628_v60 = vld [vmem:[#allocation24_spill] sm:$0xff] }
  0xb4   : > { %12954 = vmatmul.mubr.f32.gmra.mrb[8].mxu0 %v16834_v52  ;;  %12709 = vmatprep.mubr.f32.mxu1 %v674_v34  ;;  %v713_v34 = vsub.f32 %v22624_v25, %v22625_v48 }
  0xb5   : > { %12956 = vmatprep.mubr.f32.mxu0 %v16842_v55  ;;  %v704_v33 = vand.u32 4294901760, %v703_v35  ;;  %v22629_v35 = vand.u32 4294901760, %v22628_v60 }
  0xb6   : > { %v714_v3 = vand.u32 4294901760, %v713_v34  ;;  %v316_v34 = vld [vmem:[%s17211_s9] sm:$0xff] }
  0xb7   : > { %12710 = vmatmul.mubr.f32.gmra.mrb[12].mxu1 %v684_v43  ;;  %v723_v43 = vsub.f32 %v22626_v23, %v22627_v2  ;;  %v22630_v2 = vld [vmem:[#allocation25_spill] sm:$0xff] }
  0xb8   : > { %12957 = vmatmul.mubr.f32.gmra.mrb[10].mxu0 %v16854_v62  ;;  %12712 = vmatprep.mubr.f32.mxu1 %v694_v63  ;;  %v733_v63 = vsub.f32 %v22628_v60, %v22629_v35  ;;  %v22634_v35 = vld [vmem:[#allocation27_spill] sm:$0xff] }
  0xb9   : > { %12959 = vmatprep.mubr.f32.mxu0 %v16862_v1  ;;  %v724_v18 = vand.u32 4294901760, %v723_v43  ;;  %v22635_v60 = vand.u32 4294901760, %v22634_v35 }
  0xba   : > { %v734_v23 = vand.u32 4294901760, %v733_v63 }
  0xbb   : > { %12713 = vmatmul.mubr.f32.gmra.mrb[14].mxu1 %v704_v33  ;;  %v22631_v33 = vand.u32 4294901760, %v22630_v2 }
  0xbc   : > { %12960 = vmatmul.mubr.f32.gmra.mrb[12].mxu0 %v16874_v11  ;;  %12715 = vmatprep.mubr.f32.mxu1 %v714_v3  ;;  %v22632_v3 = vld [vmem:[#allocation26_spill] sm:$0xff] }
  0xbd   : > { %12962 = vmatprep.mubr.f32.mxu0 %v16882_v17  ;;  %v743_v48 = vsub.f32 %v22630_v2, %v22631_v33  ;;  %v22633_v25 = vand.u32 4294901760, %v22632_v3  ;;  %v763_v33 = vsub.f32 %v22634_v35, %v22635_v60  ;;  %v317_v2 = vld [vmem:[%s17211_s9 + $0x8] sm:$0xff]  ;;  %v22638_v60 = vld [vmem:[#allocation29_spill] sm:$0xff] }
  0xbe   : > { %v22639_v35 = vand.u32 4294901760, %v22638_v60 }
  0xbf   : > { %12716 = vmatmul.mubr.f32.gmra.mrb[16].mxu1 %v724_v18  ;;  %v744_v43 = vand.u32 4294901760, %v743_v48  ;;  %v753_v57 = vsub.f32 %v22632_v3, %v22633_v25  ;;  %v2265_v18 = vsel %vm2263_vm2, %v316_v34, 0  ;;  %v318_v48 = vld [vmem:[%s17211_s9 + $0x10] sm:$0xff]  ;;  %v22636_v25 = vld [vmem:[#allocation28_spill] sm:$0xff]  ;;  %v2268_v3 = vsel %vm2263_vm2, %v317_v2, 0  ;;  %v320_v2 = vld [vmem:[%s17211_s9 + $0x20] sm:$0xff] }
  0xc0   : > { %12963 = vmatmul.mubr.f32.gmra.mrb[14].mxu0 %v16894_v32  ;;  %12718 = vmatprep.mubr.f32.mxu1 %v734_v23  ;;  %v764_v23 = vand.u32 4294901760, %v763_v33  ;;  %v17233_v38 = vand.u32 4294901760, %v2265_v18  ;;  %v22637_v34 = vand.u32 4294901760, %v22636_v25  ;;  %v783_v31 = vsub.f32 %v22638_v60, %v22639_v35 }
  0xc1   : > { %12965 = vmatprep.mubr.f32.mxu0 %v16902_v39  ;;  %v754_v63 = vand.u32 4294901760, %v753_v57  ;;  %v2271_v57 = vsel %vm2263_vm2, %v318_v48, 0  ;;  %v22641_v35 = vand.u32 4294901760, %v17000_v7  ;;  %v2274_v48 = vsel %vm2263_vm2, %v319_v13, 0 }
  0xc2   : > { %v17247_v10 = vsub.f32 %v2265_v18, %v17233_v38  ;;  %v17255_v60 = vand.u32 4294901760, %v2271_v57  ;;  %v17269_v13 = vand.u32 4294901760, %v2274_v48 }
  0xc3   : > { %12719 = vmatmul.mubr.f32.gmra.mrb[18].mxu1 %v744_v43  ;;  %v773_v43 = vsub.f32 %v22636_v25, %v22637_v34  ;;  %v17249_v34 = vand.u32 4294901760, %v2268_v3  ;;  %v321_v25 = vld [vmem:[%s17211_s9 + $0x28] sm:$0xff] }
  0xc4   : > { %12966 = vmatmul.mubr.f32.gmra.mrb[16].mxu0 %v16914_v58  ;;  %12721 = vmatprep.mubr.f32.mxu1 %v754_v63  ;;  %v784_v63 = vand.u32 4294901760, %v783_v31  ;;  %22640 = vst [vmem:[#allocation44_spill] sm:$0xff] %v17247_v10  ;;  %22642 = vst [vmem:[#allocation45_spill] sm:$0xff] %v17255_v60 }
  0xc5   : > { %12968 = vmatprep.mubr.f32.mxu0 %v16922_v6  ;;  %v774_v33 = vand.u32 4294901760, %v773_v43  ;;  %v22643_v43 = vand.u32 4294901760, %v17012_v40  ;;  %22645 = vst [vmem:[#allocation47_spill] sm:$0xff] %v17269_v13 }
  0xc7   : > { %12722 = vmatmul.mubr.f32.gmra.mrb[20].mxu1 %v764_v23  ;;  %v793_v23 = vsub.f32 %v17000_v7, %v22641_v35  ;;  %v803_v31 = vsub.f32 %v17012_v40, %v22643_v43  ;;  %v17267_v7 = vsub.f32 %v2268_v3, %v17249_v34  ;;  %v22646_v43 = vand.u32 4294901760, %v17020_v56 }
  0xc8   : > { %12969 = vmatmul.mubr.f32.gmra.mrb[18].mxu0 %v16934_v19  ;;  %12724 = vmatprep.mubr.f32.mxu1 %v774_v33  ;;  %v2277_v33 = vsel %vm2263_vm2, %v320_v2, 0  ;;  %v17276_v40 = vsub.f32 %v2271_v57, %v17255_v60  ;;  %v22648_v2 = vand.u32 4294901760, %v17031_v46  ;;  %v2280_v35 = vsel %vm2263_vm2, %v321_v25, 0 }
  0xc9   : > { %12971 = vmatprep.mubr.f32.mxu0 %v16942_v49  ;;  %v794_v18 = vand.u32 4294901760, %v793_v23  ;;  %v804_v0 = vand.u32 4294901760, %v803_v31  ;;  %22644 = vst [vmem:[#allocation46_spill] sm:$0xff] %v17267_v7  ;;  %v813_v23 = vsub.f32 %v17020_v56, %v22646_v43  ;;  %v17282_v3 = vand.u32 4294901760, %v2277_v33  ;;  %v323_v43 = vld [vmem:[%s17211_s9 + $0x38] sm:$0xff] }
  0xca   : > { %22647 = vst [vmem:[#allocation48_spill] sm:$0xff] %v17276_v40  ;;  %v823_v31 = vsub.f32 %v17031_v46, %v22648_v2  ;;  %v22650_v57 = vand.u32 4294901760, %v17247_v10  ;;  %v17293_v2 = vsub.f32 %v2274_v48, %v17269_v13  ;;  %v324_v46 = vld [vmem:[%s17211_s9 + $0x40] sm:$0xff]  ;;  %v22653_v25 = vand.u32 4294901760, %v22652_v51  ;;  %v325_v13 = vld [vmem:[%s17211_s9 + $0x48] sm:$0xff] }
  0xcb   : > { %12725 = vmatmul.mubr.f32.gmra.mrb[22].mxu1 %v784_v63  ;;  %v322_v63 = vld [vmem:[%s17211_s9 + $0x30] sm:$0xff]  ;;  %22649 = vst [vmem:[#allocation49_spill] sm:$0xff] %v17282_v3  ;;  %v17307_v48 = vsub.f32 %v2277_v33, %v17282_v3  ;;  %v22659_v36 = vand.u32 4294901760, %v17267_v7 }
  0xcc   : > { %12972 = vmatmul.mubr.f32.gmra.mrb[20].mxu0 %v16954_v47  ;;  %12727 = vmatprep.mubr.f32.mxu1 %v794_v18  ;;  %v814_v18 = vand.u32 4294901760, %v813_v23  ;;  %v2283_v61 = vsel %vm2263_vm2, %v322_v63, 0  ;;  %v824_v56 = vand.u32 4294901760, %v823_v31  ;;  %22651 = vst [vmem:[#allocation50_spill] sm:$0xff] %v17293_v2  ;;  %v833_v23 = vsub.f32 %v22652_v51, %v22653_v25  ;;  %v326_v33 = vld [vmem:[%s17211_s9 + $0x50] sm:$0xff] }
  0xcd   : > { %12974 = vmatprep.mubr.f32.mxu0 %v16962_v21  ;;  %v17300_v31 = vand.u32 4294901760, %v2280_v35  ;;  %v2286_v25 = vsel %vm2263_vm2, %v323_v43, 0  ;;  %v2289_v63 = vsel %vm2263_vm2, %v324_v46, 0  ;;  %v22660_v3 = vld [vmem:[#allocation39_spill] sm:$0xff] }
  0xce   : > { %v834_v51 = vand.u32 4294901760, %v833_v23  ;;  %v22661_v28 = vand.u32 4294901760, %v22660_v3  ;;  %v22662_v23 = vand.u32 4294901760, %v17276_v40 }
  0xcf   : > { %12728 = vmatmul.mubr.f32.gmra.mrb[24].mxu1 %v804_v0  ;;  %v2430_v0 = vsub.f32 %v17247_v10, %v22650_v57  ;;  %22654 = vst [vmem:[#allocation51_spill] sm:$0xff] %v17300_v31  ;;  %v22655_v57 = vand.u32 4294901760, %v17048_v59  ;;  %v22656_v10 = vld [vmem:[#allocation32_spill] sm:$0xff] }
  0xd0   : > { %12975 = vmatmul.mubr.f32.gmra.mrb[22].mxu0 %v16974_v8  ;;  %12730 = vmatprep.mubr.f32.mxu1 %v814_v18  ;;  %v17309_v18 = vand.u32 4294901760, %v2283_v61  ;;  %v853_v43 = vsub.f32 %v22660_v3, %v22661_v28  ;;  %v2450_v46 = vsub.f32 %v17276_v40, %v22662_v23  ;;  %v17339_v3 = vand.u32 4294901760, %v2289_v63  ;;  %v327_v40 = vld [vmem:[%s17211_s9 + $0x58] sm:$0xff] }
  0xd1   : > { %12977 = vmatprep.mubr.f32.mxu0 %v16982_v9  ;;  %v843_v54 = vsub.f32 %v17048_v59, %v22655_v57  ;;  %v2440_v57 = vsub.f32 %v17267_v7, %v22659_v36  ;;  %v22664_v36 = vld [vmem:[#allocation40_spill] sm:$0xff] }
  0xd2   : > { %22657 = vst [vmem:[#allocation32_spill] sm:$0xff] %v17309_v18  ;;  %v22665_v59 = vand.u32 4294901760, %v22664_v36  ;;  %v17337_v28 = vsub.f32 %v2283_v61, %v17309_v18  ;;  %v854_v23 = vand.u32 4294901760, %v853_v43 }
  0xd3   : > { %12731 = vmatmul.mubr.f32.gmra.mrb[26].mxu1 %v824_v56  ;;  %v844_v41 = vand.u32 4294901760, %v843_v54  ;;  %v2431_v56 = vand.u32 4294901760, %v2430_v0  ;;  %v17327_v54 = vsub.f32 %v2280_v35, %v17300_v31  ;;  %v17329_v0 = vand.u32 4294901760, %v2286_v25 }
  0xd4   : > { %12978 = vmatmul.mubr.f32.gmra.mrb[24].mxu0 %v16994_v12  ;;  %12733 = vmatprep.mubr.f32.mxu1 %v834_v51  ;;  %v863_v7 = vsub.f32 %v22664_v36, %v22665_v59  ;;  %22667 = vst [vmem:[#allocation36_spill] sm:$0xff] %v17337_v28  ;;  %v2292_v35 = vsel %vm2263_vm2, %v325_v13, 0  ;;  %v22668_v59 = vld [vmem:[#allocation6_spill] sm:$0xff]  ;;  %v22669_v36 = vld [vmem:[#allocation5_spill] sm:$0xff]  ;;  %v22670_v51 = vand.u32 4294901760, %v17293_v2 }
  0xd5   : > { %12980 = vmatprep.mubr.f32.mxu0 %v17002_v50  ;;  %22663 = vst [vmem:[#allocation34_spill] sm:$0xff] %v17329_v0  ;;  %v874_v60 = vsub.f32 %v22669_v36, %v22668_v59  ;;  %v17352_v43 = vsub.f32 %v2286_v25, %v17329_v0  ;;  %v328_v13 = vld [vmem:[%s17211_s9 + $0x60] sm:$0xff]  ;;  %v17356_v26 = vand.u32 4294901760, %v2292_v35  ;;  %v2298_v59 = vsel %vm2263_vm2, %v327_v40, 0 }
  0xd6   : > { %v864_v31 = vand.u32 4294901760, %v863_v7  ;;  %v2460_v61 = vsub.f32 %v17293_v2, %v22670_v51  ;;  %v2441_v7 = vand.u32 4294901760, %v2440_v57  ;;  %v2451_v51 = vand.u32 4294901760, %v2450_v46  ;;  %v329_v57 = vld [vmem:[%s17211_s9 + $0x68] sm:$0xff]  ;;  %v330_v2 = vld [vmem:[%s17211_s9 + $0x70] sm:$0xff] }
  0xd7   : > { %12734 = vmatmul.mubr.f32.gmra.mrb[28].mxu1 %v844_v41  ;;  %v2295_v41 = vsel %vm2263_vm2, %v326_v33, 0  ;;  %22671 = vst [vmem:[#allocation6_spill] sm:$0xff] %v17352_v43  ;;  %v875_v33 = vand.u32 4294901760, %v874_v60  ;;  %v22672_v25 = vand.u32 4294901760, %v17307_v48  ;;  %v17367_v60 = vsub.f32 %v2289_v63, %v17339_v3 }
  0xd8   : > { %12981 = vmatmul.mubr.f32.gmra.mrb[26].mxu0 %v22656_v10  ;;  %12736 = vmatprep.mubr.f32.mxu1 %v854_v23  ;;  %v17358_v23 = vand.u32 4294901760, %v2295_v41  ;;  %v2301_v0 = vsel %vm2263_vm2, %v328_v13, 0  ;;  %v2461_v40 = vand.u32 4294901760, %v2460_v61  ;;  %v22022_v46 = vand.u32 4294901760, %v17352_v43 }
  0xd9   : > { %12983 = vmatprep.mubr.f32.mxu0 %v22658_v44  ;;  %v2470_v18 = vsub.f32 %v17307_v48, %v22672_v25  ;;  %22673 = vst [vmem:[#allocation5_spill] sm:$0xff] %v17367_v60  ;;  %12739 = vmatprep.subr.mxu1 %v875_v33  ;;  %v17376_v25 = vand.u32 4294901760, %v2298_v59  ;;  %v17381_v63 = vsub.f32 %v2292_v35, %v17356_v26  ;;  %v2304_v61 = vsel %vm2263_vm2, %v329_v57, 0 }
  0xda   : > { %12740 = vmatpush3.msra.mxu1 %v875_v33  ;;  %v17384_v13 = vsub.f32 %v2295_v41, %v17358_v23  ;;  %v2307_v33 = vsel %vm2263_vm2, %v330_v2, 0  ;;  %v22023_v35 = vand.u32 4294901760, %v17367_v60  ;;  %v331_v41 = vld [vmem:[%s17211_s9 + $0x78] sm:$0xff]  ;;  %v2500_v57 = vsub.f32 %v17352_v43, %v22022_v46  ;;  %v333_v46 = vld [vmem:[%s17211_s9 + $0x88] sm:$0xff] }
  0xdb   : > { %12737 = vmatmul.mubr.f32.gmra.mrb[30].mxu1 %v864_v31  ;;  %v22019_v31 = vand.u32 4294901760, %v17337_v28  ;;  %12789 = vmatprep.subr.mxu1 %v22669_v36  ;;  %22675 = vst [vmem:[#allocation52_spill] sm:$0xff] %v17381_v63 }
  0xdc   : > { %12984 = vmatmul.mubr.f32.gmra.mrb[28].mxu0 %v22666_v4  ;;  %12741 = vmatprep.mubr.f32.mxu1 %v16761_v14  ;;  %v22674_v14 = vand.u32 4294901760, %v17327_v54  ;;  %22676 = vst [vmem:[#allocation53_spill] sm:$0xff] %v17384_v13 }
  0xdd   : > { %12986 = vmatprep.mubr.f32.mxu0 %v17041_v22 }
  0xdf   : > { %12742 = vmatmul.mubr.f32.vlgmr.msra.gmra.mrb[0].mxu1 %v16763_v15  ;;  %v2471_v15 = vand.u32 4294901760, %v2470_v18  ;;  %v17404_v18 = vand.u32 4294901760, %v2307_v33 }
  0xe0   : > { %12987 = vmatmul.mubr.f32.gmra.mrb[30].mxu0 %v17050_v5  ;;  %12744 = vmatprep.mubr.f32.mxu1 %v16765_v16  ;;  %v17400_v16 = vsub.f32 %v2298_v59, %v17376_v25  ;;  %v2310_v59 = vsel %vm2263_vm2, %v331_v41, 0  ;;  %v22681_v41 = vand.u32 4294901760, %v17381_v63 }
  0xe1   : > { %12993 = vmatprep.mubr.f32.mxu0 %v2431_v56  ;;  %v2480_v56 = vsub.f32 %v17327_v54, %v22674_v14  ;;  %v17394_v14 = vand.u32 4294901760, %v2301_v0  ;;  %12790 = vmatpush3.msra.mxu1 %v22669_v36 }
  0xe2   : > { %22677 = vst [vmem:[#allocation54_spill] sm:$0xff] %v17400_v16  ;;  %v22683_v43 = vand.u32 4294901760, %v17400_v16 }
  0xe3   : > { %v2481_v2 = vand.u32 4294901760, %v2480_v56  ;;  %12745 = vmatmul.mubr.f32.gmra.mrb[2].mxu1 %v16770_v20  ;;  %v2510_v20 = vsub.f32 %v17367_v60, %v22023_v35  ;;  %v22682_v35 = vand.u32 4294901760, %v17384_v13 }
  0xe4   : > { %12994 = vmatmul.mubr.f32.vlgmr.msra.gmra.mrb[0].mxu0 %v2441_v7  ;;  %v2490_v7 = vsub.f32 %v17337_v28, %v22019_v31  ;;  %12747 = vmatprep.mubr.f32.mxu1 %v16784_v27  ;;  %v17428_v27 = vsub.f32 %v2307_v33, %v17404_v18 }
  0xe5   : > { %14748 = vmatpush3.bf16.msra.mxu0 %v17139_v37  ;;  %12996 = vmatprep.mubr.f32.mxu0 %v2451_v51  ;;  %v17402_v37 = vand.u32 4294901760, %v2304_v61  ;;  %v332_v51 = vld [vmem:[%s17211_s9 + $0x80] sm:$0xff]  ;;  %v2511_v33 = vand.u32 4294901760, %v2510_v20 }
  0xe6   : > { %14750 = vmatprep.subr.bf16.mxu0 %v17137_v53  ;;  %v2491_v31 = vand.u32 4294901760, %v2490_v7  ;;  %v2313_v28 = vsel %vm2263_vm2, %v332_v51, 0  ;;  %22680 = vst [vmem:[#allocation57_spill] sm:$0xff] %v17428_v27  ;;  %v334_v7 = vld [vmem:[%s17211_s9 + $0x90] sm:$0xff]  ;;  %v2520_v51 = vsub.f32 %v17381_v63, %v22681_v41  ;;  %v2540_v41 = vsub.f32 %v17400_v16, %v22683_v43  ;;  %v336_v20 = vld [vmem:[%s17211_s9 + $0xa0] sm:$0xff] }
  0xe7   : > { %v17425_v56 = vsub.f32 %v2304_v61, %v17402_v37  ;;  %12748 = vmatmul.mubr.f32.gmra.mrb[4].mxu1 %v16789_v29  ;;  %v2530_v61 = vsub.f32 %v17384_v13, %v22682_v35  ;;  %v17442_v60 = vand.u32 4294901760, %v2313_v28  ;;  %v2316_v29 = vsel %vm2263_vm2, %v333_v46, 0 }
  0xe8   : > { %12997 = vmatmul.mubr.f32.gmra.mrb[2].mxu0 %v2461_v40  ;;  %v17419_v40 = vsub.f32 %v2301_v0, %v17394_v14  ;;  %v2501_v0 = vand.u32 4294901760, %v2500_v57  ;;  %12750 = vmatprep.mubr.f32.mxu1 %v16791_v30  ;;  %v335_v57 = vld [vmem:[%s17211_s9 + $0x98] sm:$0xff]  ;;  %v2521_v46 = vand.u32 4294901760, %v2520_v51  ;;  %v17457_v36 = vand.u32 4294901760, %v2316_v29 }
  0xe9   : > { %12999 = vmatprep.mubr.f32.mxu0 %v2471_v15  ;;  %22679 = vst [vmem:[#allocation56_spill] sm:$0xff] %v17425_v56  ;;  %v17430_v15 = vand.u32 4294901760, %v2310_v59  ;;  %v17464_v30 = vsub.f32 %v2313_v28, %v17442_v60  ;;  %v2322_v16 = vsel %vm2263_vm2, %v335_v57, 0  ;;  %v2325_v51 = vsel %vm2263_vm2, %v336_v20, 0 }
  0xea   : > { %22678 = vst [vmem:[#allocation55_spill] sm:$0xff] %v17419_v40  ;;  %v22685_v43 = vand.u32 4294901760, %v17419_v40  ;;  %v22687_v13 = vand.u32 4294901760, %v17425_v56  ;;  %v17481_v57 = vsub.f32 %v2316_v29, %v17457_v36  ;;  %v17483_v20 = vand.u32 4294901760, %v2322_v16  ;;  %v340_v29 = vld [vmem:[%s17211_s9 + $0xc0] sm:$0xff] }
  0xeb   : > { %12751 = vmatmul.mubr.f32.gmra.mrb[6].mxu1 %v16812_v42  ;;  %22686 = vst [vmem:[#allocation59_spill] sm:$0xff] %v17464_v30  ;;  %v337_v42 = vld [vmem:[%s17211_s9 + $0xa8] sm:$0xff] }
  0xec   : > { %13000 = vmatmul.mubr.f32.gmra.mrb[4].mxu0 %v2481_v2  ;;  %v2319_v2 = vsel %vm2263_vm2, %v334_v7, 0  ;;  %v2531_v7 = vand.u32 4294901760, %v2530_v61  ;;  %12753 = vmatprep.mubr.f32.mxu1 %v16821_v45  ;;  %v2550_v35 = vsub.f32 %v17419_v40, %v22685_v43  ;;  %v2541_v61 = vand.u32 4294901760, %v2540_v41 }
  0xed   : > { %13002 = vmatprep.mubr.f32.mxu0 %v2491_v31  ;;  %v17453_v31 = vsub.f32 %v2310_v59, %v17430_v15  ;;  %v17466_v59 = vand.u32 4294901760, %v2319_v2  ;;  %v2560_v45 = vsub.f32 %v17425_v56, %v22687_v13  ;;  %v2328_v41 = vsel %vm2263_vm2, %v337_v42, 0 }
  0xee   : > { %v2551_v13 = vand.u32 4294901760, %v2550_v35  ;;  %v17496_v63 = vand.u32 4294901760, %v2328_v41  ;;  %v22045_v35 = vand.u32 4294901760, %v17481_v57 }
  0xef   : > { %22684 = vst [vmem:[#allocation58_spill] sm:$0xff] %v17453_v31  ;;  %12754 = vmatmul.mubr.f32.gmra.mrb[8].mxu1 %v16834_v52  ;;  %v17490_v43 = vsub.f32 %v2319_v2, %v17466_v59  ;;  %v17492_v52 = vand.u32 4294901760, %v2325_v51 }
  0xf0   : > { %13003 = vmatmul.mubr.f32.gmra.mrb[6].mxu0 %v2501_v0  ;;  %v338_v0 = vld [vmem:[%s17211_s9 + $0xb0] sm:$0xff]  ;;  %12756 = vmatprep.mubr.f32.mxu1 %v16842_v55  ;;  %v22690_v55 = vand.u32 4294901760, %v17453_v31 }
  0xf1   : > { %13005 = vmatprep.mubr.f32.mxu0 %v2511_v33  ;;  %v22688_v33 = vand.u32 4294901760, %v17428_v27  ;;  %v2331_v40 = vsel %vm2263_vm2, %v338_v0, 0  ;;  %22689 = vst [vmem:[#allocation60_spill] sm:$0xff] %v17490_v43 }
  0xf2   : > { %v17498_v42 = vand.u32 4294901760, %v2331_v40  ;;  %v2580_v2 = vsub.f32 %v17453_v31, %v22690_v55  ;;  %v341_v55 = vld [vmem:[%s17211_s9 + $0xc8] sm:$0xff]  ;;  %v343_v31 = vld [vmem:[%s17211_s9 + $0xd8] sm:$0xff] }
  0xf3   : > { %v2570_v28 = vsub.f32 %v17428_v27, %v22688_v33  ;;  %v22040_v33 = vand.u32 4294901760, %v17464_v30  ;;  %v2561_v27 = vand.u32 4294901760, %v2560_v45  ;;  %12757 = vmatmul.mubr.f32.gmra.mrb[10].mxu1 %v16854_v62  ;;  %v17515_v45 = vsub.f32 %v2325_v51, %v17492_v52 }
  0xf4   : > { %13006 = vmatmul.mubr.f32.gmra.mrb[8].mxu0 %v2521_v46  ;;  %v339_v46 = vld [vmem:[%s17211_s9 + $0xb8] sm:$0xff]  ;;  %12759 = vmatprep.mubr.f32.mxu1 %v16862_v1  ;;  %v2600_v51 = vsub.f32 %v17481_v57, %v22045_v35 }
  0xf5   : > { %13008 = vmatprep.mubr.f32.mxu0 %v2531_v7  ;;  %v2571_v56 = vand.u32 4294901760, %v2570_v28  ;;  %v17506_v7 = vsub.f32 %v2322_v16, %v17483_v20  ;;  %v2334_v0 = vsel %vm2263_vm2, %v339_v46, 0  ;;  %v2590_v62 = vsub.f32 %v17464_v30, %v22040_v33  ;;  %22692 = vst [vmem:[#allocation62_spill] sm:$0xff] %v17515_v45 }
  0xf6   : > { %v2337_v28 = vsel %vm2263_vm2, %v340_v29, 0  ;;  %v17520_v16 = vsub.f32 %v2328_v41, %v17496_v63  ;;  %v17523_v46 = vsub.f32 %v2331_v40, %v17498_v42  ;;  %v17525_v1 = vand.u32 4294901760, %v2334_v0 }
  0xf7   : > { %22691 = vst [vmem:[#allocation61_spill] sm:$0xff] %v17506_v7  ;;  %12760 = vmatmul.mubr.f32.gmra.mrb[12].mxu1 %v16874_v11  ;;  %v2581_v33 = vand.u32 4294901760, %v2580_v2  ;;  %v17533_v41 = vand.u32 4294901760, %v2337_v28  ;;  %v2591_v40 = vand.u32 4294901760, %v2590_v62  ;;  %v22051_v11 = vand.u32 4294901760, %v17515_v45 }
  0xf8   : > { %13009 = vmatmul.mubr.f32.gmra.mrb[10].mxu0 %v2541_v61  ;;  %v22046_v61 = vand.u32 4294901760, %v17490_v43  ;;  %22693 = vst [vmem:[#allocation63_spill] sm:$0xff] %v17520_v16  ;;  %22694 = vst [vmem:[#allocation64_spill] sm:$0xff] %v17523_v46  ;;  %12762 = vmatprep.mubr.f32.mxu1 %v16882_v17  ;;  %v17546_v17 = vsub.f32 %v2334_v0, %v17525_v1  ;;  %v2601_v62 = vand.u32 4294901760, %v2600_v51  ;;  %v2346_v51 = vsel %vm2263_vm2, %v343_v31, 0 }
  0xf9   : > { %13011 = vmatprep.mubr.f32.mxu0 %v2551_v13  ;;  %v342_v13 = vld [vmem:[%s17211_s9 + $0xd0] sm:$0xff]  ;;  %22695 = vst [vmem:[#allocation65_spill] sm:$0xff] %v17533_v41 }
  0xfa   : > { %v2610_v30 = vsub.f32 %v17490_v43, %v22046_v61  ;;  %v2343_v2 = vsel %vm2263_vm2, %v342_v13, 0  ;;  %v22696_v61 = vand.u32 4294901760, %v17506_v7  ;;  %v17554_v13 = vsub.f32 %v2337_v28, %v17533_v41 }
  0xfb   : > { %12763 = vmatmul.mubr.f32.gmra.mrb[14].mxu1 %v16894_v32  ;;  %v2630_v32 = vsub.f32 %v17515_v45, %v22051_v11  ;;  %v22699_v28 = vand.u32 4294901760, %v17520_v16  ;;  %v22700_v43 = vand.u32 4294901760, %v17523_v46  ;;  %v17580_v45 = vand.u32 4294901760, %v2346_v51 }
  0xfc   : > { %13012 = vmatmul.mubr.f32.gmra.mrb[12].mxu0 %v2561_v27  ;;  %v2340_v27 = vsel %vm2263_vm2, %v341_v55, 0  ;;  %v2620_v55 = vsub.f32 %v17506_v7, %v22696_v61  ;;  %12765 = vmatprep.mubr.f32.mxu1 %v16902_v39  ;;  %v2611_v0 = vand.u32 4294901760, %v2610_v30  ;;  %v345_v61 = vld [vmem:[%s17211_s9 + $0xe8] sm:$0xff] }
  0xfd   : > { %13014 = vmatprep.mubr.f32.mxu0 %v2571_v56  ;;  %v344_v56 = vld [vmem:[%s17211_s9 + $0xe0] sm:$0xff]  ;;  %v17556_v35 = vand.u32 4294901760, %v2340_v27  ;;  %v2640_v7 = vsub.f32 %v17520_v16, %v22699_v28  ;;  %v2650_v39 = vsub.f32 %v17523_v46, %v22700_v43  ;;  %22701 = vst [vmem:[#allocation68_spill] sm:$0xff] %v17580_v45  ;;  %v2631_v28 = vand.u32 4294901760, %v2630_v32 }
  0xfe   : > { %v2349_v29 = vsel %vm2263_vm2, %v344_v56, 0  ;;  %v2621_v11 = vand.u32 4294901760, %v2620_v55  ;;  %v347_v55 = vld [vmem:[%s17211_s9 + $0xf8] sm:$0xff]  ;;  %v17600_v32 = vsub.f32 %v2346_v51, %v17580_v45 }
  0xff   : > { %22697 = vst [vmem:[#allocation66_spill] sm:$0xff] %v17556_v35  ;;  %12766 = vmatmul.mubr.f32.gmra.mrb[16].mxu1 %v16914_v58  ;;  %v17578_v56 = vsub.f32 %v2340_v27, %v17556_v35  ;;  %v17586_v30 = vand.u32 4294901760, %v2349_v29  ;;  %v2352_v58 = vsel %vm2263_vm2, %v345_v61, 0  ;;  %v2641_v31 = vand.u32 4294901760, %v2640_v7 }
 0x100   : > { %13015 = vmatmul.mubr.f32.gmra.mrb[14].mxu0 %v2581_v33  ;;  %v17562_v33 = vand.u32 4294901760, %v2343_v2  ;;  %12768 = vmatprep.mubr.f32.mxu1 %v16922_v6  ;;  %v2651_v46 = vand.u32 4294901760, %v2650_v39  ;;  %v22703_v27 = vand.u32 4294901760, %v17546_v17  ;;  %v22704_v6 = vand.u32 4294901760, %v17554_v13 }
 0x101   : > { %13017 = vmatprep.mubr.f32.mxu0 %v2591_v40  ;;  %v346_v40 = vld [vmem:[%s17211_s9 + $0xf0] sm:$0xff]  ;;  %22702 = vst [vmem:[#allocation69_spill] sm:$0xff] %v17586_v30  ;;  %v17602_v61 = vand.u32 4294901760, %v2352_v58  ;;  %v17607_v39 = vsub.f32 %v2349_v29, %v17586_v30 }
 0x102   : > { %22698 = vst [vmem:[#allocation67_spill] sm:$0xff] %v17562_v33  ;;  %v17584_v43 = vsub.f32 %v2343_v2, %v17562_v33  ;;  %v2660_v16 = vsub.f32 %v17546_v17, %v22703_v27  ;;  %v2670_v2 = vsub.f32 %v17554_v13, %v22704_v6 }
 0x103   : > { %12769 = vmatmul.mubr.f32.gmra.mrb[18].mxu1 %v16934_v19  ;;  %22705 = vst [vmem:[#allocation70_spill] sm:$0xff] %v17602_v61 }
 0x104   : > { %13018 = vmatmul.mubr.f32.gmra.mrb[16].mxu0 %v2601_v62  ;;  %v2355_v62 = vsel %vm2263_vm2, %v346_v40, 0  ;;  %12771 = vmatprep.mubr.f32.mxu1 %v16942_v49  ;;  %v22063_v7 = vand.u32 4294901760, %v17584_v43  ;;  %v2661_v40 = vand.u32 4294901760, %v2660_v16  ;;  %v22062_v49 = vand.u32 4294901760, %v17600_v32 }
 0x105   : > { %13020 = vmatprep.mubr.f32.mxu0 %v2611_v0  ;;  %v22064_v0 = vand.u32 4294901760, %v17578_v56  ;;  %v17609_v19 = vand.u32 4294901760, %v2355_v62  ;;  %v2671_v29 = vand.u32 4294901760, %v2670_v2  ;;  %v22061_v16 = vand.u32 4294901760, %v17607_v39 }
 0x107   : > { %22706 = vst [vmem:[#allocation71_spill] sm:$0xff] %v17609_v19  ;;  %12772 = vmatmul.mubr.f32.gmra.mrb[20].mxu1 %v16954_v47  ;;  %v2680_v51 = vsub.f32 %v17578_v56, %v22064_v0  ;;  %v2690_v47 = vsub.f32 %v17584_v43, %v22063_v7  ;;  %v22766_v7 = vld [vmem:[#allocation61_spill] sm:$0xff]  ;;  %v22767_v0 = vld [vmem:[#allocation62_spill] sm:$0xff] }
 0x108   : > { %13021 = vmatmul.mubr.f32.gmra.mrb[18].mxu0 %v2621_v11  ;;  %v2358_v11 = vsel %vm2263_vm2, %v347_v55, 0  ;;  %12774 = vmatprep.mubr.f32.mxu1 %v16962_v21  ;;  %v2700_v55 = vsub.f32 %v17600_v32, %v22062_v49  ;;  %v22765_v49 = vld [vmem:[#allocation60_spill] sm:$0xff] }
 0x109   : > { %13023 = vmatprep.mubr.f32.mxu0 %v2631_v28  ;;  %v17618_v28 = vsub.f32 %v2352_v58, %v17602_v61  ;;  %v17620_v27 = vand.u32 4294901760, %v2358_v11  ;;  %v2681_v58 = vand.u32 4294901760, %v2680_v51  ;;  %v2691_v6 = vand.u32 4294901760, %v2690_v47 }
 0x10a   : > { %v2701_v2 = vand.u32 4294901760, %v2700_v55  ;;  %v22714_v55 = vld [vmem:[#allocation10_spill] sm:$0xff] }
 0x10b   : > { %22707 = vst [vmem:[#allocation72_spill] sm:$0xff] %v17620_v27  ;;  %12775 = vmatmul.mubr.f32.gmra.mrb[22].mxu1 %v16974_v8  ;;  %v22060_v21 = vand.u32 4294901760, %v17618_v28 }
 0x10c   : > { %13024 = vmatmul.mubr.f32.gmra.mrb[20].mxu0 %v2641_v31  ;;  %v17628_v31 = vsub.f32 %v2355_v62, %v17609_v19  ;;  %12777 = vmatprep.mubr.f32.mxu1 %v16982_v9  ;;  %v2710_v62 = vsub.f32 %v17607_v39, %v22061_v16  ;;  %v22764_v16 = vld [vmem:[#allocation59_spill] sm:$0xff] }
 0x10d   : > { %13026 = vmatprep.mubr.f32.mxu0 %v2651_v46  ;;  %v17636_v46 = vsub.f32 %v2358_v11, %v17620_v27 }
 0x10e   : > { %v22059_v8 = vand.u32 4294901760, %v17628_v31  ;;  %v2711_v9 = vand.u32 4294901760, %v2710_v62  ;;  %v22717_v62 = vld [vmem:[#allocation51_spill] sm:$0xff] }
 0x10f   : > { %12778 = vmatmul.mubr.f32.gmra.mrb[24].mxu1 %v16994_v12  ;;  %v22058_v11 = vand.u32 4294901760, %v17636_v46 }
 0x110   : > { %13027 = vmatmul.mubr.f32.gmra.mrb[22].mxu0 %v2661_v40  ;;  %v2720_v40 = vsub.f32 %v17618_v28, %v22060_v21  ;;  %12780 = vmatprep.mubr.f32.mxu1 %v17002_v50  ;;  %v2730_v51 = vsub.f32 %v17628_v31, %v22059_v8  ;;  %v22762_v8 = vld [vmem:[#allocation57_spill] sm:$0xff]  ;;  %v22763_v21 = vld [vmem:[#allocation58_spill] sm:$0xff] }
 0x111   : > { %13029 = vmatprep.mubr.f32.mxu0 %v2671_v29  ;;  %v2740_v29 = vsub.f32 %v17636_v46, %v22058_v11  ;;  %v22761_v11 = vld [vmem:[#allocation56_spill] sm:$0xff] }
 0x112   : > { %v2721_v12 = vand.u32 4294901760, %v2720_v40  ;;  %v2731_v47 = vand.u32 4294901760, %v2730_v51  ;;  %v22719_v40 = vld [vmem:[#allocation32_spill] sm:$0xff]  ;;  %v22722_v51 = vld [vmem:[#allocation14_spill] sm:$0xff] }
 0x113   : > { %12781 = vmatmul.mubr.f32.gmra.mrb[26].mxu1 %v22656_v10  ;;  %v2741_v50 = vand.u32 4294901760, %v2740_v29  ;;  %v22708_v10 = vld [vmem:[#allocation7_spill] sm:$0xff]  ;;  %v22724_v29 = vld [vmem:[#allocation16_spill] sm:$0xff] }
 0x114   : > { %13030 = vmatmul.mubr.f32.gmra.mrb[24].mxu0 %v2681_v58  ;;  %12783 = vmatprep.mubr.f32.mxu1 %v22658_v44  ;;  %v22709_v44 = vld [vmem:[#allocation8_spill] sm:$0xff]  ;;  %v22711_v58 = vld [vmem:[#allocation41_spill] sm:$0xff] }
 0x115   : > { %13032 = vmatprep.mubr.f32.mxu0 %v2691_v6  ;;  %v22716_v6 = vld [vmem:[#allocation11_spill] sm:$0xff] }
 0x117   : > { %12784 = vmatmul.mubr.f32.gmra.mrb[28].mxu1 %v22666_v4  ;;  %v22710_v4 = vld [vmem:[#allocation45_spill] sm:$0xff] }
 0x118   : > { %13033 = vmatmul.mubr.f32.gmra.mrb[26].mxu0 %v2701_v2  ;;  %12786 = vmatprep.mubr.f32.mxu1 %v17041_v22  ;;  %v22712_v22 = vld [vmem:[#allocation9_spill] sm:$0xff]  ;;  %v22718_v2 = vld [vmem:[#allocation12_spill] sm:$0xff] }
 0x119   : > { %13035 = vmatprep.mubr.f32.mxu0 %v2711_v9  ;;  %v22721_v9 = vld [vmem:[#allocation34_spill] sm:$0xff] }
 0x11b   : > { %12787 = vmatmul.mubr.f32.gmra.mrb[30].mxu1 %v17050_v5  ;;  %v22713_v5 = vld [vmem:[#allocation47_spill] sm:$0xff] }
 0x11c   : > { %13036 = vmatmul.mubr.f32.gmra.mrb[28].mxu0 %v2721_v12  ;;  %12791 = vmatprep.mubr.f32.mxu1 %v16776_v24  ;;  %v22715_v24 = vld [vmem:[#allocation49_spill] sm:$0xff]  ;;  %v22723_v12 = vld [vmem:[#allocation15_spill] sm:$0xff] }
 0x11d   : > { %13038 = vmatprep.mubr.f32.mxu0 %v2731_v47  ;;  %v22725_v47 = vld [vmem:[#allocation17_spill] sm:$0xff] }
 0x11f   : > { %12792 = vmatmul.mubr.f32.vlgmr.msra.gmra.mrb[0].mxu1 %v22708_v10  ;;  %v22727_v10 = vld [vmem:[#allocation19_spill] sm:$0xff] }
 0x120   : > { %13039 = vmatmul.mubr.f32.gmra.mrb[30].mxu0 %v2741_v50  ;;  %12794 = vmatprep.mubr.f32.mxu1 %v22709_v44  ;;  %v22726_v50 = vld [vmem:[#allocation18_spill] sm:$0xff]  ;;  %v22728_v44 = vld [vmem:[#allocation20_spill] sm:$0xff] }
 0x121   : > { %13045 = vmatprep.mubr.f32.mxu0 %v17233_v38 }
 0x123   : > { %12795 = vmatmul.mubr.f32.gmra.mrb[2].mxu1 %v22712_v22  ;;  %v22729_v22 = vld [vmem:[#allocation21_spill] sm:$0xff] }
 0x124   : > { %13046 = vmatmul.mubr.f32.vlgmr.msra.gmra.mrb[0].mxu0 %v17249_v34  ;;  %12797 = vmatprep.mubr.f32.mxu1 %v22714_v55  ;;  %v22730_v55 = vld [vmem:[#allocation22_spill] sm:$0xff] }
 0x125   : > { %14752 = vmatpush3.bf16.msra.mxu0 %v17137_v53  ;;  %13048 = vmatprep.mubr.f32.mxu0 %v22710_v4  ;;  %v22720_v53 = vld [vmem:[#allocation13_spill] sm:$0xff] }
 0x126   : > { %14754 = vmatprep.subr.bf16.mxu0 %v22711_v58 }
 0x127   : > { %12798 = vmatmul.mubr.f32.gmra.mrb[4].mxu1 %v22716_v6  ;;  %v22731_v6 = vld [vmem:[#allocation23_spill] sm:$0xff] }
 0x128   : > { %13049 = vmatmul.mubr.f32.gmra.mrb[2].mxu0 %v22713_v5  ;;  %12800 = vmatprep.mubr.f32.mxu1 %v22718_v2  ;;  %v22732_v2 = vld [vmem:[#allocation24_spill] sm:$0xff] }
 0x129   : > { %13051 = vmatprep.mubr.f32.mxu0 %v22715_v24 }
 0x12b   : > { %12801 = vmatmul.mubr.f32.gmra.mrb[6].mxu1 %v22720_v53  ;;  %v22733_v53 = vld [vmem:[#allocation25_spill] sm:$0xff] }
 0x12c   : > { %13052 = vmatmul.mubr.f32.gmra.mrb[4].mxu0 %v22717_v62  ;;  %12803 = vmatprep.mubr.f32.mxu1 %v22722_v51  ;;  %v22734_v51 = vld [vmem:[#allocation26_spill] sm:$0xff] }
 0x12d   : > { %13054 = vmatprep.mubr.f32.mxu0 %v22719_v40 }
 0x12f   : > { %12804 = vmatmul.mubr.f32.gmra.mrb[8].mxu1 %v22723_v12  ;;  %v22735_v12 = vld [vmem:[#allocation27_spill] sm:$0xff] }
 0x130   : > { %13055 = vmatmul.mubr.f32.gmra.mrb[6].mxu0 %v22721_v9  ;;  %12806 = vmatprep.mubr.f32.mxu1 %v22724_v29  ;;  %v22736_v29 = vld [vmem:[#allocation28_spill] sm:$0xff] }
 0x131   : > { %13057 = vmatprep.mubr.f32.mxu0 %v17339_v3 }
 0x133   : > { %12807 = vmatmul.mubr.f32.gmra.mrb[10].mxu1 %v22725_v47  ;;  %v22737_v47 = vld [vmem:[#allocation29_spill] sm:$0xff] }
 0x134   : > { %13058 = vmatmul.mubr.f32.gmra.mrb[8].mxu0 %v17356_v26  ;;  %12809 = vmatprep.mubr.f32.mxu1 %v22726_v50  ;;  %v22738_v50 = vld [vmem:[#allocation30_spill] sm:$0xff] }
 0x135   : > { %13060 = vmatprep.mubr.f32.mxu0 %v17358_v23 }
 0x137   : > { %12810 = vmatmul.mubr.f32.gmra.mrb[12].mxu1 %v22727_v10  ;;  %v22739_v10 = vld [vmem:[#allocation31_spill] sm:$0xff] }
 0x138   : > { %13061 = vmatmul.mubr.f32.gmra.mrb[10].mxu0 %v17376_v25  ;;  %12812 = vmatprep.mubr.f32.mxu1 %v22728_v44  ;;  %v22740_v44 = vld [vmem:[#allocation33_spill] sm:$0xff] }
 0x139   : > { %13063 = vmatprep.mubr.f32.mxu0 %v17394_v14 }
 0x13b   : > { %12813 = vmatmul.mubr.f32.gmra.mrb[14].mxu1 %v22729_v22  ;;  %v22741_v22 = vld [vmem:[#allocation35_spill] sm:$0xff] }
 0x13c   : > { %13064 = vmatmul.mubr.f32.gmra.mrb[12].mxu0 %v17402_v37  ;;  %12815 = vmatprep.mubr.f32.mxu1 %v22730_v55  ;;  %v22742_v55 = vld [vmem:[#allocation37_spill] sm:$0xff] }
 0x13d   : > { %13066 = vmatprep.mubr.f32.mxu0 %v17404_v18 }
 0x13f   : > { %12816 = vmatmul.mubr.f32.gmra.mrb[16].mxu1 %v22731_v6  ;;  %v22743_v6 = vld [vmem:[#allocation38_spill] sm:$0xff] }
 0x140   : > { %13067 = vmatmul.mubr.f32.gmra.mrb[14].mxu0 %v17430_v15  ;;  %12818 = vmatprep.mubr.f32.mxu1 %v22732_v2  ;;  %v22744_v2 = vld [vmem:[#allocation39_spill] sm:$0xff] }
 0x141   : > { %13069 = vmatprep.mubr.f32.mxu0 %v17442_v60 }
 0x143   : > { %12819 = vmatmul.mubr.f32.gmra.mrb[18].mxu1 %v22733_v53  ;;  %v22745_v53 = vld [vmem:[#allocation40_spill] sm:$0xff] }
 0x144   : > { %13070 = vmatmul.mubr.f32.gmra.mrb[16].mxu0 %v17457_v36  ;;  %12821 = vmatprep.mubr.f32.mxu1 %v22734_v51  ;;  %v22746_v51 = vld [vmem:[#allocation44_spill] sm:$0xff] }
 0x145   : > { %13072 = vmatprep.mubr.f32.mxu0 %v17466_v59 }
 0x147   : > { %12822 = vmatmul.mubr.f32.gmra.mrb[20].mxu1 %v22735_v12  ;;  %v22747_v12 = vld [vmem:[#allocation42_spill] sm:$0xff] }
 0x148   : > { %13073 = vmatmul.mubr.f32.gmra.mrb[18].mxu0 %v17483_v20  ;;  %12824 = vmatprep.mubr.f32.mxu1 %v22736_v29  ;;  %v22748_v29 = vand.u32 4294901760, %v22747_v12  ;;  %v22757_v12 = vld [vmem:[#allocation52_spill] sm:$0xff] }
 0x149   : > { %13075 = vmatprep.mubr.f32.mxu0 %v17492_v52 }
 0x14b   : > { %12825 = vmatmul.mubr.f32.gmra.mrb[22].mxu1 %v22737_v47  ;;  %v22749_v47 = vld [vmem:[#allocation43_spill] sm:$0xff] }
 0x14c   : > { %13076 = vmatmul.mubr.f32.gmra.mrb[20].mxu0 %v17496_v63  ;;  %12827 = vmatprep.mubr.f32.mxu1 %v22738_v50  ;;  %v22750_v50 = vand.u32 4294901760, %v22749_v47  ;;  %v22759_v47 = vld [vmem:[#allocation54_spill] sm:$0xff] }
 0x14d   : > { %13078 = vmatprep.mubr.f32.mxu0 %v17498_v42 }
 0x14f   : > { %12828 = vmatmul.mubr.f32.gmra.mrb[24].mxu1 %v22739_v10  ;;  %v14757_v10 = vpack.c.bf16 %v22750_v50, %v22748_v29  ;;  %v22758_v29 = vld [vmem:[#allocation53_spill] sm:$0xff]  ;;  %v22760_v50 = vld [vmem:[#allocation55_spill] sm:$0xff] }
 0x150   : > { %13079 = vmatmul.mubr.f32.gmra.mrb[22].mxu0 %v17525_v1  ;;  %12830 = vmatprep.mubr.f32.mxu1 %v22740_v44  ;;  %v22751_v44 = vld [vmem:[#allocation46_spill] sm:$0xff] }
 0x151   : > { %13081 = vmatprep.mubr.f32.mxu0 %v17533_v41  ;;  %v22775_v41 = vand.u32 4294901760, %v17327_v54 }
 0x153   : > { %12831 = vmatmul.mubr.f32.gmra.mrb[26].mxu1 %v22741_v22  ;;  %v22752_v22 = vld [vmem:[#allocation48_spill] sm:$0xff] }
 0x154   : > { %13082 = vmatmul.mubr.f32.gmra.mrb[24].mxu0 %v17556_v35  ;;  %12833 = vmatprep.mubr.f32.mxu1 %v22742_v55  ;;  %v22753_v55 = vld [vmem:[#allocation50_spill] sm:$0xff]  ;;  %v22774_v35 = vand.u32 4294901760, %v17307_v48 }
 0x155   : > { %13084 = vmatprep.mubr.f32.mxu0 %v17562_v33  ;;  %v22773_v33 = vand.u32 4294901760, %v22753_v55 }
 0x157   : > { %12834 = vmatmul.mubr.f32.gmra.mrb[28].mxu1 %v22743_v6  ;;  %v22754_v6 = vld [vmem:[#allocation36_spill] sm:$0xff] }
 0x158   : > { %13085 = vmatmul.mubr.f32.gmra.mrb[26].mxu0 %v17580_v45  ;;  %12836 = vmatprep.mubr.f32.mxu1 %v22744_v2  ;;  %v22755_v2 = vld [vmem:[#allocation6_spill] sm:$0xff]  ;;  %v22772_v45 = vand.u32 4294901760, %v22752_v22 }
 0x159   : > { %13087 = vmatprep.mubr.f32.mxu0 %v17586_v30  ;;  %v22771_v30 = vand.u32 4294901760, %v22751_v44 }
 0x15b   : > { %12837 = vmatmul.mubr.f32.gmra.mrb[30].mxu1 %v22745_v53  ;;  %v22756_v53 = vld [vmem:[#allocation5_spill] sm:$0xff] }
 0x15c   : > { %13088 = vmatmul.mubr.f32.gmra.mrb[28].mxu0 %v17602_v61  ;;  %v22770_v61 = vand.u32 4294901760, %v22746_v51 }
 0x15d   : > { %13090 = vmatprep.mubr.f32.mxu0 %v17609_v19  ;;  %v22769_v19 = vld [vmem:[#allocation64_spill] sm:$0xff] }
 0x160   : > { %13091 = vmatmul.mubr.f32.gmra.mrb[30].mxu0 %v17620_v27  ;;  %v22768_v27 = vld [vmem:[#allocation63_spill] sm:$0xff] }
 0x161   : > { %13097 = vmatprep.mubr.f32.mxu0 %v22746_v51  ;;  %v22778_v51 = vand.u32 4294901760, %v22756_v53 }
 0x164   : > { %13098 = vmatmul.mubr.f32.vlgmr.msra.gmra.mrb[0].mxu0 %v22751_v44  ;;  %v22786_v44 = vand.u32 4294901760, %v22764_v16 }
 0x165   : > { %14756 = vmatpush3.bf16.msra.mxu0 %v22711_v58  ;;  %13100 = vmatprep.mubr.f32.mxu0 %v22752_v22  ;;  %v22787_v22 = vand.u32 4294901760, %v17481_v57 }
 0x166   : > { %14758 = vmatprep.subr.bf16.mxu0 %v14757_v10 }
 0x168   : > { %13101 = vmatmul.mubr.f32.gmra.mrb[2].mxu0 %v22753_v55  ;;  %v22788_v55 = vand.u32 4294901760, %v22765_v49 }
 0x169   : > { %13103 = vmatprep.mubr.f32.mxu0 %v17307_v48  ;;  %v22781_v48 = vand.u32 4294901760, %v22759_v47 }
 0x16c   : > { %13104 = vmatmul.mubr.f32.gmra.mrb[4].mxu0 %v17327_v54  ;;  %v22782_v54 = vand.u32 4294901760, %v22760_v50 }
 0x16d   : > { %13106 = vmatprep.mubr.f32.mxu0 %v22754_v6 }
 0x170   : > { %13107 = vmatmul.mubr.f32.gmra.mrb[6].mxu0 %v22755_v2 }
 0x171   : > { %13109 = vmatprep.mubr.f32.mxu0 %v22756_v53  ;;  %v17860_v53 = vld [vmem:[%s21898_s4 + $0x28] sm:$0xff] }
 0x174   : > { %13110 = vmatmul.mubr.f32.gmra.mrb[8].mxu0 %v22757_v12 }
 0x175   : > { %13112 = vmatprep.mubr.f32.mxu0 %v22758_v29 }
 0x178   : > { %13113 = vmatmul.mubr.f32.gmra.mrb[10].mxu0 %v22759_v47 }
 0x179   : > { %13115 = vmatprep.mubr.f32.mxu0 %v22760_v50 }
 0x17c   : > { %13116 = vmatmul.mubr.f32.gmra.mrb[12].mxu0 %v22761_v11 }
 0x17d   : > { %13118 = vmatprep.mubr.f32.mxu0 %v22762_v8 }
 0x180   : > { %13119 = vmatmul.mubr.f32.gmra.mrb[14].mxu0 %v22763_v21 }
 0x181   : > { %13121 = vmatprep.mubr.f32.mxu0 %v22764_v16  ;;  %v22793_v16 = vand.u32 4294901760, %v17546_v17 }
 0x184   : > { %13122 = vmatmul.mubr.f32.gmra.mrb[16].mxu0 %v17481_v57  ;;  %v22794_v57 = vand.u32 4294901760, %v17554_v13 }
 0x185   : > { %13124 = vmatprep.mubr.f32.mxu0 %v22765_v49  ;;  %v22795_v49 = vand.u32 4294901760, %v17578_v56 }
 0x188   : > { %13125 = vmatmul.mubr.f32.gmra.mrb[18].mxu0 %v22766_v7 }
 0x189   : > { %13127 = vmatprep.mubr.f32.mxu0 %v22767_v0 }
 0x18c   : > { %13128 = vmatmul.mubr.f32.gmra.mrb[20].mxu0 %v22768_v27 }
 0x18d   : > { %13130 = vmatprep.mubr.f32.mxu0 %v22769_v19 }
 0x190   : > { %13131 = vmatmul.mubr.f32.gmra.mrb[22].mxu0 %v17546_v17  ;;  %v22800_v17 = vand.u32 4294901760, %v17628_v31 }
 0x191   : > { %13133 = vmatprep.mubr.f32.mxu0 %v17554_v13  ;;  %v22801_v13 = vand.u32 4294901760, %v17636_v46 }
 0x194   : > { %13134 = vmatmul.mubr.f32.gmra.mrb[24].mxu0 %v17578_v56  ;;  %v17831_v56 = vld [vmem:[%s21898_s4] sm:$0xff] }
 0x195   : > { %13136 = vmatprep.mubr.f32.mxu0 %v17584_v43 }
 0x198   : > { %13137 = vmatmul.mubr.f32.gmra.mrb[26].mxu0 %v17600_v32 }
 0x199   : > { %13139 = vmatprep.mubr.f32.mxu0 %v17607_v39 }
 0x19c   : > { %13140 = vmatmul.mubr.f32.gmra.mrb[28].mxu0 %v17618_v28 }
 0x19d   : > { %13142 = vmatprep.mubr.f32.mxu0 %v17628_v31  ;;  %v17849_v31 = vld [vmem:[%s21898_s4 + $0x18] sm:$0xff] }
 0x1a0   : > { %13143 = vmatmul.mubr.f32.gmra.mrb[30].mxu0 %v17636_v46 }
 0x1a1   : > { %13149 = vmatprep.mubr.f32.mxu0 %v22770_v61  ;;  %v22776_v61 = vand.u32 4294901760, %v22754_v6  ;;  %v22789_v6 = vand.u32 4294901760, %v22766_v7  ;;  %v22796_v7 = vand.u32 4294901760, %v17584_v43  ;;  %v17836_v43 = vld [vmem:[%s21898_s4 + $0x8] sm:$0xff] }
 0x1a4   : > { %13150 = vmatmul.mubr.f32.vlgmr.msra.gmra.mrb[0].mxu0 %v22771_v30  ;;  %v22777_v30 = vand.u32 4294901760, %v22755_v2  ;;  %v17855_v2 = vld [vmem:[%s21898_s4 + $0x20] sm:$0xff] }
 0x1a5   : > { %14760 = vmatpush3.bf16.msra.mxu0 %v14757_v10  ;;  %13152 = vmatprep.mubr.f32.mxu0 %v22772_v45  ;;  %v22779_v45 = vand.u32 4294901760, %v22757_v12  ;;  %v22785_v10 = vand.u32 4294901760, %v22763_v21  ;;  %v22792_v21 = vand.u32 4294901760, %v22769_v19  ;;  %v22799_v19 = vand.u32 4294901760, %v17618_v28 }
 0x1a6   : > { %14762 = vmatprep.subr.bf16.mxu0 %v22711_v58  ;;  %v22089_v28 = vand.u32 4294901760, %v17836_v43  ;;  %v22087_v12 = vand.u32 4294901760, %v17849_v31  ;;  %v22086_v50 = vand.u32 4294901760, %v17855_v2 }
 0x1a8   : > { %13153 = vmatmul.mubr.f32.gmra.mrb[2].mxu0 %v22773_v33  ;;  %v22780_v33 = vand.u32 4294901760, %v22758_v29 }
 0x1a9   : > { %13155 = vmatprep.mubr.f32.mxu0 %v22774_v35  ;;  %v22783_v35 = vand.u32 4294901760, %v22761_v11  ;;  %v22790_v11 = vand.u32 4294901760, %v22767_v0  ;;  %v22797_v0 = vand.u32 4294901760, %v17600_v32  ;;  %v17841_v32 = vld [vmem:[%s21898_s4 + $0x10] sm:$0xff] }
 0x1aa   : > { %v22088_v46 = vand.u32 4294901760, %v17841_v32 }
 0x1ac   : > { %13156 = vmatmul.mubr.f32.gmra.mrb[4].mxu0 %v22775_v41  ;;  %v22784_v41 = vand.u32 4294901760, %v22762_v8  ;;  %v22791_v8 = vand.u32 4294901760, %v22768_v27  ;;  %v22798_v27 = vand.u32 4294901760, %v17607_v39  ;;  %v22090_v39 = vand.u32 4294901760, %v17831_v56 }
 0x1ad   : > { %13158 = vmatprep.mubr.f32.mxu0 %v22776_v61  ;;  %v17874_v47 = vpack.c.bf16 %v22087_v12, %v22088_v46  ;;  %v22085_v61 = vand.u32 4294901760, %v17860_v53  ;;  %v22812_v12 = vld [vmem:[#allocation68_spill] sm:$0xff]  ;;  %v22813_v46 = vld [vmem:[#allocation69_spill] sm:$0xff] }
 0x1ae   : > { %v17867_v29 = vpack.c.bf16 %v22089_v28, %v22090_v39 }
 0x1af   : > { %22803 = vst [vmem:[#allocation8_spill] sm:$0xff] %v17874_v47 }
 0x1b0   : > { %13159 = vmatmul.mubr.f32.gmra.mrb[6].mxu0 %v22777_v30  ;;  %22802 = vst [vmem:[#allocation7_spill] sm:$0xff] %v17867_v29  ;;  %v17883_v30 = vld [vmem:[%s21898_s4 + $0x30] sm:$0xff]  ;;  %14766 = vmatprep.subr.bf16.mxu1 %v17867_v29 }
 0x1b1   : > { %13161 = vmatprep.mubr.f32.mxu0 %v22778_v51  ;;  %v17888_v51 = vld [vmem:[%s21898_s4 + $0x38] sm:$0xff]  ;;  %14768 = vmatpush3.bf16.msra.mxu1 %v17867_v29 }
 0x1b2   : > { %14770 = vmatprep.subr.bf16.mxu1 %v17874_v47  ;;  %v22820_v29 = vld [vmem:[#allocation72_spill] sm:$0xff] }
 0x1b4   : > { %13162 = vmatmul.mubr.f32.gmra.mrb[8].mxu0 %v22779_v45  ;;  %v22084_v45 = vand.u32 4294901760, %v17883_v30 }
 0x1b5   : > { %13164 = vmatprep.mubr.f32.mxu0 %v22780_v33  ;;  %v22083_v33 = vand.u32 4294901760, %v17888_v51  ;;  %14772 = vmatpush3.bf16.msra.mxu1 %v17874_v47 }
 0x1b8   : > { %13165 = vmatmul.mubr.f32.gmra.mrb[10].mxu0 %v22781_v48  ;;  %v17906_v48 = vld [vmem:[%s21898_s4 + $0x40] sm:$0xff] }
 0x1b9   : > { %13167 = vmatprep.mubr.f32.mxu0 %v22782_v54  ;;  %v17911_v54 = vld [vmem:[%s21898_s4 + $0x48] sm:$0xff] }
 0x1bc   : > { %13168 = vmatmul.mubr.f32.gmra.mrb[12].mxu0 %v22783_v35  ;;  %v17920_v35 = vpack.c.bf16 %v22083_v33, %v22084_v45  ;;  %v22808_v33 = vld [vmem:[#allocation66_spill] sm:$0xff]  ;;  %v22809_v45 = vld [vmem:[#allocation67_spill] sm:$0xff] }
 0x1bd   : > { %13170 = vmatprep.mubr.f32.mxu0 %v22784_v41  ;;  %v22082_v41 = vand.u32 4294901760, %v17906_v48 }
 0x1be   : > { %22805 = vst [vmem:[#allocation41_spill] sm:$0xff] %v17920_v35 }
 0x1c0   : > { %13171 = vmatmul.mubr.f32.gmra.mrb[14].mxu0 %v22785_v10  ;;  %v22081_v10 = vand.u32 4294901760, %v17911_v54 }
 0x1c1   : > { %13173 = vmatprep.mubr.f32.mxu0 %v22786_v44 }
 0x1c2   : > { %v17932_v44 = vpack.c.bf16 %v22081_v10, %v22082_v41 }
 0x1c4   : > { %13174 = vmatmul.mubr.f32.gmra.mrb[16].mxu0 %v22787_v22  ;;  %22806 = vst [vmem:[#allocation9_spill] sm:$0xff] %v17932_v44 }
 0x1c5   : > { %13176 = vmatprep.mubr.f32.mxu0 %v22788_v55 }
 0x1c8   : > { %13177 = vmatmul.mubr.f32.gmra.mrb[18].mxu0 %v22789_v6 }
 0x1c9   : > { %13179 = vmatprep.mubr.f32.mxu0 %v22790_v11 }
 0x1cc   : > { %13180 = vmatmul.mubr.f32.gmra.mrb[20].mxu0 %v22791_v8 }
 0x1cd   : > { %13182 = vmatprep.mubr.f32.mxu0 %v22792_v21 }
 0x1d0   : > { %13183 = vmatmul.mubr.f32.gmra.mrb[22].mxu0 %v22793_v16 }
 0x1d1   : > { %13185 = vmatprep.mubr.f32.mxu0 %v22794_v57 }
 0x1d4   : > { %13186 = vmatmul.mubr.f32.gmra.mrb[24].mxu0 %v22795_v49 }
 0x1d5   : > { %13188 = vmatprep.mubr.f32.mxu0 %v22796_v7 }
 0x1d8   : > { %13189 = vmatmul.mubr.f32.gmra.mrb[26].mxu0 %v22797_v0 }
 0x1d9   : > { %13191 = vmatprep.mubr.f32.mxu0 %v22798_v27 }
 0x1dc   : > { %13192 = vmatmul.mubr.f32.gmra.mrb[28].mxu0 %v22799_v19 }
 0x1dd   : > { %13194 = vmatprep.mubr.f32.mxu0 %v22800_v17 }
 0x1e0   : > { %13195 = vmatmul.mubr.f32.gmra.mrb[30].mxu0 %v22801_v13  ;;  %v22807_v13 = vld [vmem:[#allocation65_spill] sm:$0xff] }
 0x1e1   : > { %13201 = vmatprep.mubr.f32.mxu0 %v17233_v38 }
 0x1e4   : > { %13202 = vmatmul.mubr.f32.vlgmr.msra.gmra.mrb[0].mxu0 %v17249_v34 }
 0x1e5   : > { %14764 = vmatpush3.bf16.msra.mxu0 %v22711_v58  ;;  %13204 = vmatprep.mubr.f32.mxu0 %v22710_v4  ;;  %v17898_v58 = vpack.c.bf16 %v22085_v61, %v22086_v50 }
 0x1e7   : > { %22804 = vst [vmem:[#allocation45_spill] sm:$0xff] %v17898_v58  ;;  %14774 = vmatprep.subr.bf16.mxu1 %v17898_v58 }
 0x1e8   : > { %13205 = vmatmul.mubr.f32.gmra.mrb[2].mxu0 %v22713_v5  ;;  %14776 = vmatpush3.bf16.msra.mxu1 %v17898_v58 }
 0x1e9   : > { %13207 = vmatprep.mubr.f32.mxu0 %v22715_v24  ;;  %14778 = vmatprep.subr.bf16.mxu1 %v17920_v35 }
 0x1ec   : > { %13208 = vmatmul.mubr.f32.gmra.mrb[4].mxu0 %v22717_v62  ;;  %14780 = vmatpush3.bf16.msra.mxu1 %v17920_v35  ;;  %v22817_v35 = vld [vmem:[#allocation71_spill] sm:$0xff] }
 0x1ed   : > { %13210 = vmatprep.mubr.f32.mxu0 %v22719_v40  ;;  %14782 = vmatprep.subr.bf16.mxu1 %v17932_v44 }
 0x1f0   : > { %13211 = vmatmul.mubr.f32.gmra.mrb[6].mxu0 %v22721_v9  ;;  %14784 = vmatpush3.bf16.msra.mxu1 %v17932_v44  ;;  %v22816_v44 = vld [vmem:[#allocation70_spill] sm:$0xff] }
 0x1f1   : > { %13213 = vmatprep.mubr.f32.mxu0 %v17339_v3 }
 0x1f2   : > { %v17939_v22 = vpop.f32.mrb[0].mxu1 }
 0x1f3   : > { %v17941_v55 = vpop.f32.mrb[1].mxu1 }
 0x1f4   : > { %13214 = vmatmul.mubr.f32.gmra.mrb[8].mxu0 %v17356_v26 }
 0x1f5   : > { %13216 = vmatprep.mubr.f32.mxu0 %v17358_v23 }
 0x1f6   : > { %v17946_v6 = vpop.f32.mrb[2].mxu1 }
 0x1f7   : > { %v17948_v11 = vpop.f32.mrb[3].mxu1 }
 0x1f8   : > { %13217 = vmatmul.mubr.f32.gmra.mrb[10].mxu0 %v17376_v25 }
 0x1f9   : > { %13219 = vmatprep.mubr.f32.mxu0 %v17394_v14 }
 0x1fa   : > { %v17952_v8 = vpop.f32.mrb[4].mxu1 }
 0x1fb   : > { %v17954_v21 = vpop.f32.mrb[5].mxu1 }
 0x1fc   : > { %13220 = vmatmul.mubr.f32.gmra.mrb[12].mxu0 %v17402_v37 }
 0x1fd   : > { %13222 = vmatprep.mubr.f32.mxu0 %v17404_v18 }
 0x1fe   : > { %v17958_v16 = vpop.f32.mrb[6].mxu1 }
 0x1ff   : > { %v17960_v57 = vpop.f32.mrb[7].mxu1 }
 0x200   : > { %13223 = vmatmul.mubr.f32.gmra.mrb[14].mxu0 %v17430_v15 }
 0x201   : > { %13225 = vmatprep.mubr.f32.mxu0 %v17442_v60 }
 0x202   : > { %v17964_v49 = vpop.f32.mrb[8].mxu1 }
 0x203   : > { %v17966_v7 = vpop.f32.mrb[9].mxu1 }
 0x204   : > { %13226 = vmatmul.mubr.f32.gmra.mrb[16].mxu0 %v17457_v36 }
 0x205   : > { %13228 = vmatprep.mubr.f32.mxu0 %v17466_v59 }
 0x206   : > { %v17970_v0 = vpop.f32.mrb[10].mxu1 }
 0x207   : > { %v17972_v27 = vpop.f32.mrb[11].mxu1 }
 0x208   : > { %13229 = vmatmul.mubr.f32.gmra.mrb[18].mxu0 %v17483_v20 }
 0x209   : > { %13231 = vmatprep.mubr.f32.mxu0 %v17492_v52 }
 0x20a   : > { %v17976_v19 = vpop.f32.mrb[12].mxu1 }
 0x20b   : > { %v17978_v17 = vpop.f32.mrb[13].mxu1 }
 0x20c   : > { %13232 = vmatmul.mubr.f32.gmra.mrb[20].mxu0 %v17496_v63 }
 0x20d   : > { %13234 = vmatprep.mubr.f32.mxu0 %v17498_v42 }
 0x20e   : > { %v17982_v10 = vpop.f32.mrb[14].mxu1 }
 0x20f   : > { %v17984_v41 = vpop.f32.mrb[15].mxu1 }
 0x210   : > { %13235 = vmatmul.mubr.f32.gmra.mrb[22].mxu0 %v17525_v1 }
 0x211   : > { %13237 = vmatprep.mubr.f32.mxu0 %v22807_v13 }
 0x212   : > { %v17988_v61 = vpop.f32.mrb[16].mxu1 }
 0x213   : > { %22810 = vst [vmem:[#allocation47_spill] sm:$0xff] %v17988_v61  ;;  %v17990_v50 = vpop.f32.mrb[17].mxu1 }
 0x214   : > { %13238 = vmatmul.mubr.f32.gmra.mrb[24].mxu0 %v22808_v33  ;;  %22811 = vst [vmem:[#allocation10_spill] sm:$0xff] %v17990_v50 }
 0x215   : > { %13240 = vmatprep.mubr.f32.mxu0 %v22809_v45 }
 0x216   : > { %v17994_v28 = vpop.f32.mrb[18].mxu1 }
 0x217   : > { %22814 = vst [vmem:[#allocation49_spill] sm:$0xff] %v17994_v28  ;;  %v17996_v39 = vpop.f32.mrb[19].mxu1 }
 0x218   : > { %13241 = vmatmul.mubr.f32.gmra.mrb[26].mxu0 %v22812_v12  ;;  %22815 = vst [vmem:[#allocation11_spill] sm:$0xff] %v17996_v39 }
 0x219   : > { %13243 = vmatprep.mubr.f32.mxu0 %v22813_v46 }
 0x21a   : > { %v18000_v58 = vpop.f32.mrb[20].mxu1 }
 0x21b   : > { %22818 = vst [vmem:[#allocation51_spill] sm:$0xff] %v18000_v58  ;;  %v18002_v47 = vpop.f32.mrb[21].mxu1 }
 0x21c   : > { %13244 = vmatmul.mubr.f32.gmra.mrb[28].mxu0 %v22816_v44  ;;  %22819 = vst [vmem:[#allocation12_spill] sm:$0xff] %v18002_v47 }
 0x21d   : > { %13246 = vmatprep.mubr.f32.mxu0 %v22817_v35 }
 0x21e   : > { %v18006_v50 = vpop.f32.mrb[22].mxu1 }
 0x21f   : > { %v18008_v61 = vpop.f32.mrb[23].mxu1 }
 0x220   : > { %13247 = vmatmul.mubr.f32.gmra.mrb[30].mxu0 %v22820_v29 }
 0x221   : > { %13253 = vmatprep.mubr.f32.mxu0 %v17233_v38 }
 0x222   : > { %v18012_v39 = vpop.f32.mrb[24].mxu1 }
 0x223   : > { %v18014_v28 = vpop.f32.mrb[25].mxu1 }
 0x224   : > { %13254 = vmatmul.mubr.f32.vlgmr.msra.gmra.mrb[0].mxu0 %v17249_v34 }
 0x225   : > { %13256 = vmatprep.mubr.f32.mxu0 %v22710_v4 }
 0x226   : > { %v18018_v47 = vpop.f32.mrb[26].mxu1 }
 0x227   : > { %v18020_v58 = vpop.f32.mrb[27].mxu1 }
 0x228   : > { %13257 = vmatmul.mubr.f32.gmra.mrb[2].mxu0 %v22713_v5 }
 0x229   : > { %13259 = vmatprep.mubr.f32.mxu0 %v22715_v24 }
 0x22a   : > { %v18024_v38 = vpop.f32.mrb[28].mxu1 }
 0x22b   : > { %v18026_v34 = vpop.f32.mrb[29].mxu1 }
 0x22c   : > { %13260 = vmatmul.mubr.f32.gmra.mrb[4].mxu0 %v22717_v62  ;;  %v22826_v62 = vand.u32 4294901760, %v17836_v43 }
 0x22d   : > { %13262 = vmatprep.mubr.f32.mxu0 %v22719_v40 }
 0x22e   : > { %v18030_v4 = vpop.f32.mrb[30].mxu1  ;;  %v18095_v40 = vsub.f32 %v17836_v43, %v22826_v62 }
 0x22f   : > { %v18032_v5 = vpop.f32.mrb[31].mxu1 }
 0x230   : > { %13263 = vmatmul.mubr.f32.gmra.mrb[6].mxu0 %v22721_v9  ;;  %22827 = vst [vmem:[#allocation15_spill] sm:$0xff] %v18095_v40 }
 0x231   : > { %13265 = vmatprep.mubr.f32.mxu0 %v17339_v3  ;;  %v4232_v3 = vld [vmem:[%s21898_s4 + $0x58] sm:$0xff] }
 0x234   : > { %13266 = vmatmul.mubr.f32.gmra.mrb[8].mxu0 %v17356_v26  ;;  %v4231_v26 = vld [vmem:[%s21898_s4 + $0x50] sm:$0xff] }
 0x235   : > { %13268 = vmatprep.mubr.f32.mxu0 %v17358_v23  ;;  %v4273_v23 = vand.u32 4294901760, %v4231_v26 }
 0x237   : > { %v18108_v43 = vsub.f32 %v4231_v26, %v4273_v23 }
 0x238   : > { %13269 = vmatmul.mubr.f32.gmra.mrb[10].mxu0 %v17376_v25 }
 0x239   : > { %13271 = vmatprep.mubr.f32.mxu0 %v17394_v14  ;;  %v4234_v14 = vld [vmem:[%s21898_s4 + $0x68] sm:$0xff]  ;;  %22828 = vst [vmem:[#allocation16_spill] sm:$0xff] %v18108_v43 }
 0x23c   : > { %13272 = vmatmul.mubr.f32.gmra.mrb[12].mxu0 %v17402_v37 }
 0x23d   : > { %13274 = vmatprep.mubr.f32.mxu0 %v17404_v18  ;;  %v4282_v18 = vand.u32 4294901760, %v4234_v14 }
 0x240   : > { %13275 = vmatmul.mubr.f32.gmra.mrb[14].mxu0 %v17430_v15  ;;  %v4235_v15 = vld [vmem:[%s21898_s4 + $0x70] sm:$0xff] }
 0x241   : > { %13277 = vmatprep.mubr.f32.mxu0 %v17442_v60  ;;  %v4276_v60 = vand.u32 4294901760, %v4232_v3 }
 0x243   : > { %v18063_v25 = vpack.c.bf16 %v4276_v60, %v4273_v23 }
 0x244   : > { %13278 = vmatmul.mubr.f32.gmra.mrb[16].mxu0 %v17457_v36 }
 0x245   : > { %13280 = vmatprep.mubr.f32.mxu0 %v17466_v59  ;;  %22821 = vst [vmem:[#allocation32_spill] sm:$0xff] %v18063_v25  ;;  %14786 = vmatprep.subr.bf16.mxu1 %v18063_v25  ;;  %v4236_v59 = vld [vmem:[%s21898_s4 + $0x78] sm:$0xff] }
 0x246   : > { %14788 = vmatpush3.bf16.msra.mxu1 %v18063_v25 }
 0x248   : > { %13281 = vmatmul.mubr.f32.gmra.mrb[18].mxu0 %v17483_v20  ;;  %v4285_v20 = vand.u32 4294901760, %v4235_v15 }
 0x249   : > { %13283 = vmatprep.mubr.f32.mxu0 %v17492_v52  ;;  %v4288_v52 = vand.u32 4294901760, %v4236_v59 }
 0x24c   : > { %13284 = vmatmul.mubr.f32.gmra.mrb[20].mxu0 %v17496_v63  ;;  %v4233_v63 = vld [vmem:[%s21898_s4 + $0x60] sm:$0xff] }
 0x24d   : > { %13286 = vmatprep.mubr.f32.mxu0 %v17498_v42  ;;  %v4279_v37 = vand.u32 4294901760, %v4233_v63  ;;  %v18083_v42 = vpack.c.bf16 %v4288_v52, %v4285_v20 }
 0x24f   : > { %v18073_v36 = vpack.c.bf16 %v4282_v18, %v4279_v37  ;;  %22823 = vst [vmem:[#allocation34_spill] sm:$0xff] %v18083_v42  ;;  %v18117_v62 = vsub.f32 %v4233_v63, %v4279_v37  ;;  %v18134_v37 = vsub.f32 %v4236_v59, %v4288_v52 }
 0x250   : > { %13287 = vmatmul.mubr.f32.gmra.mrb[22].mxu0 %v17525_v1  ;;  %v22824_v1 = vand.u32 4294901760, %v17831_v56 }
 0x251   : > { %13289 = vmatprep.mubr.f32.mxu0 %v22807_v13  ;;  %22822 = vst [vmem:[#allocation13_spill] sm:$0xff] %v18073_v36  ;;  %14790 = vmatprep.subr.bf16.mxu1 %v18073_v36  ;;  %22830 = vst [vmem:[#allocation18_spill] sm:$0xff] %v18117_v62 }
 0x252   : > { %14792 = vmatpush3.bf16.msra.mxu1 %v18073_v36  ;;  %v18090_v24 = vsub.f32 %v17831_v56, %v22824_v1  ;;  %22833 = vst [vmem:[#allocation21_spill] sm:$0xff] %v18134_v37 }
 0x253   : > { %14794 = vmatprep.subr.bf16.mxu1 %v18083_v42 }
 0x254   : > { %13290 = vmatmul.mubr.f32.gmra.mrb[24].mxu0 %v22808_v33  ;;  %22825 = vst [vmem:[#allocation14_spill] sm:$0xff] %v18090_v24  ;;  %v22108_v9 = vand.u32 4294901760, %v18090_v24 }
 0x255   : > { %13292 = vmatprep.mubr.f32.mxu0 %v22809_v45 }
 0x256   : > { %14796 = vmatpush3.bf16.msra.mxu1 %v18083_v42  ;;  %v22858_v42 = vld [vmem:[#allocation10_spill] sm:$0xff] }
 0x258   : > { %13293 = vmatmul.mubr.f32.gmra.mrb[26].mxu0 %v22812_v12  ;;  %v4647_v12 = vsub.f32 %v18090_v24, %v22108_v9 }
 0x259   : > { %13295 = vmatprep.mubr.f32.mxu0 %v22813_v46  ;;  %v22107_v46 = vand.u32 4294901760, %v18095_v40 }
 0x25a   : > { %v4648_v45 = vand.u32 4294901760, %v4647_v12  ;;  %v18119_v12 = vsub.f32 %v4234_v14, %v4282_v18  ;;  %v18132_v14 = vsub.f32 %v4235_v15, %v4285_v20 }
 0x25c   : > { %13296 = vmatmul.mubr.f32.gmra.mrb[28].mxu0 %v22816_v44  ;;  %v22102_v44 = vand.u32 4294901760, %v18108_v43  ;;  %22831 = vst [vmem:[#allocation19_spill] sm:$0xff] %v18119_v12  ;;  %v22106_v23 = vand.u32 4294901760, %v18119_v12  ;;  %22832 = vst [vmem:[#allocation20_spill] sm:$0xff] %v18132_v14 }
 0x25d   : > { %13298 = vmatprep.mubr.f32.mxu0 %v22817_v35  ;;  %v18110_v35 = vsub.f32 %v4232_v3, %v4276_v60  ;;  %v22103_v3 = vand.u32 4294901760, %v18117_v62 }
 0x25e   : > { %v4717_v1 = vsub.f32 %v18108_v43, %v22102_v44  ;;  %v4738_v63 = vsub.f32 %v18119_v12, %v22106_v23 }
 0x25f   : > { %22829 = vst [vmem:[#allocation17_spill] sm:$0xff] %v18110_v35  ;;  %v22101_v13 = vand.u32 4294901760, %v18110_v35 }
 0x260   : > { %13299 = vmatmul.mubr.f32.gmra.mrb[30].mxu0 %v22820_v29  ;;  %v4654_v29 = vsub.f32 %v18095_v40, %v22107_v46  ;;  %v4718_v26 = vand.u32 4294901760, %v4717_v1  ;;  %v4739_v1 = vand.u32 4294901760, %v4738_v63  ;;  %v22836_v63 = vand.u32 4294901760, %v17849_v31 }
 0x262   : > { %v4655_v56 = vand.u32 4294901760, %v4654_v29  ;;  %v4724_v29 = vsub.f32 %v18110_v35, %v22101_v13  ;;  %v22105_v13 = vand.u32 4294901760, %v18132_v14 }
 0x264   : > { %v18105_v33 = vpack.c.bf16 %v4655_v56, %v4648_v45  ;;  %v4725_v60 = vand.u32 4294901760, %v4724_v29  ;;  %v4731_v45 = vsub.f32 %v18117_v62, %v22103_v3  ;;  %v22104_v29 = vand.u32 4294901760, %v18134_v37 }
 0x265   : > { %v4745_v3 = vsub.f32 %v18132_v14, %v22105_v13 }
 0x266   : > { %14798 = vmatprep.subr.bf16.mxu1 %v18105_v33  ;;  %v18136_v18 = vpack.c.bf16 %v4725_v60, %v4718_v26  ;;  %v4732_v56 = vand.u32 4294901760, %v4731_v45  ;;  %v4752_v15 = vsub.f32 %v18134_v37, %v22104_v29  ;;  %v18152_v26 = vpack.c.bf16 %v18095_v40, %v18090_v24 }
 0x267   : > { %v4746_v59 = vand.u32 4294901760, %v4745_v3  ;;  %v22834_v60 = vand.u32 4294901760, %v17841_v32 }
 0x268   : > { %v18140_v44 = vpack.c.bf16 %v4739_v1, %v4732_v56  ;;  %v4753_v20 = vand.u32 4294901760, %v4752_v15  ;;  %v18162_v56 = vsub.f32 %v17849_v31, %v22836_v63  ;;  %v22838_v1 = vand.u32 4294901760, %v17855_v2 }
 0x269   : > { %v18157_v45 = vsub.f32 %v17841_v32, %v22834_v60  ;;  %v22842_v31 = vand.u32 4294901760, %v17883_v30  ;;  %v22844_v63 = vand.u32 4294901760, %v17888_v51 }
 0x26a   : > { %v18148_v52 = vpack.c.bf16 %v4753_v20, %v4746_v59  ;;  %22837 = vst [vmem:[#allocation23_spill] sm:$0xff] %v18162_v56  ;;  %v18171_v15 = vsub.f32 %v17855_v2, %v22838_v1  ;;  %v22840_v59 = vand.u32 4294901760, %v17860_v53 }
 0x26b   : > { %22835 = vst [vmem:[#allocation22_spill] sm:$0xff] %v18157_v45  ;;  %v18166_v3 = vpack.c.bf16 %v18162_v56, %v18157_v45  ;;  %v18185_v60 = vsub.f32 %v17883_v30, %v22842_v31  ;;  %v18190_v29 = vsub.f32 %v17888_v51, %v22844_v63  ;;  %v18213_v31 = vld [vmem:[%s21899_s5] ss:$0 sm:$0xff] }
 0x26c   : > { %22839 = vst [vmem:[#allocation24_spill] sm:$0xff] %v18171_v15  ;;  %v18176_v20 = vsub.f32 %v17860_v53, %v22840_v59  ;;  %v22846_v53 = vand.u32 4294901760, %v17906_v48  ;;  %v22848_v59 = vand.u32 4294901760, %v17911_v54 }
 0x26d   : > { %22843 = vst [vmem:[#allocation26_spill] sm:$0xff] %v18185_v60  ;;  %22845 = vst [vmem:[#allocation27_spill] sm:$0xff] %v18190_v29  ;;  %v18194_v2 = vpack.c.bf16 %v18190_v29, %v18185_v60 }
 0x26e   : > { %22841 = vst [vmem:[#allocation25_spill] sm:$0xff] %v18176_v20  ;;  %v18180_v32 = vpack.c.bf16 %v18176_v20, %v18171_v15  ;;  %v18199_v1 = vsub.f32 %v17906_v48, %v22846_v53  ;;  %v18204_v13 = vsub.f32 %v17911_v54, %v22848_v59  ;;  %v18219_v53 = vpack.c.bf16 %v18110_v35, %v18108_v43 }
 0x270   : > { %22847 = vst [vmem:[#allocation28_spill] sm:$0xff] %v18199_v1  ;;  %22849 = vst [vmem:[#allocation29_spill] sm:$0xff] %v18204_v13  ;;  %v18208_v30 = vpack.c.bf16 %v18204_v13, %v18199_v1 }
 0x2f7   : > { %v13255_v51 = vpop.f32.mrb[0].mxu0 }
 0x2f8   : > { %v15341_v63 = vadd.f32 %v13255_v51, %v17939_v22  ;;  %v3962_v23 = vpop.f32.mrb[1].mxu0  ;;  %v22112_v51 = vand.u32 4294901760, %v18171_v15 }
 0x2f9   : > { %v15342_v48 = vadd.f32 %v3962_v23, %v17941_v55 }
 0x2fa   : > { %v4158_v54 = vadd.f32 %v15341_v63, %v18213_v31 }
 0x2fb   : > { %v4157_v59 = vadd.f32 %v15342_v48, %v18213_v31  ;;  %v13258_v46 = vpop.f32.mrb[2].mxu0  ;;  %v22117_v48 = vand.u32 4294901760, %v18185_v60 }
 0x2fc   : > { %16313 = vtanh.f32 %v4158_v54  ;;  %v15343_v24 = vadd.f32 %v13258_v46, %v17946_v6  ;;  %v3974_v22 = vpop.f32.mrb[3].mxu0  ;;  %v22850_v54 = vand.u32 4294901760, %v18157_v45  ;;  %v22851_v46 = vand.u32 4294901760, %v18162_v56 }
 0x2fd   : > { %16315 = vtanh.f32 %v4157_v59  ;;  %v15344_v23 = vadd.f32 %v3974_v22, %v17948_v11  ;;  %v22852_v22 = vand.u32 4294901760, %v18176_v20 }
 0x2fe   : > { %v4160_v63 = vadd.f32 %v15343_v24, %v18213_v31  ;;  %v4661_v6 = vsub.f32 %v18157_v45, %v22850_v54  ;;  %v4668_v55 = vsub.f32 %v18162_v56, %v22851_v46  ;;  %v4675_v24 = vsub.f32 %v18171_v15, %v22112_v51 }
 0x2ff   : > { %v4159_v9 = vadd.f32 %v15344_v23, %v18213_v31  ;;  %v13261_v40 = vpop.f32.mrb[4].mxu0  ;;  %v4682_v23 = vsub.f32 %v18176_v20, %v22852_v22  ;;  %v18249_v54 = vpack.c.bf16 %v18119_v12, %v18117_v62 }
 0x300   : > { %16317 = vtanh.f32 %v4160_v63  ;;  %v15345_v11 = vadd.f32 %v13261_v40, %v17952_v8  ;;  %v3986_v59 = vpop.f32.mrb[5].mxu0  ;;  %v4689_v8 = vsub.f32 %v18185_v60, %v22117_v48  ;;  %v22853_v40 = vand.u32 4294901760, %v18190_v29 }
 0x301   : > { %16319 = vtanh.f32 %v4159_v9  ;;  %v15346_v35 = vadd.f32 %v3986_v59, %v17954_v21  ;;  %v4662_v9 = vand.u32 4294901760, %v4661_v6  ;;  %v4669_v43 = vand.u32 4294901760, %v4668_v55 }
 0x302   : > { %v4162_v63 = vadd.f32 %v15345_v11, %v18213_v31  ;;  %v4696_v46 = vsub.f32 %v18190_v29, %v22853_v40  ;;  %v4676_v12 = vand.u32 4294901760, %v4675_v24  ;;  %v4683_v62 = vand.u32 4294901760, %v4682_v23 }
 0x303   : > { %v4161_v51 = vadd.f32 %v15346_v35, %v18213_v31  ;;  %v13264_v22 = vpop.f32.mrb[6].mxu0  ;;  %v4690_v60 = vand.u32 4294901760, %v4689_v8  ;;  %v18265_v6 = vpack.c.bf16 %v4669_v43, %v4662_v9  ;;  %v18279_v43 = vpack.c.bf16 %v18134_v37, %v18132_v14 }
 0x304   : > { %16321 = vtanh.f32 %v4162_v63  ;;  %v15347_v21 = vadd.f32 %v13264_v22, %v17958_v16  ;;  %v3998_v59 = vpop.f32.mrb[7].mxu0  ;;  %v4697_v15 = vand.u32 4294901760, %v4696_v46  ;;  %v22121_v16 = vand.u32 4294901760, %v18199_v1 }
 0x305   : > { %16323 = vtanh.f32 %v4161_v51  ;;  %v15348_v11 = vadd.f32 %v3998_v59, %v17960_v57  ;;  %v18271_v23 = vpack.c.bf16 %v4683_v62, %v4676_v12  ;;  %v22125_v62 = vand.u32 4294901760, %v18204_v13 }
 0x306   : > { %v16314_v20 = vpop.eup %16313  ;;  %v4164_v48 = vadd.f32 %v15347_v21, %v18213_v31  ;;  %v18295_v59 = vsub.f32 %v18199_v1, %v22121_v16 }
 0x307   : > { %v16316_v40 = vpop.eup %16315  ;;  %v18262_v29 = vand.u32 4294901760, %v16314_v20  ;;  %v4163_v35 = vadd.f32 %v15348_v11, %v18213_v31  ;;  %v13267_v55 = vpop.f32.mrb[8].mxu0 }
 0x308   : > { %v18268_v24 = vand.u32 4294901760, %v16316_v40  ;;  %16325 = vtanh.f32 %v4164_v48  ;;  %v15349_v57 = vadd.f32 %v13267_v55, %v17964_v49  ;;  %v4010_v51 = vpop.f32.mrb[9].mxu0  ;;  %v18285_v49 = vpack.c.bf16 %v4697_v15, %v4690_v60 }
 0x309   : > { %v18274_v63 = vsub.f32 %v16314_v20, %v18262_v29  ;;  %16327 = vtanh.f32 %v4163_v35  ;;  %v15350_v8 = vadd.f32 %v4010_v51, %v17966_v7 }
 0x30a   : > { %v16318_v46 = vpop.eup %16317  ;;  %v4166_v22 = vadd.f32 %v15349_v57, %v18213_v31  ;;  %v18283_v48 = vsub.f32 %v16316_v40, %v18268_v24 }
 0x30b   : > { %v16320_v12 = vpop.eup %16319  ;;  %v18288_v20 = vand.u32 4294901760, %v16318_v46  ;;  %v4165_v9 = vadd.f32 %v15350_v8, %v18213_v31  ;;  %v13270_v7 = vpop.f32.mrb[10].mxu0  ;;  %v22122_v21 = vand.u32 4294901760, %v18274_v63 }
 0x30c   : > { %v18297_v11 = vand.u32 4294901760, %v16320_v12  ;;  %16329 = vtanh.f32 %v4166_v22  ;;  %v15351_v15 = vadd.f32 %v13270_v7, %v17970_v0  ;;  %v4022_v60 = vpop.f32.mrb[11].mxu0  ;;  %v22123_v40 = vand.u32 4294901760, %v18283_v48 }
 0x30d   : > { %16331 = vtanh.f32 %v4165_v9  ;;  %v15352_v35 = vadd.f32 %v4022_v60, %v17972_v27  ;;  %v4336_v55 = vsub.f32 %v18274_v63, %v22122_v21  ;;  %v18306_v57 = vsub.f32 %v16318_v46, %v18288_v20 }
 0x30e   : > { %v16322_v51 = vpop.eup %16321  ;;  %v4168_v8 = vadd.f32 %v15351_v15, %v18213_v31  ;;  %v4326_v0 = vsub.f32 %v18283_v48, %v22123_v40  ;;  %v18313_v22 = vsub.f32 %v16320_v12, %v18297_v11  ;;  %v18318_v27 = vsub.f32 %v18204_v13, %v22125_v62 }
 0x30f   : > { %v16324_v9 = vpop.eup %16323  ;;  %v18320_v7 = vand.u32 4294901760, %v16322_v51  ;;  %v4167_v46 = vadd.f32 %v15352_v35, %v18213_v31  ;;  %v13273_v60 = vpop.f32.mrb[12].mxu0  ;;  %v4337_v16 = vand.u32 4294901760, %v4336_v55  ;;  %v22129_v15 = vand.u32 4294901760, %v18306_v57 }
 0x310   : > { %v18324_v21 = vand.u32 4294901760, %v16324_v9  ;;  %16333 = vtanh.f32 %v4168_v8  ;;  %v15353_v12 = vadd.f32 %v13273_v60, %v17976_v19  ;;  %v4034_v40 = vpop.f32.mrb[13].mxu0  ;;  %v4327_v37 = vand.u32 4294901760, %v4326_v0 }
 0x311   : > { %16335 = vtanh.f32 %v4167_v46  ;;  %v15354_v62 = vadd.f32 %v4034_v40, %v17978_v17  ;;  %v22130_v14 = vand.u32 4294901760, %v18313_v22  ;;  %v4356_v35 = vsub.f32 %v18306_v57, %v22129_v15 }
 0x312   : > { %v16326_v13 = vpop.eup %16325  ;;  %v4170_v55 = vadd.f32 %v15353_v12, %v18213_v31  ;;  %13333 = vmatprep.mubr.f32.mxu1 %v4327_v37  ;;  %v18334_v1 = vsub.f32 %v16324_v9, %v18324_v21  ;;  %v18337_v19 = vsub.f32 %v16322_v51, %v18320_v7  ;;  %v4704_v8 = vand.u32 4294901760, %v18295_v59 }
 0x313   : > { %v16328_v0 = vpop.eup %16327  ;;  %v18340_v17 = vand.u32 4294901760, %v16326_v13  ;;  %v4169_v40 = vadd.f32 %v15354_v62, %v18213_v31  ;;  %v13276_v46 = vpop.f32.mrb[14].mxu0  ;;  %13334 = vmatmul.mubr.f32.vlgmr.msra.gmra.mrb[32].mxu1 %v4337_v16  ;;  %v4346_v60 = vsub.f32 %v18313_v22, %v22130_v14  ;;  %v4357_v37 = vand.u32 4294901760, %v4356_v35 }
 0x314   : > { %22854 = vst [vmem:[#allocation30_spill] sm:$0xff] %v18334_v1  ;;  %22855 = vst [vmem:[#allocation31_spill] sm:$0xff] %v18337_v19  ;;  %v18346_v12 = vand.u32 4294901760, %v16328_v0  ;;  %16337 = vtanh.f32 %v4170_v55  ;;  %v15355_v51 = vadd.f32 %v13276_v46, %v17982_v10  ;;  %14800 = vmatpush3.bf16.msra.mxu1 %v18105_v33  ;;  %v4046_v59 = vpop.f32.mrb[15].mxu0  ;;  %v22131_v9 = vand.u32 4294901760, %v18334_v1 }
 0x315   : > { %16339 = vtanh.f32 %v4169_v40  ;;  %v15356_v62 = vadd.f32 %v4046_v59, %v17984_v41  ;;  %v4347_v15 = vand.u32 4294901760, %v4346_v60  ;;  %14802 = vmatprep.subr.bf16.mxu1 %v18265_v6  ;;  %v22140_v16 = vand.u32 4294901760, %v18337_v19 }
 0x316   : > { %v16330_v14 = vpop.eup %16329  ;;  %v4172_v35 = vadd.f32 %v15355_v51, %v18213_v31  ;;  %v4366_v10 = vsub.f32 %v18334_v1, %v22131_v9  ;;  %v18359_v33 = vsub.f32 %v16328_v0, %v18346_v12  ;;  %v18362_v55 = vsub.f32 %v16326_v13, %v18340_v17  ;;  %v22857_v0 = vld [vmem:[#allocation47_spill] sm:$0xff] }
 0x317   : > { %v16332_v40 = vpop.eup %16331  ;;  %v18364_v41 = vand.u32 4294901760, %v16330_v14  ;;  %v4171_v46 = vadd.f32 %v15356_v62, %v18213_v31  ;;  %13336 = vmatprep.mubr.f32.mxu1 %v4347_v15  ;;  %v13279_v60 = vpop.f32.mrb[16].mxu0  ;;  %v4376_v51 = vsub.f32 %v18337_v19, %v22140_v16  ;;  %v4711_v59 = vand.u32 4294901760, %v18318_v27 }
 0x318   : > { %22856 = vst [vmem:[#allocation33_spill] sm:$0xff] %v18362_v55  ;;  %v18371_v9 = vand.u32 4294901760, %v16332_v40  ;;  %16341 = vtanh.f32 %v4172_v35  ;;  %v15357_v56 = vadd.f32 %v13279_v60, %v22857_v0  ;;  %13337 = vmatmul.mubr.f32.gmra.mrb[34].mxu1 %v4357_v37  ;;  %v4058_v13 = vpop.f32.mrb[17].mxu0  ;;  %v4367_v45 = vand.u32 4294901760, %v4366_v10 }
 0x319   : > { %16343 = vtanh.f32 %v4171_v46  ;;  %v15358_v36 = vadd.f32 %v4058_v13, %v22858_v42  ;;  %v4377_v62 = vand.u32 4294901760, %v4376_v51  ;;  %14804 = vmatpush3.bf16.msra.mxu1 %v18265_v6  ;;  %v22146_v15 = vand.u32 4294901760, %v18359_v33  ;;  %v22862_v13 = vld [vmem:[#allocation11_spill] sm:$0xff] }
 0x31a   : > { %v16334_v25 = vpop.eup %16333  ;;  %v4174_v16 = vadd.f32 %v15357_v56, %v18213_v31  ;;  %13339 = vmatprep.mubr.f32.mxu1 %v4367_v45  ;;  %v22145_v27 = vand.u32 4294901760, %v18362_v55  ;;  %v18380_v35 = vsub.f32 %v16332_v40, %v18371_v9  ;;  %14806 = vmatprep.subr.bf16.mxu1 %v18271_v23  ;;  %v18384_v37 = vsub.f32 %v16330_v14, %v18364_v41  ;;  %v22861_v40 = vld [vmem:[#allocation49_spill] sm:$0xff] }
 0x31b   : > { %v16336_v42 = vpop.eup %16335  ;;  %v18386_v10 = vand.u32 4294901760, %v16334_v25  ;;  %v4173_v6 = vadd.f32 %v15358_v36, %v18213_v31  ;;  %v13282_v46 = vpop.f32.mrb[18].mxu0  ;;  %v4386_v45 = vsub.f32 %v18359_v33, %v22146_v15  ;;  %v14813_v56 = vpack.c.bf16 %v4711_v59, %v4704_v8 }
 0x31c   : > { %22859 = vst [vmem:[#allocation35_spill] sm:$0xff] %v18380_v35  ;;  %22860 = vst [vmem:[#allocation37_spill] sm:$0xff] %v18384_v37  ;;  %v18392_v60 = vand.u32 4294901760, %v16336_v42  ;;  %16345 = vtanh.f32 %v4174_v16  ;;  %v15359_v51 = vadd.f32 %v13282_v46, %v22861_v40  ;;  %13340 = vmatmul.mubr.f32.gmra.mrb[36].mxu1 %v4377_v62  ;;  %v4070_v0 = vpop.f32.mrb[19].mxu0  ;;  %v4396_v14 = vsub.f32 %v18362_v55, %v22145_v27 }
 0x31d   : > { %16347 = vtanh.f32 %v4173_v6  ;;  %v15360_v36 = vadd.f32 %v4070_v0, %v22862_v13  ;;  %v4387_v19 = vand.u32 4294901760, %v4386_v45  ;;  %v22149_v1 = vand.u32 4294901760, %v18380_v35  ;;  %14808 = vmatpush3.bf16.msra.mxu1 %v18271_v23 }
 0x31e   : > { %v16338_v8 = vpop.eup %16337  ;;  %v4176_v59 = vadd.f32 %v15359_v51, %v18213_v31  ;;  %v4397_v16 = vand.u32 4294901760, %v4396_v14  ;;  %v22152_v46 = vand.u32 4294901760, %v18384_v37  ;;  %v18404_v62 = vsub.f32 %v16336_v42, %v18392_v60  ;;  %14810 = vmatprep.subr.bf16.mxu1 %v18285_v49  ;;  %v22866_v42 = vld [vmem:[#allocation51_spill] sm:$0xff] }
 0x31f   : > { %v16340_v40 = vpop.eup %16339  ;;  %v18407_v6 = vand.u32 4294901760, %v16338_v8  ;;  %v4175_v45 = vadd.f32 %v15360_v36, %v18213_v31  ;;  %13342 = vmatprep.mubr.f32.mxu1 %v4387_v19  ;;  %v13285_v0 = vpop.f32.mrb[20].mxu0  ;;  %v4406_v23 = vsub.f32 %v18380_v35, %v22149_v1  ;;  %v18414_v51 = vsub.f32 %v16334_v25, %v18386_v10  ;;  %v22867_v19 = vld [vmem:[#allocation12_spill] sm:$0xff] }
 0x320   : > { %22863 = vst [vmem:[#allocation38_spill] sm:$0xff] %v18404_v62  ;;  %v18416_v14 = vand.u32 4294901760, %v16340_v40  ;;  %16349 = vtanh.f32 %v4176_v59  ;;  %v15361_v13 = vadd.f32 %v13285_v0, %v22866_v42  ;;  %13343 = vmatmul.mubr.f32.gmra.mrb[38].mxu1 %v4397_v16  ;;  %v4082_v27 = vpop.f32.mrb[21].mxu0  ;;  %v4416_v36 = vsub.f32 %v18384_v37, %v22152_v46 }
 0x321   : > { %22864 = vst [vmem:[#allocation39_spill] sm:$0xff] %v18407_v6  ;;  %16351 = vtanh.f32 %v4175_v45  ;;  %v15362_v15 = vadd.f32 %v4082_v27, %v22867_v19  ;;  %v4407_v55 = vand.u32 4294901760, %v4406_v23  ;;  %v22153_v1 = vand.u32 4294901760, %v18404_v62  ;;  %14812 = vmatpush3.bf16.msra.mxu1 %v18285_v49 }
 0x322   : > { %22865 = vst [vmem:[#allocation40_spill] sm:$0xff] %v18416_v14  ;;  %v16342_v25 = vpop.eup %16341  ;;  %v4178_v35 = vadd.f32 %v15361_v13, %v18213_v31  ;;  %v4417_v59 = vand.u32 4294901760, %v4416_v36  ;;  %v22159_v0 = vand.u32 4294901760, %v18414_v51  ;;  %v18428_v16 = vsub.f32 %v16340_v40, %v18416_v14  ;;  %14814 = vmatprep.subr.bf16.mxu1 %v14813_v56 }
 0x323   : > { %v16344_v42 = vpop.eup %16343  ;;  %v18430_v46 = vand.u32 4294901760, %v16342_v25  ;;  %v4177_v27 = vadd.f32 %v15362_v15, %v18213_v31  ;;  %13345 = vmatprep.mubr.f32.mxu1 %v4407_v55  ;;  %v13288_v45 = vpop.f32.mrb[22].mxu0  ;;  %v4426_v49 = vsub.f32 %v18404_v62, %v22153_v1  ;;  %v18437_v23 = vsub.f32 %v16338_v8, %v18407_v6 }
 0x324   : > { %v18439_v13 = vand.u32 4294901760, %v16344_v42  ;;  %16353 = vtanh.f32 %v4178_v35  ;;  %v15363_v40 = vadd.f32 %v13288_v45, %v18006_v50  ;;  %13346 = vmatmul.mubr.f32.gmra.mrb[40].mxu1 %v4417_v59  ;;  %v4094_v36 = vpop.f32.mrb[23].mxu0  ;;  %v4436_v15 = vsub.f32 %v18414_v51, %v22159_v0 }
 0x325   : > { %22868 = vst [vmem:[#allocation44_spill] sm:$0xff] %v18430_v46  ;;  %16355 = vtanh.f32 %v4177_v27  ;;  %v15364_v55 = vadd.f32 %v4094_v36, %v18008_v61  ;;  %v4427_v19 = vand.u32 4294901760, %v4426_v49  ;;  %v22158_v1 = vand.u32 4294901760, %v18428_v16  ;;  %14816 = vmatpush3.bf16.msra.mxu1 %v14813_v56 }
 0x326   : > { %22869 = vst [vmem:[#allocation42_spill] sm:$0xff] %v18439_v13  ;;  %v16346_v8 = vpop.eup %16345  ;;  %v4180_v62 = vadd.f32 %v15363_v40, %v18213_v31  ;;  %v4437_v37 = vand.u32 4294901760, %v4436_v15  ;;  %v22160_v35 = vand.u32 4294901760, %v18437_v23  ;;  %v18450_v50 = vsub.f32 %v16344_v42, %v18439_v13  ;;  %14818 = vmatprep.subr.bf16.mxu1 %v18136_v18 }
 0x327   : > { %v16348_v59 = vpop.eup %16347  ;;  %v18453_v45 = vand.u32 4294901760, %v16346_v8  ;;  %v4179_v61 = vadd.f32 %v15364_v55, %v18213_v31  ;;  %13348 = vmatprep.mubr.f32.mxu1 %v4427_v19  ;;  %v13291_v27 = vpop.f32.mrb[24].mxu0  ;;  %v4446_v56 = vsub.f32 %v18428_v16, %v22158_v1  ;;  %v18460_v49 = vsub.f32 %v16342_v25, %v18430_v46 }
 0x328   : > { %22870 = vst [vmem:[#allocation43_spill] sm:$0xff] %v18450_v50  ;;  %v18462_v40 = vand.u32 4294901760, %v16348_v59  ;;  %16357 = vtanh.f32 %v4180_v62  ;;  %v15365_v42 = vadd.f32 %v13291_v27, %v18012_v39  ;;  %13349 = vmatmul.mubr.f32.gmra.mrb[42].mxu1 %v4437_v37  ;;  %v4106_v36 = vpop.f32.mrb[25].mxu0  ;;  %v4456_v15 = vsub.f32 %v18437_v23, %v22160_v35 }
 0x329   : > { %22871 = vst [vmem:[#allocation46_spill] sm:$0xff] %v18453_v45  ;;  %16359 = vtanh.f32 %v4179_v61  ;;  %v15366_v55 = vadd.f32 %v4106_v36, %v18014_v28  ;;  %v4447_v19 = vand.u32 4294901760, %v4446_v56  ;;  %v22161_v1 = vand.u32 4294901760, %v18450_v50  ;;  %14820 = vmatpush3.bf16.msra.mxu1 %v18136_v18 }
 0x32a   : > { %22872 = vst [vmem:[#allocation48_spill] sm:$0xff] %v18462_v40  ;;  %v16350_v25 = vpop.eup %16349  ;;  %v4182_v0 = vadd.f32 %v15365_v42, %v18213_v31  ;;  %v4457_v62 = vand.u32 4294901760, %v4456_v15  ;;  %v22164_v39 = vand.u32 4294901760, %v18460_v49  ;;  %v18474_v37 = vsub.f32 %v16348_v59, %v18462_v40  ;;  %14822 = vmatprep.subr.bf16.mxu1 %v18140_v44 }
 0x32b   : > { %v16352_v27 = vpop.eup %16351  ;;  %v18477_v61 = vand.u32 4294901760, %v16350_v25  ;;  %v4181_v28 = vadd.f32 %v15366_v55, %v18213_v31  ;;  %13351 = vmatprep.mubr.f32.mxu1 %v4447_v19  ;;  %v13294_v56 = vpop.f32.mrb[26].mxu0  ;;  %v4466_v18 = vsub.f32 %v18450_v50, %v22161_v1  ;;  %v18484_v42 = vsub.f32 %v16346_v8, %v18453_v45 }
 0x32c   : > { %22873 = vst [vmem:[#allocation50_spill] sm:$0xff] %v18474_v37  ;;  %v18486_v36 = vand.u32 4294901760, %v16352_v27  ;;  %16361 = vtanh.f32 %v4182_v0  ;;  %v15367_v59 = vadd.f32 %v13294_v56, %v18018_v47  ;;  %13352 = vmatmul.mubr.f32.gmra.mrb[44].mxu1 %v4457_v62  ;;  %v4118_v15 = vpop.f32.mrb[27].mxu0  ;;  %v4476_v55 = vsub.f32 %v18460_v49, %v22164_v39 }
 0x32d   : > { %22874 = vst [vmem:[#allocation36_spill] sm:$0xff] %v18477_v61  ;;  %22875 = vst [vmem:[#allocation6_spill] sm:$0xff] %v18484_v42  ;;  %16363 = vtanh.f32 %v4181_v28  ;;  %v15368_v19 = vadd.f32 %v4118_v15, %v18020_v58  ;;  %v4467_v35 = vand.u32 4294901760, %v4466_v18  ;;  %v22165_v1 = vand.u32 4294901760, %v18474_v37  ;;  %14824 = vmatpush3.bf16.msra.mxu1 %v18140_v44 }
 0x32e   : > { %22876 = vst [vmem:[#allocation5_spill] sm:$0xff] %v18486_v36  ;;  %v16354_v8 = vpop.eup %16353  ;;  %v4184_v50 = vadd.f32 %v15367_v59, %v18213_v31  ;;  %v4477_v0 = vand.u32 4294901760, %v4476_v55  ;;  %v22168_v47 = vand.u32 4294901760, %v18484_v42  ;;  %v18498_v62 = vsub.f32 %v16352_v27, %v18486_v36  ;;  %14826 = vmatprep.subr.bf16.mxu1 %v18148_v52 }
 0x32f   : > { %v16356_v56 = vpop.eup %16355  ;;  %v18501_v28 = vand.u32 4294901760, %v16354_v8  ;;  %v4183_v58 = vadd.f32 %v15368_v19, %v18213_v31  ;;  %13354 = vmatprep.mubr.f32.mxu1 %v4467_v35  ;;  %v13297_v18 = vpop.f32.mrb[28].mxu0  ;;  %v4486_v44 = vsub.f32 %v18474_v37, %v22165_v1  ;;  %v18508_v59 = vsub.f32 %v16350_v25, %v18477_v61 }
 0x330   : > { %22877 = vst [vmem:[#allocation52_spill] sm:$0xff] %v18498_v62  ;;  %v18510_v15 = vand.u32 4294901760, %v16356_v56  ;;  %16365 = vtanh.f32 %v4184_v50  ;;  %v15369_v27 = vadd.f32 %v13297_v18, %v18024_v38  ;;  %13355 = vmatmul.mubr.f32.gmra.mrb[46].mxu1 %v4477_v0  ;;  %v4130_v55 = vpop.f32.mrb[29].mxu0  ;;  %v4496_v19 = vsub.f32 %v18484_v42, %v22168_v47 }
 0x331   : > { %22878 = vst [vmem:[#allocation53_spill] sm:$0xff] %v18501_v28  ;;  %22879 = vst [vmem:[#allocation54_spill] sm:$0xff] %v18508_v59  ;;  %16367 = vtanh.f32 %v4183_v58  ;;  %v15370_v35 = vadd.f32 %v4130_v55, %v18026_v34  ;;  %v4487_v39 = vand.u32 4294901760, %v4486_v44  ;;  %v22169_v1 = vand.u32 4294901760, %v18498_v62  ;;  %14828 = vmatpush3.bf16.msra.mxu1 %v18148_v52 }
 0x332   : > { %22880 = vst [vmem:[#allocation55_spill] sm:$0xff] %v18510_v15  ;;  %v16358_v25 = vpop.eup %16357  ;;  %v4186_v37 = vadd.f32 %v15369_v27, %v18213_v31  ;;  %v4497_v50 = vand.u32 4294901760, %v4496_v19  ;;  %v22174_v38 = vand.u32 4294901760, %v18508_v59  ;;  %v18522_v0 = vsub.f32 %v16356_v56, %v18510_v15  ;;  %14830 = vmatprep.subr.bf16.mxu1 %v18152_v26 }
 0x333   : > { %v16360_v18 = vpop.eup %16359  ;;  %v18525_v58 = vand.u32 4294901760, %v16358_v25  ;;  %v4185_v34 = vadd.f32 %v15370_v35, %v18213_v31  ;;  %13357 = vmatprep.mubr.f32.mxu1 %v4487_v39  ;;  %v13300_v44 = vpop.f32.mrb[30].mxu0  ;;  %v4506_v52 = vsub.f32 %v18498_v62, %v22169_v1  ;;  %v18532_v27 = vsub.f32 %v16354_v8, %v18501_v28 }
 0x334   : > { %22881 = vst [vmem:[#allocation56_spill] sm:$0xff] %v18522_v0  ;;  %v18534_v55 = vand.u32 4294901760, %v16360_v18  ;;  %16369 = vtanh.f32 %v4186_v37  ;;  %v15371_v56 = vadd.f32 %v13300_v44, %v18030_v4  ;;  %13358 = vmatmul.mubr.f32.gmra.mrb[48].mxu1 %v4497_v50  ;;  %v4142_v19 = vpop.f32.mrb[31].mxu0  ;;  %v4516_v35 = vsub.f32 %v18508_v59, %v22174_v38 }
 0x335   : > { %22882 = vst [vmem:[#allocation57_spill] sm:$0xff] %v18525_v58  ;;  %22883 = vst [vmem:[#allocation58_spill] sm:$0xff] %v18532_v27  ;;  %16371 = vtanh.f32 %v4185_v34  ;;  %v15372_v39 = vadd.f32 %v4142_v19, %v18032_v5  ;;  %v4507_v47 = vand.u32 4294901760, %v4506_v52  ;;  %v22176_v1 = vand.u32 4294901760, %v18522_v0 }
 0x336   : > { %22884 = vst [vmem:[#allocation59_spill] sm:$0xff] %v18534_v55  ;;  %v16362_v62 = vpop.eup %16361  ;;  %v4188_v8 = vadd.f32 %v15371_v56, %v18213_v31  ;;  %v4517_v42 = vand.u32 4294901760, %v4516_v35  ;;  %v22175_v37 = vand.u32 4294901760, %v18532_v27  ;;  %v18545_v4 = vsub.f32 %v16360_v18, %v18534_v55 }
 0x337   : > { %v16364_v50 = vpop.eup %16363  ;;  %v18547_v44 = vand.u32 4294901760, %v16362_v62  ;;  %v4187_v38 = vadd.f32 %v15372_v39, %v18213_v31  ;;  %13360 = vmatprep.mubr.f32.mxu1 %v4507_v47  ;;  %v4526_v5 = vsub.f32 %v18522_v0, %v22176_v1  ;;  %v18554_v34 = vsub.f32 %v16358_v25, %v18525_v58 }
 0x338   : > { %22885 = vst [vmem:[#allocation60_spill] sm:$0xff] %v18545_v4  ;;  %v18556_v52 = vand.u32 4294901760, %v16364_v50  ;;  %16373 = vtanh.f32 %v4188_v8  ;;  %13361 = vmatmul.mubr.f32.gmra.mrb[50].mxu1 %v4517_v42  ;;  %v4536_v18 = vsub.f32 %v18532_v27, %v22175_v37  ;;  %v22177_v56 = vand.u32 4294901760, %v18545_v4 }
 0x339   : > { %22886 = vst [vmem:[#allocation61_spill] sm:$0xff] %v18547_v44  ;;  %22887 = vst [vmem:[#allocation62_spill] sm:$0xff] %v18554_v34  ;;  %16375 = vtanh.f32 %v4187_v38  ;;  %v4527_v31 = vand.u32 4294901760, %v4526_v5  ;;  %v22180_v47 = vand.u32 4294901760, %v18554_v34  ;;  %v18564_v19 = vsub.f32 %v16362_v62, %v18547_v44 }
 0x33a   : > { %22888 = vst [vmem:[#allocation63_spill] sm:$0xff] %v18556_v52  ;;  %v16366_v35 = vpop.eup %16365  ;;  %v4537_v25 = vand.u32 4294901760, %v4536_v18  ;;  %v4546_v39 = vsub.f32 %v18545_v4, %v22177_v56  ;;  %v18570_v42 = vsub.f32 %v16364_v50, %v18556_v52 }
 0x33b   : > { %22889 = vst [vmem:[#allocation64_spill] sm:$0xff] %v18564_v19  ;;  %v16368_v8 = vpop.eup %16367  ;;  %v18572_v37 = vand.u32 4294901760, %v16366_v35  ;;  %13363 = vmatprep.mubr.f32.mxu1 %v4527_v31  ;;  %v4556_v38 = vsub.f32 %v18554_v34, %v22180_v47  ;;  %v22188_v62 = vand.u32 4294901760, %v18564_v19 }
 0x33c   : > { %22890 = vst [vmem:[#allocation65_spill] sm:$0xff] %v18570_v42  ;;  %v18578_v5 = vand.u32 4294901760, %v16368_v8  ;;  %13364 = vmatmul.mubr.f32.gmra.mrb[52].mxu1 %v4537_v25  ;;  %v4547_v18 = vand.u32 4294901760, %v4546_v39  ;;  %v22185_v1 = vand.u32 4294901760, %v18570_v42 }
 0x33d   : > { %22891 = vst [vmem:[#allocation66_spill] sm:$0xff] %v18572_v37  ;;  %v18582_v56 = vsub.f32 %v16366_v35, %v18572_v37  ;;  %v4557_v4 = vand.u32 4294901760, %v4556_v38  ;;  %v4576_v47 = vsub.f32 %v18564_v19, %v22188_v62 }
 0x33e   : > { %22892 = vst [vmem:[#allocation67_spill] sm:$0xff] %v18578_v5  ;;  %v16370_v50 = vpop.eup %16369  ;;  %13366 = vmatprep.mubr.f32.mxu1 %v4547_v18  ;;  %v4566_v31 = vsub.f32 %v18570_v42, %v22185_v1  ;;  %v18591_v34 = vsub.f32 %v16368_v8, %v18578_v5 }
 0x33f   : > { %22893 = vst [vmem:[#allocation68_spill] sm:$0xff] %v18582_v56  ;;  %v16372_v25 = vpop.eup %16371  ;;  %v18593_v39 = vand.u32 4294901760, %v16370_v50  ;;  %v22198_v35 = vand.u32 4294901760, %v18582_v56  ;;  %v4577_v62 = vand.u32 4294901760, %v4576_v47 }
 0x340   : > { %22894 = vst [vmem:[#allocation69_spill] sm:$0xff] %v18591_v34  ;;  %v18596_v27 = vand.u32 4294901760, %v16372_v25  ;;  %13367 = vmatmul.mubr.f32.gmra.mrb[54].mxu1 %v4557_v4  ;;  %v4567_v38 = vand.u32 4294901760, %v4566_v31  ;;  %v22195_v18 = vand.u32 4294901760, %v18591_v34 }
 0x341   : > { %22895 = vst [vmem:[#allocation70_spill] sm:$0xff] %v18593_v39  ;;  %v18600_v1 = vsub.f32 %v16370_v50, %v18593_v39  ;;  %v4596_v19 = vsub.f32 %v18582_v56, %v22198_v35 }
 0x342   : > { %22896 = vst [vmem:[#allocation71_spill] sm:$0xff] %v18596_v27  ;;  %v16374_v42 = vpop.eup %16373  ;;  %13369 = vmatprep.mubr.f32.mxu1 %v4567_v38  ;;  %v4586_v8 = vsub.f32 %v18591_v34, %v22195_v18  ;;  %v18609_v0 = vsub.f32 %v16372_v25, %v18596_v27 }
 0x343   : > { %v16376_v4 = vpop.eup %16375  ;;  %v18611_v31 = vand.u32 4294901760, %v16374_v42  ;;  %v22202_v50 = vand.u32 4294901760, %v18600_v1  ;;  %v4597_v34 = vand.u32 4294901760, %v4596_v19 }
 0x344   : > { %v18614_v59 = vand.u32 4294901760, %v16376_v4  ;;  %13370 = vmatmul.mubr.f32.gmra.mrb[56].mxu1 %v4577_v62  ;;  %v4587_v47 = vand.u32 4294901760, %v4586_v8  ;;  %v22201_v38 = vand.u32 4294901760, %v18609_v0 }
 0x345   : > { %22897 = vst [vmem:[#allocation72_spill] sm:$0xff] %v18611_v31  ;;  %v18618_v18 = vsub.f32 %v16374_v42, %v18611_v31  ;;  %v4616_v35 = vsub.f32 %v18600_v1, %v22202_v50 }
 0x346   : > { %22898 = vst [vmem:[#allocation47_spill] sm:$0xff] %v18614_v59  ;;  %13372 = vmatprep.mubr.f32.mxu1 %v4587_v47  ;;  %v4606_v25 = vsub.f32 %v18609_v0, %v22201_v38  ;;  %v18627_v56 = vsub.f32 %v16376_v4, %v18614_v59 }
 0x347   : > { %v22203_v62 = vand.u32 4294901760, %v18618_v18  ;;  %v4617_v47 = vand.u32 4294901760, %v4616_v35  ;;  %v22908_v35 = vld [vmem:[#allocation37_spill] sm:$0xff] }
 0x348   : > { %13373 = vmatmul.mubr.f32.gmra.mrb[58].mxu1 %v4597_v34  ;;  %v4607_v8 = vand.u32 4294901760, %v4606_v25  ;;  %v22204_v42 = vand.u32 4294901760, %v18627_v56  ;;  %v22907_v34 = vld [vmem:[#allocation9_spill] sm:$0xff] }
 0x349   : > { %v4636_v38 = vsub.f32 %v18618_v18, %v22203_v62  ;;  %v22911_v25 = vld [vmem:[#allocation13_spill] sm:$0xff]  ;;  %v22916_v62 = vld [vmem:[#allocation15_spill] sm:$0xff] }
 0x34a   : > { %13375 = vmatprep.mubr.f32.mxu1 %v4607_v8  ;;  %v4626_v19 = vsub.f32 %v18627_v56, %v22204_v42  ;;  %v22912_v8 = vld [vmem:[#allocation43_spill] sm:$0xff]  ;;  %v22917_v42 = vand.u32 4294901760, %v22916_v62  ;;  %v22925_v62 = vld [vmem:[#allocation62_spill] sm:$0xff] }
 0x34b   : > { %v4637_v4 = vand.u32 4294901760, %v4636_v38  ;;  %v22910_v38 = vld [vmem:[#allocation32_spill] sm:$0xff] }
 0x34c   : > { %13376 = vmatmul.mubr.f32.gmra.mrb[60].mxu1 %v4617_v47  ;;  %v4627_v50 = vand.u32 4294901760, %v4626_v19  ;;  %v22913_v47 = vld [vmem:[#allocation34_spill] sm:$0xff] }
 0x34d   : > { %v22914_v19 = vld [vmem:[#allocation14_spill] sm:$0xff] }
 0x34e   : > { %13378 = vmatprep.mubr.f32.mxu1 %v4627_v50  ;;  %v22909_v50 = vld [vmem:[#allocation38_spill] sm:$0xff] }
 0x350   : > { %13379 = vmatmul.mubr.f32.gmra.mrb[62].mxu1 %v4637_v4  ;;  %v22915_v4 = vand.u32 4294901760, %v22914_v19  ;;  %v22924_v19 = vld [vmem:[#allocation60_spill] sm:$0xff] }
 0x351   : > { %13413 = vmatprep.mubr.f32.mxu1 %v18268_v24 }
 0x354   : > { %13414 = vmatmul.mubr.f32.vlgmr.msra.gmra.mrb[32].mxu1 %v18262_v29 }
 0x355   : > { %14832 = vmatpush3.bf16.msra.mxu1 %v18152_v26  ;;  %13416 = vmatprep.mubr.f32.mxu1 %v18297_v11  ;;  %v22899_v26 = vld [vmem:[#allocation7_spill] sm:$0xff] }
 0x356   : > { %14834 = vmatprep.subr.bf16.mxu1 %v18166_v3 }
 0x358   : > { %13417 = vmatmul.mubr.f32.gmra.mrb[34].mxu1 %v18288_v20 }
 0x359   : > { %13419 = vmatprep.mubr.f32.mxu1 %v18324_v21  ;;  %14836 = vmatpush3.bf16.msra.mxu1 %v18166_v3  ;;  %v22900_v3 = vld [vmem:[#allocation8_spill] sm:$0xff] }
 0x35a   : > { %14838 = vmatprep.subr.bf16.mxu1 %v18180_v32 }
 0x35c   : > { %13420 = vmatmul.mubr.f32.gmra.mrb[36].mxu1 %v18320_v7 }
 0x35d   : > { %13422 = vmatprep.mubr.f32.mxu1 %v18346_v12  ;;  %14840 = vmatpush3.bf16.msra.mxu1 %v18180_v32  ;;  %v22901_v32 = vld [vmem:[#allocation30_spill] sm:$0xff] }
 0x35e   : > { %14842 = vmatprep.subr.bf16.mxu1 %v18194_v2 }
 0x360   : > { %13423 = vmatmul.mubr.f32.gmra.mrb[38].mxu1 %v18340_v17 }
 0x361   : > { %13425 = vmatprep.mubr.f32.mxu1 %v18371_v9  ;;  %14844 = vmatpush3.bf16.msra.mxu1 %v18194_v2  ;;  %v22902_v2 = vld [vmem:[#allocation45_spill] sm:$0xff] }
 0x362   : > { %14846 = vmatprep.subr.bf16.mxu1 %v18208_v30 }
 0x364   : > { %13426 = vmatmul.mubr.f32.gmra.mrb[40].mxu1 %v18364_v41 }
 0x365   : > { %13428 = vmatprep.mubr.f32.mxu1 %v18392_v60  ;;  %14848 = vmatpush3.bf16.msra.mxu1 %v18208_v30  ;;  %v22903_v30 = vld [vmem:[#allocation31_spill] sm:$0xff] }
 0x366   : > { %14850 = vmatprep.subr.bf16.mxu1 %v18219_v53 }
 0x368   : > { %13429 = vmatmul.mubr.f32.gmra.mrb[42].mxu1 %v18386_v10 }
 0x369   : > { %13431 = vmatprep.mubr.f32.mxu1 %v18416_v14  ;;  %14852 = vmatpush3.bf16.msra.mxu1 %v18219_v53  ;;  %v22904_v53 = vld [vmem:[#allocation41_spill] sm:$0xff] }
 0x36a   : > { %14854 = vmatprep.subr.bf16.mxu1 %v18249_v54 }
 0x36c   : > { %13432 = vmatmul.mubr.f32.gmra.mrb[44].mxu1 %v18407_v6  ;;  %v22939_v6 = vld [vmem:[#allocation25_spill] sm:$0xff] }
 0x36d   : > { %13434 = vmatprep.mubr.f32.mxu1 %v18439_v13  ;;  %14856 = vmatpush3.bf16.msra.mxu1 %v18249_v54  ;;  %v22905_v54 = vld [vmem:[#allocation33_spill] sm:$0xff] }
 0x36e   : > { %14858 = vmatprep.subr.bf16.mxu1 %v18279_v43 }
 0x370   : > { %13435 = vmatmul.mubr.f32.gmra.mrb[46].mxu1 %v18430_v46  ;;  %v22936_v46 = vand.u32 4294901760, %v18313_v22 }
 0x371   : > { %13437 = vmatprep.mubr.f32.mxu1 %v18462_v40  ;;  %14860 = vmatpush3.bf16.msra.mxu1 %v18279_v43  ;;  %v22906_v43 = vld [vmem:[#allocation35_spill] sm:$0xff]  ;;  %v22935_v40 = vand.u32 4294901760, %v18274_v63 }
 0x372   : > { %14862 = vmatprep.subr.bf16.mxu1 %v22899_v26 }
 0x374   : > { %13438 = vmatmul.mubr.f32.gmra.mrb[48].mxu1 %v18453_v45 }
 0x375   : > { %13440 = vmatprep.mubr.f32.mxu1 %v18486_v36 }
 0x378   : > { %13441 = vmatmul.mubr.f32.gmra.mrb[50].mxu1 %v18477_v61  ;;  %v22933_v61 = vld [vmem:[#allocation23_spill] sm:$0xff] }
 0x379   : > { %13443 = vmatprep.mubr.f32.mxu1 %v18510_v15  ;;  %v22934_v36 = vand.u32 4294901760, %v22933_v61  ;;  %v22945_v61 = vld [vmem:[#allocation27_spill] sm:$0xff] }
 0x37c   : > { %13444 = vmatmul.mubr.f32.gmra.mrb[52].mxu1 %v18501_v28  ;;  %v22931_v28 = vld [vmem:[#allocation22_spill] sm:$0xff] }
 0x37d   : > { %13446 = vmatprep.mubr.f32.mxu1 %v18534_v55  ;;  %v22930_v55 = vand.u32 4294901760, %v18283_v48  ;;  %v22932_v15 = vand.u32 4294901760, %v22931_v28  ;;  %v22942_v28 = vand.u32 4294901760, %v22901_v32 }
 0x37f   : > { %v14897_v45 = vpack.c.bf16 %v22934_v36, %v22932_v15  ;;  %v22946_v36 = vand.u32 4294901760, %v22945_v61  ;;  %v22948_v15 = vand.u32 4294901760, %v18359_v33 }
 0x380   : > { %13447 = vmatmul.mubr.f32.gmra.mrb[54].mxu1 %v18525_v58  ;;  %v22929_v58 = vld [vmem:[#allocation68_spill] sm:$0xff] }
 0x381   : > { %13449 = vmatprep.mubr.f32.mxu1 %v18556_v52  ;;  %v22928_v52 = vld [vmem:[#allocation69_spill] sm:$0xff] }
 0x384   : > { %13450 = vmatmul.mubr.f32.gmra.mrb[56].mxu1 %v18547_v44  ;;  %v22923_v44 = vld [vmem:[#allocation58_spill] sm:$0xff] }
 0x385   : > { %13452 = vmatprep.mubr.f32.mxu1 %v18578_v5  ;;  %v22922_v5 = vld [vmem:[#allocation56_spill] sm:$0xff] }
 0x388   : > { %13453 = vmatmul.mubr.f32.gmra.mrb[58].mxu1 %v18572_v37  ;;  %v22921_v37 = vld [vmem:[#allocation54_spill] sm:$0xff] }
 0x389   : > { %13455 = vmatprep.mubr.f32.mxu1 %v18596_v27  ;;  %v22920_v27 = vld [vmem:[#allocation52_spill] sm:$0xff] }
 0x38c   : > { %13456 = vmatmul.mubr.f32.gmra.mrb[60].mxu1 %v18593_v39  ;;  %v22919_v39 = vld [vmem:[#allocation6_spill] sm:$0xff] }
 0x38d   : > { %13458 = vmatprep.mubr.f32.mxu1 %v18614_v59  ;;  %v22918_v59 = vld [vmem:[#allocation50_spill] sm:$0xff] }
 0x390   : > { %13459 = vmatmul.mubr.f32.gmra.mrb[62].mxu1 %v18611_v31  ;;  %v14893_v31 = vpack.c.bf16 %v22917_v42, %v22915_v4  ;;  %v22926_v42 = vld [vmem:[#allocation65_spill] sm:$0xff]  ;;  %v22927_v4 = vld [vmem:[#allocation64_spill] sm:$0xff] }
 0x391   : > { %13493 = vmatprep.mubr.f32.mxu1 %v18283_v48  ;;  %v22941_v48 = vand.u32 4294901760, %v18306_v57 }
 0x394   : > { %13494 = vmatmul.mubr.f32.vlgmr.msra.gmra.mrb[32].mxu1 %v18274_v63  ;;  %v22943_v63 = vld [vmem:[#allocation26_spill] sm:$0xff] }
 0x395   : > { %14864 = vmatpush3.bf16.msra.mxu1 %v22899_v26  ;;  %13496 = vmatprep.mubr.f32.mxu1 %v18313_v22 }
 0x396   : > { %14866 = vmatprep.subr.bf16.mxu1 %v22900_v3 }
 0x398   : > { %13497 = vmatmul.mubr.f32.gmra.mrb[34].mxu1 %v18306_v57  ;;  %v22949_v57 = vld [vmem:[#allocation28_spill] sm:$0xff] }
 0x399   : > { %13499 = vmatprep.mubr.f32.mxu1 %v22901_v32  ;;  %14868 = vmatpush3.bf16.msra.mxu1 %v22900_v3  ;;  %v22954_v32 = vand.u32 4294901760, %v22906_v43 }
 0x39a   : > { %14870 = vmatprep.subr.bf16.mxu1 %v22902_v2 }
 0x39c   : > { %13500 = vmatmul.mubr.f32.gmra.mrb[36].mxu1 %v22903_v30 }
 0x39d   : > { %13502 = vmatprep.mubr.f32.mxu1 %v18359_v33  ;;  %14872 = vmatpush3.bf16.msra.mxu1 %v22902_v2 }
 0x39e   : > { %14874 = vmatprep.subr.bf16.mxu1 %v22904_v53 }
 0x3a0   : > { %13503 = vmatmul.mubr.f32.gmra.mrb[38].mxu1 %v22905_v54 }
 0x3a1   : > { %13505 = vmatprep.mubr.f32.mxu1 %v22906_v43  ;;  %14876 = vmatpush3.bf16.msra.mxu1 %v22904_v53 }
 0x3a2   : > { %14878 = vmatprep.subr.bf16.mxu1 %v22907_v34 }
 0x3a4   : > { %13506 = vmatmul.mubr.f32.gmra.mrb[40].mxu1 %v22908_v35 }
 0x3a5   : > { %13508 = vmatprep.mubr.f32.mxu1 %v22909_v50  ;;  %14880 = vmatpush3.bf16.msra.mxu1 %v22907_v34 }
 0x3a6   : > { %14882 = vmatprep.subr.bf16.mxu1 %v22910_v38 }
 0x3a8   : > { %13509 = vmatmul.mubr.f32.gmra.mrb[42].mxu1 %v18414_v51 }
 0x3a9   : > { %13511 = vmatprep.mubr.f32.mxu1 %v18428_v16  ;;  %14884 = vmatpush3.bf16.msra.mxu1 %v22910_v38 }
 0x3aa   : > { %14886 = vmatprep.subr.bf16.mxu1 %v22911_v25 }
 0x3ac   : > { %13512 = vmatmul.mubr.f32.gmra.mrb[44].mxu1 %v18437_v23 }
 0x3ad   : > { %13514 = vmatprep.mubr.f32.mxu1 %v22912_v8  ;;  %14888 = vmatpush3.bf16.msra.mxu1 %v22911_v25  ;;  %v22940_v25 = vand.u32 4294901760, %v22939_v6  ;;  %v22950_v6 = vand.u32 4294901760, %v22949_v57 }
 0x3ae   : > { %14890 = vmatprep.subr.bf16.mxu1 %v22913_v47 }
 0x3b0   : > { %13515 = vmatmul.mubr.f32.gmra.mrb[46].mxu1 %v18460_v49 }
 0x3b1   : > { %13517 = vmatprep.mubr.f32.mxu1 %v22918_v59  ;;  %14892 = vmatpush3.bf16.msra.mxu1 %v22913_v47  ;;  %v22937_v47 = vld [vmem:[#allocation24_spill] sm:$0xff] }
 0x3b2   : > { %14894 = vmatprep.subr.bf16.mxu1 %v14893_v31  ;;  %v22938_v13 = vand.u32 4294901760, %v22937_v47  ;;  %v22957_v47 = vld [vmem:[#allocation17_spill] sm:$0xff] }
 0x3b3   : > { %v22958_v33 = vand.u32 4294901760, %v22957_v47  ;;  %v23001_v47 = vld [vmem:[#allocation53_spill] sm:$0xff] }
 0x3b4   : > { %13518 = vmatmul.mubr.f32.gmra.mrb[48].mxu1 %v22919_v39  ;;  %v14901_v14 = vpack.c.bf16 %v22940_v25, %v22938_v13  ;;  %v22951_v13 = vld [vmem:[#allocation29_spill] sm:$0xff] }
 0x3b5   : > { %13520 = vmatprep.mubr.f32.mxu1 %v22920_v27 }
 0x3b8   : > { %13521 = vmatmul.mubr.f32.gmra.mrb[50].mxu1 %v22921_v37 }
 0x3b9   : > { %13523 = vmatprep.mubr.f32.mxu1 %v22922_v5 }
 0x3bc   : > { %13524 = vmatmul.mubr.f32.gmra.mrb[52].mxu1 %v22923_v44 }
 0x3bd   : > { %13526 = vmatprep.mubr.f32.mxu1 %v22924_v19 }
 0x3c0   : > { %13527 = vmatmul.mubr.f32.gmra.mrb[54].mxu1 %v22925_v62 }
 0x3c1   : > { %13529 = vmatprep.mubr.f32.mxu1 %v22926_v42 }
 0x3c4   : > { %13530 = vmatmul.mubr.f32.gmra.mrb[56].mxu1 %v22927_v4 }
 0x3c5   : > { %13532 = vmatprep.mubr.f32.mxu1 %v22928_v52 }
 0x3c8   : > { %13533 = vmatmul.mubr.f32.gmra.mrb[58].mxu1 %v22929_v58 }
 0x3c9   : > { %13535 = vmatprep.mubr.f32.mxu1 %v18609_v0 }
 0x3cc   : > { %13536 = vmatmul.mubr.f32.gmra.mrb[60].mxu1 %v18600_v1 }
 0x3cd   : > { %13538 = vmatprep.mubr.f32.mxu1 %v18627_v56 }
 0x3d0   : > { %13539 = vmatmul.mubr.f32.gmra.mrb[62].mxu1 %v18618_v18 }
 0x3d1   : > { %13573 = vmatprep.mubr.f32.mxu1 %v22930_v55  ;;  %v22952_v55 = vand.u32 4294901760, %v22951_v13  ;;  %v22972_v13 = vand.u32 4294901760, %v22912_v8  ;;  %v22977_v8 = vand.u32 4294901760, %v22921_v37  ;;  %v22984_v37 = vand.u32 4294901760, %v22928_v52  ;;  %v22991_v52 = vld [vmem:[#allocation13_spill] sm:$0xff] }
 0x3d4   : > { %13574 = vmatmul.mubr.f32.vlgmr.msra.gmra.mrb[32].mxu1 %v22935_v40  ;;  %v22944_v40 = vand.u32 4294901760, %v22943_v63 }
 0x3d5   : > { %14896 = vmatpush3.bf16.msra.mxu1 %v14893_v31  ;;  %13576 = vmatprep.mubr.f32.mxu1 %v22936_v46  ;;  %v22947_v46 = vand.u32 4294901760, %v22903_v30  ;;  %v14909_v31 = vpack.c.bf16 %v22952_v55, %v22950_v6  ;;  %v22955_v30 = vld [vmem:[#allocation16_spill] sm:$0xff]  ;;  %v22971_v6 = vand.u32 4294901760, %v18437_v23  ;;  %v22975_v55 = vand.u32 4294901760, %v22919_v39 }
 0x3d6   : > { %14898 = vmatprep.subr.bf16.mxu1 %v14897_v45  ;;  %v14905_v22 = vpack.c.bf16 %v22946_v36, %v22944_v40  ;;  %v22956_v25 = vand.u32 4294901760, %v22955_v30  ;;  %v22963_v40 = vld [vmem:[#allocation19_spill] sm:$0xff]  ;;  %v22965_v36 = vand.u32 4294901760, %v18414_v51  ;;  %v22973_v51 = vand.u32 4294901760, %v18460_v49  ;;  %v22999_v30 = vld [vmem:[#allocation36_spill] sm:$0xff] }
 0x3d7   : > { %v22964_v43 = vand.u32 4294901760, %v22963_v40  ;;  %v22976_v23 = vand.u32 4294901760, %v22920_v27  ;;  %v22979_v49 = vand.u32 4294901760, %v22923_v44  ;;  %v22982_v39 = vand.u32 4294901760, %v22926_v42  ;;  %v23008_v40 = vld [vmem:[#allocation71_spill] sm:$0xff] }
 0x3d8   : > { %13577 = vmatmul.mubr.f32.gmra.mrb[34].mxu1 %v22941_v48  ;;  %v14913_v48 = vpack.c.bf16 %v22958_v33, %v22956_v25  ;;  %v22983_v27 = vand.u32 4294901760, %v22927_v4  ;;  %v22986_v44 = vand.u32 4294901760, %v18609_v0  ;;  %v22989_v42 = vand.u32 4294901760, %v18618_v18  ;;  %v18858_v0 = vld [vmem:[%s21898_s4 + $0x88] sm:$0xff]  ;;  %v23000_v25 = vld [vmem:[#allocation55_spill] sm:$0xff] }
 0x3d9   : > { %13579 = vmatprep.mubr.f32.mxu1 %v22942_v28  ;;  %14900 = vmatpush3.bf16.msra.mxu1 %v14897_v45  ;;  %v22953_v45 = vand.u32 4294901760, %v22905_v54  ;;  %v22960_v28 = vand.u32 4294901760, %v22909_v50  ;;  %v22961_v54 = vld [vmem:[#allocation18_spill] sm:$0xff]  ;;  %v6274_v18 = vand.u32 4294901760, %v18858_v0  ;;  %v23002_v33 = vld [vmem:[#allocation59_spill] sm:$0xff] }
 0x3da   : > { %14902 = vmatprep.subr.bf16.mxu1 %v14901_v14  ;;  %v22962_v63 = vand.u32 4294901760, %v22961_v54  ;;  %v22997_v4 = vld [vmem:[#allocation46_spill] sm:$0xff]  ;;  %v23006_v54 = vld [vmem:[#allocation67_spill] sm:$0xff] }
 0x3dc   : > { %13580 = vmatmul.mubr.f32.gmra.mrb[36].mxu1 %v22947_v46  ;;  %v14917_v61 = vpack.c.bf16 %v22964_v43, %v22962_v63  ;;  %v23007_v63 = vld [vmem:[#allocation66_spill] sm:$0xff]  ;;  %v18895_v43 = vld [vmem:[%s21898_s4 + $0x90] sm:$0xff] }
 0x3dd   : > { %13582 = vmatprep.mubr.f32.mxu1 %v22948_v15  ;;  %14904 = vmatpush3.bf16.msra.mxu1 %v14901_v14  ;;  %v22959_v14 = vand.u32 4294901760, %v22908_v35  ;;  %v22967_v35 = vld [vmem:[#allocation20_spill] sm:$0xff]  ;;  %v22969_v15 = vld [vmem:[#allocation21_spill] sm:$0xff] }
 0x3de   : > { %14906 = vmatprep.subr.bf16.mxu1 %v14905_v22  ;;  %v22968_v46 = vand.u32 4294901760, %v22967_v35  ;;  %v22970_v50 = vand.u32 4294901760, %v22969_v15  ;;  %v6277_v35 = vand.u32 4294901760, %v18895_v43  ;;  %v18909_v15 = vld [vmem:[%s21898_s4 + $0xa0] sm:$0xff] }
 0x3e0   : > { %13583 = vmatmul.mubr.f32.gmra.mrb[38].mxu1 %v22953_v45  ;;  %v14921_v57 = vpack.c.bf16 %v22970_v50, %v22968_v46  ;;  %v22981_v45 = vand.u32 4294901760, %v22925_v62  ;;  %v22988_v62 = vand.u32 4294901760, %v18627_v56  ;;  %v18914_v50 = vld [vmem:[%s21898_s4 + $0xa8] sm:$0xff] }
 0x3e1   : > { %13585 = vmatprep.mubr.f32.mxu1 %v22954_v32  ;;  %14908 = vmatpush3.bf16.msra.mxu1 %v14905_v22  ;;  %v22966_v22 = vand.u32 4294901760, %v18428_v16  ;;  %v22974_v16 = vand.u32 4294901760, %v22918_v59  ;;  %v22980_v59 = vand.u32 4294901760, %v22924_v19  ;;  %v22987_v19 = vand.u32 4294901760, %v18600_v1  ;;  %v18853_v1 = vld [vmem:[%s21898_s4 + $0x80] sm:$0xff] }
 0x3e2   : > { %14910 = vmatprep.subr.bf16.mxu1 %v14909_v31  ;;  %v6271_v56 = vand.u32 4294901760, %v18853_v1  ;;  %v22998_v32 = vld [vmem:[#allocation5_spill] sm:$0xff] }
 0x3e4   : > { %13586 = vmatmul.mubr.f32.gmra.mrb[40].mxu1 %v22959_v14  ;;  %v23004_v14 = vld [vmem:[#allocation63_spill] sm:$0xff] }
 0x3e5   : > { %13588 = vmatprep.mubr.f32.mxu1 %v22960_v28  ;;  %14912 = vmatpush3.bf16.msra.mxu1 %v14909_v31  ;;  %v22978_v31 = vand.u32 4294901760, %v22922_v5  ;;  %v22985_v5 = vand.u32 4294901760, %v22929_v58  ;;  %v22990_v58 = vld [vmem:[#allocation40_spill] sm:$0xff]  ;;  %v23005_v28 = vld [vmem:[#allocation61_spill] sm:$0xff] }
 0x3e6   : > { %14914 = vmatprep.subr.bf16.mxu1 %v14913_v48 }
 0x3e8   : > { %13589 = vmatmul.mubr.f32.gmra.mrb[42].mxu1 %v22965_v36  ;;  %v23009_v36 = vld [vmem:[#allocation70_spill] sm:$0xff] }
 0x3e9   : > { %13591 = vmatprep.mubr.f32.mxu1 %v22966_v22  ;;  %14916 = vmatpush3.bf16.msra.mxu1 %v14913_v48  ;;  %v23003_v48 = vld [vmem:[#allocation57_spill] sm:$0xff]  ;;  %v23010_v22 = vld [vmem:[#allocation47_spill] sm:$0xff] }
 0x3ea   : > { %14918 = vmatprep.subr.bf16.mxu1 %v14917_v61 }
 0x3ec   : > { %13592 = vmatmul.mubr.f32.gmra.mrb[44].mxu1 %v22971_v6 }
 0x3ed   : > { %13594 = vmatprep.mubr.f32.mxu1 %v22972_v13  ;;  %14920 = vmatpush3.bf16.msra.mxu1 %v14917_v61  ;;  %v18900_v61 = vld [vmem:[%s21898_s4 + $0x98] sm:$0xff]  ;;  %v6283_v13 = vand.u32 4294901760, %v18909_v15 }
 0x3ee   : > { %14922 = vmatprep.subr.bf16.mxu1 %v14921_v57  ;;  %v6280_v46 = vand.u32 4294901760, %v18900_v61 }
 0x3f0   : > { %13595 = vmatmul.mubr.f32.gmra.mrb[46].mxu1 %v22973_v51  ;;  %v18922_v6 = vpack.c.bf16 %v6280_v46, %v6277_v35  ;;  %v6286_v51 = vand.u32 4294901760, %v18914_v50 }
 0x3f1   : > { %13597 = vmatprep.mubr.f32.mxu1 %v22974_v16  ;;  %14924 = vmatpush3.bf16.msra.mxu1 %v14921_v57  ;;  %v23011_v57 = vld [vmem:[#allocation72_spill] sm:$0xff]  ;;  %v18929_v16 = vld [vmem:[%s21898_s4 + $0xb0] sm:$0xff] }
 0x3f2   : > { %14926 = vmatprep.subr.bf16.mxu1 %v22899_v26 }
 0x3f4   : > { %13598 = vmatmul.mubr.f32.gmra.mrb[48].mxu1 %v22975_v55  ;;  %v18934_v55 = vld [vmem:[%s21898_s4 + $0xb8] sm:$0xff] }
 0x3f5   : > { %13600 = vmatprep.mubr.f32.mxu1 %v22976_v23  ;;  %v6289_v23 = vand.u32 4294901760, %v18929_v16 }
 0x3f8   : > { %13601 = vmatmul.mubr.f32.gmra.mrb[50].mxu1 %v22977_v8  ;;  %v6292_v8 = vand.u32 4294901760, %v18934_v55 }
 0x3f9   : > { %13603 = vmatprep.mubr.f32.mxu1 %v22978_v31 }
 0x3fa   : > { %v18966_v31 = vpack.c.bf16 %v6292_v8, %v6289_v23 }
 0x3fc   : > { %13604 = vmatmul.mubr.f32.gmra.mrb[52].mxu1 %v22979_v49  ;;  %23012 = vst [vmem:[#allocation10_spill] sm:$0xff] %v18966_v31 }
 0x3fd   : > { %13606 = vmatprep.mubr.f32.mxu1 %v22980_v59 }
 0x400   : > { %13607 = vmatmul.mubr.f32.gmra.mrb[54].mxu1 %v22981_v45 }
 0x401   : > { %13609 = vmatprep.mubr.f32.mxu1 %v22982_v39 }
 0x404   : > { %13610 = vmatmul.mubr.f32.gmra.mrb[56].mxu1 %v22983_v27  ;;  %v11395_v27 = vld [vmem:[%s21898_s4 + $0xf0] sm:$0xff] }
 0x405   : > { %13612 = vmatprep.mubr.f32.mxu1 %v22984_v37  ;;  %v11396_v37 = vld [vmem:[%s21898_s4 + $0xf8] sm:$0xff] }
 0x408   : > { %13613 = vmatmul.mubr.f32.gmra.mrb[58].mxu1 %v22985_v5  ;;  %v6313_v5 = vand.u32 4294901760, %v11395_v27 }
 0x409   : > { %13615 = vmatprep.mubr.f32.mxu1 %v22986_v44  ;;  %v6316_v44 = vand.u32 4294901760, %v11396_v37 }
 0x40c   : > { %13616 = vmatmul.mubr.f32.gmra.mrb[60].mxu1 %v22987_v19  ;;  %v19034_v19 = vpack.c.bf16 %v6316_v44, %v6313_v5 }
 0x40d   : > { %13618 = vmatprep.mubr.f32.mxu1 %v22988_v62  ;;  %v19041_v62 = vsub.f32 %v18853_v1, %v6271_v56 }
 0x40e   : > { %23016 = vst [vmem:[#allocation12_spill] sm:$0xff] %v19034_v19 }
 0x40f   : > { %23017 = vst [vmem:[#allocation7_spill] sm:$0xff] %v19041_v62 }
 0x410   : > { %13619 = vmatmul.mubr.f32.gmra.mrb[62].mxu1 %v22989_v42  ;;  %v19046_v42 = vsub.f32 %v18858_v0, %v6274_v18 }
 0x411   : > { %13653 = vmatprep.mubr.f32.mxu1 %v18268_v24 }
 0x412   : > { %23018 = vst [vmem:[#allocation8_spill] sm:$0xff] %v19046_v42 }
 0x414   : > { %13654 = vmatmul.mubr.f32.vlgmr.msra.gmra.mrb[32].mxu1 %v18262_v29 }
 0x415   : > { %14928 = vmatpush3.bf16.msra.mxu1 %v22899_v26  ;;  %13656 = vmatprep.mubr.f32.mxu1 %v18297_v11  ;;  %v22992_v26 = vld [vmem:[#allocation39_spill] sm:$0xff] }
 0x416   : > { %14930 = vmatprep.subr.bf16.mxu1 %v22900_v3 }
 0x418   : > { %13657 = vmatmul.mubr.f32.gmra.mrb[34].mxu1 %v18288_v20 }
 0x419   : > { %13659 = vmatprep.mubr.f32.mxu1 %v18324_v21  ;;  %14932 = vmatpush3.bf16.msra.mxu1 %v22900_v3  ;;  %v22993_v3 = vld [vmem:[#allocation42_spill] sm:$0xff] }
 0x41a   : > { %14934 = vmatprep.subr.bf16.mxu1 %v22902_v2 }
 0x41c   : > { %13660 = vmatmul.mubr.f32.gmra.mrb[36].mxu1 %v18320_v7 }
 0x41d   : > { %13662 = vmatprep.mubr.f32.mxu1 %v18346_v12  ;;  %14936 = vmatpush3.bf16.msra.mxu1 %v22902_v2  ;;  %v22994_v2 = vld [vmem:[#allocation34_spill] sm:$0xff] }
 0x41e   : > { %14938 = vmatprep.subr.bf16.mxu1 %v22904_v53 }
 0x420   : > { %13663 = vmatmul.mubr.f32.gmra.mrb[38].mxu1 %v18340_v17 }
 0x421   : > { %13665 = vmatprep.mubr.f32.mxu1 %v18371_v9  ;;  %14940 = vmatpush3.bf16.msra.mxu1 %v22904_v53  ;;  %v18874_v53 = vpack.c.bf16 %v6274_v18, %v6271_v56 }
 0x422   : > { %14942 = vmatprep.subr.bf16.mxu1 %v22907_v34 }
 0x424   : > { %13666 = vmatmul.mubr.f32.gmra.mrb[40].mxu1 %v18364_v41 }
 0x425   : > { %13668 = vmatprep.mubr.f32.mxu1 %v18392_v60  ;;  %14944 = vmatpush3.bf16.msra.mxu1 %v22907_v34  ;;  %v22995_v34 = vld [vmem:[#allocation44_spill] sm:$0xff] }
 0x426   : > { %14946 = vmatprep.subr.bf16.mxu1 %v22910_v38 }
 0x428   : > { %13669 = vmatmul.mubr.f32.gmra.mrb[42].mxu1 %v18386_v10 }
 0x429   : > { %13671 = vmatprep.mubr.f32.mxu1 %v22990_v58  ;;  %14948 = vmatpush3.bf16.msra.mxu1 %v22910_v38  ;;  %v22996_v38 = vld [vmem:[#allocation48_spill] sm:$0xff] }
 0x42a   : > { %14950 = vmatprep.subr.bf16.mxu1 %v22991_v52 }
 0x42c   : > { %13672 = vmatmul.mubr.f32.gmra.mrb[44].mxu1 %v22992_v26 }
 0x42d   : > { %13674 = vmatprep.mubr.f32.mxu1 %v22993_v3  ;;  %14952 = vmatpush3.bf16.msra.mxu1 %v22991_v52  ;;  %v22260_v52 = vand.u32 4294901760, %v19046_v42 }
 0x42e   : > { %14954 = vmatprep.subr.bf16.mxu1 %v22994_v2 }
 0x430   : > { %13675 = vmatmul.mubr.f32.gmra.mrb[46].mxu1 %v22995_v34 }
 0x431   : > { %13677 = vmatprep.mubr.f32.mxu1 %v22996_v38  ;;  %14956 = vmatpush3.bf16.msra.mxu1 %v22994_v2 }
 0x432   : > { %14958 = vmatprep.subr.bf16.mxu1 %v18874_v53 }
 0x434   : > { %13678 = vmatmul.mubr.f32.gmra.mrb[48].mxu1 %v22997_v4 }
 0x435   : > { %13680 = vmatprep.mubr.f32.mxu1 %v22998_v32 }
 0x438   : > { %13681 = vmatmul.mubr.f32.gmra.mrb[50].mxu1 %v22999_v30 }
 0x439   : > { %13683 = vmatprep.mubr.f32.mxu1 %v23000_v25 }
 0x43c   : > { %13684 = vmatmul.mubr.f32.gmra.mrb[52].mxu1 %v23001_v47 }
 0x43d   : > { %13686 = vmatprep.mubr.f32.mxu1 %v23002_v33 }
 0x440   : > { %13687 = vmatmul.mubr.f32.gmra.mrb[54].mxu1 %v23003_v48 }
 0x441   : > { %13689 = vmatprep.mubr.f32.mxu1 %v23004_v14 }
 0x444   : > { %13690 = vmatmul.mubr.f32.gmra.mrb[56].mxu1 %v23005_v28 }
 0x445   : > { %13692 = vmatprep.mubr.f32.mxu1 %v23006_v54 }
 0x448   : > { %13693 = vmatmul.mubr.f32.gmra.mrb[58].mxu1 %v23007_v63 }
 0x449   : > { %13695 = vmatprep.mubr.f32.mxu1 %v23008_v40 }
 0x44c   : > { %13696 = vmatmul.mubr.f32.gmra.mrb[60].mxu1 %v23009_v36 }
 0x44d   : > { %13698 = vmatprep.mubr.f32.mxu1 %v23010_v22 }
 0x450   : > { %13699 = vmatmul.mubr.f32.gmra.mrb[62].mxu1 %v23011_v57 }
 0x451   : > { %13733 = vmatprep.mubr.f32.mxu1 %v18268_v24  ;;  %v18944_v24 = vpack.c.bf16 %v6286_v51, %v6283_v13 }
 0x454   : > { %13734 = vmatmul.mubr.f32.vlgmr.msra.gmra.mrb[32].mxu1 %v18262_v29  ;;  %v18951_v29 = vld [vmem:[%s21898_s4 + $0xc0] sm:$0xff] }
 0x455   : > { %13736 = vmatprep.mubr.f32.mxu1 %v18297_v11  ;;  %14960 = vmatpush3.bf16.msra.mxu1 %v18874_v53  ;;  %v18956_v11 = vld [vmem:[%s21898_s4 + $0xc8] sm:$0xff]  ;;  %v6295_v49 = vand.u32 4294901760, %v18951_v29 }
 0x456   : > { %14962 = vmatprep.subr.bf16.mxu1 %v18922_v6  ;;  %v6298_v59 = vand.u32 4294901760, %v18956_v11 }
 0x458   : > { %13737 = vmatmul.mubr.f32.gmra.mrb[34].mxu1 %v18288_v20  ;;  %v18978_v20 = vpack.c.bf16 %v6298_v59, %v6295_v49 }
 0x459   : > { %13739 = vmatprep.mubr.f32.mxu1 %v18324_v21  ;;  %14964 = vmatpush3.bf16.msra.mxu1 %v18922_v6  ;;  %v11391_v21 = vld [vmem:[%s21898_s4 + $0xd0] sm:$0xff] }
 0x45a   : > { %14966 = vmatprep.subr.bf16.mxu1 %v18944_v24  ;;  %23013 = vst [vmem:[#allocation49_spill] sm:$0xff] %v18978_v20 }
 0x45c   : > { %13740 = vmatmul.mubr.f32.gmra.mrb[36].mxu1 %v18320_v7  ;;  %v11392_v7 = vld [vmem:[%s21898_s4 + $0xd8] sm:$0xff] }
 0x45d   : > { %13742 = vmatprep.mubr.f32.mxu1 %v18346_v12  ;;  %14968 = vmatpush3.bf16.msra.mxu1 %v18944_v24  ;;  %v6304_v12 = vand.u32 4294901760, %v11392_v7 }
 0x45e   : > { %14970 = vmatprep.subr.bf16.mxu1 %v18966_v31 }
 0x45f   : > { %v19061_v18 = vsub.f32 %v11392_v7, %v6304_v12 }
 0x460   : > { %13743 = vmatmul.mubr.f32.gmra.mrb[38].mxu1 %v18340_v17  ;;  %v6301_v17 = vand.u32 4294901760, %v11391_v21 }
 0x461   : > { %13745 = vmatprep.mubr.f32.mxu1 %v18371_v9  ;;  %14972 = vmatpush3.bf16.msra.mxu1 %v18966_v31  ;;  %23020 = vst [vmem:[#allocation45_spill] sm:$0xff] %v19061_v18 }
 0x462   : > { %14974 = vmatprep.subr.bf16.mxu1 %v18978_v20  ;;  %v19014_v9 = vpack.c.bf16 %v6304_v12, %v6301_v17  ;;  %v19059_v0 = vsub.f32 %v11391_v21, %v6301_v17 }
 0x464   : > { %13746 = vmatmul.mubr.f32.gmra.mrb[40].mxu1 %v18364_v41  ;;  %23014 = vst [vmem:[#allocation11_spill] sm:$0xff] %v19014_v9  ;;  %v11393_v41 = vld [vmem:[%s21898_s4 + $0xe0] sm:$0xff]  ;;  %23019 = vst [vmem:[#allocation30_spill] sm:$0xff] %v19059_v0 }
 0x465   : > { %13748 = vmatprep.mubr.f32.mxu1 %v18392_v60  ;;  %14976 = vmatpush3.bf16.msra.mxu1 %v18978_v20  ;;  %v6307_v60 = vand.u32 4294901760, %v11393_v41 }
 0x466   : > { %14978 = vmatprep.subr.bf16.mxu1 %v19014_v9 }
 0x468   : > { %13749 = vmatmul.mubr.f32.gmra.mrb[42].mxu1 %v18386_v10  ;;  %v11394_v10 = vld [vmem:[%s21898_s4 + $0xe8] sm:$0xff] }
 0x469   : > { %13751 = vmatprep.mubr.f32.mxu1 %v22990_v58  ;;  %v6310_v45 = vand.u32 4294901760, %v11394_v10  ;;  %14980 = vmatpush3.bf16.msra.mxu1 %v19014_v9  ;;  %v22261_v58 = vand.u32 4294901760, %v19041_v62 }
 0x46b   : > { %v19024_v39 = vpack.c.bf16 %v6310_v45, %v6307_v60 }
 0x46c   : > { %13752 = vmatmul.mubr.f32.gmra.mrb[44].mxu1 %v22992_v26  ;;  %v6675_v26 = vsub.f32 %v19041_v62, %v22261_v58 }
 0x46d   : > { %13754 = vmatprep.mubr.f32.mxu1 %v22993_v3  ;;  %23015 = vst [vmem:[#allocation51_spill] sm:$0xff] %v19024_v39  ;;  %14982 = vmatprep.subr.bf16.mxu1 %v19024_v39  ;;  %v6682_v3 = vsub.f32 %v19046_v42, %v22260_v52 }
 0x46e   : > { %14984 = vmatpush3.bf16.msra.mxu1 %v19024_v39  ;;  %v6676_v2 = vand.u32 4294901760, %v6675_v26  ;;  %v19122_v26 = vsub.f32 %v18909_v15, %v6283_v13  ;;  %v19150_v15 = vsub.f32 %v18951_v29, %v6295_v49 }
 0x46f   : > { %14986 = vmatprep.subr.bf16.mxu1 %v19034_v19  ;;  %v6683_v1 = vand.u32 4294901760, %v6682_v3  ;;  %v19127_v3 = vsub.f32 %v18914_v50, %v6286_v51  ;;  %v19155_v50 = vsub.f32 %v18956_v11, %v6298_v59  ;;  %v19164_v51 = vld [vmem:[%s21899_s5 + $0x1] ss:$0 sm:$0xff] }
 0x470   : > { %13755 = vmatmul.mubr.f32.gmra.mrb[46].mxu1 %v22995_v34  ;;  %v22252_v34 = vand.u32 4294901760, %v19059_v0  ;;  %23027 = vst [vmem:[#allocation38_spill] sm:$0xff] %v19122_v26  ;;  %23031 = vst [vmem:[#allocation15_spill] sm:$0xff] %v19150_v15 }
 0x471   : > { %13757 = vmatprep.mubr.f32.mxu1 %v22996_v38  ;;  %v19056_v56 = vpack.c.bf16 %v6683_v1, %v6676_v2  ;;  %v22251_v38 = vand.u32 4294901760, %v19061_v18  ;;  %23028 = vst [vmem:[#allocation32_spill] sm:$0xff] %v19127_v3  ;;  %23032 = vst [vmem:[#allocation50_spill] sm:$0xff] %v19155_v50  ;;  %v19159_v13 = vpack.c.bf16 %v19155_v50, %v19150_v15 }
 0x472   : > { %14988 = vmatpush3.bf16.msra.mxu1 %v19034_v19 }
 0x473   : > { %14990 = vmatprep.subr.bf16.mxu1 %v19056_v56 }
 0x474   : > { %13758 = vmatmul.mubr.f32.gmra.mrb[48].mxu1 %v22997_v4  ;;  %v6745_v4 = vsub.f32 %v19059_v0, %v22252_v34 }
 0x475   : > { %13760 = vmatprep.mubr.f32.mxu1 %v22998_v32  ;;  %v19068_v32 = vsub.f32 %v11393_v41, %v6307_v60 }
 0x477   : > { %23021 = vst [vmem:[#allocation31_spill] sm:$0xff] %v19068_v32 }
 0x478   : > { %13761 = vmatmul.mubr.f32.gmra.mrb[50].mxu1 %v22999_v30  ;;  %v19070_v30 = vsub.f32 %v11394_v10, %v6310_v45 }
 0x479   : > { %13763 = vmatprep.mubr.f32.mxu1 %v23000_v25  ;;  %v6752_v25 = vsub.f32 %v19061_v18, %v22251_v38 }
 0x47a   : > { %23022 = vst [vmem:[#allocation41_spill] sm:$0xff] %v19070_v30 }
 0x47c   : > { %13764 = vmatmul.mubr.f32.gmra.mrb[52].mxu1 %v23001_v47  ;;  %v6746_v47 = vand.u32 4294901760, %v6745_v4 }
 0x47d   : > { %13766 = vmatprep.mubr.f32.mxu1 %v23002_v33  ;;  %v22250_v33 = vand.u32 4294901760, %v19068_v32 }
 0x480   : > { %13767 = vmatmul.mubr.f32.gmra.mrb[54].mxu1 %v23003_v48  ;;  %v22249_v48 = vand.u32 4294901760, %v19070_v30 }
 0x481   : > { %13769 = vmatprep.mubr.f32.mxu1 %v23004_v14  ;;  %v6753_v14 = vand.u32 4294901760, %v6752_v25  ;;  %v22256_v25 = vand.u32 4294901760, %v19122_v26 }
 0x484   : > { %13770 = vmatmul.mubr.f32.gmra.mrb[56].mxu1 %v23005_v28  ;;  %v6759_v28 = vsub.f32 %v19068_v32, %v22250_v33 }
 0x485   : > { %13772 = vmatprep.mubr.f32.mxu1 %v23006_v54  ;;  %v6766_v54 = vsub.f32 %v19070_v30, %v22249_v48 }
 0x488   : > { %13773 = vmatmul.mubr.f32.gmra.mrb[58].mxu1 %v23007_v63  ;;  %v19083_v63 = vsub.f32 %v11395_v27, %v6313_v5  ;;  %v19103_v27 = vpack.c.bf16 %v19046_v42, %v19041_v62  ;;  %v19113_v5 = vsub.f32 %v18900_v61, %v6280_v46  ;;  %v19136_v61 = vsub.f32 %v18929_v16, %v6289_v23 }
 0x489   : > { %13775 = vmatprep.mubr.f32.mxu1 %v23008_v40  ;;  %v19085_v40 = vsub.f32 %v11396_v37, %v6316_v44  ;;  %v19108_v37 = vsub.f32 %v18895_v43, %v6277_v35  ;;  %v19131_v43 = vpack.c.bf16 %v19127_v3, %v19122_v26  ;;  %v19141_v35 = vsub.f32 %v18934_v55, %v6292_v8 }
 0x48a   : > { %23023 = vst [vmem:[#allocation33_spill] sm:$0xff] %v19083_v63  ;;  %v22248_v21 = vand.u32 4294901760, %v19083_v63  ;;  %23026 = vst [vmem:[#allocation37_spill] sm:$0xff] %v19113_v5  ;;  %v19168_v16 = vpack.c.bf16 %v19061_v18, %v19059_v0  ;;  %v22257_v1 = vand.u32 4294901760, %v19113_v5 }
 0x48b   : > { %23024 = vst [vmem:[#allocation35_spill] sm:$0xff] %v19085_v40  ;;  %v22247_v7 = vand.u32 4294901760, %v19085_v40  ;;  %23025 = vst [vmem:[#allocation9_spill] sm:$0xff] %v19108_v37  ;;  %v19117_v44 = vpack.c.bf16 %v19113_v5, %v19108_v37  ;;  %v19145_v46 = vpack.c.bf16 %v19141_v35, %v19136_v61  ;;  %v22258_v2 = vand.u32 4294901760, %v19108_v37 }
 0x48c   : > { %13776 = vmatmul.mubr.f32.gmra.mrb[60].mxu1 %v23009_v36  ;;  %v19087_v36 = vpack.c.bf16 %v6753_v14, %v6746_v47  ;;  %v6773_v12 = vsub.f32 %v19083_v63, %v22248_v21  ;;  %23029 = vst [vmem:[#allocation43_spill] sm:$0xff] %v19136_v61  ;;  %23030 = vst [vmem:[#allocation14_spill] sm:$0xff] %v19141_v35  ;;  %v22255_v47 = vand.u32 4294901760, %v19127_v3 }
 0x48d   : > { %13778 = vmatprep.mubr.f32.mxu1 %v23010_v22  ;;  %v6760_v22 = vand.u32 4294901760, %v6759_v28  ;;  %v6780_v41 = vsub.f32 %v19085_v40, %v22247_v7  ;;  %v19180_v14 = vpack.c.bf16 %v19070_v30, %v19068_v32 }
 0x48e   : > { %v6774_v10 = vand.u32 4294901760, %v6773_v12  ;;  %v6696_v12 = vsub.f32 %v19113_v5, %v22257_v1 }
 0x48f   : > { %v6781_v60 = vand.u32 4294901760, %v6780_v41  ;;  %v22254_v41 = vand.u32 4294901760, %v19136_v61 }
 0x490   : > { %13779 = vmatmul.mubr.f32.gmra.mrb[62].mxu1 %v23011_v57  ;;  %v6767_v57 = vand.u32 4294901760, %v6766_v54 }
 0x491   : > { %v19099_v45 = vpack.c.bf16 %v6781_v60, %v6774_v10  ;;  %v6703_v60 = vsub.f32 %v19122_v26, %v22256_v25 }
 0x492   : > { %v19091_v17 = vpack.c.bf16 %v6767_v57, %v6760_v22  ;;  %v6689_v57 = vsub.f32 %v19108_v37, %v22258_v2 }
 0x493   : > { %v6704_v21 = vand.u32 4294901760, %v6703_v60 }
 0x527   : > { %v13735_v55 = vpop.f32.mrb[32].mxu1 }
 0x528   : > { %v15373_v23 = vadd.f32 %v13735_v55, %v19164_v51  ;;  %v6026_v8 = vpop.f32.mrb[33].mxu1  ;;  %v22253_v55 = vand.u32 4294901760, %v19141_v35 }
 0x529   : > { %v15374_v29 = vadd.f32 %v19164_v51, %v6026_v8 }
 0x52a   : > { %16377 = vtanh.f32 %v15373_v23  ;;  %v6710_v23 = vsub.f32 %v19127_v3, %v22255_v47 }
 0x52b   : > { %16379 = vtanh.f32 %v15374_v29  ;;  %v13738_v11 = vpop.f32.mrb[34].mxu1 }
 0x52c   : > { %v15375_v49 = vadd.f32 %v13738_v11, %v19164_v51  ;;  %v6038_v59 = vpop.f32.mrb[35].mxu1 }
 0x52d   : > { %v15376_v4 = vadd.f32 %v19164_v51, %v6038_v59  ;;  %v6690_v59 = vand.u32 4294901760, %v6689_v57  ;;  %v19212_v57 = vpack.c.bf16 %v19085_v40, %v19083_v63 }
 0x52e   : > { %16381 = vtanh.f32 %v15375_v49 }
 0x52f   : > { %16383 = vtanh.f32 %v15376_v4  ;;  %v13741_v28 = vpop.f32.mrb[36].mxu1  ;;  %v6697_v4 = vand.u32 4294901760, %v6696_v12 }
 0x530   : > { %v15377_v54 = vadd.f32 %v13741_v28, %v19164_v51  ;;  %v6050_v22 = vpop.f32.mrb[37].mxu1  ;;  %v6717_v28 = vsub.f32 %v19136_v61, %v22254_v41 }
 0x531   : > { %v15378_v10 = vadd.f32 %v19164_v51, %v6050_v22 }
 0x532   : > { %16385 = vtanh.f32 %v15377_v54 }
 0x533   : > { %16387 = vtanh.f32 %v15378_v10  ;;  %v13744_v8 = vpop.f32.mrb[38].mxu1  ;;  %v6724_v10 = vsub.f32 %v19141_v35, %v22253_v55  ;;  %v19221_v55 = vpack.c.bf16 %v6697_v4, %v6690_v59 }
 0x534   : > { %v16378_v29 = vpop.eup %16377  ;;  %v15379_v11 = vadd.f32 %v13744_v8, %v19164_v51  ;;  %v6062_v49 = vpop.f32.mrb[39].mxu1  ;;  %v6711_v8 = vand.u32 4294901760, %v6710_v23 }
 0x535   : > { %v16380_v22 = vpop.eup %16379  ;;  %v19202_v7 = vand.u32 4294901760, %v16378_v29  ;;  %v15380_v54 = vadd.f32 %v19164_v51, %v6062_v49  ;;  %v6725_v25 = vand.u32 4294901760, %v6724_v10 }
 0x536   : > { %v19208_v48 = vand.u32 4294901760, %v16380_v22  ;;  %16389 = vtanh.f32 %v15379_v11  ;;  %v6718_v11 = vand.u32 4294901760, %v6717_v28  ;;  %v19230_v1 = vpack.c.bf16 %v6711_v8, %v6704_v21 }
 0x537   : > { %v19215_v12 = vsub.f32 %v16378_v29, %v19202_v7  ;;  %16391 = vtanh.f32 %v15380_v54  ;;  %v13747_v33 = vpop.f32.mrb[40].mxu1 }
 0x538   : > { %v16382_v38 = vpop.eup %16381  ;;  %v15381_v60 = vadd.f32 %v13747_v33, %v19164_v51  ;;  %v6074_v49 = vpop.f32.mrb[41].mxu1  ;;  %v19219_v34 = vsub.f32 %v16380_v22, %v19208_v48  ;;  %v19251_v58 = vpack.c.bf16 %v6725_v25, %v6718_v11 }
 0x539   : > { %v16384_v23 = vpop.eup %16383  ;;  %v19223_v41 = vand.u32 4294901760, %v16382_v38  ;;  %v15382_v47 = vadd.f32 %v19164_v51, %v6074_v49  ;;  %v22259_v29 = vand.u32 4294901760, %v19215_v12 }
 0x53a   : > { %v19227_v54 = vand.u32 4294901760, %v16384_v23  ;;  %16393 = vtanh.f32 %v15381_v60  ;;  %v22262_v33 = vand.u32 4294901760, %v19219_v34 }
 0x53b   : > { %16395 = vtanh.f32 %v15382_v47  ;;  %v13750_v22 = vpop.f32.mrb[42].mxu1  ;;  %v6364_v59 = vsub.f32 %v19215_v12, %v22259_v29  ;;  %v19236_v4 = vsub.f32 %v16382_v38, %v19223_v41 }
 0x53c   : > { %v16386_v49 = vpop.eup %16385  ;;  %v15383_v10 = vadd.f32 %v13750_v22, %v19164_v51  ;;  %v6086_v2 = vpop.f32.mrb[43].mxu1  ;;  %v6354_v21 = vsub.f32 %v19219_v34, %v22262_v33  ;;  %v19244_v47 = vsub.f32 %v16384_v23, %v19227_v54 }
 0x53d   : > { %v16388_v60 = vpop.eup %16387  ;;  %v19247_v29 = vand.u32 4294901760, %v16386_v49  ;;  %v15384_v38 = vadd.f32 %v19164_v51, %v6086_v2  ;;  %v22265_v52 = vand.u32 4294901760, %v19236_v4  ;;  %v6365_v40 = vand.u32 4294901760, %v6364_v59 }
 0x53e   : > { %v19253_v22 = vand.u32 4294901760, %v16388_v60  ;;  %16397 = vtanh.f32 %v15383_v10  ;;  %v6355_v28 = vand.u32 4294901760, %v6354_v21  ;;  %v22268_v33 = vand.u32 4294901760, %v19244_v47 }
 0x53f   : > { %16399 = vtanh.f32 %v15384_v38  ;;  %v13753_v23 = vpop.f32.mrb[44].mxu1  ;;  %v6384_v8 = vsub.f32 %v19236_v4, %v22265_v52  ;;  %v19260_v63 = vsub.f32 %v16386_v49, %v19247_v29  ;;  %v23034_v59 = vand.u32 4294901760, %v19150_v15 }
 0x540   : > { %v16390_v2 = vpop.eup %16389  ;;  %v15385_v25 = vadd.f32 %v13753_v23, %v19164_v51  ;;  %v6098_v11 = vpop.f32.mrb[45].mxu1  ;;  %13813 = vmatprep.mubr.f32.mxu1 %v6355_v28  ;;  %v6374_v10 = vsub.f32 %v19244_v47, %v22268_v33  ;;  %v19267_v21 = vsub.f32 %v16388_v60, %v19253_v22  ;;  %v23035_v28 = vand.u32 4294901760, %v19155_v50 }
 0x541   : > { %23033 = vst [vmem:[#allocation6_spill] sm:$0xff] %v19260_v63  ;;  %v6731_v38 = vsub.f32 %v19150_v15, %v23034_v59  ;;  %v16392_v52 = vpop.eup %16391  ;;  %v19272_v30 = vand.u32 4294901760, %v16390_v2  ;;  %v15386_v49 = vadd.f32 %v19164_v51, %v6098_v11  ;;  %13814 = vmatmul.mubr.f32.vlgmr.msra.gmra.mrb[64].mxu1 %v6365_v40  ;;  %v22273_v23 = vand.u32 4294901760, %v19260_v63 }
 0x542   : > { %v6738_v32 = vsub.f32 %v19155_v50, %v23035_v28  ;;  %v19279_v33 = vand.u32 4294901760, %v16392_v52  ;;  %16401 = vtanh.f32 %v15385_v25  ;;  %14992 = vmatpush3.bf16.msra.mxu1 %v19056_v56  ;;  %v6375_v60 = vand.u32 4294901760, %v6374_v10 }
 0x543   : > { %v22275_v59 = vand.u32 4294901760, %v19267_v21  ;;  %16403 = vtanh.f32 %v15386_v49  ;;  %v13756_v18 = vpop.f32.mrb[46].mxu1  ;;  %v6385_v0 = vand.u32 4294901760, %v6384_v8  ;;  %14994 = vmatprep.subr.bf16.mxu1 %v19221_v55  ;;  %v6404_v40 = vsub.f32 %v19260_v63, %v22273_v23 }
 0x544   : > { %v19288_v11 = vsub.f32 %v16390_v2, %v19272_v30  ;;  %v16394_v28 = vpop.eup %16393  ;;  %v15387_v25 = vadd.f32 %v13756_v18, %v19164_v51  ;;  %v6110_v50 = vpop.f32.mrb[47].mxu1  ;;  %13816 = vmatprep.mubr.f32.mxu1 %v6375_v60  ;;  %v19295_v8 = vsub.f32 %v16392_v52, %v19279_v33  ;;  %v6732_v10 = vand.u32 4294901760, %v6731_v38 }
 0x545   : > { %v6394_v56 = vsub.f32 %v19267_v21, %v22275_v59  ;;  %v16396_v49 = vpop.eup %16395  ;;  %v19297_v15 = vand.u32 4294901760, %v16394_v28  ;;  %v15388_v23 = vadd.f32 %v19164_v51, %v6110_v50  ;;  %13817 = vmatmul.mubr.f32.gmra.mrb[66].mxu1 %v6385_v0  ;;  %v6739_v35 = vand.u32 4294901760, %v6738_v32 }
 0x546   : > { %23036 = vst [vmem:[#allocation52_spill] sm:$0xff] %v19288_v11  ;;  %23037 = vst [vmem:[#allocation54_spill] sm:$0xff] %v19295_v8  ;;  %v22277_v2 = vand.u32 4294901760, %v19288_v11  ;;  %v19301_v18 = vand.u32 4294901760, %v16396_v49  ;;  %16405 = vtanh.f32 %v15387_v25  ;;  %14996 = vmatpush3.bf16.msra.mxu1 %v19221_v55  ;;  %v22280_v59 = vand.u32 4294901760, %v19295_v8 }
 0x547   : > { %v6395_v60 = vand.u32 4294901760, %v6394_v56  ;;  %16407 = vtanh.f32 %v15388_v23  ;;  %v13759_v52 = vpop.f32.mrb[48].mxu1  ;;  %v6405_v38 = vand.u32 4294901760, %v6404_v40  ;;  %14998 = vmatprep.subr.bf16.mxu1 %v19230_v1  ;;  %v19310_v0 = vsub.f32 %v16394_v28, %v19297_v15 }
 0x548   : > { %v6424_v61 = vsub.f32 %v19288_v11, %v22277_v2  ;;  %v16398_v32 = vpop.eup %16397  ;;  %v15389_v50 = vadd.f32 %v13759_v52, %v19164_v51  ;;  %v6122_v25 = vpop.f32.mrb[49].mxu1  ;;  %v6414_v55 = vsub.f32 %v19295_v8, %v22280_v59  ;;  %v19317_v23 = vsub.f32 %v16396_v49, %v19301_v18 }
 0x549   : > { %23038 = vst [vmem:[#allocation56_spill] sm:$0xff] %v19310_v0  ;;  %13819 = vmatprep.mubr.f32.mxu1 %v6395_v60  ;;  %v16400_v40 = vpop.eup %16399  ;;  %v19319_v56 = vand.u32 4294901760, %v16398_v32  ;;  %v15390_v2 = vadd.f32 %v19164_v51, %v6122_v25  ;;  %v22282_v28 = vand.u32 4294901760, %v19310_v0  ;;  %v15005_v3 = vpack.c.bf16 %v6739_v35, %v6732_v10 }
 0x54a   : > { %23039 = vst [vmem:[#allocation58_spill] sm:$0xff] %v19317_v23  ;;  %13820 = vmatmul.mubr.f32.gmra.mrb[68].mxu1 %v6405_v38  ;;  %v19323_v26 = vand.u32 4294901760, %v16400_v40  ;;  %16409 = vtanh.f32 %v15389_v50  ;;  %v6415_v60 = vand.u32 4294901760, %v6414_v55  ;;  %v22283_v52 = vand.u32 4294901760, %v19317_v23 }
 0x54b   : > { %15000 = vmatpush3.bf16.msra.mxu1 %v19230_v1  ;;  %16411 = vtanh.f32 %v15390_v2  ;;  %v13762_v49 = vpop.f32.mrb[50].mxu1  ;;  %v6425_v59 = vand.u32 4294901760, %v6424_v61  ;;  %v6444_v5 = vsub.f32 %v19310_v0, %v22282_v28  ;;  %v19331_v38 = vsub.f32 %v16398_v32, %v19319_v56 }
 0x54c   : > { %15002 = vmatprep.subr.bf16.mxu1 %v19251_v58  ;;  %v16402_v35 = vpop.eup %16401  ;;  %v15391_v10 = vadd.f32 %v13762_v49, %v19164_v51  ;;  %v6134_v50 = vpop.f32.mrb[51].mxu1  ;;  %13822 = vmatprep.mubr.f32.mxu1 %v6415_v60  ;;  %v6434_v1 = vsub.f32 %v19317_v23, %v22283_v52  ;;  %v19339_v61 = vsub.f32 %v16400_v40, %v19323_v26 }
 0x54d   : > { %23040 = vst [vmem:[#allocation60_spill] sm:$0xff] %v19331_v38  ;;  %v16404_v2 = vpop.eup %16403  ;;  %v19341_v25 = vand.u32 4294901760, %v16402_v35  ;;  %v15392_v32 = vadd.f32 %v19164_v51, %v6134_v50  ;;  %v22286_v55 = vand.u32 4294901760, %v19331_v38  ;;  %v6445_v40 = vand.u32 4294901760, %v6444_v5 }
 0x54e   : > { %23041 = vst [vmem:[#allocation62_spill] sm:$0xff] %v19339_v61  ;;  %13823 = vmatmul.mubr.f32.gmra.mrb[70].mxu1 %v6425_v59  ;;  %v19345_v28 = vand.u32 4294901760, %v16404_v2  ;;  %16413 = vtanh.f32 %v15391_v10  ;;  %v6435_v49 = vand.u32 4294901760, %v6434_v1  ;;  %v22288_v60 = vand.u32 4294901760, %v19339_v61 }
 0x54f   : > { %23042 = vst [vmem:[#allocation65_spill] sm:$0xff] %v19341_v25  ;;  %15004 = vmatpush3.bf16.msra.mxu1 %v19251_v58  ;;  %16415 = vtanh.f32 %v15392_v32  ;;  %v13765_v52 = vpop.f32.mrb[52].mxu1  ;;  %v6464_v37 = vsub.f32 %v19331_v38, %v22286_v55  ;;  %v19353_v50 = vsub.f32 %v16402_v35, %v19341_v25 }
 0x550   : > { %23043 = vst [vmem:[#allocation64_spill] sm:$0xff] %v19345_v28  ;;  %15006 = vmatprep.subr.bf16.mxu1 %v15005_v3  ;;  %v16406_v59 = vpop.eup %16405  ;;  %v15393_v42 = vadd.f32 %v13765_v52, %v19164_v51  ;;  %v6146_v10 = vpop.f32.mrb[53].mxu1  ;;  %13825 = vmatprep.mubr.f32.mxu1 %v6435_v49  ;;  %v6454_v58 = vsub.f32 %v19339_v61, %v22288_v60 }
 0x551   : > { %23044 = vst [vmem:[#allocation69_spill] sm:$0xff] %v19353_v50  ;;  %v19360_v1 = vsub.f32 %v16404_v2, %v19345_v28  ;;  %v16408_v5 = vpop.eup %16407  ;;  %v19362_v32 = vand.u32 4294901760, %v16406_v59  ;;  %v15394_v55 = vadd.f32 %v19164_v51, %v6146_v10  ;;  %v22293_v35 = vand.u32 4294901760, %v19353_v50 }
 0x552   : > { %13826 = vmatmul.mubr.f32.gmra.mrb[72].mxu1 %v6445_v40  ;;  %v19366_v62 = vand.u32 4294901760, %v16408_v5  ;;  %16417 = vtanh.f32 %v15393_v42  ;;  %v6455_v52 = vand.u32 4294901760, %v6454_v58  ;;  %v6465_v19 = vand.u32 4294901760, %v6464_v37 }
 0x553   : > { %23045 = vst [vmem:[#allocation68_spill] sm:$0xff] %v19360_v1  ;;  %23046 = vst [vmem:[#allocation22_spill] sm:$0xff] %v19362_v32  ;;  %v22296_v49 = vand.u32 4294901760, %v19360_v1  ;;  %15008 = vmatpush3.bf16.msra.mxu1 %v15005_v3  ;;  %16419 = vtanh.f32 %v15394_v55  ;;  %v13768_v60 = vpop.f32.mrb[54].mxu1  ;;  %v6484_v2 = vsub.f32 %v19353_v50, %v22293_v35  ;;  %v19373_v39 = vsub.f32 %v16406_v59, %v19362_v32 }
 0x554   : > { %23047 = vst [vmem:[#allocation23_spill] sm:$0xff] %v19366_v62  ;;  %15010 = vmatprep.subr.bf16.mxu1 %v19087_v36  ;;  %v16410_v40 = vpop.eup %16409  ;;  %v15395_v10 = vadd.f32 %v13768_v60, %v19164_v51  ;;  %v6158_v42 = vpop.f32.mrb[55].mxu1  ;;  %13828 = vmatprep.mubr.f32.mxu1 %v6455_v52  ;;  %v19381_v37 = vsub.f32 %v16408_v5, %v19366_v62 }
 0x555   : > { %23048 = vst [vmem:[#allocation24_spill] sm:$0xff] %v19373_v39  ;;  %v6474_v3 = vsub.f32 %v19360_v1, %v22296_v49  ;;  %v16412_v55 = vpop.eup %16411  ;;  %v19383_v58 = vand.u32 4294901760, %v16410_v40  ;;  %v15396_v59 = vadd.f32 %v19164_v51, %v6158_v42  ;;  %v22301_v35 = vand.u32 4294901760, %v19373_v39 }
 0x556   : > { %23049 = vst [vmem:[#allocation25_spill] sm:$0xff] %v19381_v37  ;;  %13829 = vmatmul.mubr.f32.gmra.mrb[74].mxu1 %v6465_v19  ;;  %v19387_v50 = vand.u32 4294901760, %v16412_v55  ;;  %16421 = vtanh.f32 %v15395_v10  ;;  %v22304_v52 = vand.u32 4294901760, %v19381_v37  ;;  %v6485_v5 = vand.u32 4294901760, %v6484_v2 }
 0x557   : > { %23050 = vst [vmem:[#allocation26_spill] sm:$0xff] %v19383_v58  ;;  %v6475_v60 = vand.u32 4294901760, %v6474_v3  ;;  %15012 = vmatpush3.bf16.msra.mxu1 %v19087_v36  ;;  %16423 = vtanh.f32 %v15396_v59  ;;  %v13771_v49 = vpop.f32.mrb[56].mxu1  ;;  %v6504_v1 = vsub.f32 %v19373_v39, %v22301_v35  ;;  %v19395_v42 = vsub.f32 %v16410_v40, %v19383_v58 }
 0x558   : > { %23051 = vst [vmem:[#allocation27_spill] sm:$0xff] %v19387_v50  ;;  %15014 = vmatprep.subr.bf16.mxu1 %v19091_v17  ;;  %v16414_v19 = vpop.eup %16413  ;;  %v15397_v10 = vadd.f32 %v13771_v49, %v19164_v51  ;;  %v6170_v3 = vpop.f32.mrb[57].mxu1  ;;  %v6494_v36 = vsub.f32 %v19381_v37, %v22304_v52  ;;  %v19403_v2 = vsub.f32 %v16412_v55, %v19387_v50 }
 0x559   : > { %23052 = vst [vmem:[#allocation28_spill] sm:$0xff] %v19395_v42  ;;  %13831 = vmatprep.mubr.f32.mxu1 %v6475_v60  ;;  %v16416_v59 = vpop.eup %16415  ;;  %v19405_v38 = vand.u32 4294901760, %v16414_v19  ;;  %v15398_v40 = vadd.f32 %v19164_v51, %v6170_v3  ;;  %v22309_v35 = vand.u32 4294901760, %v19395_v42  ;;  %v6505_v55 = vand.u32 4294901760, %v6504_v1 }
 0x55a   : > { %23053 = vst [vmem:[#allocation29_spill] sm:$0xff] %v19403_v2  ;;  %13832 = vmatmul.mubr.f32.gmra.mrb[76].mxu1 %v6485_v5  ;;  %v19409_v39 = vand.u32 4294901760, %v16416_v59  ;;  %16425 = vtanh.f32 %v15397_v10  ;;  %v6495_v49 = vand.u32 4294901760, %v6494_v36  ;;  %v22312_v60 = vand.u32 4294901760, %v19403_v2 }
 0x55b   : > { %23054 = vst [vmem:[#allocation16_spill] sm:$0xff] %v19405_v38  ;;  %15016 = vmatpush3.bf16.msra.mxu1 %v19091_v17  ;;  %16427 = vtanh.f32 %v15398_v40  ;;  %v13774_v52 = vpop.f32.mrb[58].mxu1  ;;  %v6524_v37 = vsub.f32 %v19395_v42, %v22309_v35  ;;  %v19417_v3 = vsub.f32 %v16414_v19, %v19405_v38 }
 0x55c   : > { %23055 = vst [vmem:[#allocation17_spill] sm:$0xff] %v19409_v39  ;;  %15018 = vmatprep.subr.bf16.mxu1 %v19099_v45  ;;  %v16418_v5 = vpop.eup %16417  ;;  %v15399_v10 = vadd.f32 %v13774_v52, %v19164_v51  ;;  %v6182_v36 = vpop.f32.mrb[59].mxu1  ;;  %13834 = vmatprep.mubr.f32.mxu1 %v6495_v49  ;;  %v6514_v17 = vsub.f32 %v19403_v2, %v22312_v60 }
 0x55d   : > { %23056 = vst [vmem:[#allocation18_spill] sm:$0xff] %v19417_v3  ;;  %v19425_v1 = vsub.f32 %v16416_v59, %v19409_v39  ;;  %v16420_v40 = vpop.eup %16419  ;;  %v19427_v9 = vand.u32 4294901760, %v16418_v5  ;;  %v15400_v19 = vadd.f32 %v19164_v51, %v6182_v36  ;;  %v22317_v35 = vand.u32 4294901760, %v19417_v3 }
 0x55e   : > { %13835 = vmatmul.mubr.f32.gmra.mrb[78].mxu1 %v6505_v55  ;;  %v19431_v42 = vand.u32 4294901760, %v16420_v40  ;;  %16429 = vtanh.f32 %v15399_v10  ;;  %v6515_v52 = vand.u32 4294901760, %v6514_v17  ;;  %v6525_v59 = vand.u32 4294901760, %v6524_v37 }
 0x55f   : > { %23057 = vst [vmem:[#allocation19_spill] sm:$0xff] %v19425_v1  ;;  %23058 = vst [vmem:[#allocation20_spill] sm:$0xff] %v19427_v9  ;;  %v22322_v49 = vand.u32 4294901760, %v19425_v1  ;;  %15020 = vmatpush3.bf16.msra.mxu1 %v19099_v45  ;;  %16431 = vtanh.f32 %v15400_v19  ;;  %v13777_v60 = vpop.f32.mrb[60].mxu1  ;;  %v6544_v2 = vsub.f32 %v19417_v3, %v22317_v35  ;;  %v19439_v36 = vsub.f32 %v16418_v5, %v19427_v9 }
 0x560   : > { %23059 = vst [vmem:[#allocation21_spill] sm:$0xff] %v19431_v42  ;;  %15022 = vmatprep.subr.bf16.mxu1 %v19103_v27  ;;  %v16422_v55 = vpop.eup %16421  ;;  %v15401_v10 = vadd.f32 %v13777_v60, %v19164_v51  ;;  %v6194_v17 = vpop.f32.mrb[61].mxu1  ;;  %13837 = vmatprep.mubr.f32.mxu1 %v6515_v52  ;;  %v19447_v37 = vsub.f32 %v16420_v40, %v19431_v42 }
 0x561   : > { %23060 = vst [vmem:[#allocation40_spill] sm:$0xff] %v19439_v36  ;;  %v6534_v45 = vsub.f32 %v19425_v1, %v22322_v49  ;;  %v16424_v19 = vpop.eup %16423  ;;  %v19449_v61 = vand.u32 4294901760, %v16422_v55  ;;  %v15402_v5 = vadd.f32 %v19164_v51, %v6194_v17  ;;  %v22327_v35 = vand.u32 4294901760, %v19439_v36 }
 0x562   : > { %23061 = vst [vmem:[#allocation13_spill] sm:$0xff] %v19447_v37  ;;  %13838 = vmatmul.mubr.f32.gmra.mrb[80].mxu1 %v6525_v59  ;;  %v19453_v3 = vand.u32 4294901760, %v16424_v19  ;;  %16433 = vtanh.f32 %v15401_v10  ;;  %v22332_v52 = vand.u32 4294901760, %v19447_v37  ;;  %v6545_v49 = vand.u32 4294901760, %v6544_v2 }
 0x563   : > { %23062 = vst [vmem:[#allocation39_spill] sm:$0xff] %v19449_v61  ;;  %v6535_v60 = vand.u32 4294901760, %v6534_v45  ;;  %16435 = vtanh.f32 %v15402_v5  ;;  %v13780_v0 = vpop.f32.mrb[62].mxu1  ;;  %v6564_v40 = vsub.f32 %v19439_v36, %v22327_v35  ;;  %v19460_v1 = vsub.f32 %v16422_v55, %v19449_v61 }
 0x564   : > { %23063 = vst [vmem:[#allocation42_spill] sm:$0xff] %v19453_v3  ;;  %v16426_v17 = vpop.eup %16425  ;;  %v15403_v59 = vadd.f32 %v13780_v0, %v19164_v51  ;;  %v6206_v20 = vpop.f32.mrb[63].mxu1  ;;  %v6554_v10 = vsub.f32 %v19447_v37, %v22332_v52  ;;  %v19467_v45 = vsub.f32 %v16424_v19, %v19453_v3 }
 0x565   : > { %23064 = vst [vmem:[#allocation34_spill] sm:$0xff] %v19460_v1  ;;  %13840 = vmatprep.mubr.f32.mxu1 %v6535_v60  ;;  %v16428_v2 = vpop.eup %16427  ;;  %v19469_v5 = vand.u32 4294901760, %v16426_v17  ;;  %v15404_v35 = vadd.f32 %v19164_v51, %v6206_v20  ;;  %v22335_v55 = vand.u32 4294901760, %v19460_v1  ;;  %v6565_v23 = vand.u32 4294901760, %v6564_v40 }
 0x566   : > { %23065 = vst [vmem:[#allocation44_spill] sm:$0xff] %v19467_v45  ;;  %13841 = vmatmul.mubr.f32.gmra.mrb[82].mxu1 %v6545_v49  ;;  %v19473_v36 = vand.u32 4294901760, %v16428_v2  ;;  %16437 = vtanh.f32 %v15403_v59  ;;  %v6555_v0 = vand.u32 4294901760, %v6554_v10  ;;  %v22336_v60 = vand.u32 4294901760, %v19467_v45 }
 0x567   : > { %23066 = vst [vmem:[#allocation48_spill] sm:$0xff] %v19469_v5  ;;  %16439 = vtanh.f32 %v15404_v35  ;;  %v6584_v19 = vsub.f32 %v19460_v1, %v22335_v55  ;;  %v19480_v52 = vsub.f32 %v16426_v17, %v19469_v5 }
 0x568   : > { %23067 = vst [vmem:[#allocation46_spill] sm:$0xff] %v19473_v36  ;;  %v16430_v37 = vpop.eup %16429  ;;  %13843 = vmatprep.mubr.f32.mxu1 %v6555_v0  ;;  %v6574_v20 = vsub.f32 %v19467_v45, %v22336_v60  ;;  %v19486_v51 = vsub.f32 %v16428_v2, %v19473_v36 }
 0x569   : > { %23068 = vst [vmem:[#allocation5_spill] sm:$0xff] %v19480_v52  ;;  %v16432_v49 = vpop.eup %16431  ;;  %v19488_v59 = vand.u32 4294901760, %v16430_v37  ;;  %v22343_v35 = vand.u32 4294901760, %v19480_v52  ;;  %v6585_v55 = vand.u32 4294901760, %v6584_v19 }
 0x56a   : > { %23069 = vst [vmem:[#allocation36_spill] sm:$0xff] %v19486_v51  ;;  %13844 = vmatmul.mubr.f32.gmra.mrb[84].mxu1 %v6565_v23  ;;  %v19491_v40 = vand.u32 4294901760, %v16432_v49  ;;  %v6575_v10 = vand.u32 4294901760, %v6574_v20  ;;  %v22346_v17 = vand.u32 4294901760, %v19486_v51 }
 0x56b   : > { %23070 = vst [vmem:[#allocation55_spill] sm:$0xff] %v19488_v59  ;;  %v6604_v0 = vsub.f32 %v19480_v52, %v22343_v35  ;;  %v19498_v60 = vsub.f32 %v16430_v37, %v19488_v59 }
 0x56c   : > { %23071 = vst [vmem:[#allocation53_spill] sm:$0xff] %v19491_v40  ;;  %v16434_v2 = vpop.eup %16433  ;;  %13846 = vmatprep.mubr.f32.mxu1 %v6575_v10  ;;  %v6594_v23 = vsub.f32 %v19486_v51, %v22346_v17  ;;  %v19504_v1 = vsub.f32 %v16432_v49, %v19491_v40 }
 0x56d   : > { %23072 = vst [vmem:[#allocation59_spill] sm:$0xff] %v19498_v60  ;;  %v16436_v20 = vpop.eup %16435  ;;  %v19506_v45 = vand.u32 4294901760, %v16434_v2  ;;  %v22353_v19 = vand.u32 4294901760, %v19498_v60  ;;  %v6605_v52 = vand.u32 4294901760, %v6604_v0 }
 0x56e   : > { %23073 = vst [vmem:[#allocation57_spill] sm:$0xff] %v19504_v1  ;;  %13847 = vmatmul.mubr.f32.gmra.mrb[86].mxu1 %v6585_v55  ;;  %v19509_v11 = vand.u32 4294901760, %v16436_v20  ;;  %v6595_v35 = vand.u32 4294901760, %v6594_v23  ;;  %v22356_v37 = vand.u32 4294901760, %v19504_v1 }
 0x56f   : > { %23074 = vst [vmem:[#allocation63_spill] sm:$0xff] %v19506_v45  ;;  %v6624_v10 = vsub.f32 %v19498_v60, %v22353_v19  ;;  %v19516_v17 = vsub.f32 %v16434_v2, %v19506_v45 }
 0x570   : > { %23075 = vst [vmem:[#allocation61_spill] sm:$0xff] %v19509_v11  ;;  %v16438_v49 = vpop.eup %16437  ;;  %13849 = vmatprep.mubr.f32.mxu1 %v6595_v35  ;;  %v6614_v55 = vsub.f32 %v19504_v1, %v22356_v37  ;;  %v19522_v51 = vsub.f32 %v16436_v20, %v19509_v11 }
 0x571   : > { %v16440_v23 = vpop.eup %16439  ;;  %v19524_v31 = vand.u32 4294901760, %v16438_v49  ;;  %v22361_v0 = vand.u32 4294901760, %v19516_v17  ;;  %v6625_v60 = vand.u32 4294901760, %v6624_v10 }
 0x572   : > { %13850 = vmatmul.mubr.f32.gmra.mrb[88].mxu1 %v6605_v52  ;;  %v19527_v8 = vand.u32 4294901760, %v16440_v23  ;;  %v6615_v19 = vand.u32 4294901760, %v6614_v55  ;;  %v22364_v2 = vand.u32 4294901760, %v19522_v51 }
 0x573   : > { %23076 = vst [vmem:[#allocation67_spill] sm:$0xff] %v19524_v31  ;;  %v6644_v35 = vsub.f32 %v19516_v17, %v22361_v0  ;;  %v19534_v37 = vsub.f32 %v16438_v49, %v19524_v31 }
 0x574   : > { %23077 = vst [vmem:[#allocation66_spill] sm:$0xff] %v19527_v8  ;;  %13852 = vmatprep.mubr.f32.mxu1 %v6615_v19  ;;  %v6634_v52 = vsub.f32 %v19522_v51, %v22364_v2  ;;  %v19540_v20 = vsub.f32 %v16440_v23, %v19527_v8 }
 0x575   : > { %v22362_v55 = vand.u32 4294901760, %v19534_v37  ;;  %v6645_v63 = vand.u32 4294901760, %v6644_v35  ;;  %v23090_v35 = vld [vmem:[#allocation69_spill] sm:$0xff] }
 0x576   : > { %13853 = vmatmul.mubr.f32.gmra.mrb[90].mxu1 %v6625_v60  ;;  %v6635_v1 = vand.u32 4294901760, %v6634_v52  ;;  %v22363_v10 = vand.u32 4294901760, %v19540_v20  ;;  %v23088_v60 = vld [vmem:[#allocation68_spill] sm:$0xff]  ;;  %v23091_v52 = vld [vmem:[#allocation25_spill] sm:$0xff] }
 0x577   : > { %v6664_v49 = vsub.f32 %v19534_v37, %v22362_v55  ;;  %v23095_v55 = vld [vmem:[#allocation8_spill] sm:$0xff] }
 0x578   : > { %13855 = vmatprep.mubr.f32.mxu1 %v6635_v1  ;;  %v6654_v19 = vsub.f32 %v19540_v20, %v22363_v10  ;;  %v23087_v1 = vld [vmem:[#allocation60_spill] sm:$0xff]  ;;  %v23096_v10 = vand.u32 4294901760, %v23095_v55  ;;  %v23105_v55 = vld [vmem:[#allocation34_spill] sm:$0xff] }
 0x579   : > { %v6665_v23 = vand.u32 4294901760, %v6664_v49  ;;  %v23092_v49 = vld [vmem:[#allocation12_spill] sm:$0xff] }
 0x57a   : > { %13856 = vmatmul.mubr.f32.gmra.mrb[92].mxu1 %v6645_v63  ;;  %v6655_v0 = vand.u32 4294901760, %v6654_v19  ;;  %v23078_v63 = vld [vmem:[#allocation6_spill] sm:$0xff]  ;;  %v23093_v19 = vld [vmem:[#allocation7_spill] sm:$0xff] }
 0x57c   : > { %13858 = vmatprep.mubr.f32.mxu1 %v6655_v0  ;;  %v23089_v0 = vld [vmem:[#allocation51_spill] sm:$0xff] }
 0x57e   : > { %13859 = vmatmul.mubr.f32.gmra.mrb[94].mxu1 %v6665_v23  ;;  %v23094_v23 = vand.u32 4294901760, %v23093_v19  ;;  %v23104_v19 = vld [vmem:[#allocation44_spill] sm:$0xff] }
 0x57f   : > { %13893 = vmatprep.mubr.f32.mxu1 %v19208_v48 }
 0x580   : > { %v15085_v2 = vpack.c.bf16 %v23096_v10, %v23094_v23  ;;  %v23106_v10 = vld [vmem:[#allocation36_spill] sm:$0xff]  ;;  %v23107_v23 = vld [vmem:[#allocation5_spill] sm:$0xff] }
 0x582   : > { %13894 = vmatmul.mubr.f32.vlgmr.msra.gmra.mrb[64].mxu1 %v19202_v7 }
 0x583   : > { %15024 = vmatpush3.bf16.msra.mxu1 %v19103_v27  ;;  %13896 = vmatprep.mubr.f32.mxu1 %v19227_v54  ;;  %v23079_v27 = vld [vmem:[#allocation54_spill] sm:$0xff] }
 0x584   : > { %15026 = vmatprep.subr.bf16.mxu1 %v19117_v44 }
 0x586   : > { %13897 = vmatmul.mubr.f32.gmra.mrb[66].mxu1 %v19223_v41 }
 0x587   : > { %13899 = vmatprep.mubr.f32.mxu1 %v19253_v22  ;;  %15028 = vmatpush3.bf16.msra.mxu1 %v19117_v44  ;;  %v23080_v44 = vld [vmem:[#allocation10_spill] sm:$0xff] }
 0x588   : > { %15030 = vmatprep.subr.bf16.mxu1 %v19131_v43 }
 0x58a   : > { %13900 = vmatmul.mubr.f32.gmra.mrb[68].mxu1 %v19247_v29 }
 0x58b   : > { %13902 = vmatprep.mubr.f32.mxu1 %v19279_v33  ;;  %15032 = vmatpush3.bf16.msra.mxu1 %v19131_v43  ;;  %v23081_v43 = vld [vmem:[#allocation52_spill] sm:$0xff] }
 0x58c   : > { %15034 = vmatprep.subr.bf16.mxu1 %v19145_v46 }
 0x58e   : > { %13903 = vmatmul.mubr.f32.gmra.mrb[70].mxu1 %v19272_v30 }
 0x58f   : > { %13905 = vmatprep.mubr.f32.mxu1 %v19301_v18  ;;  %15036 = vmatpush3.bf16.msra.mxu1 %v19145_v46  ;;  %v23082_v46 = vld [vmem:[#allocation58_spill] sm:$0xff] }
 0x590   : > { %15038 = vmatprep.subr.bf16.mxu1 %v19159_v13 }
 0x592   : > { %13906 = vmatmul.mubr.f32.gmra.mrb[72].mxu1 %v19297_v15 }
 0x593   : > { %13908 = vmatprep.mubr.f32.mxu1 %v19323_v26  ;;  %15040 = vmatpush3.bf16.msra.mxu1 %v19159_v13  ;;  %v23083_v13 = vld [vmem:[#allocation49_spill] sm:$0xff] }
 0x594   : > { %15042 = vmatprep.subr.bf16.mxu1 %v19168_v16 }
 0x596   : > { %13909 = vmatmul.mubr.f32.gmra.mrb[74].mxu1 %v19319_v56 }
 0x597   : > { %13911 = vmatprep.mubr.f32.mxu1 %v19345_v28  ;;  %15044 = vmatpush3.bf16.msra.mxu1 %v19168_v16  ;;  %v23084_v16 = vld [vmem:[#allocation56_spill] sm:$0xff] }
 0x598   : > { %15046 = vmatprep.subr.bf16.mxu1 %v19180_v14 }
 0x59a   : > { %13912 = vmatmul.mubr.f32.gmra.mrb[76].mxu1 %v19341_v25  ;;  %v23119_v25 = vld [vmem:[#allocation32_spill] sm:$0xff] }
 0x59b   : > { %13914 = vmatprep.mubr.f32.mxu1 %v19366_v62  ;;  %15048 = vmatpush3.bf16.msra.mxu1 %v19180_v14  ;;  %v23085_v14 = vld [vmem:[#allocation62_spill] sm:$0xff] }
 0x59c   : > { %15050 = vmatprep.subr.bf16.mxu1 %v19212_v57 }
 0x59e   : > { %13915 = vmatmul.mubr.f32.gmra.mrb[78].mxu1 %v19362_v32  ;;  %v23116_v32 = vand.u32 4294901760, %v19244_v47 }
 0x59f   : > { %13917 = vmatprep.mubr.f32.mxu1 %v19387_v50  ;;  %15052 = vmatpush3.bf16.msra.mxu1 %v19212_v57  ;;  %v23086_v57 = vld [vmem:[#allocation11_spill] sm:$0xff]  ;;  %v23115_v50 = vand.u32 4294901760, %v19215_v12 }
 0x5a0   : > { %15054 = vmatprep.subr.bf16.mxu1 %v18874_v53 }
 0x5a2   : > { %13918 = vmatmul.mubr.f32.gmra.mrb[80].mxu1 %v19383_v58 }
 0x5a3   : > { %13920 = vmatprep.mubr.f32.mxu1 %v19409_v39 }
 0x5a6   : > { %13921 = vmatmul.mubr.f32.gmra.mrb[82].mxu1 %v19405_v38  ;;  %v23113_v38 = vld [vmem:[#allocation37_spill] sm:$0xff] }
 0x5a7   : > { %13923 = vmatprep.mubr.f32.mxu1 %v19431_v42  ;;  %v23114_v39 = vand.u32 4294901760, %v23113_v38  ;;  %v23125_v38 = vld [vmem:[#allocation14_spill] sm:$0xff] }
 0x5aa   : > { %13924 = vmatmul.mubr.f32.gmra.mrb[84].mxu1 %v19427_v9  ;;  %v23111_v9 = vld [vmem:[#allocation9_spill] sm:$0xff] }
 0x5ab   : > { %13926 = vmatprep.mubr.f32.mxu1 %v19453_v3  ;;  %v23110_v3 = vand.u32 4294901760, %v19219_v34  ;;  %v23112_v42 = vand.u32 4294901760, %v23111_v9  ;;  %v23122_v9 = vand.u32 4294901760, %v19267_v21 }
 0x5ad   : > { %v15089_v58 = vpack.c.bf16 %v23114_v39, %v23112_v42  ;;  %v23123_v39 = vld [vmem:[#allocation43_spill] sm:$0xff]  ;;  %v23128_v42 = vand.u32 4294901760, %v23079_v27 }
 0x5ae   : > { %13927 = vmatmul.mubr.f32.gmra.mrb[86].mxu1 %v19449_v61  ;;  %v23109_v61 = vld [vmem:[#allocation59_spill] sm:$0xff] }
 0x5af   : > { %13929 = vmatprep.mubr.f32.mxu1 %v19473_v36  ;;  %v23108_v36 = vld [vmem:[#allocation57_spill] sm:$0xff] }
 0x5b2   : > { %13930 = vmatmul.mubr.f32.gmra.mrb[88].mxu1 %v19469_v5  ;;  %v23103_v5 = vld [vmem:[#allocation40_spill] sm:$0xff] }
 0x5b3   : > { %13932 = vmatprep.mubr.f32.mxu1 %v19491_v40  ;;  %v23102_v40 = vld [vmem:[#allocation13_spill] sm:$0xff] }
 0x5b6   : > { %13933 = vmatmul.mubr.f32.gmra.mrb[90].mxu1 %v19488_v59  ;;  %v23101_v59 = vld [vmem:[#allocation18_spill] sm:$0xff] }
 0x5b7   : > { %13935 = vmatprep.mubr.f32.mxu1 %v19509_v11  ;;  %v23100_v11 = vld [vmem:[#allocation19_spill] sm:$0xff] }
 0x5ba   : > { %13936 = vmatmul.mubr.f32.gmra.mrb[92].mxu1 %v19506_v45  ;;  %v23099_v45 = vld [vmem:[#allocation28_spill] sm:$0xff] }
 0x5bb   : > { %13938 = vmatprep.mubr.f32.mxu1 %v19527_v8  ;;  %v23098_v8 = vld [vmem:[#allocation29_spill] sm:$0xff] }
 0x5be   : > { %13939 = vmatmul.mubr.f32.gmra.mrb[94].mxu1 %v19524_v31  ;;  %v23097_v31 = vld [vmem:[#allocation24_spill] sm:$0xff] }
 0x5bf   : > { %13973 = vmatprep.mubr.f32.mxu1 %v19219_v34  ;;  %v23121_v34 = vand.u32 4294901760, %v19236_v4 }
 0x5c2   : > { %13974 = vmatmul.mubr.f32.vlgmr.msra.gmra.mrb[64].mxu1 %v19215_v12  ;;  %v23124_v12 = vand.u32 4294901760, %v23123_v39 }
 0x5c3   : > { %15056 = vmatpush3.bf16.msra.mxu1 %v18874_v53  ;;  %13976 = vmatprep.mubr.f32.mxu1 %v19244_v47 }
 0x5c4   : > { %15058 = vmatprep.subr.bf16.mxu1 %v18922_v6 }
 0x5c6   : > { %13977 = vmatmul.mubr.f32.gmra.mrb[66].mxu1 %v19236_v4 }
 0x5c7   : > { %13979 = vmatprep.mubr.f32.mxu1 %v19267_v21  ;;  %15060 = vmatpush3.bf16.msra.mxu1 %v18922_v6 }
 0x5c8   : > { %15062 = vmatprep.subr.bf16.mxu1 %v18944_v24 }
 0x5ca   : > { %13980 = vmatmul.mubr.f32.gmra.mrb[68].mxu1 %v23078_v63 }
 0x5cb   : > { %13982 = vmatprep.mubr.f32.mxu1 %v23079_v27  ;;  %15064 = vmatpush3.bf16.msra.mxu1 %v18944_v24 }
 0x5cc   : > { %15066 = vmatprep.subr.bf16.mxu1 %v23080_v44 }
 0x5ce   : > { %13983 = vmatmul.mubr.f32.gmra.mrb[70].mxu1 %v23081_v43 }
 0x5cf   : > { %13985 = vmatprep.mubr.f32.mxu1 %v23082_v46  ;;  %15068 = vmatpush3.bf16.msra.mxu1 %v23080_v44 }
 0x5d0   : > { %15070 = vmatprep.subr.bf16.mxu1 %v23083_v13 }
 0x5d2   : > { %13986 = vmatmul.mubr.f32.gmra.mrb[72].mxu1 %v23084_v16 }
 0x5d3   : > { %13988 = vmatprep.mubr.f32.mxu1 %v23085_v14  ;;  %15072 = vmatpush3.bf16.msra.mxu1 %v23083_v13 }
 0x5d4   : > { %15074 = vmatprep.subr.bf16.mxu1 %v23086_v57 }
 0x5d6   : > { %13989 = vmatmul.mubr.f32.gmra.mrb[74].mxu1 %v23087_v1 }
 0x5d7   : > { %13991 = vmatprep.mubr.f32.mxu1 %v23088_v60  ;;  %15076 = vmatpush3.bf16.msra.mxu1 %v23086_v57 }
 0x5d8   : > { %15078 = vmatprep.subr.bf16.mxu1 %v23089_v0 }
 0x5da   : > { %13992 = vmatmul.mubr.f32.gmra.mrb[76].mxu1 %v23090_v35 }
 0x5db   : > { %13994 = vmatprep.mubr.f32.mxu1 %v23091_v52  ;;  %15080 = vmatpush3.bf16.msra.mxu1 %v23089_v0  ;;  %v23120_v0 = vand.u32 4294901760, %v23119_v25  ;;  %v23131_v25 = vld [vmem:[#allocation50_spill] sm:$0xff] }
 0x5dc   : > { %15082 = vmatprep.subr.bf16.mxu1 %v23092_v49  ;;  %v23132_v21 = vand.u32 4294901760, %v23131_v25  ;;  %v23152_v25 = vand.u32 4294901760, %v23091_v52  ;;  %v23157_v52 = vand.u32 4294901760, %v23101_v59 }
 0x5de   : > { %13995 = vmatmul.mubr.f32.gmra.mrb[78].mxu1 %v23097_v31 }
 0x5df   : > { %13997 = vmatprep.mubr.f32.mxu1 %v23098_v8  ;;  %15084 = vmatpush3.bf16.msra.mxu1 %v23092_v49  ;;  %v23117_v49 = vld [vmem:[#allocation38_spill] sm:$0xff] }
 0x5e0   : > { %15086 = vmatprep.subr.bf16.mxu1 %v15085_v2  ;;  %v23118_v62 = vand.u32 4294901760, %v23117_v49  ;;  %v23137_v49 = vld [vmem:[#allocation45_spill] sm:$0xff] }
 0x5e1   : > { %v23138_v27 = vand.u32 4294901760, %v23137_v49 }
 0x5e2   : > { %13998 = vmatmul.mubr.f32.gmra.mrb[80].mxu1 %v23099_v45  ;;  %v15093_v28 = vpack.c.bf16 %v23120_v0, %v23118_v62  ;;  %v23129_v62 = vld [vmem:[#allocation15_spill] sm:$0xff] }
 0x5e3   : > { %14000 = vmatprep.mubr.f32.mxu1 %v23100_v11  ;;  %v23130_v4 = vand.u32 4294901760, %v23129_v62 }
 0x5e6   : > { %14001 = vmatmul.mubr.f32.gmra.mrb[82].mxu1 %v23101_v59  ;;  %v23164_v59 = vand.u32 4294901760, %v23108_v36 }
 0x5e7   : > { %14003 = vmatprep.mubr.f32.mxu1 %v23102_v40 }
 0x5ea   : > { %14004 = vmatmul.mubr.f32.gmra.mrb[84].mxu1 %v23103_v5 }
 0x5eb   : > { %14006 = vmatprep.mubr.f32.mxu1 %v23104_v19 }
 0x5ee   : > { %14007 = vmatmul.mubr.f32.gmra.mrb[86].mxu1 %v23105_v55 }
 0x5ef   : > { %14009 = vmatprep.mubr.f32.mxu1 %v23106_v10 }
 0x5f2   : > { %14010 = vmatmul.mubr.f32.gmra.mrb[88].mxu1 %v23107_v23 }
 0x5f3   : > { %14012 = vmatprep.mubr.f32.mxu1 %v23108_v36  ;;  %v19745_v36 = vld [vmem:[%s21898_s4 + $0x100] sm:$0xff] }
 0x5f6   : > { %14013 = vmatmul.mubr.f32.gmra.mrb[90].mxu1 %v23109_v61 }
 0x5f7   : > { %14015 = vmatprep.mubr.f32.mxu1 %v19522_v51 }
 0x5fa   : > { %14016 = vmatmul.mubr.f32.gmra.mrb[92].mxu1 %v19516_v17 }
 0x5fb   : > { %14018 = vmatprep.mubr.f32.mxu1 %v19540_v20 }
 0x5fe   : > { %14019 = vmatmul.mubr.f32.gmra.mrb[94].mxu1 %v19534_v37 }
 0x5ff   : > { %14053 = vmatprep.mubr.f32.mxu1 %v23110_v3  ;;  %v15101_v3 = vpack.c.bf16 %v23132_v21, %v23130_v4  ;;  %v23151_v4 = vand.u32 4294901760, %v23090_v35  ;;  %v23155_v21 = vand.u32 4294901760, %v23099_v45  ;;  %v23156_v35 = vand.u32 4294901760, %v23100_v11 }
 0x600   : > { %v23162_v45 = vand.u32 4294901760, %v23106_v10  ;;  %v23163_v11 = vand.u32 4294901760, %v23107_v23  ;;  %v23169_v10 = vand.u32 4294901760, %v19534_v37 }
 0x602   : > { %14054 = vmatmul.mubr.f32.vlgmr.msra.gmra.mrb[64].mxu1 %v23115_v50  ;;  %v23126_v50 = vand.u32 4294901760, %v23125_v38 }
 0x603   : > { %15088 = vmatpush3.bf16.msra.mxu1 %v15085_v2  ;;  %14056 = vmatprep.mubr.f32.mxu1 %v23116_v32  ;;  %v23127_v32 = vand.u32 4294901760, %v23078_v63  ;;  %v23134_v2 = vand.u32 4294901760, %v23082_v46  ;;  %v23135_v63 = vld [vmem:[#allocation30_spill] sm:$0xff] }
 0x604   : > { %15090 = vmatprep.subr.bf16.mxu1 %v15089_v58  ;;  %v15097_v47 = vpack.c.bf16 %v23126_v50, %v23124_v12  ;;  %v23136_v0 = vand.u32 4294901760, %v23135_v63  ;;  %v23143_v12 = vld [vmem:[#allocation41_spill] sm:$0xff]  ;;  %v23145_v50 = vand.u32 4294901760, %v23087_v1  ;;  %v23153_v1 = vand.u32 4294901760, %v23097_v31  ;;  %v19774_v63 = vld [vmem:[%s21898_s4 + $0x128] sm:$0xff] }
 0x605   : > { %v23144_v46 = vand.u32 4294901760, %v23143_v12  ;;  %v23159_v31 = vand.u32 4294901760, %v23103_v5  ;;  %v23166_v5 = vand.u32 4294901760, %v19522_v51  ;;  %v19755_v51 = vld [vmem:[%s21898_s4 + $0x110] sm:$0xff] }
 0x606   : > { %14057 = vmatmul.mubr.f32.gmra.mrb[66].mxu1 %v23121_v34  ;;  %v15105_v34 = vpack.c.bf16 %v23138_v27, %v23136_v0  ;;  %v8337_v23 = vand.u32 4294901760, %v19755_v51 }
 0x607   : > { %14059 = vmatprep.mubr.f32.mxu1 %v23122_v9  ;;  %15092 = vmatpush3.bf16.msra.mxu1 %v15089_v58  ;;  %v23133_v58 = vand.u32 4294901760, %v23081_v43  ;;  %v23140_v9 = vand.u32 4294901760, %v23085_v14  ;;  %v23141_v43 = vld [vmem:[#allocation31_spill] sm:$0xff] }
 0x608   : > { %15094 = vmatprep.subr.bf16.mxu1 %v15093_v28  ;;  %v23142_v39 = vand.u32 4294901760, %v23141_v43  ;;  %v19802_v43 = vld [vmem:[%s21898_s4 + $0x138] sm:$0xff] }
 0x609   : > { %v8352_v12 = vand.u32 4294901760, %v19802_v43 }
 0x60a   : > { %14060 = vmatmul.mubr.f32.gmra.mrb[68].mxu1 %v23127_v32  ;;  %v15109_v38 = vpack.c.bf16 %v23144_v46, %v23142_v39  ;;  %v19822_v46 = vld [vmem:[%s21898_s4 + $0x140] sm:$0xff] }
 0x60b   : > { %14062 = vmatprep.mubr.f32.mxu1 %v23128_v42  ;;  %15096 = vmatpush3.bf16.msra.mxu1 %v15093_v28  ;;  %v23139_v28 = vand.u32 4294901760, %v23084_v16  ;;  %v23147_v16 = vld [vmem:[#allocation33_spill] sm:$0xff]  ;;  %v23149_v42 = vld [vmem:[#allocation35_spill] sm:$0xff] }
 0x60c   : > { %15098 = vmatprep.subr.bf16.mxu1 %v15097_v47  ;;  %v23148_v32 = vand.u32 4294901760, %v23147_v16  ;;  %v23150_v14 = vand.u32 4294901760, %v23149_v42  ;;  %v23175_v42 = vld [vmem:[#allocation23_spill] sm:$0xff] }
 0x60e   : > { %14063 = vmatmul.mubr.f32.gmra.mrb[70].mxu1 %v23133_v58  ;;  %v15113_v62 = vpack.c.bf16 %v23150_v14, %v23148_v32  ;;  %v23161_v58 = vand.u32 4294901760, %v23105_v55  ;;  %v23168_v55 = vand.u32 4294901760, %v19540_v20  ;;  %v19763_v20 = vld [vmem:[%s21898_s4 + $0x118] sm:$0xff]  ;;  %v23174_v32 = vld [vmem:[#allocation65_spill] sm:$0xff] }
 0x60f   : > { %14065 = vmatprep.mubr.f32.mxu1 %v23134_v2  ;;  %15100 = vmatpush3.bf16.msra.mxu1 %v15097_v47  ;;  %v23146_v47 = vand.u32 4294901760, %v23088_v60  ;;  %v23154_v60 = vand.u32 4294901760, %v23098_v8  ;;  %v23160_v8 = vand.u32 4294901760, %v23104_v19  ;;  %v23167_v19 = vand.u32 4294901760, %v19516_v17  ;;  %v19769_v2 = vld [vmem:[%s21898_s4 + $0x120] sm:$0xff]  ;;  %v23176_v14 = vld [vmem:[#allocation12_spill] sm:$0xff] }
 0x610   : > { %15102 = vmatprep.subr.bf16.mxu1 %v15101_v3  ;;  %v8331_v17 = vand.u32 4294901760, %v19745_v36  ;;  %v8340_v0 = vand.u32 4294901760, %v19763_v20 }
 0x612   : > { %14066 = vmatmul.mubr.f32.gmra.mrb[72].mxu1 %v23139_v28  ;;  %v19788_v27 = vpack.c.bf16 %v8340_v0, %v8337_v23  ;;  %v8346_v28 = vand.u32 4294901760, %v19774_v63 }
 0x613   : > { %14068 = vmatprep.mubr.f32.mxu1 %v23140_v9  ;;  %15104 = vmatpush3.bf16.msra.mxu1 %v15101_v3  ;;  %v23158_v3 = vand.u32 4294901760, %v23102_v40  ;;  %v23165_v40 = vand.u32 4294901760, %v23109_v61  ;;  %v19750_v61 = vld [vmem:[%s21898_s4 + $0x108] sm:$0xff]  ;;  %v19797_v9 = vld [vmem:[%s21898_s4 + $0x130] sm:$0xff] }
 0x614   : > { %15106 = vmatprep.subr.bf16.mxu1 %v15105_v34  ;;  %v8334_v37 = vand.u32 4294901760, %v19750_v61  ;;  %v8349_v39 = vand.u32 4294901760, %v19797_v9 }
 0x616   : > { %14069 = vmatmul.mubr.f32.gmra.mrb[74].mxu1 %v23145_v50  ;;  %v19781_v49 = vpack.c.bf16 %v8334_v37, %v8331_v17  ;;  %v8355_v50 = vand.u32 4294901760, %v19822_v46 }
 0x617   : > { %14071 = vmatprep.mubr.f32.mxu1 %v23146_v47  ;;  %15108 = vmatpush3.bf16.msra.mxu1 %v15105_v34  ;;  %v8343_v34 = vand.u32 4294901760, %v19769_v2 }
 0x618   : > { %15110 = vmatprep.subr.bf16.mxu1 %v15109_v38  ;;  %15150 = vmatprep.subr.bf16.mxu0 %v19781_v49 }
 0x619   : > { %15152 = vmatpush3.bf16.msra.mxu0 %v19781_v49 }
 0x61a   : > { %14072 = vmatmul.mubr.f32.gmra.mrb[76].mxu1 %v23151_v4  ;;  %15154 = vmatprep.subr.bf16.mxu0 %v19788_v27  ;;  %v23179_v4 = vld [vmem:[#allocation26_spill] sm:$0xff] }
 0x61b   : > { %14074 = vmatprep.mubr.f32.mxu1 %v23152_v25  ;;  %15112 = vmatpush3.bf16.msra.mxu1 %v15109_v38  ;;  %v19827_v38 = vld [vmem:[%s21898_s4 + $0x148] sm:$0xff]  ;;  %v23180_v25 = vld [vmem:[#allocation17_spill] sm:$0xff] }
 0x61c   : > { %15114 = vmatprep.subr.bf16.mxu1 %v15113_v62  ;;  %v8358_v47 = vand.u32 4294901760, %v19827_v38 }
 0x61d   : > { %15156 = vmatpush3.bf16.msra.mxu0 %v19788_v27 }
 0x61e   : > { %14075 = vmatmul.mubr.f32.gmra.mrb[78].mxu1 %v23153_v1  ;;  %v19851_v16 = vpack.c.bf16 %v8358_v47, %v8355_v50  ;;  %v23182_v1 = vld [vmem:[#allocation21_spill] sm:$0xff] }
 0x61f   : > { %14077 = vmatprep.mubr.f32.mxu1 %v23154_v60  ;;  %15116 = vmatpush3.bf16.msra.mxu1 %v15113_v62  ;;  %v23178_v62 = vld [vmem:[#allocation27_spill] sm:$0xff]  ;;  %v23183_v60 = vld [vmem:[#allocation20_spill] sm:$0xff] }
 0x620   : > { %15118 = vmatprep.subr.bf16.mxu1 %v18874_v53  ;;  %23171 = vst [vmem:[#allocation70_spill] sm:$0xff] %v19851_v16 }
 0x622   : > { %14078 = vmatmul.mubr.f32.gmra.mrb[80].mxu1 %v23155_v21  ;;  %v23184_v21 = vld [vmem:[#allocation42_spill] sm:$0xff] }
 0x623   : > { %14080 = vmatprep.mubr.f32.mxu1 %v23156_v35  ;;  %v23185_v35 = vld [vmem:[#allocation39_spill] sm:$0xff] }
 0x626   : > { %14081 = vmatmul.mubr.f32.gmra.mrb[82].mxu1 %v23157_v52  ;;  %v23186_v52 = vld [vmem:[#allocation46_spill] sm:$0xff] }
 0x627   : > { %14083 = vmatprep.mubr.f32.mxu1 %v23158_v3  ;;  %v23187_v3 = vld [vmem:[#allocation48_spill] sm:$0xff] }
 0x62a   : > { %14084 = vmatmul.mubr.f32.gmra.mrb[84].mxu1 %v23159_v31  ;;  %v23188_v31 = vld [vmem:[#allocation53_spill] sm:$0xff] }
 0x62b   : > { %14086 = vmatprep.mubr.f32.mxu1 %v23160_v8  ;;  %v23189_v8 = vld [vmem:[#allocation55_spill] sm:$0xff] }
 0x62e   : > { %14087 = vmatmul.mubr.f32.gmra.mrb[86].mxu1 %v23161_v58  ;;  %v23190_v58 = vld [vmem:[#allocation61_spill] sm:$0xff] }
 0x62f   : > { %14089 = vmatprep.mubr.f32.mxu1 %v23162_v45  ;;  %v23191_v45 = vld [vmem:[#allocation63_spill] sm:$0xff] }
 0x632   : > { %14090 = vmatmul.mubr.f32.gmra.mrb[88].mxu1 %v23163_v11  ;;  %v23192_v11 = vld [vmem:[#allocation66_spill] sm:$0xff] }
 0x633   : > { %14092 = vmatprep.mubr.f32.mxu1 %v23164_v59  ;;  %v23193_v59 = vld [vmem:[#allocation67_spill] sm:$0xff] }
 0x636   : > { %14093 = vmatmul.mubr.f32.gmra.mrb[90].mxu1 %v23165_v40 }
 0x637   : > { %14095 = vmatprep.mubr.f32.mxu1 %v23166_v5 }
 0x63a   : > { %14096 = vmatmul.mubr.f32.gmra.mrb[92].mxu1 %v23167_v19 }
 0x63b   : > { %14098 = vmatprep.mubr.f32.mxu1 %v23168_v55  ;;  %v19954_v55 = vsub.f32 %v19745_v36, %v8331_v17 }
 0x63d   : > { %23197 = vst [vmem:[#allocation54_spill] sm:$0xff] %v19954_v55 }
 0x63e   : > { %14099 = vmatmul.mubr.f32.gmra.mrb[94].mxu1 %v23169_v10  ;;  %v19959_v10 = vsub.f32 %v19750_v61, %v8334_v37 }
 0x63f   : > { %14133 = vmatprep.mubr.f32.mxu1 %v19208_v48 }
 0x640   : > { %23198 = vst [vmem:[#allocation10_spill] sm:$0xff] %v19959_v10 }
 0x642   : > { %14134 = vmatmul.mubr.f32.vlgmr.msra.gmra.mrb[64].mxu1 %v19202_v7 }
 0x643   : > { %15120 = vmatpush3.bf16.msra.mxu1 %v18874_v53  ;;  %14136 = vmatprep.mubr.f32.mxu1 %v19227_v54  ;;  %v19813_v53 = vpack.c.bf16 %v8346_v28, %v8343_v34 }
 0x644   : > { %15122 = vmatprep.subr.bf16.mxu1 %v18922_v6 }
 0x645   : > { %15158 = vmatprep.subr.bf16.mxu0 %v19813_v53 }
 0x646   : > { %14137 = vmatmul.mubr.f32.gmra.mrb[66].mxu1 %v19223_v41  ;;  %15160 = vmatpush3.bf16.msra.mxu0 %v19813_v53 }
 0x647   : > { %14139 = vmatprep.mubr.f32.mxu1 %v19253_v22  ;;  %15124 = vmatpush3.bf16.msra.mxu1 %v18922_v6  ;;  %v19837_v6 = vpack.c.bf16 %v8352_v12, %v8349_v39 }
 0x648   : > { %15126 = vmatprep.subr.bf16.mxu1 %v18944_v24 }
 0x649   : > { %23170 = vst [vmem:[#allocation71_spill] sm:$0xff] %v19837_v6  ;;  %15162 = vmatprep.subr.bf16.mxu0 %v19837_v6 }
 0x64a   : > { %14140 = vmatmul.mubr.f32.gmra.mrb[68].mxu1 %v19247_v29  ;;  %15164 = vmatpush3.bf16.msra.mxu0 %v19837_v6 }
 0x64b   : > { %14142 = vmatprep.mubr.f32.mxu1 %v19279_v33  ;;  %15128 = vmatpush3.bf16.msra.mxu1 %v18944_v24  ;;  %v23172_v24 = vld [vmem:[#allocation64_spill] sm:$0xff] }
 0x64c   : > { %15130 = vmatprep.subr.bf16.mxu1 %v23080_v44  ;;  %15166 = vmatprep.subr.bf16.mxu0 %v19851_v16 }
 0x64e   : > { %14143 = vmatmul.mubr.f32.gmra.mrb[70].mxu1 %v19272_v30  ;;  %15168 = vmatpush3.bf16.msra.mxu0 %v19851_v16 }
 0x64f   : > { %14145 = vmatprep.mubr.f32.mxu1 %v19301_v18  ;;  %15132 = vmatpush3.bf16.msra.mxu1 %v23080_v44  ;;  %v23173_v44 = vld [vmem:[#allocation51_spill] sm:$0xff] }
 0x650   : > { %15134 = vmatprep.subr.bf16.mxu1 %v23083_v13 }
 0x652   : > { %14146 = vmatmul.mubr.f32.gmra.mrb[72].mxu1 %v19297_v15 }
 0x653   : > { %14148 = vmatprep.mubr.f32.mxu1 %v19323_v26  ;;  %15136 = vmatpush3.bf16.msra.mxu1 %v23083_v13  ;;  %v23177_v13 = vld [vmem:[#allocation22_spill] sm:$0xff] }
 0x654   : > { %15138 = vmatprep.subr.bf16.mxu1 %v23086_v57 }
 0x656   : > { %14149 = vmatmul.mubr.f32.gmra.mrb[74].mxu1 %v19319_v56 }
 0x657   : > { %14151 = vmatprep.mubr.f32.mxu1 %v23172_v24  ;;  %15140 = vmatpush3.bf16.msra.mxu1 %v23086_v57  ;;  %v23181_v57 = vld [vmem:[#allocation16_spill] sm:$0xff] }
 0x658   : > { %15142 = vmatprep.subr.bf16.mxu1 %v23173_v44 }
 0x65a   : > { %14152 = vmatmul.mubr.f32.gmra.mrb[76].mxu1 %v23174_v32 }
 0x65b   : > { %14154 = vmatprep.mubr.f32.mxu1 %v23175_v42  ;;  %15144 = vmatpush3.bf16.msra.mxu1 %v23173_v44  ;;  %v22420_v44 = vand.u32 4294901760, %v19959_v10 }
 0x65c   : > { %15146 = vmatprep.subr.bf16.mxu1 %v23176_v14 }
 0x65e   : > { %14155 = vmatmul.mubr.f32.gmra.mrb[78].mxu1 %v23177_v13 }
 0x65f   : > { %14157 = vmatprep.mubr.f32.mxu1 %v23178_v62  ;;  %15148 = vmatpush3.bf16.msra.mxu1 %v23176_v14 }
 0x662   : > { %14158 = vmatmul.mubr.f32.gmra.mrb[80].mxu1 %v23179_v4 }
 0x663   : > { %14160 = vmatprep.mubr.f32.mxu1 %v23180_v25 }
 0x666   : > { %14161 = vmatmul.mubr.f32.gmra.mrb[82].mxu1 %v23181_v57 }
 0x667   : > { %14163 = vmatprep.mubr.f32.mxu1 %v23182_v1 }
 0x66a   : > { %14164 = vmatmul.mubr.f32.gmra.mrb[84].mxu1 %v23183_v60 }
 0x66b   : > { %14166 = vmatprep.mubr.f32.mxu1 %v23184_v21 }
 0x66e   : > { %14167 = vmatmul.mubr.f32.gmra.mrb[86].mxu1 %v23185_v35 }
 0x66f   : > { %14169 = vmatprep.mubr.f32.mxu1 %v23186_v52 }
 0x672   : > { %14170 = vmatmul.mubr.f32.gmra.mrb[88].mxu1 %v23187_v3 }
 0x673   : > { %14172 = vmatprep.mubr.f32.mxu1 %v23188_v31 }
 0x676   : > { %14173 = vmatmul.mubr.f32.gmra.mrb[90].mxu1 %v23189_v8 }
 0x677   : > { %14175 = vmatprep.mubr.f32.mxu1 %v23190_v58 }
 0x67a   : > { %14176 = vmatmul.mubr.f32.gmra.mrb[92].mxu1 %v23191_v45 }
 0x67b   : > { %14178 = vmatprep.mubr.f32.mxu1 %v23192_v11 }
 0x67e   : > { %14179 = vmatmul.mubr.f32.gmra.mrb[94].mxu1 %v23193_v59 }
 0x67f   : > { %14213 = vmatprep.mubr.f32.mxu1 %v19208_v48  ;;  %v11409_v48 = vld [vmem:[%s21898_s4 + $0x158] sm:$0xff] }
 0x682   : > { %14214 = vmatmul.mubr.f32.vlgmr.msra.gmra.mrb[64].mxu1 %v19202_v7 }
 0x683   : > { %14216 = vmatprep.mubr.f32.mxu1 %v19227_v54 }
 0x686   : > { %14217 = vmatmul.mubr.f32.gmra.mrb[66].mxu1 %v19223_v41  ;;  %v11410_v41 = vld [vmem:[%s21898_s4 + $0x160] sm:$0xff] }
 0x687   : > { %14219 = vmatprep.mubr.f32.mxu1 %v19253_v22  ;;  %v8367_v54 = vand.u32 4294901760, %v11410_v41 }
 0x68a   : > { %14220 = vmatmul.mubr.f32.gmra.mrb[68].mxu1 %v19247_v29  ;;  %v11411_v29 = vld [vmem:[%s21898_s4 + $0x168] sm:$0xff] }
 0x68b   : > { %14222 = vmatprep.mubr.f32.mxu1 %v19279_v33  ;;  %v8370_v33 = vand.u32 4294901760, %v11411_v29 }
 0x68d   : > { %v19937_v22 = vpack.c.bf16 %v8370_v33, %v8367_v54 }
 0x68e   : > { %14223 = vmatmul.mubr.f32.gmra.mrb[70].mxu1 %v19272_v30  ;;  %v11408_v30 = vld [vmem:[%s21898_s4 + $0x150] sm:$0xff] }
 0x68f   : > { %14225 = vmatprep.mubr.f32.mxu1 %v19301_v18  ;;  %v8361_v7 = vand.u32 4294901760, %v11408_v30  ;;  %23195 = vst [vmem:[#allocation72_spill] sm:$0xff] %v19937_v22  ;;  %v11412_v18 = vld [vmem:[%s21898_s4 + $0x170] sm:$0xff] }
 0x690   : > { %v8373_v40 = vand.u32 4294901760, %v11412_v18 }
 0x691   : > { %v19972_v61 = vsub.f32 %v11408_v30, %v8361_v7 }
 0x692   : > { %14226 = vmatmul.mubr.f32.gmra.mrb[72].mxu1 %v19297_v15 }
 0x693   : > { %14228 = vmatprep.mubr.f32.mxu1 %v19323_v26  ;;  %v8364_v26 = vand.u32 4294901760, %v11409_v48  ;;  %23199 = vst [vmem:[#allocation52_spill] sm:$0xff] %v19972_v61 }
 0x695   : > { %v19927_v15 = vpack.c.bf16 %v8364_v26, %v8361_v7  ;;  %v19974_v37 = vsub.f32 %v11409_v48, %v8364_v26 }
 0x696   : > { %14229 = vmatmul.mubr.f32.gmra.mrb[74].mxu1 %v19319_v56  ;;  %v11413_v56 = vld [vmem:[%s21898_s4 + $0x178] sm:$0xff] }
 0x697   : > { %14231 = vmatprep.mubr.f32.mxu1 %v23172_v24  ;;  %23194 = vst [vmem:[#allocation47_spill] sm:$0xff] %v19927_v15  ;;  %15170 = vmatprep.subr.bf16.mxu0 %v19927_v15  ;;  %v8376_v5 = vand.u32 4294901760, %v11413_v56  ;;  %v22421_v24 = vand.u32 4294901760, %v19954_v55  ;;  %23200 = vst [vmem:[#allocation58_spill] sm:$0xff] %v19974_v37 }
 0x698   : > { %15172 = vmatpush3.bf16.msra.mxu0 %v19927_v15 }
 0x699   : > { %15174 = vmatprep.subr.bf16.mxu0 %v19937_v22  ;;  %v19947_v19 = vpack.c.bf16 %v8376_v5, %v8373_v40 }
 0x69a   : > { %14232 = vmatmul.mubr.f32.gmra.mrb[76].mxu1 %v23174_v32  ;;  %v8735_v32 = vsub.f32 %v19954_v55, %v22421_v24 }
 0x69b   : > { %14234 = vmatprep.mubr.f32.mxu1 %v23175_v42  ;;  %23196 = vst [vmem:[#allocation6_spill] sm:$0xff] %v19947_v19  ;;  %v8742_v42 = vsub.f32 %v19959_v10, %v22420_v44 }
 0x69c   : > { %15176 = vmatpush3.bf16.msra.mxu0 %v19937_v22  ;;  %v8736_v14 = vand.u32 4294901760, %v8735_v32  ;;  %v20035_v32 = vsub.f32 %v19769_v2, %v8343_v34 }
 0x69d   : > { %15178 = vmatprep.subr.bf16.mxu0 %v19947_v19  ;;  %v8743_v36 = vand.u32 4294901760, %v8742_v42  ;;  %v20040_v42 = vsub.f32 %v19774_v63, %v8346_v28  ;;  %v20063_v63 = vsub.f32 %v19822_v46, %v8355_v50  ;;  %v20080_v28 = vld [vmem:[%s21899_s5 + $0x2] ss:$0 sm:$0xff] }
 0x69e   : > { %14235 = vmatmul.mubr.f32.gmra.mrb[78].mxu1 %v23177_v13  ;;  %v22412_v13 = vand.u32 4294901760, %v19972_v61  ;;  %23207 = vst [vmem:[#allocation69_spill] sm:$0xff] %v20035_v32 }
 0x69f   : > { %14237 = vmatprep.mubr.f32.mxu1 %v23178_v62  ;;  %v19969_v17 = vpack.c.bf16 %v8743_v36, %v8736_v14  ;;  %v22411_v62 = vand.u32 4294901760, %v19974_v37  ;;  %23208 = vst [vmem:[#allocation25_spill] sm:$0xff] %v20040_v42  ;;  %23211 = vst [vmem:[#allocation24_spill] sm:$0xff] %v20063_v63 }
 0x6a0   : > { %15180 = vmatpush3.bf16.msra.mxu0 %v19947_v19 }
 0x6a1   : > { %15182 = vmatprep.subr.bf16.mxu0 %v19969_v17 }
 0x6a2   : > { %14238 = vmatmul.mubr.f32.gmra.mrb[80].mxu1 %v23179_v4  ;;  %v8805_v4 = vsub.f32 %v19972_v61, %v22412_v13 }
 0x6a3   : > { %14240 = vmatprep.mubr.f32.mxu1 %v23180_v25  ;;  %v19981_v25 = vsub.f32 %v11410_v41, %v8367_v54 }
 0x6a5   : > { %23201 = vst [vmem:[#allocation49_spill] sm:$0xff] %v19981_v25 }
 0x6a6   : > { %14241 = vmatmul.mubr.f32.gmra.mrb[82].mxu1 %v23181_v57  ;;  %v19983_v57 = vsub.f32 %v11411_v29, %v8370_v33 }
 0x6a7   : > { %14243 = vmatprep.mubr.f32.mxu1 %v23182_v1  ;;  %v8812_v1 = vsub.f32 %v19974_v37, %v22411_v62 }
 0x6a8   : > { %23202 = vst [vmem:[#allocation56_spill] sm:$0xff] %v19983_v57 }
 0x6aa   : > { %14244 = vmatmul.mubr.f32.gmra.mrb[84].mxu1 %v23183_v60  ;;  %v8806_v60 = vand.u32 4294901760, %v8805_v4 }
 0x6ab   : > { %14246 = vmatprep.mubr.f32.mxu1 %v23184_v21  ;;  %v22410_v21 = vand.u32 4294901760, %v19981_v25 }
 0x6ae   : > { %14247 = vmatmul.mubr.f32.gmra.mrb[86].mxu1 %v23185_v35  ;;  %v22409_v35 = vand.u32 4294901760, %v19983_v57 }
 0x6af   : > { %14249 = vmatprep.mubr.f32.mxu1 %v23186_v52  ;;  %v8813_v52 = vand.u32 4294901760, %v8812_v1  ;;  %v22416_v1 = vand.u32 4294901760, %v20035_v32 }
 0x6b2   : > { %14250 = vmatmul.mubr.f32.gmra.mrb[88].mxu1 %v23187_v3  ;;  %v8819_v3 = vsub.f32 %v19981_v25, %v22410_v21 }
 0x6b3   : > { %14252 = vmatprep.mubr.f32.mxu1 %v23188_v31  ;;  %v8826_v31 = vsub.f32 %v19983_v57, %v22409_v35 }
 0x6b6   : > { %14253 = vmatmul.mubr.f32.gmra.mrb[90].mxu1 %v23189_v8  ;;  %v19996_v8 = vsub.f32 %v11412_v18, %v8373_v40  ;;  %v20016_v18 = vpack.c.bf16 %v19959_v10, %v19954_v55  ;;  %v20026_v40 = vsub.f32 %v19763_v20, %v8340_v0  ;;  %v20049_v20 = vsub.f32 %v19797_v9, %v8349_v39 }
 0x6b7   : > { %14255 = vmatprep.mubr.f32.mxu1 %v23190_v58  ;;  %v19998_v58 = vsub.f32 %v11413_v56, %v8376_v5  ;;  %v20021_v56 = vsub.f32 %v19755_v51, %v8337_v23  ;;  %v20044_v51 = vpack.c.bf16 %v20040_v42, %v20035_v32  ;;  %v20054_v23 = vsub.f32 %v19802_v43, %v8352_v12 }
 0x6b8   : > { %23203 = vst [vmem:[#allocation62_spill] sm:$0xff] %v19996_v8  ;;  %v22408_v30 = vand.u32 4294901760, %v19996_v8  ;;  %23206 = vst [vmem:[#allocation68_spill] sm:$0xff] %v20026_v40  ;;  %v20068_v0 = vsub.f32 %v19827_v38, %v8358_v47  ;;  %v20084_v9 = vpack.c.bf16 %v19974_v37, %v19972_v61  ;;  %v22417_v36 = vand.u32 4294901760, %v20026_v40 }
 0x6b9   : > { %23204 = vst [vmem:[#allocation11_spill] sm:$0xff] %v19998_v58  ;;  %v22407_v48 = vand.u32 4294901760, %v19998_v58  ;;  %23205 = vst [vmem:[#allocation60_spill] sm:$0xff] %v20021_v56  ;;  %v20030_v5 = vpack.c.bf16 %v20026_v40, %v20021_v56  ;;  %v20058_v2 = vpack.c.bf16 %v20054_v23, %v20049_v20  ;;  %v22419_v14 = vand.u32 4294901760, %v20021_v56 }
 0x6ba   : > { %14256 = vmatmul.mubr.f32.gmra.mrb[92].mxu1 %v23191_v45  ;;  %v20000_v45 = vpack.c.bf16 %v8813_v52, %v8806_v60  ;;  %v8833_v26 = vsub.f32 %v19996_v8, %v22408_v30  ;;  %23209 = vst [vmem:[#allocation7_spill] sm:$0xff] %v20049_v20  ;;  %23210 = vst [vmem:[#allocation8_spill] sm:$0xff] %v20054_v23  ;;  %v20072_v34 = vpack.c.bf16 %v20068_v0, %v20063_v63 }
 0x6bb   : > { %14258 = vmatprep.mubr.f32.mxu1 %v23192_v11  ;;  %v8820_v11 = vand.u32 4294901760, %v8819_v3  ;;  %v8840_v41 = vsub.f32 %v19998_v58, %v22407_v48  ;;  %23212 = vst [vmem:[#allocation29_spill] sm:$0xff] %v20068_v0  ;;  %v22415_v60 = vand.u32 4294901760, %v20040_v42  ;;  %v20101_v52 = vpack.c.bf16 %v19983_v57, %v19981_v25 }
 0x6bc   : > { %v8834_v29 = vand.u32 4294901760, %v8833_v26  ;;  %v8756_v26 = vsub.f32 %v20026_v40, %v22417_v36 }
 0x6bd   : > { %v8841_v54 = vand.u32 4294901760, %v8840_v41  ;;  %v22414_v41 = vand.u32 4294901760, %v20049_v20 }
 0x6be   : > { %14259 = vmatmul.mubr.f32.gmra.mrb[94].mxu1 %v23193_v59  ;;  %v8827_v59 = vand.u32 4294901760, %v8826_v31 }
 0x6bf   : > { %v20012_v33 = vpack.c.bf16 %v8841_v54, %v8834_v29  ;;  %v8763_v54 = vsub.f32 %v20035_v32, %v22416_v1 }
 0x6c0   : > { %v20004_v7 = vpack.c.bf16 %v8827_v59, %v8820_v11  ;;  %v8749_v59 = vsub.f32 %v20021_v56, %v22419_v14 }
 0x6c1   : > { %v8764_v30 = vand.u32 4294901760, %v8763_v54 }
 0x755   : > { %v14215_v43 = vpop.f32.mrb[64].mxu1 }
 0x756   : > { %v15405_v39 = vadd.f32 %v14215_v43, %v20080_v28  ;;  %v8054_v12 = vpop.f32.mrb[65].mxu1  ;;  %v22413_v43 = vand.u32 4294901760, %v20054_v23 }
 0x757   : > { %v15406_v46 = vadd.f32 %v20080_v28, %v8054_v12 }
 0x758   : > { %8245 = vst [vmem:[%s20088_s13 + $0x8] sm:$0xff] %v15405_v39  ;;  %16441 = vtanh.f32 %v15405_v39  ;;  %v8770_v39 = vsub.f32 %v20040_v42, %v22415_v60 }
 0x759   : > { %8244 = vst [vmem:[%s20088_s13] sm:$0xff] %v15406_v46  ;;  %16443 = vtanh.f32 %v15406_v46  ;;  %v14218_v38 = vpop.f32.mrb[66].mxu1 }
 0x75a   : > { %v15407_v50 = vadd.f32 %v14218_v38, %v20080_v28  ;;  %v8066_v47 = vpop.f32.mrb[67].mxu1 }
 0x75b   : > { %v15408_v4 = vadd.f32 %v20080_v28, %v8066_v47  ;;  %v8750_v47 = vand.u32 4294901760, %v8749_v59  ;;  %v8771_v59 = vand.u32 4294901760, %v8770_v39 }
 0x75c   : > { %8247 = vst [vmem:[%s20088_s13 + $0x18] sm:$0xff] %v15407_v50  ;;  %16445 = vtanh.f32 %v15407_v50 }
 0x75d   : > { %8246 = vst [vmem:[%s20088_s13 + $0x10] sm:$0xff] %v15408_v4  ;;  %16447 = vtanh.f32 %v15408_v4  ;;  %v14221_v3 = vpop.f32.mrb[68].mxu1  ;;  %v8757_v4 = vand.u32 4294901760, %v8756_v26  ;;  %v20137_v26 = vpack.c.bf16 %v19998_v58, %v19996_v8  ;;  %v20157_v36 = vpack.c.bf16 %v8771_v59, %v8764_v30 }
 0x75e   : > { %v15409_v31 = vadd.f32 %v14221_v3, %v20080_v28  ;;  %v8078_v11 = vpop.f32.mrb[69].mxu1  ;;  %v8777_v3 = vsub.f32 %v20049_v20, %v22414_v41 }
 0x75f   : > { %v15410_v29 = vadd.f32 %v20080_v28, %v8078_v11  ;;  %v20147_v39 = vpack.c.bf16 %v8757_v4, %v8750_v47 }
 0x760   : > { %8249 = vst [vmem:[%s20088_s13 + $0x28] sm:$0xff] %v15409_v31  ;;  %16449 = vtanh.f32 %v15409_v31 }
 0x761   : > { %8248 = vst [vmem:[%s20088_s13 + $0x20] sm:$0xff] %v15410_v29  ;;  %16451 = vtanh.f32 %v15410_v29  ;;  %v14224_v12 = vpop.f32.mrb[70].mxu1  ;;  %v8784_v29 = vsub.f32 %v20054_v23, %v22413_v43 }
 0x762   : > { %v16442_v46 = vpop.eup %16441  ;;  %v15411_v38 = vadd.f32 %v14224_v12, %v20080_v28  ;;  %v8090_v50 = vpop.f32.mrb[71].mxu1 }
 0x763   : > { %v16444_v31 = vpop.eup %16443  ;;  %v20126_v11 = vand.u32 4294901760, %v16442_v46  ;;  %v15412_v48 = vadd.f32 %v20080_v28, %v8090_v50 }
 0x764   : > { %v20132_v35 = vand.u32 4294901760, %v16444_v31  ;;  %8251 = vst [vmem:[%s20088_s13 + $0x38] sm:$0xff] %v15411_v38  ;;  %16453 = vtanh.f32 %v15411_v38  ;;  %v8778_v38 = vand.u32 4294901760, %v8777_v3 }
 0x765   : > { %v20140_v12 = vsub.f32 %v16442_v46, %v20126_v11  ;;  %8250 = vst [vmem:[%s20088_s13 + $0x30] sm:$0xff] %v15412_v48  ;;  %16455 = vtanh.f32 %v15412_v48  ;;  %v14227_v54 = vpop.f32.mrb[72].mxu1  ;;  %v8785_v48 = vand.u32 4294901760, %v8784_v29 }
 0x766   : > { %v16446_v50 = vpop.eup %16445  ;;  %v15413_v21 = vadd.f32 %v14227_v54, %v20080_v28  ;;  %v8102_v62 = vpop.f32.mrb[73].mxu1  ;;  %v20145_v13 = vsub.f32 %v16444_v31, %v20132_v35 }
 0x767   : > { %v16448_v43 = vpop.eup %16447  ;;  %v20149_v41 = vand.u32 4294901760, %v16446_v50  ;;  %v15414_v46 = vadd.f32 %v20080_v28, %v8102_v62  ;;  %v22418_v60 = vand.u32 4294901760, %v20140_v12  ;;  %v20179_v24 = vpack.c.bf16 %v8785_v48, %v8778_v38 }
 0x768   : > { %v20153_v1 = vand.u32 4294901760, %v16448_v43  ;;  %8253 = vst [vmem:[%s20088_s13 + $0x48] sm:$0xff] %v15413_v21  ;;  %16457 = vtanh.f32 %v15413_v21  ;;  %v22422_v54 = vand.u32 4294901760, %v20145_v13 }
 0x769   : > { %8252 = vst [vmem:[%s20088_s13 + $0x40] sm:$0xff] %v15414_v46  ;;  %16459 = vtanh.f32 %v15414_v46  ;;  %v14230_v47 = vpop.f32.mrb[74].mxu1  ;;  %v8424_v4 = vsub.f32 %v20140_v12, %v22418_v60  ;;  %v20164_v62 = vsub.f32 %v16446_v50, %v20149_v41 }
 0x76a   : > { %v16450_v31 = vpop.eup %16449  ;;  %v15415_v21 = vadd.f32 %v14230_v47, %v20080_v28  ;;  %v8114_v29 = vpop.f32.mrb[75].mxu1  ;;  %v8414_v30 = vsub.f32 %v20145_v13, %v22422_v54  ;;  %v20172_v59 = vsub.f32 %v16448_v43, %v20153_v1 }
 0x76b   : > { %v16452_v60 = vpop.eup %16451  ;;  %v20175_v14 = vand.u32 4294901760, %v16450_v31  ;;  %v15416_v50 = vadd.f32 %v20080_v28, %v8114_v29  ;;  %v22425_v44 = vand.u32 4294901760, %v20164_v62  ;;  %v8425_v46 = vand.u32 4294901760, %v8424_v4 }
 0x76c   : > { %v20181_v47 = vand.u32 4294901760, %v16452_v60  ;;  %8255 = vst [vmem:[%s20088_s13 + $0x58] sm:$0xff] %v15415_v21  ;;  %16461 = vtanh.f32 %v15415_v21  ;;  %v8415_v3 = vand.u32 4294901760, %v8414_v30  ;;  %v22428_v54 = vand.u32 4294901760, %v20172_v59 }
 0x76d   : > { %8254 = vst [vmem:[%s20088_s13 + $0x50] sm:$0xff] %v15416_v50  ;;  %16463 = vtanh.f32 %v15416_v50  ;;  %v14233_v43 = vpop.f32.mrb[76].mxu1  ;;  %v8444_v58 = vsub.f32 %v20164_v62, %v22425_v44  ;;  %v20190_v29 = vsub.f32 %v16450_v31, %v20175_v14  ;;  %v23214_v30 = vand.u32 4294901760, %v20063_v63 }
 0x76e   : > { %v16454_v38 = vpop.eup %16453  ;;  %v15417_v48 = vadd.f32 %v14233_v43, %v20080_v28  ;;  %v8126_v8 = vpop.f32.mrb[77].mxu1  ;;  %14293 = vmatprep.mubr.f32.mxu0 %v8415_v3  ;;  %v8434_v21 = vsub.f32 %v20172_v59, %v22428_v54  ;;  %v20197_v4 = vsub.f32 %v16452_v60, %v20181_v47  ;;  %v23215_v43 = vand.u32 4294901760, %v20068_v0 }
 0x76f   : > { %23213 = vst [vmem:[#allocation28_spill] sm:$0xff] %v20190_v29  ;;  %v8791_v50 = vsub.f32 %v20063_v63, %v23214_v30  ;;  %v16456_v44 = vpop.eup %16455  ;;  %v20202_v31 = vand.u32 4294901760, %v16454_v38  ;;  %v15418_v57 = vadd.f32 %v20080_v28, %v8126_v8  ;;  %14294 = vmatmul.mubr.f32.vlgmr.msra.gmra.mrb[32].mxu0 %v8425_v46  ;;  %v22432_v3 = vand.u32 4294901760, %v20190_v29 }
 0x770   : > { %v8798_v25 = vsub.f32 %v20068_v0, %v23215_v43  ;;  %v20209_v54 = vand.u32 4294901760, %v16456_v44  ;;  %8257 = vst [vmem:[%s20088_s13 + $0x68] sm:$0xff] %v15417_v48  ;;  %16465 = vtanh.f32 %v15417_v48  ;;  %15184 = vmatpush3.bf16.msra.mxu0 %v19969_v17  ;;  %v8435_v60 = vand.u32 4294901760, %v8434_v21 }
 0x771   : > { %v22435_v30 = vand.u32 4294901760, %v20197_v4  ;;  %8256 = vst [vmem:[%s20088_s13 + $0x60] sm:$0xff] %v15418_v57  ;;  %16467 = vtanh.f32 %v15418_v57  ;;  %v14236_v37 = vpop.f32.mrb[78].mxu1  ;;  %v8445_v8 = vand.u32 4294901760, %v8444_v58  ;;  %15186 = vmatprep.subr.bf16.mxu0 %v20147_v39  ;;  %v8464_v46 = vsub.f32 %v20190_v29, %v22432_v3 }
 0x772   : > { %v20220_v43 = vsub.f32 %v16454_v38, %v20202_v31  ;;  %v16458_v48 = vpop.eup %16457  ;;  %v15419_v17 = vadd.f32 %v14236_v37, %v20080_v28  ;;  %v8138_v21 = vpop.f32.mrb[79].mxu1  ;;  %14296 = vmatprep.mubr.f32.mxu0 %v8435_v60  ;;  %v20227_v58 = vsub.f32 %v16456_v44, %v20209_v54  ;;  %v8792_v61 = vand.u32 4294901760, %v8791_v50 }
 0x773   : > { %v8454_v57 = vsub.f32 %v20197_v4, %v22435_v30  ;;  %v16460_v0 = vpop.eup %16459  ;;  %v20229_v3 = vand.u32 4294901760, %v16458_v48  ;;  %v15420_v38 = vadd.f32 %v20080_v28, %v8138_v21  ;;  %14297 = vmatmul.mubr.f32.gmra.mrb[34].mxu0 %v8445_v8  ;;  %v8799_v37 = vand.u32 4294901760, %v8798_v25 }
 0x774   : > { %23216 = vst [vmem:[#allocation19_spill] sm:$0xff] %v20220_v43  ;;  %23217 = vst [vmem:[#allocation18_spill] sm:$0xff] %v20227_v58  ;;  %v22436_v63 = vand.u32 4294901760, %v20220_v43  ;;  %v20233_v23 = vand.u32 4294901760, %v16460_v0  ;;  %16469 = vtanh.f32 %v15419_v17  ;;  %15188 = vmatpush3.bf16.msra.mxu0 %v20147_v39  ;;  %v22440_v44 = vand.u32 4294901760, %v20227_v58 }
 0x775   : > { %8259 = vst [vmem:[%s20088_s13 + $0x78] sm:$0xff] %v15419_v17  ;;  %v8455_v60 = vand.u32 4294901760, %v8454_v57  ;;  %8258 = vst [vmem:[%s20088_s13 + $0x70] sm:$0xff] %v15420_v38  ;;  %16471 = vtanh.f32 %v15420_v38  ;;  %v14239_v50 = vpop.f32.mrb[80].mxu1  ;;  %v8465_v30 = vand.u32 4294901760, %v8464_v46  ;;  %15190 = vmatprep.subr.bf16.mxu0 %v20157_v36  ;;  %v20244_v25 = vsub.f32 %v16458_v48, %v20229_v3 }
 0x776   : > { %v8484_v8 = vsub.f32 %v20220_v43, %v22436_v63  ;;  %v16462_v17 = vpop.eup %16461  ;;  %v15421_v21 = vadd.f32 %v14239_v50, %v20080_v28  ;;  %v8150_v39 = vpop.f32.mrb[81].mxu1  ;;  %v8474_v46 = vsub.f32 %v20227_v58, %v22440_v44  ;;  %v20251_v57 = vsub.f32 %v16460_v0, %v20233_v23 }
 0x777   : > { %23218 = vst [vmem:[#allocation13_spill] sm:$0xff] %v20244_v25  ;;  %14299 = vmatprep.mubr.f32.mxu0 %v8455_v60  ;;  %v16464_v38 = vpop.eup %16463  ;;  %v20253_v63 = vand.u32 4294901760, %v16462_v17  ;;  %v15422_v20 = vadd.f32 %v20080_v28, %v8150_v39  ;;  %v22441_v48 = vand.u32 4294901760, %v20244_v25  ;;  %v15197_v42 = vpack.c.bf16 %v8799_v37, %v8792_v61 }
 0x778   : > { %23219 = vst [vmem:[#allocation40_spill] sm:$0xff] %v20251_v57  ;;  %14300 = vmatmul.mubr.f32.gmra.mrb[36].mxu0 %v8465_v30  ;;  %v20257_v50 = vand.u32 4294901760, %v16464_v38  ;;  %8261 = vst [vmem:[%s20088_s13 + $0x88] sm:$0xff] %v15421_v21  ;;  %16473 = vtanh.f32 %v15421_v21  ;;  %v8475_v60 = vand.u32 4294901760, %v8474_v46  ;;  %v22443_v32 = vand.u32 4294901760, %v20251_v57 }
 0x779   : > { %15192 = vmatpush3.bf16.msra.mxu0 %v20157_v36  ;;  %8260 = vst [vmem:[%s20088_s13 + $0x80] sm:$0xff] %v15422_v20  ;;  %16475 = vtanh.f32 %v15422_v20  ;;  %v14242_v0 = vpop.f32.mrb[82].mxu1  ;;  %v8485_v44 = vand.u32 4294901760, %v8484_v8  ;;  %v8504_v30 = vsub.f32 %v20244_v25, %v22441_v48  ;;  %v20267_v61 = vsub.f32 %v16462_v17, %v20253_v63 }
 0x77a   : > { %15194 = vmatprep.subr.bf16.mxu0 %v20179_v24  ;;  %v16466_v37 = vpop.eup %16465  ;;  %v15423_v21 = vadd.f32 %v14242_v0, %v20080_v28  ;;  %v8162_v39 = vpop.f32.mrb[83].mxu1  ;;  %14302 = vmatprep.mubr.f32.mxu0 %v8475_v60  ;;  %v8494_v20 = vsub.f32 %v20251_v57, %v22443_v32  ;;  %v20275_v36 = vsub.f32 %v16464_v38, %v20257_v50 }
 0x77b   : > { %23220 = vst [vmem:[#allocation44_spill] sm:$0xff] %v20267_v61  ;;  %v16468_v8 = vpop.eup %16467  ;;  %v20277_v46 = vand.u32 4294901760, %v16466_v37  ;;  %v15424_v17 = vadd.f32 %v20080_v28, %v8162_v39  ;;  %v22446_v48 = vand.u32 4294901760, %v20267_v61  ;;  %v8505_v32 = vand.u32 4294901760, %v8504_v30 }
 0x77c   : > { %23221 = vst [vmem:[#allocation34_spill] sm:$0xff] %v20275_v36  ;;  %14303 = vmatmul.mubr.f32.gmra.mrb[38].mxu0 %v8485_v44  ;;  %v20281_v40 = vand.u32 4294901760, %v16468_v8  ;;  %8263 = vst [vmem:[%s20088_s13 + $0x98] sm:$0xff] %v15423_v21  ;;  %16477 = vtanh.f32 %v15423_v21  ;;  %v8495_v60 = vand.u32 4294901760, %v8494_v20  ;;  %v22448_v0 = vand.u32 4294901760, %v20275_v36 }
 0x77d   : > { %23222 = vst [vmem:[#allocation36_spill] sm:$0xff] %v20277_v46  ;;  %15196 = vmatpush3.bf16.msra.mxu0 %v20179_v24  ;;  %8262 = vst [vmem:[%s20088_s13 + $0x90] sm:$0xff] %v15424_v17  ;;  %16479 = vtanh.f32 %v15424_v17  ;;  %v14245_v38 = vpop.f32.mrb[84].mxu1  ;;  %v8524_v44 = vsub.f32 %v20267_v61, %v22446_v48  ;;  %v20291_v39 = vsub.f32 %v16466_v37, %v20277_v46 }
 0x77e   : > { %23223 = vst [vmem:[#allocation5_spill] sm:$0xff] %v20281_v40  ;;  %15198 = vmatprep.subr.bf16.mxu0 %v15197_v42  ;;  %v16470_v56 = vpop.eup %16469  ;;  %v15425_v21 = vadd.f32 %v14245_v38, %v20080_v28  ;;  %v8174_v20 = vpop.f32.mrb[85].mxu1  ;;  %14305 = vmatprep.mubr.f32.mxu0 %v8495_v60  ;;  %v8514_v24 = vsub.f32 %v20275_v36, %v22448_v0 }
 0x77f   : > { %23224 = vst [vmem:[#allocation57_spill] sm:$0xff] %v20291_v39  ;;  %v20298_v30 = vsub.f32 %v16468_v8, %v20281_v40  ;;  %v16472_v17 = vpop.eup %16471  ;;  %v20300_v10 = vand.u32 4294901760, %v16470_v56  ;;  %v15426_v37 = vadd.f32 %v20080_v28, %v8174_v20  ;;  %v22451_v48 = vand.u32 4294901760, %v20291_v39 }
 0x780   : > { %14306 = vmatmul.mubr.f32.gmra.mrb[40].mxu0 %v8505_v32  ;;  %v20304_v55 = vand.u32 4294901760, %v16472_v17  ;;  %8265 = vst [vmem:[%s20088_s13 + $0xa8] sm:$0xff] %v15425_v21  ;;  %16481 = vtanh.f32 %v15425_v21  ;;  %v8515_v60 = vand.u32 4294901760, %v8514_v24  ;;  %v8525_v0 = vand.u32 4294901760, %v8524_v44 }
 0x781   : > { %23225 = vst [vmem:[#allocation59_spill] sm:$0xff] %v20298_v30  ;;  %23226 = vst [vmem:[#allocation9_spill] sm:$0xff] %v20300_v10  ;;  %v22456_v38 = vand.u32 4294901760, %v20298_v30  ;;  %15200 = vmatpush3.bf16.msra.mxu0 %v15197_v42  ;;  %16483 = vtanh.f32 %v15426_v37  ;;  %v14248_v8 = vpop.f32.mrb[86].mxu1  ;;  %v8544_v20 = vsub.f32 %v20291_v39, %v22451_v48  ;;  %v20313_v32 = vsub.f32 %v16470_v56, %v20300_v10 }
 0x782   : > { %23227 = vst [vmem:[#allocation37_spill] sm:$0xff] %v20304_v55  ;;  %8264 = vst [vmem:[%s20088_s13 + $0xa0] sm:$0xff] %v15426_v37  ;;  %15202 = vmatprep.subr.bf16.mxu0 %v20000_v45  ;;  %v16474_v19 = vpop.eup %16473  ;;  %v15427_v21 = vadd.f32 %v14248_v8, %v20080_v28  ;;  %v8186_v24 = vpop.f32.mrb[87].mxu1  ;;  %14308 = vmatprep.mubr.f32.mxu0 %v8515_v60  ;;  %v20321_v44 = vsub.f32 %v16472_v17, %v20304_v55 }
 0x783   : > { %23228 = vst [vmem:[#allocation38_spill] sm:$0xff] %v20313_v32  ;;  %v8534_v42 = vsub.f32 %v20298_v30, %v22456_v38  ;;  %v16476_v37 = vpop.eup %16475  ;;  %v20323_v48 = vand.u32 4294901760, %v16474_v19  ;;  %v15428_v56 = vadd.f32 %v20080_v28, %v8186_v24  ;;  %v22459_v39 = vand.u32 4294901760, %v20313_v32 }
 0x784   : > { %23229 = vst [vmem:[#allocation32_spill] sm:$0xff] %v20321_v44  ;;  %14309 = vmatmul.mubr.f32.gmra.mrb[42].mxu0 %v8525_v0  ;;  %v20327_v22 = vand.u32 4294901760, %v16476_v37  ;;  %8267 = vst [vmem:[%s20088_s13 + $0xb8] sm:$0xff] %v15427_v21  ;;  %16485 = vtanh.f32 %v15427_v21  ;;  %v8545_v38 = vand.u32 4294901760, %v8544_v20 }
 0x785   : > { %23230 = vst [vmem:[#allocation43_spill] sm:$0xff] %v20323_v48  ;;  %v8535_v60 = vand.u32 4294901760, %v8534_v42  ;;  %15204 = vmatpush3.bf16.msra.mxu0 %v20000_v45  ;;  %8266 = vst [vmem:[%s20088_s13 + $0xb0] sm:$0xff] %v15428_v56  ;;  %16487 = vtanh.f32 %v15428_v56  ;;  %v14251_v17 = vpop.f32.mrb[88].mxu1  ;;  %v8564_v0 = vsub.f32 %v20313_v32, %v22459_v39  ;;  %v20337_v24 = vsub.f32 %v16474_v19, %v20323_v48 }
 0x786   : > { %23231 = vst [vmem:[#allocation14_spill] sm:$0xff] %v20327_v22  ;;  %15206 = vmatprep.subr.bf16.mxu0 %v20004_v7  ;;  %v16478_v21 = vpop.eup %16477  ;;  %v15429_v42 = vadd.f32 %v14251_v17, %v20080_v28  ;;  %v8198_v8 = vpop.f32.mrb[89].mxu1  ;;  %v23233_v45 = vand.u32 4294901760, %v20321_v44  ;;  %v20345_v56 = vsub.f32 %v16476_v37, %v20327_v22 }
 0x787   : > { %23232 = vst [vmem:[#allocation15_spill] sm:$0xff] %v20337_v24  ;;  %14311 = vmatprep.mubr.f32.mxu0 %v8535_v60  ;;  %v16480_v30 = vpop.eup %16479  ;;  %v20347_v39 = vand.u32 4294901760, %v16478_v21  ;;  %v15430_v19 = vadd.f32 %v20080_v28, %v8198_v8  ;;  %v22466_v32 = vand.u32 4294901760, %v20337_v24 }
 0x788   : > { %v8554_v20 = vsub.f32 %v20321_v44, %v23233_v45  ;;  %23234 = vst [vmem:[#allocation50_spill] sm:$0xff] %v20345_v56  ;;  %14312 = vmatmul.mubr.f32.gmra.mrb[44].mxu0 %v8545_v38  ;;  %v20351_v61 = vand.u32 4294901760, %v16480_v30  ;;  %8269 = vst [vmem:[%s20088_s13 + $0xc8] sm:$0xff] %v15429_v42  ;;  %16489 = vtanh.f32 %v15429_v42  ;;  %v8565_v45 = vand.u32 4294901760, %v8564_v0 }
 0x789   : > { %23235 = vst [vmem:[#allocation30_spill] sm:$0xff] %v20347_v39  ;;  %15208 = vmatpush3.bf16.msra.mxu0 %v20004_v7  ;;  %8268 = vst [vmem:[%s20088_s13 + $0xc0] sm:$0xff] %v15430_v19  ;;  %16491 = vtanh.f32 %v15430_v19  ;;  %v14254_v37 = vpop.f32.mrb[90].mxu1  ;;  %v8584_v38 = vsub.f32 %v20337_v24, %v22466_v32  ;;  %v20361_v8 = vsub.f32 %v16478_v21, %v20347_v39  ;;  %v23238_v7 = vand.u32 4294901760, %v20345_v56 }
 0x78a   : > { %23236 = vst [vmem:[#allocation45_spill] sm:$0xff] %v20351_v61  ;;  %v8555_v60 = vand.u32 4294901760, %v8554_v20  ;;  %15210 = vmatprep.subr.bf16.mxu0 %v20012_v33  ;;  %v16482_v42 = vpop.eup %16481  ;;  %v15431_v20 = vadd.f32 %v14254_v37, %v20080_v28  ;;  %v8210_v17 = vpop.f32.mrb[91].mxu1  ;;  %v20369_v19 = vsub.f32 %v16480_v30, %v20351_v61 }
 0x78b   : > { %23237 = vst [vmem:[#allocation31_spill] sm:$0xff] %v20361_v8  ;;  %v8574_v0 = vsub.f32 %v20345_v56, %v23238_v7  ;;  %v16484_v44 = vpop.eup %16483  ;;  %v20371_v32 = vand.u32 4294901760, %v16482_v42  ;;  %v15432_v21 = vadd.f32 %v20080_v28, %v8210_v17  ;;  %v22473_v24 = vand.u32 4294901760, %v20361_v8 }
 0x78c   : > { %14314 = vmatprep.mubr.f32.mxu0 %v8555_v60  ;;  %23239 = vst [vmem:[#allocation41_spill] sm:$0xff] %v20369_v19  ;;  %v20375_v15 = vand.u32 4294901760, %v16484_v44  ;;  %8271 = vst [vmem:[%s20088_s13 + $0xd8] sm:$0xff] %v15431_v20  ;;  %16493 = vtanh.f32 %v15431_v20  ;;  %v8585_v7 = vand.u32 4294901760, %v8584_v38 }
 0x78d   : > { %23240 = vst [vmem:[#allocation33_spill] sm:$0xff] %v20371_v32  ;;  %14315 = vmatmul.mubr.f32.gmra.mrb[46].mxu0 %v8565_v45  ;;  %v8575_v60 = vand.u32 4294901760, %v8574_v0  ;;  %8270 = vst [vmem:[%s20088_s13 + $0xd0] sm:$0xff] %v15432_v21  ;;  %16495 = vtanh.f32 %v15432_v21  ;;  %v14257_v30 = vpop.f32.mrb[92].mxu1  ;;  %v8604_v17 = vsub.f32 %v20361_v8, %v22473_v24  ;;  %v20385_v45 = vsub.f32 %v16482_v42, %v20371_v32 }
 0x78e   : > { %23241 = vst [vmem:[#allocation35_spill] sm:$0xff] %v20375_v15  ;;  %15212 = vmatpush3.bf16.msra.mxu0 %v20012_v33  ;;  %v16486_v20 = vpop.eup %16485  ;;  %v15433_v0 = vadd.f32 %v14257_v30, %v20080_v28  ;;  %v8222_v37 = vpop.f32.mrb[93].mxu1  ;;  %v23243_v33 = vand.u32 4294901760, %v20369_v19  ;;  %v20393_v21 = vsub.f32 %v16484_v44, %v20375_v15 }
 0x78f   : > { %23242 = vst [vmem:[#allocation64_spill] sm:$0xff] %v20385_v45  ;;  %15214 = vmatprep.subr.bf16.mxu0 %v20016_v18  ;;  %14317 = vmatprep.mubr.f32.mxu0 %v8575_v60  ;;  %v16488_v56 = vpop.eup %16487  ;;  %v20395_v24 = vand.u32 4294901760, %v16486_v20  ;;  %v15434_v42 = vadd.f32 %v20080_v28, %v8222_v37  ;;  %v22484_v8 = vand.u32 4294901760, %v20385_v45  ;;  %v8605_v44 = vand.u32 4294901760, %v8604_v17 }
 0x790   : > { %v8594_v38 = vsub.f32 %v20369_v19, %v23243_v33  ;;  %23244 = vst [vmem:[#allocation51_spill] sm:$0xff] %v20393_v21  ;;  %v20399_v36 = vand.u32 4294901760, %v16488_v56  ;;  %8273 = vst [vmem:[%s20088_s13 + $0xe8] sm:$0xff] %v15433_v0  ;;  %16497 = vtanh.f32 %v15433_v0  ;;  %v22487_v30 = vand.u32 4294901760, %v20393_v21 }
 0x791   : > { %23245 = vst [vmem:[#allocation65_spill] sm:$0xff] %v20395_v24  ;;  %14318 = vmatmul.mubr.f32.gmra.mrb[48].mxu0 %v8585_v7  ;;  %8272 = vst [vmem:[%s20088_s13 + $0xe0] sm:$0xff] %v15434_v42  ;;  %16499 = vtanh.f32 %v15434_v42  ;;  %v14260_v33 = vpop.f32.mrb[94].mxu1  ;;  %v8624_v19 = vsub.f32 %v20385_v45, %v22484_v8  ;;  %v20408_v37 = vsub.f32 %v16486_v20, %v20395_v24 }
 0x792   : > { %23246 = vst [vmem:[#allocation23_spill] sm:$0xff] %v20399_v36  ;;  %v8595_v60 = vand.u32 4294901760, %v8594_v38  ;;  %v16490_v7 = vpop.eup %16489  ;;  %v15435_v25 = vadd.f32 %v14260_v33, %v20080_v28  ;;  %v8234_v0 = vpop.f32.mrb[95].mxu1  ;;  %v8614_v38 = vsub.f32 %v20393_v21, %v22487_v30  ;;  %v20415_v42 = vsub.f32 %v16488_v56, %v20399_v36 }
 0x793   : > { %23247 = vst [vmem:[#allocation12_spill] sm:$0xff] %v20408_v37  ;;  %v16492_v17 = vpop.eup %16491  ;;  %v20417_v16 = vand.u32 4294901760, %v16490_v7  ;;  %v15436_v8 = vadd.f32 %v20080_v28, %v8234_v0  ;;  %v22490_v20 = vand.u32 4294901760, %v20408_v37  ;;  %v8625_v30 = vand.u32 4294901760, %v8624_v19 }
 0x794   : > { %14320 = vmatprep.mubr.f32.mxu0 %v8595_v60  ;;  %23248 = vst [vmem:[#allocation22_spill] sm:$0xff] %v20415_v42  ;;  %v20421_v45 = vand.u32 4294901760, %v16492_v17  ;;  %8275 = vst [vmem:[%s20088_s13 + $0xf8] sm:$0xff] %v15435_v25  ;;  %16501 = vtanh.f32 %v15435_v25  ;;  %v8615_v60 = vand.u32 4294901760, %v8614_v38  ;;  %v22493_v33 = vand.u32 4294901760, %v20415_v42 }
 0x795   : > { %23249 = vst [vmem:[#allocation27_spill] sm:$0xff] %v20417_v16  ;;  %14321 = vmatmul.mubr.f32.gmra.mrb[50].mxu0 %v8605_v44  ;;  %8274 = vst [vmem:[%s20088_s13 + $0xf0] sm:$0xff] %v15436_v8  ;;  %16503 = vtanh.f32 %v15436_v8  ;;  %v8644_v56 = vsub.f32 %v20408_v37, %v22490_v20  ;;  %v20430_v21 = vsub.f32 %v16490_v7, %v20417_v16 }
 0x796   : > { %23250 = vst [vmem:[#allocation26_spill] sm:$0xff] %v20421_v45  ;;  %v16494_v28 = vpop.eup %16493  ;;  %14323 = vmatprep.mubr.f32.mxu0 %v8615_v60  ;;  %v8634_v44 = vsub.f32 %v20415_v42, %v22493_v33  ;;  %v20436_v25 = vsub.f32 %v16492_v17, %v20421_v45 }
 0x797   : > { %23251 = vst [vmem:[#allocation17_spill] sm:$0xff] %v20430_v21  ;;  %v16496_v0 = vpop.eup %16495  ;;  %v20438_v38 = vand.u32 4294901760, %v16494_v28  ;;  %v22500_v8 = vand.u32 4294901760, %v20430_v21  ;;  %v8645_v37 = vand.u32 4294901760, %v8644_v56 }
 0x798   : > { %23252 = vst [vmem:[#allocation16_spill] sm:$0xff] %v20436_v25  ;;  %v20441_v19 = vand.u32 4294901760, %v16496_v0  ;;  %v8635_v20 = vand.u32 4294901760, %v8634_v44  ;;  %v22503_v7 = vand.u32 4294901760, %v20436_v25 }
 0x799   : > { %23253 = vst [vmem:[#allocation21_spill] sm:$0xff] %v20438_v38  ;;  %14324 = vmatmul.mubr.f32.gmra.mrb[52].mxu0 %v8625_v30  ;;  %v8664_v60 = vsub.f32 %v20430_v21, %v22500_v8  ;;  %v20448_v33 = vsub.f32 %v16494_v28, %v20438_v38 }
 0x79a   : > { %23254 = vst [vmem:[#allocation20_spill] sm:$0xff] %v20441_v19  ;;  %v16498_v17 = vpop.eup %16497  ;;  %14326 = vmatprep.mubr.f32.mxu0 %v8635_v20  ;;  %v8654_v30 = vsub.f32 %v20436_v25, %v22503_v7  ;;  %v20454_v42 = vsub.f32 %v16496_v0, %v20441_v19 }
 0x79b   : > { %23255 = vst [vmem:[#allocation42_spill] sm:$0xff] %v20448_v33  ;;  %v16500_v44 = vpop.eup %16499  ;;  %v20456_v57 = vand.u32 4294901760, %v16498_v17  ;;  %v22510_v56 = vand.u32 4294901760, %v20448_v33  ;;  %v8665_v21 = vand.u32 4294901760, %v8664_v60 }
 0x79c   : > { %23256 = vst [vmem:[#allocation39_spill] sm:$0xff] %v20454_v42  ;;  %v20459_v43 = vand.u32 4294901760, %v16500_v44  ;;  %v8655_v8 = vand.u32 4294901760, %v8654_v30  ;;  %v22513_v28 = vand.u32 4294901760, %v20454_v42 }
 0x79d   : > { %23257 = vst [vmem:[#allocation46_spill] sm:$0xff] %v20456_v57  ;;  %14327 = vmatmul.mubr.f32.gmra.mrb[54].mxu0 %v8645_v37  ;;  %v8684_v20 = vsub.f32 %v20448_v33, %v22510_v56  ;;  %v20466_v7 = vsub.f32 %v16498_v17, %v20456_v57 }
 0x79e   : > { %23258 = vst [vmem:[#allocation48_spill] sm:$0xff] %v20459_v43  ;;  %v16502_v0 = vpop.eup %16501  ;;  %14329 = vmatprep.mubr.f32.mxu0 %v8655_v8  ;;  %v8674_v37 = vsub.f32 %v20454_v42, %v22513_v28  ;;  %v20472_v25 = vsub.f32 %v16500_v44, %v20459_v43 }
 0x79f   : > { %v16504_v30 = vpop.eup %16503  ;;  %v20474_v6 = vand.u32 4294901760, %v16502_v0  ;;  %v22518_v60 = vand.u32 4294901760, %v20466_v7  ;;  %v8685_v33 = vand.u32 4294901760, %v8684_v20 }
 0x7a0   : > { %v20477_v58 = vand.u32 4294901760, %v16504_v30  ;;  %v8675_v56 = vand.u32 4294901760, %v8674_v37  ;;  %v22521_v17 = vand.u32 4294901760, %v20472_v25 }
 0x7a1   : > { %23259 = vst [vmem:[#allocation53_spill] sm:$0xff] %v20474_v6  ;;  %14330 = vmatmul.mubr.f32.gmra.mrb[56].mxu0 %v8665_v21  ;;  %v8704_v8 = vsub.f32 %v20466_v7, %v22518_v60  ;;  %v20484_v28 = vsub.f32 %v16502_v0, %v20474_v6 }
 0x7a2   : > { %23260 = vst [vmem:[#allocation55_spill] sm:$0xff] %v20477_v58  ;;  %14332 = vmatprep.mubr.f32.mxu0 %v8675_v56  ;;  %v8694_v21 = vsub.f32 %v20472_v25, %v22521_v17  ;;  %v20490_v44 = vsub.f32 %v16504_v30, %v20477_v58 }
 0x7a3   : > { %v22519_v37 = vand.u32 4294901760, %v20484_v28  ;;  %v8705_v29 = vand.u32 4294901760, %v8704_v8  ;;  %v23273_v8 = vld [vmem:[#allocation57_spill] sm:$0xff] }
 0x7a4   : > { %v8695_v42 = vand.u32 4294901760, %v8694_v21  ;;  %v22520_v20 = vand.u32 4294901760, %v20490_v44  ;;  %v23274_v21 = vld [vmem:[#allocation32_spill] sm:$0xff] }
 0x7a5   : > { %14333 = vmatmul.mubr.f32.gmra.mrb[58].mxu0 %v8685_v33  ;;  %v8724_v0 = vsub.f32 %v20484_v28, %v22519_v37  ;;  %v23271_v33 = vld [vmem:[#allocation59_spill] sm:$0xff]  ;;  %v23278_v37 = vld [vmem:[#allocation10_spill] sm:$0xff] }
 0x7a6   : > { %14335 = vmatprep.mubr.f32.mxu0 %v8695_v42  ;;  %v8714_v56 = vsub.f32 %v20490_v44, %v22520_v20  ;;  %v23270_v42 = vld [vmem:[#allocation44_spill] sm:$0xff]  ;;  %v23279_v20 = vand.u32 4294901760, %v23278_v37 }
 0x7a7   : > { %v8725_v30 = vand.u32 4294901760, %v8724_v0  ;;  %v23275_v0 = vld [vmem:[#allocation6_spill] sm:$0xff]  ;;  %v23288_v37 = vld [vmem:[#allocation12_spill] sm:$0xff] }
 0x7a8   : > { %v8715_v60 = vand.u32 4294901760, %v8714_v56  ;;  %v23276_v56 = vld [vmem:[#allocation54_spill] sm:$0xff] }
 0x7a9   : > { %14336 = vmatmul.mubr.f32.gmra.mrb[60].mxu0 %v8705_v29  ;;  %v23269_v29 = vld [vmem:[#allocation47_spill] sm:$0xff] }
 0x7aa   : > { %14338 = vmatprep.mubr.f32.mxu0 %v8715_v60  ;;  %v23272_v60 = vld [vmem:[#allocation72_spill] sm:$0xff] }
 0x7ad   : > { %14339 = vmatmul.mubr.f32.gmra.mrb[62].mxu0 %v8725_v30  ;;  %v23277_v30 = vand.u32 4294901760, %v23276_v56  ;;  %v23287_v56 = vld [vmem:[#allocation22_spill] sm:$0xff] }
 0x7ae   : > { %14373 = vmatprep.mubr.f32.mxu0 %v20132_v35 }
 0x7af   : > { %v15277_v17 = vpack.c.bf16 %v23279_v20, %v23277_v30  ;;  %v23289_v20 = vld [vmem:[#allocation16_spill] sm:$0xff]  ;;  %v23290_v30 = vld [vmem:[#allocation17_spill] sm:$0xff] }
 0x7b1   : > { %14374 = vmatmul.mubr.f32.vlgmr.msra.gmra.mrb[32].mxu0 %v20126_v11 }
 0x7b2   : > { %15216 = vmatpush3.bf16.msra.mxu0 %v20016_v18  ;;  %14376 = vmatprep.mubr.f32.mxu0 %v20153_v1  ;;  %v23261_v18 = vld [vmem:[#allocation28_spill] sm:$0xff] }
 0x7b3   : > { %15218 = vmatprep.subr.bf16.mxu0 %v20030_v5 }
 0x7b5   : > { %14377 = vmatmul.mubr.f32.gmra.mrb[34].mxu0 %v20149_v41 }
 0x7b6   : > { %14379 = vmatprep.mubr.f32.mxu0 %v20181_v47  ;;  %15220 = vmatpush3.bf16.msra.mxu0 %v20030_v5  ;;  %v23262_v5 = vld [vmem:[#allocation18_spill] sm:$0xff] }
 0x7b7   : > { %15222 = vmatprep.subr.bf16.mxu0 %v20044_v51 }
 0x7b9   : > { %14380 = vmatmul.mubr.f32.gmra.mrb[36].mxu0 %v20175_v14 }
 0x7ba   : > { %14382 = vmatprep.mubr.f32.mxu0 %v20209_v54  ;;  %15224 = vmatpush3.bf16.msra.mxu0 %v20044_v51  ;;  %v23263_v51 = vld [vmem:[#allocation71_spill] sm:$0xff] }
 0x7bb   : > { %15226 = vmatprep.subr.bf16.mxu0 %v20058_v2 }
 0x7bd   : > { %14383 = vmatmul.mubr.f32.gmra.mrb[38].mxu0 %v20202_v31 }
 0x7be   : > { %14385 = vmatprep.mubr.f32.mxu0 %v20233_v23  ;;  %15228 = vmatpush3.bf16.msra.mxu0 %v20058_v2  ;;  %v23264_v2 = vld [vmem:[#allocation19_spill] sm:$0xff] }
 0x7bf   : > { %15230 = vmatprep.subr.bf16.mxu0 %v20072_v34 }
 0x7c1   : > { %14386 = vmatmul.mubr.f32.gmra.mrb[40].mxu0 %v20229_v3 }
 0x7c2   : > { %14388 = vmatprep.mubr.f32.mxu0 %v20257_v50  ;;  %15232 = vmatpush3.bf16.msra.mxu0 %v20072_v34  ;;  %v23265_v34 = vld [vmem:[#allocation40_spill] sm:$0xff] }
 0x7c3   : > { %15234 = vmatprep.subr.bf16.mxu0 %v20084_v9 }
 0x7c5   : > { %14389 = vmatmul.mubr.f32.gmra.mrb[42].mxu0 %v20253_v63 }
 0x7c6   : > { %14391 = vmatprep.mubr.f32.mxu0 %v20281_v40  ;;  %15236 = vmatpush3.bf16.msra.mxu0 %v20084_v9  ;;  %v23266_v9 = vld [vmem:[#allocation70_spill] sm:$0xff] }
 0x7c7   : > { %15238 = vmatprep.subr.bf16.mxu0 %v20101_v52 }
 0x7c9   : > { %14392 = vmatmul.mubr.f32.gmra.mrb[44].mxu0 %v20277_v46  ;;  %v23302_v46 = vld [vmem:[#allocation25_spill] sm:$0xff] }
 0x7ca   : > { %14394 = vmatprep.mubr.f32.mxu0 %v20304_v55  ;;  %15240 = vmatpush3.bf16.msra.mxu0 %v20101_v52  ;;  %v23267_v52 = vld [vmem:[#allocation13_spill] sm:$0xff] }
 0x7cb   : > { %15242 = vmatprep.subr.bf16.mxu0 %v20137_v26 }
 0x7cd   : > { %14395 = vmatmul.mubr.f32.gmra.mrb[46].mxu0 %v20300_v10  ;;  %v23299_v10 = vand.u32 4294901760, %v20172_v59 }
 0x7ce   : > { %14397 = vmatprep.mubr.f32.mxu0 %v20327_v22  ;;  %15244 = vmatpush3.bf16.msra.mxu0 %v20137_v26  ;;  %v23268_v26 = vld [vmem:[#allocation34_spill] sm:$0xff]  ;;  %v23298_v22 = vand.u32 4294901760, %v20140_v12 }
 0x7cf   : > { %15246 = vmatprep.subr.bf16.mxu0 %v19781_v49 }
 0x7d1   : > { %14398 = vmatmul.mubr.f32.gmra.mrb[48].mxu0 %v20323_v48 }
 0x7d2   : > { %14400 = vmatprep.mubr.f32.mxu0 %v20351_v61 }
 0x7d5   : > { %14401 = vmatmul.mubr.f32.gmra.mrb[50].mxu0 %v20347_v39  ;;  %v23296_v39 = vld [vmem:[#allocation68_spill] sm:$0xff] }
 0x7d6   : > { %14403 = vmatprep.mubr.f32.mxu0 %v20375_v15  ;;  %v23297_v61 = vand.u32 4294901760, %v23296_v39  ;;  %v23311_v39 = vand.u32 4294901760, %v23262_v5 }
 0x7d9   : > { %14404 = vmatmul.mubr.f32.gmra.mrb[52].mxu0 %v20371_v32  ;;  %v23294_v32 = vld [vmem:[#allocation60_spill] sm:$0xff] }
 0x7da   : > { %14406 = vmatprep.mubr.f32.mxu0 %v20399_v36  ;;  %v23293_v36 = vand.u32 4294901760, %v20145_v13  ;;  %v23295_v15 = vand.u32 4294901760, %v23294_v32 }
 0x7dc   : > { %v15281_v48 = vpack.c.bf16 %v23297_v61, %v23295_v15  ;;  %v23306_v15 = vld [vmem:[#allocation7_spill] sm:$0xff] }
 0x7dd   : > { %14407 = vmatmul.mubr.f32.gmra.mrb[54].mxu0 %v20395_v24  ;;  %v23292_v24 = vld [vmem:[#allocation42_spill] sm:$0xff] }
 0x7de   : > { %14409 = vmatprep.mubr.f32.mxu0 %v20421_v45  ;;  %v23291_v45 = vld [vmem:[#allocation39_spill] sm:$0xff] }
 0x7e1   : > { %14410 = vmatmul.mubr.f32.gmra.mrb[56].mxu0 %v20417_v16  ;;  %v23286_v16 = vld [vmem:[#allocation64_spill] sm:$0xff] }
 0x7e2   : > { %14412 = vmatprep.mubr.f32.mxu0 %v20441_v19  ;;  %v23285_v19 = vld [vmem:[#allocation51_spill] sm:$0xff] }
 0x7e5   : > { %14413 = vmatmul.mubr.f32.gmra.mrb[58].mxu0 %v20438_v38  ;;  %v23284_v38 = vld [vmem:[#allocation31_spill] sm:$0xff] }
 0x7e6   : > { %14415 = vmatprep.mubr.f32.mxu0 %v20459_v43  ;;  %v23283_v43 = vld [vmem:[#allocation41_spill] sm:$0xff] }
 0x7e9   : > { %14416 = vmatmul.mubr.f32.gmra.mrb[60].mxu0 %v20456_v57  ;;  %v23282_v57 = vld [vmem:[#allocation15_spill] sm:$0xff] }
 0x7ea   : > { %14418 = vmatprep.mubr.f32.mxu0 %v20477_v58  ;;  %v23281_v58 = vld [vmem:[#allocation50_spill] sm:$0xff] }
 0x7ed   : > { %14419 = vmatmul.mubr.f32.gmra.mrb[62].mxu0 %v20474_v6  ;;  %v23280_v6 = vld [vmem:[#allocation38_spill] sm:$0xff] }
 0x7ee   : > { %14453 = vmatprep.mubr.f32.mxu0 %v20145_v13  ;;  %v23304_v13 = vand.u32 4294901760, %v20164_v62 }
 0x7f1   : > { %14454 = vmatmul.mubr.f32.vlgmr.msra.gmra.mrb[32].mxu0 %v20140_v12  ;;  %v23308_v12 = vld [vmem:[#allocation8_spill] sm:$0xff] }
 0x7f2   : > { %15248 = vmatpush3.bf16.msra.mxu0 %v19781_v49  ;;  %14456 = vmatprep.mubr.f32.mxu0 %v20172_v59  ;;  %v23309_v61 = vand.u32 4294901760, %v23308_v12 }
 0x7f3   : > { %15250 = vmatprep.subr.bf16.mxu0 %v19788_v27 }
 0x7f5   : > { %14457 = vmatmul.mubr.f32.gmra.mrb[34].mxu0 %v20164_v62 }
 0x7f6   : > { %14459 = vmatprep.mubr.f32.mxu0 %v20197_v4  ;;  %15252 = vmatpush3.bf16.msra.mxu0 %v19788_v27 }
 0x7f7   : > { %15254 = vmatprep.subr.bf16.mxu0 %v19813_v53 }
 0x7f9   : > { %14460 = vmatmul.mubr.f32.gmra.mrb[36].mxu0 %v23261_v18 }
 0x7fa   : > { %14462 = vmatprep.mubr.f32.mxu0 %v23262_v5  ;;  %15256 = vmatpush3.bf16.msra.mxu0 %v19813_v53 }
 0x7fb   : > { %15258 = vmatprep.subr.bf16.mxu0 %v23263_v51 }
 0x7fd   : > { %14463 = vmatmul.mubr.f32.gmra.mrb[38].mxu0 %v23264_v2 }
 0x7fe   : > { %14465 = vmatprep.mubr.f32.mxu0 %v23265_v34  ;;  %15260 = vmatpush3.bf16.msra.mxu0 %v23263_v51 }
 0x7ff   : > { %15262 = vmatprep.subr.bf16.mxu0 %v23266_v9 }
 0x801   : > { %14466 = vmatmul.mubr.f32.gmra.mrb[40].mxu0 %v23267_v52 }
 0x802   : > { %14468 = vmatprep.mubr.f32.mxu0 %v23268_v26  ;;  %15264 = vmatpush3.bf16.msra.mxu0 %v23266_v9 }
 0x803   : > { %15266 = vmatprep.subr.bf16.mxu0 %v23269_v29 }
 0x805   : > { %14469 = vmatmul.mubr.f32.gmra.mrb[42].mxu0 %v23270_v42 }
 0x806   : > { %14471 = vmatprep.mubr.f32.mxu0 %v23271_v33  ;;  %15268 = vmatpush3.bf16.msra.mxu0 %v23269_v29 }
 0x807   : > { %15270 = vmatprep.subr.bf16.mxu0 %v23272_v60 }
 0x809   : > { %14472 = vmatmul.mubr.f32.gmra.mrb[44].mxu0 %v23273_v8 }
 0x80a   : > { %14474 = vmatprep.mubr.f32.mxu0 %v23274_v21  ;;  %15272 = vmatpush3.bf16.msra.mxu0 %v23272_v60  ;;  %v23303_v60 = vand.u32 4294901760, %v23302_v46  ;;  %v23314_v46 = vld [vmem:[#allocation29_spill] sm:$0xff] }
 0x80b   : > { %15274 = vmatprep.subr.bf16.mxu0 %v23275_v0 }
 0x80d   : > { %14475 = vmatmul.mubr.f32.gmra.mrb[46].mxu0 %v23280_v6 }
 0x80e   : > { %14477 = vmatprep.mubr.f32.mxu0 %v23281_v58  ;;  %15276 = vmatpush3.bf16.msra.mxu0 %v23275_v0  ;;  %v23300_v0 = vld [vmem:[#allocation69_spill] sm:$0xff] }
 0x80f   : > { %15278 = vmatprep.subr.bf16.mxu0 %v15277_v17  ;;  %v23301_v55 = vand.u32 4294901760, %v23300_v0  ;;  %v23320_v0 = vld [vmem:[#allocation58_spill] sm:$0xff] }
 0x810   : > { %v23321_v5 = vand.u32 4294901760, %v23320_v0  ;;  %v23369_v0 = vld [vmem:[#allocation20_spill] sm:$0xff] }
 0x811   : > { %14478 = vmatmul.mubr.f32.gmra.mrb[48].mxu0 %v23282_v57  ;;  %v15285_v40 = vpack.c.bf16 %v23303_v60, %v23301_v55  ;;  %v23312_v55 = vld [vmem:[#allocation24_spill] sm:$0xff] }
 0x812   : > { %14480 = vmatprep.mubr.f32.mxu0 %v23283_v43  ;;  %v23313_v62 = vand.u32 4294901760, %v23312_v55 }
 0x815   : > { %14481 = vmatmul.mubr.f32.gmra.mrb[50].mxu0 %v23284_v38 }
 0x816   : > { %14483 = vmatprep.mubr.f32.mxu0 %v23285_v19 }
 0x819   : > { %14484 = vmatmul.mubr.f32.gmra.mrb[52].mxu0 %v23286_v16 }
 0x81a   : > { %14486 = vmatprep.mubr.f32.mxu0 %v23287_v56 }
 0x81d   : > { %14487 = vmatmul.mubr.f32.gmra.mrb[54].mxu0 %v23288_v37 }
 0x81e   : > { %14489 = vmatprep.mubr.f32.mxu0 %v23289_v20 }
 0x821   : > { %14490 = vmatmul.mubr.f32.gmra.mrb[56].mxu0 %v23290_v30 }
 0x822   : > { %14492 = vmatprep.mubr.f32.mxu0 %v23291_v45 }
 0x825   : > { %14493 = vmatmul.mubr.f32.gmra.mrb[58].mxu0 %v23292_v24 }
 0x826   : > { %14495 = vmatprep.mubr.f32.mxu0 %v20472_v25 }
 0x829   : > { %14496 = vmatmul.mubr.f32.gmra.mrb[60].mxu0 %v20466_v7 }
 0x82a   : > { %14498 = vmatprep.mubr.f32.mxu0 %v20490_v44 }
 0x82d   : > { %14499 = vmatmul.mubr.f32.gmra.mrb[62].mxu0 %v20484_v28 }
 0x82e   : > { %14533 = vmatprep.mubr.f32.mxu0 %v23293_v36  ;;  %v23305_v36 = vand.u32 4294901760, %v20197_v4  ;;  %v23315_v4 = vand.u32 4294901760, %v23314_v46  ;;  %v23335_v46 = vand.u32 4294901760, %v23274_v21  ;;  %v23340_v21 = vand.u32 4294901760, %v23284_v38 }
 0x82f   : > { %v23347_v38 = vand.u32 4294901760, %v23291_v45  ;;  %v23357_v45 = vld [vmem:[#allocation6_spill] sm:$0xff] }
 0x830   : > { %v15293_v32 = vpack.c.bf16 %v23315_v4, %v23313_v62  ;;  %v23334_v62 = vand.u32 4294901760, %v23273_v8  ;;  %v23338_v4 = vand.u32 4294901760, %v23282_v57  ;;  %v23339_v8 = vand.u32 4294901760, %v23283_v43 }
 0x831   : > { %14534 = vmatmul.mubr.f32.vlgmr.msra.gmra.mrb[32].mxu0 %v23298_v22  ;;  %v23307_v22 = vand.u32 4294901760, %v23306_v15  ;;  %v23345_v57 = vand.u32 4294901760, %v23289_v20  ;;  %v23346_v43 = vand.u32 4294901760, %v23290_v30  ;;  %v23352_v20 = vand.u32 4294901760, %v20484_v28  ;;  %v23360_v28 = vld [vmem:[#allocation43_spill] sm:$0xff] }
 0x832   : > { %15280 = vmatpush3.bf16.msra.mxu0 %v15277_v17  ;;  %14536 = vmatprep.mubr.f32.mxu0 %v23299_v10  ;;  %v23310_v10 = vand.u32 4294901760, %v23261_v18  ;;  %v23317_v17 = vand.u32 4294901760, %v23265_v34  ;;  %v23318_v18 = vld [vmem:[#allocation52_spill] sm:$0xff]  ;;  %v23365_v30 = vld [vmem:[#allocation23_spill] sm:$0xff] }
 0x833   : > { %15282 = vmatprep.subr.bf16.mxu0 %v15281_v48  ;;  %v15289_v59 = vpack.c.bf16 %v23309_v61, %v23307_v22  ;;  %v23319_v60 = vand.u32 4294901760, %v23318_v18  ;;  %v23326_v22 = vld [vmem:[#allocation56_spill] sm:$0xff]  ;;  %v23328_v61 = vand.u32 4294901760, %v23270_v42  ;;  %v23336_v42 = vand.u32 4294901760, %v23280_v6  ;;  %v23367_v18 = vld [vmem:[#allocation26_spill] sm:$0xff] }
 0x834   : > { %v23327_v34 = vand.u32 4294901760, %v23326_v22  ;;  %v23342_v6 = vand.u32 4294901760, %v23286_v16  ;;  %v23349_v16 = vand.u32 4294901760, %v20472_v25  ;;  %v23358_v25 = vld [vmem:[#allocation9_spill] sm:$0xff] }
 0x835   : > { %14537 = vmatmul.mubr.f32.gmra.mrb[34].mxu0 %v23304_v13  ;;  %v15297_v13 = vpack.c.bf16 %v23321_v5, %v23319_v60  ;;  %v23368_v60 = vld [vmem:[#allocation27_spill] sm:$0xff]  ;;  %v23370_v5 = vld [vmem:[#allocation21_spill] sm:$0xff] }
 0x836   : > { %14539 = vmatprep.mubr.f32.mxu0 %v23305_v36  ;;  %15284 = vmatpush3.bf16.msra.mxu0 %v15281_v48  ;;  %v23316_v48 = vand.u32 4294901760, %v23264_v2  ;;  %v23323_v36 = vand.u32 4294901760, %v23268_v26  ;;  %v23324_v2 = vld [vmem:[#allocation49_spill] sm:$0xff] }
 0x837   : > { %15286 = vmatprep.subr.bf16.mxu0 %v15285_v40  ;;  %v23325_v15 = vand.u32 4294901760, %v23324_v2  ;;  %v23374_v2 = vld [vmem:[#allocation53_spill] sm:$0xff] }
 0x839   : > { %14540 = vmatmul.mubr.f32.gmra.mrb[36].mxu0 %v23310_v10  ;;  %v15301_v12 = vpack.c.bf16 %v23327_v34, %v23325_v15  ;;  %v20784_v15 = vld [vmem:[%s21899_s5 + $0x4] ss:$0 sm:$0xff] }
 0x83a   : > { %14542 = vmatprep.mubr.f32.mxu0 %v23311_v39  ;;  %15288 = vmatpush3.bf16.msra.mxu0 %v15285_v40  ;;  %v23322_v40 = vand.u32 4294901760, %v23267_v52  ;;  %v23330_v52 = vld [vmem:[#allocation62_spill] sm:$0xff]  ;;  %v23332_v39 = vld [vmem:[#allocation11_spill] sm:$0xff] }
 0x83b   : > { %15290 = vmatprep.subr.bf16.mxu0 %v15289_v59  ;;  %v23331_v10 = vand.u32 4294901760, %v23330_v52  ;;  %v23333_v26 = vand.u32 4294901760, %v23332_v39 }
 0x83d   : > { %14543 = vmatmul.mubr.f32.gmra.mrb[38].mxu0 %v23316_v48  ;;  %v15305_v55 = vpack.c.bf16 %v23333_v26, %v23331_v10  ;;  %v23344_v48 = vand.u32 4294901760, %v23288_v37  ;;  %v23351_v37 = vand.u32 4294901760, %v20490_v44  ;;  %v23361_v44 = vld [vmem:[#allocation45_spill] sm:$0xff] }
 0x83e   : > { %14545 = vmatprep.mubr.f32.mxu0 %v23317_v17  ;;  %15292 = vmatpush3.bf16.msra.mxu0 %v15289_v59  ;;  %v23329_v59 = vand.u32 4294901760, %v23271_v33  ;;  %v23337_v33 = vand.u32 4294901760, %v23281_v58  ;;  %v23343_v58 = vand.u32 4294901760, %v23287_v56  ;;  %v23350_v56 = vand.u32 4294901760, %v20466_v7  ;;  %v23359_v7 = vld [vmem:[#allocation14_spill] sm:$0xff]  ;;  %v23366_v17 = vld [vmem:[#allocation65_spill] sm:$0xff] }
 0x83f   : > { %15294 = vmatprep.subr.bf16.mxu0 %v15293_v32 }
 0x841   : > { %14546 = vmatmul.mubr.f32.gmra.mrb[40].mxu0 %v23322_v40  ;;  %v23372_v40 = vld [vmem:[#allocation46_spill] sm:$0xff] }
 0x842   : > { %14548 = vmatprep.mubr.f32.mxu0 %v23323_v36  ;;  %15296 = vmatpush3.bf16.msra.mxu0 %v15293_v32  ;;  %v23341_v32 = vand.u32 4294901760, %v23285_v19  ;;  %v23348_v19 = vand.u32 4294901760, %v23292_v24  ;;  %v23356_v24 = vld [vmem:[#allocation37_spill] sm:$0xff]  ;;  %v23373_v36 = vld [vmem:[#allocation55_spill] sm:$0xff] }
 0x843   : > { %15298 = vmatprep.subr.bf16.mxu0 %v15297_v13 }
 0x845   : > { %14549 = vmatmul.mubr.f32.gmra.mrb[42].mxu0 %v23328_v61 }
 0x846   : > { %14551 = vmatprep.mubr.f32.mxu0 %v23329_v59  ;;  %15300 = vmatpush3.bf16.msra.mxu0 %v15297_v13  ;;  %v23371_v13 = vld [vmem:[#allocation48_spill] sm:$0xff] }
 0x847   : > { %15302 = vmatprep.subr.bf16.mxu0 %v15301_v12 }
 0x849   : > { %14552 = vmatmul.mubr.f32.gmra.mrb[44].mxu0 %v23334_v62 }
 0x84a   : > { %14554 = vmatprep.mubr.f32.mxu0 %v23335_v46  ;;  %15304 = vmatpush3.bf16.msra.mxu0 %v15301_v12 }
 0x84b   : > { %15306 = vmatprep.subr.bf16.mxu0 %v15305_v55 }
 0x84d   : > { %14555 = vmatmul.mubr.f32.gmra.mrb[46].mxu0 %v23336_v42 }
 0x84e   : > { %14557 = vmatprep.mubr.f32.mxu0 %v23337_v33  ;;  %15308 = vmatpush3.bf16.msra.mxu0 %v15305_v55 }
 0x84f   : > { %15310 = vmatprep.subr.bf16.mxu0 %v19781_v49 }
 0x851   : > { %14558 = vmatmul.mubr.f32.gmra.mrb[48].mxu0 %v23338_v4 }
 0x852   : > { %14560 = vmatprep.mubr.f32.mxu0 %v23339_v8 }
 0x855   : > { %14561 = vmatmul.mubr.f32.gmra.mrb[50].mxu0 %v23340_v21 }
 0x856   : > { %14563 = vmatprep.mubr.f32.mxu0 %v23341_v32 }
 0x859   : > { %14564 = vmatmul.mubr.f32.gmra.mrb[52].mxu0 %v23342_v6 }
 0x85a   : > { %14566 = vmatprep.mubr.f32.mxu0 %v23343_v58 }
 0x85d   : > { %14567 = vmatmul.mubr.f32.gmra.mrb[54].mxu0 %v23344_v48 }
 0x85e   : > { %14569 = vmatprep.mubr.f32.mxu0 %v23345_v57 }
 0x861   : > { %14570 = vmatmul.mubr.f32.gmra.mrb[56].mxu0 %v23346_v43 }
 0x862   : > { %14572 = vmatprep.mubr.f32.mxu0 %v23347_v38 }
 0x865   : > { %14573 = vmatmul.mubr.f32.gmra.mrb[58].mxu0 %v23348_v19 }
 0x866   : > { %14575 = vmatprep.mubr.f32.mxu0 %v23349_v16 }
 0x869   : > { %14576 = vmatmul.mubr.f32.gmra.mrb[60].mxu0 %v23350_v56 }
 0x86a   : > { %14578 = vmatprep.mubr.f32.mxu0 %v23351_v37 }
 0x86d   : > { %14579 = vmatmul.mubr.f32.gmra.mrb[62].mxu0 %v23352_v20 }
 0x86e   : > { %14613 = vmatprep.mubr.f32.mxu0 %v20132_v35 }
 0x871   : > { %14614 = vmatmul.mubr.f32.vlgmr.msra.gmra.mrb[32].mxu0 %v20126_v11 }
 0x872   : > { %15312 = vmatpush3.bf16.msra.mxu0 %v19781_v49  ;;  %14616 = vmatprep.mubr.f32.mxu0 %v20153_v1  ;;  %v23353_v49 = vld [vmem:[#allocation5_spill] sm:$0xff] }
 0x873   : > { %15314 = vmatprep.subr.bf16.mxu0 %v19788_v27 }
 0x875   : > { %14617 = vmatmul.mubr.f32.gmra.mrb[34].mxu0 %v20149_v41 }
 0x876   : > { %14619 = vmatprep.mubr.f32.mxu0 %v20181_v47  ;;  %15316 = vmatpush3.bf16.msra.mxu0 %v19788_v27  ;;  %v23354_v27 = vld [vmem:[#allocation72_spill] sm:$0xff] }
 0x877   : > { %15318 = vmatprep.subr.bf16.mxu0 %v19813_v53 }
 0x879   : > { %14620 = vmatmul.mubr.f32.gmra.mrb[36].mxu0 %v20175_v14 }
 0x87a   : > { %14622 = vmatprep.mubr.f32.mxu0 %v20209_v54  ;;  %15320 = vmatpush3.bf16.msra.mxu0 %v19813_v53  ;;  %v23355_v53 = vld [vmem:[#allocation36_spill] sm:$0xff] }
 0x87b   : > { %15322 = vmatprep.subr.bf16.mxu0 %v23263_v51 }
 0x87d   : > { %14623 = vmatmul.mubr.f32.gmra.mrb[38].mxu0 %v20202_v31 }
 0x87e   : > { %14625 = vmatprep.mubr.f32.mxu0 %v20233_v23  ;;  %15324 = vmatpush3.bf16.msra.mxu0 %v23263_v51  ;;  %v23362_v51 = vld [vmem:[#allocation30_spill] sm:$0xff] }
 0x87f   : > { %15326 = vmatprep.subr.bf16.mxu0 %v23266_v9 }
 0x881   : > { %14626 = vmatmul.mubr.f32.gmra.mrb[40].mxu0 %v20229_v3 }
 0x882   : > { %14628 = vmatprep.mubr.f32.mxu0 %v20257_v50  ;;  %15328 = vmatpush3.bf16.msra.mxu0 %v23266_v9  ;;  %v23363_v9 = vld [vmem:[#allocation35_spill] sm:$0xff] }
 0x883   : > { %15330 = vmatprep.subr.bf16.mxu0 %v23269_v29 }
 0x885   : > { %14629 = vmatmul.mubr.f32.gmra.mrb[42].mxu0 %v20253_v63 }
 0x886   : > { %14631 = vmatprep.mubr.f32.mxu0 %v23353_v49  ;;  %15332 = vmatpush3.bf16.msra.mxu0 %v23269_v29  ;;  %v23364_v29 = vld [vmem:[#allocation33_spill] sm:$0xff] }
 0x887   : > { %15334 = vmatprep.subr.bf16.mxu0 %v23354_v27 }
 0x889   : > { %14632 = vmatmul.mubr.f32.gmra.mrb[44].mxu0 %v23355_v53 }
 0x88a   : > { %14634 = vmatprep.mubr.f32.mxu0 %v23356_v24  ;;  %15336 = vmatpush3.bf16.msra.mxu0 %v23354_v27 }
 0x88b   : > { %15338 = vmatprep.subr.bf16.mxu0 %v23357_v45 }
 0x88d   : > { %14635 = vmatmul.mubr.f32.gmra.mrb[46].mxu0 %v23358_v25 }
 0x88e   : > { %14637 = vmatprep.mubr.f32.mxu0 %v23359_v7  ;;  %15340 = vmatpush3.bf16.msra.mxu0 %v23357_v45 }
 0x891   : > { %14638 = vmatmul.mubr.f32.gmra.mrb[48].mxu0 %v23360_v28 }
 0x892   : > { %14640 = vmatprep.mubr.f32.mxu0 %v23361_v44 }
 0x895   : > { %14641 = vmatmul.mubr.f32.gmra.mrb[50].mxu0 %v23362_v51 }
 0x896   : > { %14643 = vmatprep.mubr.f32.mxu0 %v23363_v9 }
 0x899   : > { %14644 = vmatmul.mubr.f32.gmra.mrb[52].mxu0 %v23364_v29 }
 0x89a   : > { %14646 = vmatprep.mubr.f32.mxu0 %v23365_v30 }
 0x89d   : > { %14647 = vmatmul.mubr.f32.gmra.mrb[54].mxu0 %v23366_v17 }
 0x89e   : > { %14649 = vmatprep.mubr.f32.mxu0 %v23367_v18 }
 0x8a1   : > { %14650 = vmatmul.mubr.f32.gmra.mrb[56].mxu0 %v23368_v60 }
 0x8a2   : > { %14652 = vmatprep.mubr.f32.mxu0 %v23369_v0 }
 0x8a5   : > { %14653 = vmatmul.mubr.f32.gmra.mrb[58].mxu0 %v23370_v5 }
 0x8a6   : > { %14655 = vmatprep.mubr.f32.mxu0 %v23371_v13 }
 0x8a9   : > { %14656 = vmatmul.mubr.f32.gmra.mrb[60].mxu0 %v23372_v40 }
 0x8aa   : > { %14658 = vmatprep.mubr.f32.mxu0 %v23373_v36 }
 0x8ad   : > { %14659 = vmatmul.mubr.f32.gmra.mrb[62].mxu0 %v23374_v2 }
 0x8ae   : > { %14693 = vmatprep.mubr.f32.mxu0 %v20132_v35  ;;  %v20774_v35 = vld [vmem:[%s21899_s5 + $0x3] ss:$0 sm:$0xff] }
 0x8b1   : > { %14694 = vmatmul.mubr.f32.vlgmr.msra.gmra.mrb[32].mxu0 %v20126_v11 }
 0x8b2   : > { %14696 = vmatprep.mubr.f32.mxu0 %v20153_v1 }
 0x8b5   : > { %14697 = vmatmul.mubr.f32.gmra.mrb[34].mxu0 %v20149_v41 }
 0x8b6   : > { %14699 = vmatprep.mubr.f32.mxu0 %v20181_v47 }
 0x8b9   : > { %14700 = vmatmul.mubr.f32.gmra.mrb[36].mxu0 %v20175_v14 }
 0x8ba   : > { %14702 = vmatprep.mubr.f32.mxu0 %v20209_v54 }
 0x8bd   : > { %14703 = vmatmul.mubr.f32.gmra.mrb[38].mxu0 %v20202_v31 }
 0x8be   : > { %14705 = vmatprep.mubr.f32.mxu0 %v20233_v23 }
 0x8c1   : > { %14706 = vmatmul.mubr.f32.gmra.mrb[40].mxu0 %v20229_v3 }
 0x8c2   : > { %14708 = vmatprep.mubr.f32.mxu0 %v20257_v50 }
 0x8c5   : > { %14709 = vmatmul.mubr.f32.gmra.mrb[42].mxu0 %v20253_v63 }
 0x8c6   : > { %14711 = vmatprep.mubr.f32.mxu0 %v23353_v49 }
 0x8c9   : > { %14712 = vmatmul.mubr.f32.gmra.mrb[44].mxu0 %v23355_v53 }
 0x8ca   : > { %14714 = vmatprep.mubr.f32.mxu0 %v23356_v24 }
 0x8cd   : > { %14715 = vmatmul.mubr.f32.gmra.mrb[46].mxu0 %v23358_v25 }
 0x8ce   : > { %14717 = vmatprep.mubr.f32.mxu0 %v23359_v7 }
 0x8d1   : > { %14718 = vmatmul.mubr.f32.gmra.mrb[48].mxu0 %v23360_v28 }
 0x8d2   : > { %14720 = vmatprep.mubr.f32.mxu0 %v23361_v44 }
 0x8d5   : > { %14721 = vmatmul.mubr.f32.gmra.mrb[50].mxu0 %v23362_v51 }
 0x8d6   : > { %14723 = vmatprep.mubr.f32.mxu0 %v23363_v9 }
 0x8d9   : > { %14724 = vmatmul.mubr.f32.gmra.mrb[52].mxu0 %v23364_v29 }
 0x8da   : > { %14726 = vmatprep.mubr.f32.mxu0 %v23365_v30 }
 0x8dd   : > { %14727 = vmatmul.mubr.f32.gmra.mrb[54].mxu0 %v23366_v17 }
 0x8de   : > { %14729 = vmatprep.mubr.f32.mxu0 %v23367_v18 }
 0x8e1   : > { %14730 = vmatmul.mubr.f32.gmra.mrb[56].mxu0 %v23368_v60 }
 0x8e2   : > { %14732 = vmatprep.mubr.f32.mxu0 %v23369_v0 }
 0x8e5   : > { %14733 = vmatmul.mubr.f32.gmra.mrb[58].mxu0 %v23370_v5 }
 0x8e6   : > { %14735 = vmatprep.mubr.f32.mxu0 %v23371_v13 }
 0x8e9   : > { %14736 = vmatmul.mubr.f32.gmra.mrb[60].mxu0 %v23372_v40 }
 0x8ea   : > { %14738 = vmatprep.mubr.f32.mxu0 %v23373_v36 }
 0x8ed   : > { %14739 = vmatmul.mubr.f32.gmra.mrb[62].mxu0 %v23374_v2 }
 0x984   : > { %v14695_v23 = vpop.f32.mrb[32].mxu0 }
 0x985   : > { %v15437_v63 = vadd.f32 %v14695_v23, %v20774_v35  ;;  %v10114_v14 = vpop.f32.mrb[33].mxu0 }
 0x986   : > { %v15438_v46 = vadd.f32 %v20774_v35, %v10114_v14 }
 0x987   : > { %16505 = vtanh.f32 %v15437_v63 }
 0x988   : > { %v14698_v1 = vpop.f32.mrb[34].mxu0 }
 0x989   : > { %v10126_v41 = vpop.f32.mrb[35].mxu0  ;;  %v15439_v47 = vadd.f32 %v14698_v1, %v20774_v35 }
 0x98a   : > { %v15440_v11 = vadd.f32 %v20774_v35, %v10126_v41 }
 0x98c   : > { %16507 = vtanh.f32 %v15440_v11  ;;  %v14701_v54 = vpop.f32.mrb[36].mxu0 }
 0x98d   : > { %v15441_v31 = vadd.f32 %v14701_v54, %v20774_v35  ;;  %v10138_v3 = vpop.f32.mrb[37].mxu0 }
 0x98e   : > { %v15442_v50 = vadd.f32 %v20774_v35, %v10138_v3 }
 0x98f   : > { %16509 = vtanh.f32 %v15441_v31 }
 0x990   : > { %16511 = vtanh.f32 %v15442_v50  ;;  %v14704_v22 = vpop.f32.mrb[38].mxu0 }
 0x991   : > { %v16506_v34 = vpop.eup %16505  ;;  %16513 = vtanh.f32 %v15439_v47  ;;  %v15443_v12 = vadd.f32 %v14704_v22, %v20774_v35  ;;  %v10150_v61 = vpop.f32.mrb[39].mxu0 }
 0x992   : > { %v15444_v59 = vadd.f32 %v20774_v35, %v10150_v61  ;;  %v10342_v52 = vmul.f32 %v16506_v34, %v20784_v15 }
 0x993   : > { %16515 = vtanh.f32 %v15443_v12 }
 0x994   : > { %16517 = vtanh.f32 %v15444_v59  ;;  %10504 = vrot.lane.b32.xlu1 %v10342_v52, %s16633_s19  ;;  %v14707_v10 = vpop.f32.mrb[40].mxu0  ;;  %v10377_v39 = vsel %vm10373_vm3, %v10342_v52, 0.0 }
 0x995   : > { %v15445_v26 = vadd.f32 %v14707_v10, %v20774_v35  ;;  %10378 = vadd.xlane.f32.xlu0 %v10377_v39  ;;  %v10162_v55 = vpop.f32.mrb[41].mxu0 }
 0x996   : > { %v16508_v62 = vpop.eup %16507  ;;  %v15446_v42 = vadd.f32 %v20774_v35, %v10162_v55 }
 0x997   : > { %16519 = vtanh.f32 %v15445_v26  ;;  %v20795_v33 = vmul.f32 %v16508_v62, %v20784_v15 }
 0x998   : > { %16521 = vtanh.f32 %v15446_v42  ;;  %10696 = vrot.lane.b32.xlu1 %v10342_v52, %s16634_s20  ;;  %v14710_v4 = vpop.f32.mrb[42].mxu0 }
 0x999   : > { %v16510_v8 = vpop.eup %16509  ;;  %v15447_v21 = vadd.f32 %v14710_v4, %v20774_v35  ;;  %v10174_v32 = vpop.f32.mrb[43].mxu0  ;;  %16523 = vtanh.f32 %v15438_v46 }
 0x99a   : > { %v16512_v6 = vpop.eup %16511  ;;  %v15448_v58 = vadd.f32 %v20774_v35, %v10174_v32  ;;  %v20801_v48 = vmul.f32 %v16510_v8, %v20784_v15 }
 0x99b   : > { %v16514_v57 = vpop.eup %16513  ;;  %16525 = vtanh.f32 %v15447_v21  ;;  %v20804_v43 = vmul.f32 %v16512_v6, %v20784_v15 }
 0x99c   : > { %16527 = vtanh.f32 %v15448_v58  ;;  %10888 = vrot.lane.b32.xlu1 %v10342_v52, %s16635_s21  ;;  %v14713_v38 = vpop.f32.mrb[44].mxu0  ;;  %v20810_v49 = vmul.f32 %v16514_v57, %v20784_v15 }
 0x99d   : > { %v16516_v19 = vpop.eup %16515  ;;  %v15449_v16 = vadd.f32 %v14713_v38, %v20774_v35  ;;  %v10186_v56 = vpop.f32.mrb[45].mxu0 }
 0x99e   : > { %v16518_v37 = vpop.eup %16517  ;;  %v15450_v20 = vadd.f32 %v20774_v35, %v10186_v56  ;;  %v20813_v27 = vmul.f32 %v16516_v19, %v20784_v15 }
 0x99f   : > { %16529 = vtanh.f32 %v15449_v16  ;;  %v20816_v53 = vmul.f32 %v16518_v37, %v20784_v15 }
 0x9a0   : > { %16531 = vtanh.f32 %v15450_v20  ;;  %10508 = vrot.lane.b32.xlu1 %v20810_v49, %s16633_s19  ;;  %v14716_v24 = vpop.f32.mrb[46].mxu0 }
 0x9a1   : > { %v16520_v45 = vpop.eup %16519  ;;  %v15451_v25 = vadd.f32 %v14716_v24, %v20774_v35  ;;  %v10198_v7 = vpop.f32.mrb[47].mxu0 }
 0x9a2   : > { %v16522_v28 = vpop.eup %16521  ;;  %v15452_v44 = vadd.f32 %v20774_v35, %v10198_v7  ;;  %v20823_v51 = vmul.f32 %v16520_v45, %v20784_v15 }
 0x9a3   : > { %16533 = vtanh.f32 %v15451_v25  ;;  %v20826_v9 = vmul.f32 %v16522_v28, %v20784_v15  ;;  %v16524_v29 = vpop.eup %16523 }
 0x9a4   : > { %16535 = vtanh.f32 %v15452_v44  ;;  %10700 = vrot.lane.b32.xlu1 %v20810_v49, %s16634_s20  ;;  %v14719_v30 = vpop.f32.mrb[48].mxu0  ;;  %v20842_v14 = vmul.f32 %v16524_v29, %v20784_v15 }
 0x9a5   : > { %v16526_v17 = vpop.eup %16525  ;;  %v15453_v18 = vadd.f32 %v14719_v30, %v20774_v35  ;;  %v10210_v60 = vpop.f32.mrb[49].mxu0 }
 0x9a6   : > { %v16528_v0 = vpop.eup %16527  ;;  %v15454_v5 = vadd.f32 %v20774_v35, %v10210_v60  ;;  %v20833_v13 = vmul.f32 %v16526_v17, %v20784_v15 }
 0x9a7   : > { %16537 = vtanh.f32 %v15453_v18  ;;  %v20836_v40 = vmul.f32 %v16528_v0, %v20784_v15 }
 0x9a8   : > { %16539 = vtanh.f32 %v15454_v5  ;;  %10892 = vrot.lane.b32.xlu1 %v20810_v49, %s16635_s21  ;;  %v14722_v36 = vpop.f32.mrb[50].mxu0 }
 0x9a9   : > { %v16530_v2 = vpop.eup %16529  ;;  %v15455_v23 = vadd.f32 %v14722_v36, %v20774_v35  ;;  %v10222_v63 = vpop.f32.mrb[51].mxu0 }
 0x9aa   : > { %v16532_v1 = vpop.eup %16531  ;;  %v15456_v41 = vadd.f32 %v20774_v35, %v10222_v63  ;;  %v20846_v11 = vmul.f32 %v16530_v2, %v20784_v15 }
 0x9ab   : > { %16541 = vtanh.f32 %v15455_v23  ;;  %10502 = vrot.lane.b32.xlu0 %v20842_v14, %s16633_s19  ;;  %v20851_v54 = vmul.f32 %v16532_v1, %v20784_v15 }
 0x9ac   : > { %16543 = vtanh.f32 %v15456_v41  ;;  %v14725_v47 = vpop.f32.mrb[52].mxu0 }
 0x9ad   : > { %v16534_v31 = vpop.eup %16533  ;;  %v15457_v3 = vadd.f32 %v14725_v47, %v20774_v35  ;;  %v10234_v50 = vpop.f32.mrb[53].mxu0 }
 0x9ae   : > { %v16536_v22 = vpop.eup %16535  ;;  %v15458_v34 = vadd.f32 %v20774_v35, %v10234_v50  ;;  %v20856_v12 = vmul.f32 %v16534_v31, %v20784_v15 }
 0x9af   : > { %16545 = vtanh.f32 %v15457_v3  ;;  %10694 = vrot.lane.b32.xlu0 %v20842_v14, %s16634_s20  ;;  %v20861_v61 = vmul.f32 %v16536_v22, %v20784_v15 }
 0x9b0   : > { %16547 = vtanh.f32 %v15458_v34  ;;  %v14728_v59 = vpop.f32.mrb[54].mxu0  ;;  %v10383_v34 = vsel %vm10373_vm3, %v20810_v49, 0.0  ;;  %v10386_v49 = vsel %vm10373_vm3, %v20804_v43, 0.0 }
 0x9b1   : > { %v16538_v52 = vpop.eup %16537  ;;  %v15459_v10 = vadd.f32 %v14728_v59, %v20774_v35  ;;  %v10246_v39 = vpop.f32.mrb[55].mxu0 }
 0x9b2   : > { %v16540_v26 = vpop.eup %16539  ;;  %v15460_v55 = vadd.f32 %v20774_v35, %v10246_v39  ;;  %v20866_v62 = vmul.f32 %v16538_v52, %v20784_v15 }
 0x9b3   : > { %16549 = vtanh.f32 %v15459_v10  ;;  %10886 = vrot.lane.b32.xlu0 %v20842_v14, %s16635_s21  ;;  %v20871_v46 = vmul.f32 %v16540_v26, %v20784_v15 }
 0x9b4   : > { %16551 = vtanh.f32 %v15460_v55  ;;  %v14731_v42 = vpop.f32.mrb[56].mxu0  ;;  %v10374_v55 = vsel %vm10373_vm3, %v20842_v14, 0.0  ;;  %v10416_v14 = vsel %vm10373_vm3, %v20861_v61, 0.0 }
 0x9b5   : > { %v16542_v4 = vpop.eup %16541  ;;  %v15461_v8 = vadd.f32 %v14731_v42, %v20774_v35  ;;  %v10258_v21 = vpop.f32.mrb[57].mxu0 }
 0x9b6   : > { %v16544_v32 = vpop.eup %16543  ;;  %v15462_v6 = vadd.f32 %v20774_v35, %v10258_v21  ;;  %v20876_v58 = vmul.f32 %v16542_v4, %v20784_v15 }
 0x9b7   : > { %16553 = vtanh.f32 %v15461_v8  ;;  %v20879_v57 = vmul.f32 %v16544_v32, %v20784_v15 }
 0x9b8   : > { %16555 = vtanh.f32 %v15462_v6  ;;  %v14734_v38 = vpop.f32.mrb[58].mxu0 }
 0x9b9   : > { %v16546_v19 = vpop.eup %16545  ;;  %v15463_v16 = vadd.f32 %v14734_v38, %v20774_v35  ;;  %v10270_v56 = vpop.f32.mrb[59].mxu0 }
 0x9ba   : > { %v16548_v37 = vpop.eup %16547  ;;  %v15464_v20 = vadd.f32 %v20774_v35, %v10270_v56  ;;  %v20884_v24 = vmul.f32 %v16546_v19, %v20784_v15 }
 0x9bb   : > { %16557 = vtanh.f32 %v15463_v16  ;;  %v20887_v45 = vmul.f32 %v16548_v37, %v20784_v15 }
 0x9bc   : > { %16559 = vtanh.f32 %v15464_v20  ;;  %v14737_v25 = vpop.f32.mrb[60].mxu0  ;;  %v10437_v42 = vsel %vm10373_vm3, %v20884_v24, 0.0 }
 0x9bd   : > { %v16550_v7 = vpop.eup %16549  ;;  %v15465_v28 = vadd.f32 %v14737_v25, %v20774_v35  ;;  %v10282_v44 = vpop.f32.mrb[61].mxu0 }
 0x9be   : > { %v16552_v29 = vpop.eup %16551  ;;  %v15466_v30 = vadd.f32 %v20774_v35, %v10282_v44  ;;  %v20892_v17 = vmul.f32 %v16550_v7, %v20784_v15 }
 0x9bf   : > { %16561 = vtanh.f32 %v15465_v28  ;;  %v20895_v18 = vmul.f32 %v16552_v29, %v20784_v15 }
 0x9c0   : > { %16563 = vtanh.f32 %v15466_v30  ;;  %v14740_v60 = vpop.f32.mrb[62].mxu0  ;;  %v10443_v21 = vsel %vm10373_vm3, %v20892_v17, 0.0 }
 0x9c1   : > { %v16554_v0 = vpop.eup %16553  ;;  %v15467_v5 = vadd.f32 %v14740_v60, %v20774_v35  ;;  %v10294_v36 = vpop.f32.mrb[63].mxu0  ;;  %v10440_v4 = vsel %vm10373_vm3, %v20895_v18, 0.0 }
 0x9c2   : > { %v16556_v2 = vpop.eup %16555  ;;  %v15468_v23 = vadd.f32 %v20774_v35, %v10294_v36  ;;  %v20900_v63 = vmul.f32 %v16554_v0, %v20784_v15 }
 0x9c3   : > { %16565 = vtanh.f32 %v15467_v5  ;;  %v20903_v1 = vmul.f32 %v16556_v2, %v20784_v15 }
 0x9c4   : > { %16567 = vtanh.f32 %v15468_v23 }
 0x9c5   : > { %v16558_v41 = vpop.eup %16557 }
 0x9c6   : > { %v16560_v47 = vpop.eup %16559  ;;  %v20906_v31 = vmul.f32 %v16558_v41, %v20784_v15 }
 0x9c7   : > { %v20909_v3 = vmul.f32 %v16560_v47, %v20784_v15 }
 0x9c9   : > { %v16562_v50 = vpop.eup %16561  ;;  %v10452_v5 = vsel %vm10373_vm3, %v20909_v3, 0.0 }
 0x9ca   : > { %v16564_v22 = vpop.eup %16563  ;;  %v20912_v35 = vmul.f32 %v16562_v50, %v20784_v15 }
 0x9cb   : > { %v20917_v59 = vmul.f32 %v16564_v22, %v20784_v15 }
 0x9cc   : > { %10384 = vadd.xlane.f32.xlu1 %v10383_v34 }
 0x9cd   : > { %v16566_v52 = vpop.eup %16565 }
 0x9ce   : > { %v16568_v10 = vpop.eup %16567  ;;  %v20920_v39 = vmul.f32 %v16566_v52, %v20784_v15 }
 0x9cf   : > { %v20923_v26 = vmul.f32 %v16568_v10, %v20784_v15  ;;  %v10380_v15 = vsel %vm10373_vm3, %v20795_v33, 0.0 }
 0x9d2   : > { %10375 = vadd.xlane.f32.xlu0 %v10374_v55 }
 0x9dd   : > { %10506 = vrot.lane.b32.xlu1 %v20795_v33, %s16633_s19 }
 0x9e1   : > { %10698 = vrot.lane.b32.xlu1 %v20795_v33, %s16634_s20 }
 0x9e5   : > { %10890 = vrot.lane.b32.xlu1 %v20795_v33, %s16635_s21  ;;  %v10389_v33 = vsel %vm10373_vm3, %v20801_v48, 0.0 }
 0x9e8   : > { %10510 = vrot.lane.b32.xlu0 %v20804_v43, %s16633_s19 }
 0x9ec   : > { %10702 = vrot.lane.b32.xlu0 %v20804_v43, %s16634_s20 }
 0x9f0   : > { %10894 = vrot.lane.b32.xlu0 %v20804_v43, %s16635_s21  ;;  %v10392_v43 = vsel %vm10373_vm3, %v20816_v53, 0.0 }
 0xa06   : > { %v21091_v8 = vpop.permute.xlu1 %10504 }
 0xa09   : > { %10381 = vadd.xlane.f32.xlu1 %v10380_v15 }
 0xa0a   : > { %v21103_v32 = vpop.permute.xlu1 %10696 }
 0xa0e   : > { %v21113_v19 = vpop.permute.xlu1 %10888 }
 0xa0f   : > { %10387 = vadd.xlane.f32.xlu0 %v10386_v49 }
 0xa12   : > { %v21119_v56 = vpop.permute.xlu1 %10508 }
 0xa16   : > { %v21125_v20 = vpop.permute.xlu1 %10700 }
 0xa1a   : > { %10512 = vrot.lane.b32.xlu1 %v20801_v48, %s16633_s19  ;;  %v21145_v44 = vpop.permute.xlu1 %10892 }
 0xa1e   : > { %10704 = vrot.lane.b32.xlu1 %v20801_v48, %s16634_s20 }
 0xa22   : > { %10896 = vrot.lane.b32.xlu1 %v20801_v48, %s16635_s21  ;;  %v10395_v48 = vsel %vm10373_vm3, %v20813_v27, 0.0  ;;  %v21105_v6 = vpop.xlane.xlu0 %10378 }
 0xa23   : > { %23375 = vst [vmem:[#allocation61_spill] sm:$0xff] %v21105_v6 }
 0xa25   : > { %10514 = vrot.lane.b32.xlu0 %v20816_v53, %s16633_s19 }
 0xa29   : > { %10706 = vrot.lane.b32.xlu0 %v20816_v53, %s16634_s20 }
 0xa2d   : > { %10898 = vrot.lane.b32.xlu0 %v20816_v53, %s16635_s21  ;;  %v10398_v53 = vsel %vm10373_vm3, %v20826_v9, 0.0 }
 0xa46   : > { %10390 = vadd.xlane.f32.xlu1 %v10389_v33 }
 0xa4c   : > { %10393 = vadd.xlane.f32.xlu0 %v10392_v43 }
 0xa57   : > { %10516 = vrot.lane.b32.xlu1 %v20813_v27, %s16633_s19 }
 0xa59   : > { %v21147_v29 = vpop.xlane.xlu1 %10384 }
 0xa5b   : > { %10708 = vrot.lane.b32.xlu1 %v20813_v27, %s16634_s20 }
 0xa5f   : > { %10900 = vrot.lane.b32.xlu1 %v20813_v27, %s16635_s21  ;;  %v10401_v27 = vsel %vm10373_vm3, %v20823_v51, 0.0 }
 0xa62   : > { %10518 = vrot.lane.b32.xlu0 %v20826_v9, %s16633_s19 }
 0xa66   : > { %10710 = vrot.lane.b32.xlu0 %v20826_v9, %s16634_s20 }
 0xa6a   : > { %10902 = vrot.lane.b32.xlu0 %v20826_v9, %s16635_s21  ;;  %v10404_v9 = vsel %vm10373_vm3, %v20836_v40, 0.0 }
 0xa83   : > { %10396 = vadd.xlane.f32.xlu1 %v10395_v48 }
 0xa89   : > { %10399 = vadd.xlane.f32.xlu0 %v10398_v53 }
 0xa94   : > { %10520 = vrot.lane.b32.xlu1 %v20823_v51, %s16633_s19 }
 0xa98   : > { %10712 = vrot.lane.b32.xlu1 %v20823_v51, %s16634_s20 }
 0xa9c   : > { %10904 = vrot.lane.b32.xlu1 %v20823_v51, %s16635_s21  ;;  %v10407_v51 = vsel %vm10373_vm3, %v20833_v13, 0.0 }
 0xa9f   : > { %10522 = vrot.lane.b32.xlu0 %v20836_v40, %s16633_s19 }
 0xaa3   : > { %10714 = vrot.lane.b32.xlu0 %v20836_v40, %s16634_s20 }
 0xaa7   : > { %10906 = vrot.lane.b32.xlu0 %v20836_v40, %s16635_s21  ;;  %v10410_v40 = vsel %vm10373_vm3, %v20851_v54, 0.0 }
 0xac0   : > { %10402 = vadd.xlane.f32.xlu1 %v10401_v27  ;;  %v10455_v27 = vsel %vm10373_vm3, %v20906_v31, 0.0 }
 0xac6   : > { %10405 = vadd.xlane.f32.xlu0 %v10404_v9 }
 0xad1   : > { %10524 = vrot.lane.b32.xlu1 %v20833_v13, %s16633_s19 }
 0xad5   : > { %10716 = vrot.lane.b32.xlu1 %v20833_v13, %s16634_s20 }
 0xad9   : > { %10908 = vrot.lane.b32.xlu1 %v20833_v13, %s16635_s21  ;;  %v10413_v13 = vsel %vm10373_vm3, %v20846_v11, 0.0 }
 0xadc   : > { %10526 = vrot.lane.b32.xlu0 %v20851_v54, %s16633_s19 }
 0xae0   : > { %10718 = vrot.lane.b32.xlu0 %v20851_v54, %s16634_s20 }
 0xae4   : > { %10910 = vrot.lane.b32.xlu0 %v20851_v54, %s16635_s21  ;;  %v10422_v54 = vsel %vm10373_vm3, %v20871_v46, 0.0 }
 0xafd   : > { %10408 = vadd.xlane.f32.xlu1 %v10407_v51 }
 0xb03   : > { %10411 = vadd.xlane.f32.xlu0 %v10410_v40  ;;  %v10458_v40 = vsel %vm10373_vm3, %v20917_v59, 0.0 }
 0xb0e   : > { %10528 = vrot.lane.b32.xlu1 %v20846_v11, %s16633_s19 }
 0xb12   : > { %10720 = vrot.lane.b32.xlu1 %v20846_v11, %s16634_s20 }
 0xb16   : > { %10912 = vrot.lane.b32.xlu1 %v20846_v11, %s16635_s21  ;;  %v10419_v11 = vsel %vm10373_vm3, %v20856_v12, 0.0 }
 0xb19   : > { %10530 = vrot.lane.b32.xlu0 %v20861_v61, %s16633_s19 }
 0xb1d   : > { %10722 = vrot.lane.b32.xlu0 %v20861_v61, %s16634_s20 }
 0xb21   : > { %10914 = vrot.lane.b32.xlu0 %v20861_v61, %s16635_s21  ;;  %v10428_v61 = vsel %vm10373_vm3, %v20879_v57, 0.0 }
 0xb3a   : > { %10414 = vadd.xlane.f32.xlu1 %v10413_v13 }
 0xb40   : > { %10417 = vadd.xlane.f32.xlu0 %v10416_v14 }
 0xb4b   : > { %10532 = vrot.lane.b32.xlu1 %v20856_v12, %s16633_s19 }
 0xb4f   : > { %10724 = vrot.lane.b32.xlu1 %v20856_v12, %s16634_s20 }
 0xb53   : > { %10916 = vrot.lane.b32.xlu1 %v20856_v12, %s16635_s21  ;;  %v10425_v12 = vsel %vm10373_vm3, %v20866_v62, 0.0 }
 0xb56   : > { %10534 = vrot.lane.b32.xlu0 %v20871_v46, %s16633_s19 }
 0xb5a   : > { %10726 = vrot.lane.b32.xlu0 %v20871_v46, %s16634_s20 }
 0xb5e   : > { %10918 = vrot.lane.b32.xlu0 %v20871_v46, %s16635_s21  ;;  %v10434_v46 = vsel %vm10373_vm3, %v20887_v45, 0.0 }
 0xb77   : > { %10420 = vadd.xlane.f32.xlu1 %v10419_v11 }
 0xb7d   : > { %10423 = vadd.xlane.f32.xlu0 %v10422_v54 }
 0xb88   : > { %10536 = vrot.lane.b32.xlu1 %v20866_v62, %s16633_s19 }
 0xb8c   : > { %10728 = vrot.lane.b32.xlu1 %v20866_v62, %s16634_s20 }
 0xb90   : > { %10920 = vrot.lane.b32.xlu1 %v20866_v62, %s16635_s21  ;;  %v10431_v62 = vsel %vm10373_vm3, %v20876_v58, 0.0 }
 0xb93   : > { %10538 = vrot.lane.b32.xlu0 %v20879_v57, %s16633_s19 }
 0xb97   : > { %10730 = vrot.lane.b32.xlu0 %v20879_v57, %s16634_s20 }
 0xb9b   : > { %10922 = vrot.lane.b32.xlu0 %v20879_v57, %s16635_s21  ;;  %v21109_v57 = vpop.permute.xlu0 %10502 }
 0xb9f   : > { %v21111_v38 = vpop.permute.xlu0 %10694 }
 0xba3   : > { %v21117_v16 = vpop.permute.xlu0 %10886 }
 0xba7   : > { %v21123_v37 = vpop.xlane.xlu0 %10375 }
 0xbb4   : > { %10426 = vadd.xlane.f32.xlu1 %v10425_v12 }
 0xbba   : > { %10429 = vadd.xlane.f32.xlu0 %v10428_v61 }
 0xbc5   : > { %10540 = vrot.lane.b32.xlu1 %v20876_v58, %s16633_s19 }
 0xbc9   : > { %10732 = vrot.lane.b32.xlu1 %v20876_v58, %s16634_s20 }
 0xbcd   : > { %10924 = vrot.lane.b32.xlu1 %v20876_v58, %s16635_s21  ;;  %v10446_v58 = vsel %vm10373_vm3, %v20903_v1, 0.0 }
 0xbd0   : > { %10542 = vrot.lane.b32.xlu0 %v20887_v45, %s16633_s19 }
 0xbd4   : > { %10734 = vrot.lane.b32.xlu0 %v20887_v45, %s16634_s20 }
 0xbd8   : > { %10926 = vrot.lane.b32.xlu0 %v20887_v45, %s16635_s21 }
 0xbf1   : > { %10432 = vadd.xlane.f32.xlu1 %v10431_v62 }
 0xbf7   : > { %10435 = vadd.xlane.f32.xlu0 %v10434_v46 }
 0xc02   : > { %10544 = vrot.lane.b32.xlu1 %v20884_v24, %s16633_s19 }
 0xc06   : > { %10736 = vrot.lane.b32.xlu1 %v20884_v24, %s16634_s20 }
 0xc0a   : > { %10928 = vrot.lane.b32.xlu1 %v20884_v24, %s16635_s21  ;;  %v21129_v24 = vpop.permute.xlu0 %10510 }
 0xc0d   : > { %10546 = vrot.lane.b32.xlu0 %v20895_v18, %s16633_s19 }
 0xc0e   : > { %v21135_v45 = vpop.permute.xlu0 %10702 }
 0xc11   : > { %10738 = vrot.lane.b32.xlu0 %v20895_v18, %s16634_s20 }
 0xc12   : > { %v21139_v25 = vpop.permute.xlu0 %10894 }
 0xc15   : > { %10930 = vrot.lane.b32.xlu0 %v20895_v18, %s16635_s21  ;;  %v21153_v18 = vpop.permute.xlu1 %10506 }
 0xc16   : > { %v21141_v7 = vpop.xlane.xlu0 %10387 }
 0xc19   : > { %v21161_v36 = vpop.permute.xlu1 %10698 }
 0xc1a   : > { %v21143_v28 = vpop.permute.xlu0 %10514 }
 0xc1d   : > { %v21165_v23 = vpop.permute.xlu1 %10890 }
 0xc1e   : > { %v21149_v30 = vpop.permute.xlu0 %10706 }
 0xc22   : > { %v21155_v60 = vpop.permute.xlu0 %10898 }
 0xc26   : > { %v21157_v0 = vpop.xlane.xlu0 %10393 }
 0xc27   : > { %23376 = vst [vmem:[#allocation63_spill] sm:$0xff] %v21157_v0 }
 0xc2a   : > { %v21163_v2 = vpop.permute.xlu0 %10518 }
 0xc2e   : > { %10438 = vadd.xlane.f32.xlu1 %v10437_v42 }
 0xc34   : > { %10441 = vadd.xlane.f32.xlu0 %v10440_v4 }
 0xc3f   : > { %10548 = vrot.lane.b32.xlu1 %v20892_v17, %s16633_s19 }
 0xc43   : > { %10740 = vrot.lane.b32.xlu1 %v20892_v17, %s16634_s20 }
 0xc47   : > { %10932 = vrot.lane.b32.xlu1 %v20892_v17, %s16635_s21  ;;  %v10449_v17 = vsel %vm10373_vm3, %v20900_v63, 0.0 }
 0xc4a   : > { %10550 = vrot.lane.b32.xlu0 %v20903_v1, %s16633_s19 }
 0xc4e   : > { %10742 = vrot.lane.b32.xlu0 %v20903_v1, %s16634_s20 }
 0xc52   : > { %10934 = vrot.lane.b32.xlu0 %v20903_v1, %s16635_s21  ;;  %v21167_v1 = vpop.xlane.xlu1 %10381 }
 0xc56   : > { %v21175_v41 = vpop.permute.xlu1 %10512 }
 0xc5a   : > { %v21183_v50 = vpop.permute.xlu1 %10704 }
 0xc5e   : > { %v21191_v34 = vpop.permute.xlu1 %10896 }
 0xc62   : > { %v21195_v52 = vpop.xlane.xlu1 %10390 }
 0xc63   : > { %23378 = vst [vmem:[#allocation67_spill] sm:$0xff] %v21195_v52  ;;  %v10464_v52 = vsel %vm10373_vm3, %v20923_v26, 0.0 }
 0xc66   : > { %v21199_v55 = vpop.permute.xlu1 %10516 }
 0xc6a   : > { %v21205_v33 = vpop.permute.xlu1 %10708 }
 0xc6b   : > { %10444 = vadd.xlane.f32.xlu1 %v10443_v21 }
 0xc6e   : > { %v21209_v48 = vpop.permute.xlu1 %10900 }
 0xc71   : > { %10447 = vadd.xlane.f32.xlu0 %v10446_v58 }
 0xc72   : > { %v21211_v53 = vpop.xlane.xlu1 %10396 }
 0xc73   : > { %23380 = vst [vmem:[#allocation18_spill] sm:$0xff] %v21211_v53 }
 0xc76   : > { %v21217_v51 = vpop.permute.xlu1 %10520 }
 0xc7a   : > { %v21225_v11 = vpop.permute.xlu1 %10712 }
 0xc7c   : > { %10552 = vrot.lane.b32.xlu1 %v20900_v63, %s16633_s19 }
 0xc7e   : > { %v21229_v12 = vpop.permute.xlu1 %10904 }
 0xc80   : > { %10744 = vrot.lane.b32.xlu1 %v20900_v63, %s16634_s20 }
 0xc84   : > { %10936 = vrot.lane.b32.xlu1 %v20900_v63, %s16635_s21  ;;  %v21169_v63 = vpop.permute.xlu0 %10710 }
 0xc87   : > { %10554 = vrot.lane.b32.xlu0 %v20909_v3, %s16633_s19 }
 0xc88   : > { %v21177_v47 = vpop.permute.xlu0 %10902 }
 0xc8b   : > { %10746 = vrot.lane.b32.xlu0 %v20909_v3, %s16634_s20 }
 0xc8f   : > { %10938 = vrot.lane.b32.xlu0 %v20909_v3, %s16635_s21  ;;  %v21181_v3 = vpop.xlane.xlu0 %10399 }
 0xc90   : > { %23377 = vst [vmem:[#allocation66_spill] sm:$0xff] %v21181_v3 }
 0xc93   : > { %v21189_v22 = vpop.permute.xlu0 %10522 }
 0xc97   : > { %v21197_v10 = vpop.permute.xlu0 %10714 }
 0xc9b   : > { %v21201_v15 = vpop.permute.xlu0 %10906 }
 0xc9f   : > { %v21203_v49 = vpop.xlane.xlu0 %10405 }
 0xca0   : > { %23379 = vst [vmem:[#allocation28_spill] sm:$0xff] %v21203_v49 }
 0xca3   : > { %v21207_v43 = vpop.permute.xlu0 %10526 }
 0xca7   : > { %v21215_v9 = vpop.permute.xlu0 %10718 }
 0xca8   : > { %10450 = vadd.xlane.f32.xlu1 %v10449_v17 }
 0xcab   : > { %v21221_v13 = vpop.permute.xlu0 %10910 }
 0xcae   : > { %10453 = vadd.xlane.f32.xlu0 %v10452_v5 }
 0xcaf   : > { %v21223_v14 = vpop.xlane.xlu0 %10411 }
 0xcb0   : > { %23381 = vst [vmem:[#allocation71_spill] sm:$0xff] %v21223_v14  ;;  %v10461_v14 = vsel %vm10373_vm3, %v20912_v35, 0.0 }
 0xcb3   : > { %v21227_v54 = vpop.permute.xlu0 %10530 }
 0xcb9   : > { %10556 = vrot.lane.b32.xlu1 %v20906_v31, %s16633_s19 }
 0xcbd   : > { %10748 = vrot.lane.b32.xlu1 %v20906_v31, %s16634_s20 }
 0xcc1   : > { %10940 = vrot.lane.b32.xlu1 %v20906_v31, %s16635_s21  ;;  %v21233_v31 = vpop.xlane.xlu1 %10402 }
 0xcc2   : > { %23382 = vst [vmem:[#allocation19_spill] sm:$0xff] %v21233_v31 }
 0xcc4   : > { %10558 = vrot.lane.b32.xlu0 %v20917_v59, %s16633_s19 }
 0xcc5   : > { %v21241_v61 = vpop.permute.xlu1 %10524 }
 0xcc8   : > { %10750 = vrot.lane.b32.xlu0 %v20917_v59, %s16634_s20 }
 0xcc9   : > { %v21251_v42 = vpop.permute.xlu1 %10716 }
 0xccc   : > { %10942 = vrot.lane.b32.xlu0 %v20917_v59, %s16635_s21  ;;  %v21237_v59 = vpop.permute.xlu0 %10722 }
 0xccd   : > { %v21257_v21 = vpop.permute.xlu1 %10908 }
 0xcd0   : > { %v21243_v62 = vpop.permute.xlu0 %10914 }
 0xcd1   : > { %v21259_v58 = vpop.xlane.xlu1 %10408 }
 0xcd2   : > { %23384 = vst [vmem:[#allocation70_spill] sm:$0xff] %v21259_v58 }
 0xcd4   : > { %v21247_v46 = vpop.xlane.xlu0 %10417 }
 0xcd5   : > { %23383 = vst [vmem:[#allocation40_spill] sm:$0xff] %v21247_v46  ;;  %v21263_v5 = vpop.permute.xlu1 %10528 }
 0xcd8   : > { %v21255_v4 = vpop.permute.xlu0 %10534 }
 0xcd9   : > { %v21269_v46 = vpop.permute.xlu1 %10720 }
 0xcdc   : > { %v21261_v17 = vpop.permute.xlu0 %10726 }
 0xcdd   : > { %v21275_v53 = vpop.permute.xlu1 %10912 }
 0xce1   : > { %v21277_v49 = vpop.xlane.xlu1 %10414 }
 0xce2   : > { %23386 = vst [vmem:[#allocation34_spill] sm:$0xff] %v21277_v49 }
 0xce5   : > { %10456 = vadd.xlane.f32.xlu1 %v10455_v27  ;;  %v21265_v27 = vpop.permute.xlu0 %10918  ;;  %v21285_v3 = vpop.permute.xlu1 %10532 }
 0xce9   : > { %v21293_v49 = vpop.permute.xlu1 %10724 }
 0xceb   : > { %10459 = vadd.xlane.f32.xlu0 %v10458_v40  ;;  %v21267_v40 = vpop.xlane.xlu0 %10423 }
 0xcec   : > { %23385 = vst [vmem:[#allocation13_spill] sm:$0xff] %v21267_v40  ;;  %v10598_v40 = vsel %vm10373_vm3, %v21109_v57, 0.0 }
 0xcef   : > { %v21271_v31 = vpop.permute.xlu0 %10538 }
 0xcf3   : > { %v21279_v58 = vpop.permute.xlu0 %10730 }
 0xcf6   : > { %10560 = vrot.lane.b32.xlu1 %v20912_v35, %s16633_s19 }
 0xcf7   : > { %v21287_v6 = vpop.permute.xlu0 %10922 }
 0xcfa   : > { %10752 = vrot.lane.b32.xlu1 %v20912_v35, %s16634_s20 }
 0xcfe   : > { %10944 = vrot.lane.b32.xlu1 %v20912_v35, %s16635_s21  ;;  %v10790_v35 = vsel %vm10373_vm3, %v21111_v38, 0.0  ;;  %v10607_v38 = vsel %vm10373_vm3, %v21119_v56, 0.0 }
 0xd01   : > { %10562 = vrot.lane.b32.xlu0 %v20923_v26, %s16633_s19 }
 0xd05   : > { %10754 = vrot.lane.b32.xlu0 %v20923_v26, %s16634_s20 }
 0xd09   : > { %10946 = vrot.lane.b32.xlu0 %v20923_v26, %s16635_s21  ;;  %v10982_v26 = vsel %vm10373_vm3, %v21117_v16, 0.0 }
 0xd22   : > { %10462 = vadd.xlane.f32.xlu1 %v10461_v14  ;;  %v21291_v14 = vpop.xlane.xlu0 %10429 }
 0xd23   : > { %23387 = vst [vmem:[#allocation47_spill] sm:$0xff] %v21291_v14 }
 0xd26   : > { %v21299_v57 = vpop.permute.xlu0 %10542 }
 0xd28   : > { %10465 = vadd.xlane.f32.xlu0 %v10464_v52  ;;  %v21305_v52 = vpop.permute.xlu1 %10916 }
 0xd2a   : > { %v21313_v16 = vpop.permute.xlu0 %10734 }
 0xd2c   : > { %10599 = vadd.xlane.f32.xlu0 %v10598_v40  ;;  %v10799_v40 = vsel %vm10373_vm3, %v21125_v20, 0.0  ;;  %v10796_v20 = vsel %vm10373_vm3, %v21161_v36, 0.0  ;;  %v10802_v36 = vsel %vm10373_vm3, %v21135_v45, 0.0  ;;  %v10467_v45 = vsel %vm10373_vm3, %v20920_v39, 0.0 }
 0xd2e   : > { %v21319_v56 = vpop.permute.xlu0 %10926 }
 0xd30   : > { %10791 = vadd.xlane.f32.xlu0 %v10790_v35  ;;  %v21311_v35 = vpop.xlane.xlu1 %10420 }
 0xd31   : > { %23388 = vst [vmem:[#allocation44_spill] sm:$0xff] %v21311_v35 }
 0xd32   : > { %v21323_v0 = vpop.xlane.xlu0 %10435 }
 0xd33   : > { %10564 = vrot.lane.b32.xlu1 %v20920_v39, %s16633_s19  ;;  %23389 = vst [vmem:[#allocation59_spill] sm:$0xff] %v21323_v0  ;;  %s11265_s19 = sshll.u32 %s20088_s13, 4  ;;  %s16636_s13 = smov [#allocation2]   ;;  %s21716_s19 = int_to_ptr.vmem [resolvable:$true] %s11265_s19 }
 0xd34   : > { %10983 = vadd.xlane.f32.xlu0 %v10982_v26  ;;  %v10991_v26 = vsel %vm10373_vm3, %v21145_v44, 0.0  ;;  %v21317_v14 = vpop.permute.xlu1 %10536  ;;  %v10988_v44 = vsel %vm10373_vm3, %v21165_v23, 0.0  ;;  %v10994_v23 = vsel %vm10373_vm3, %v21139_v25, 0.0  ;;  %v10808_v25 = vsel %vm10373_vm3, %v21149_v30, 0.0 }
 0xd35   : > { %v10622_v30 = vsel %vm10373_vm3, %v21163_v2, 0.0  ;;  %v11006_v2 = vsel %vm10373_vm3, %v21177_v47, 0.0  ;;  %v10820_v47 = vsel %vm10373_vm3, %v21197_v10, 0.0  ;;  %v10634_v10 = vsel %vm10373_vm3, %v21207_v43, 0.0 }
 0xd36   : > { %v11018_v43 = vsel %vm10373_vm3, %v21221_v13, 0.0  ;;  %v10832_v13 = vsel %vm10373_vm3, %v21237_v59, 0.0  ;;  %v10646_v59 = vsel %vm10373_vm3, %v21255_v4, 0.0  ;;  %v11030_v4 = vsel %vm10373_vm3, %v21265_v27, 0.0 }
 0xd37   : > { %10756 = vrot.lane.b32.xlu1 %v20920_v39, %s16634_s20  ;;  %v10844_v27 = vsel %vm10373_vm3, %v21279_v58, 0.0  ;;  %v10658_v58 = vsel %vm10373_vm3, %v21299_v57, 0.0  ;;  %v10649_v57 = vsel %vm10373_vm3, %v21317_v14, 0.0  ;;  %s16569_s20 = scalar_lea.vmem %s21716_s19, 4096 }
 0xd38   : > { %10608 = vadd.xlane.f32.xlu0 %v10607_v38  ;;  %v10604_v38 = vsel %vm10373_vm3, %v21153_v18, 0.0  ;;  %v10610_v18 = vsel %vm10373_vm3, %v21129_v24, 0.0  ;;  %v10616_v24 = vsel %vm10373_vm3, %v21143_v28, 0.0  ;;  %v11000_v28 = vsel %vm10373_vm3, %v21155_v60, 0.0  ;;  %p16570_p11 = scmp.ne.s32.totalorder %s21716_s19, %s16569_s20 }
 0xd39   : > { %v10814_v60 = vsel %vm10373_vm3, %v21169_v63, 0.0  ;;  %v10628_v63 = vsel %vm10373_vm3, %v21189_v22, 0.0  ;;  %v11012_v22 = vsel %vm10373_vm3, %v21201_v15, 0.0  ;;  %v10826_v15 = vsel %vm10373_vm3, %v21215_v9, 0.0 }
 0xd3a   : > { %v10817_v9 = vsel %vm10373_vm3, %v21225_v11, 0.0  ;;  %v10631_v11 = vsel %vm10373_vm3, %v21241_v61, 0.0  ;;  %v11015_v61 = vsel %vm10373_vm3, %v21257_v21, 0.0  ;;  %v10829_v21 = vsel %vm10373_vm3, %v21269_v46, 0.0  ;;  %p16571_p12 = pnand %p16570_p11, %p16717_p5 }
 0xd3b   : > { %10948 = vrot.lane.b32.xlu1 %v20920_v39, %s16635_s21  ;;  %v10793_v39 = vsel %vm10373_vm3, %v21103_v32, 0.0  ;;  %v10613_v32 = vsel %vm10373_vm3, %v21175_v41, 0.0  ;;  %v10997_v41 = vsel %vm10373_vm3, %v21191_v34, 0.0  ;;  %v10811_v34 = vsel %vm10373_vm3, %v21205_v33, 0.0  ;;  %s16573_s21 = sshll.u32 %s16636_s13, 4  ;;  %s16574_s21 = int_to_ptr.vmem [resolvable:$false] %s16573_s21 }
 0xd3c   : > { %10800 = vadd.xlane.f32.xlu0 %v10799_v40  ;;  %v21327_v40 = vpop.permute.xlu1 %10728  ;;  %v10625_v33 = vsel %vm10373_vm3, %v21217_v51, 0.0  ;;  %v11009_v51 = vsel %vm10373_vm3, %v21229_v12, 0.0  ;;  %v10643_v46 = vsel %vm10373_vm3, %v21285_v3, 0.0  ;;  %v11027_v3 = vsel %vm10373_vm3, %v21305_v52, 0.0  ;;  %p16572_p13 = pneg %p16571_p12  ;;  %s16575_s22 = scalar_lea.vmem %s16574_s21, 8192 }
 0xd3d   : > { %v10841_v52 = vsel %vm10373_vm3, %v21327_v40, 0.0  ;;  %p16576_p0 = scmp.lt.s32.totalorder %s21716_s19, %s16574_s21  ;;  %p16577_p1 = scmp.lt.s32.totalorder %s16575_s22, %s16569_s20 }
 0xd3f   : > { %p16578_p2 = por %p16577_p1, %p16576_p0 }
 0xd40   : > { %10992 = vadd.xlane.f32.xlu0 %v10991_v26  ;;  %v21331_v26 = vpop.permute.xlu0 %10546  ;;  %v21333_v35 = vpop.permute.xlu1 %10920 }
 0xd41   : > { %v11033_v14 = vsel %vm10373_vm3, %v21333_v35, 0.0  ;;  %p16579_p3 = pnand %p16578_p2, %p16572_p13 }
 0xd44   : > { %10605 = vadd.xlane.f32.xlu0 %v10604_v38  ;;  %v21337_v38 = vpop.xlane.xlu1 %10426  ;;  %v21339_v0 = vpop.permute.xlu0 %10738 }
 0xd45   : > { %23390 = vst [vmem:[#allocation57_spill] sm:$0xff] %v21337_v38 }
 0xd48   : > { %10797 = vadd.xlane.f32.xlu0 %v10796_v20  ;;  %v21345_v20 = vpop.permute.xlu1 %10540 }
 0xd4c   : > { %10989 = vadd.xlane.f32.xlu0 %v10988_v44  ;;  %v21347_v44 = vpop.permute.xlu0 %10930  ;;  %v21353_v38 = vpop.permute.xlu1 %10732 }
 0xd50   : > { %10611 = vadd.xlane.f32.xlu0 %v10610_v18  ;;  %v21351_v18 = vpop.xlane.xlu0 %10441 }
 0xd54   : > { %10803 = vadd.xlane.f32.xlu0 %v10802_v36  ;;  %v10601_v36 = vsel %vm10373_vm3, %v21091_v8, 0.0 }
 0xd58   : > { %10995 = vadd.xlane.f32.xlu0 %v10994_v23  ;;  %v21361_v23 = vpop.permute.xlu0 %10550 }
 0xd5c   : > { %10617 = vadd.xlane.f32.xlu0 %v10616_v24  ;;  %v21365_v24 = vpop.permute.xlu1 %10924  ;;  %v21373_v8 = vpop.permute.xlu0 %10742 }
 0xd5f   : > { %10468 = vadd.xlane.f32.xlu1 %v10467_v45 }
 0xd60   : > { %10809 = vadd.xlane.f32.xlu0 %v10808_v25  ;;  %v21371_v45 = vpop.xlane.xlu1 %10432  ;;  %v10985_v25 = vsel %vm10373_vm3, %v21113_v19, 0.0  ;;  %v10805_v19 = vsel %vm10373_vm3, %v21183_v50, 0.0 }
 0xd63   : > { %10602 = vadd.xlane.f32.xlu1 %v10601_v36 }
 0xd64   : > { %11001 = vadd.xlane.f32.xlu0 %v11000_v28  ;;  %v21379_v36 = vpop.permute.xlu1 %10544  ;;  %v21383_v28 = vpop.permute.xlu0 %10934 }
 0xd67   : > { %10794 = vadd.xlane.f32.xlu1 %v10793_v39 }
 0xd68   : > { %10623 = vadd.xlane.f32.xlu0 %v10622_v30  ;;  %v21389_v39 = vpop.xlane.xlu0 %10447  ;;  %v21393_v30 = vpop.permute.xlu1 %10736 }
 0xd6b   : > { %10986 = vadd.xlane.f32.xlu1 %v10985_v25 }
 0xd6c   : > { %10815 = vadd.xlane.f32.xlu0 %v10814_v60  ;;  %v21399_v25 = vpop.permute.xlu0 %10554  ;;  %v21401_v50 = vpop.permute.xlu1 %10928  ;;  %v10619_v60 = vsel %vm10373_vm3, %v21199_v55, 0.0  ;;  %v11003_v55 = vsel %vm10373_vm3, %v21209_v48, 0.0 }
 0xd6f   : > { %10614 = vadd.xlane.f32.xlu1 %v10613_v32 }
 0xd70   : > { %11007 = vadd.xlane.f32.xlu0 %v11006_v2  ;;  %v21407_v32 = vpop.xlane.xlu1 %10438  ;;  %v21411_v2 = vpop.permute.xlu0 %10746 }
 0xd73   : > { %10806 = vadd.xlane.f32.xlu1 %v10805_v19 }
 0xd74   : > { %10629 = vadd.xlane.f32.xlu0 %v10628_v63  ;;  %v21419_v19 = vpop.permute.xlu1 %10548  ;;  %v21421_v63 = vpop.permute.xlu0 %10938 }
 0xd77   : > { %10998 = vadd.xlane.f32.xlu1 %v10997_v41 }
 0xd78   : > { %10821 = vadd.xlane.f32.xlu0 %v10820_v47  ;;  %v21427_v41 = vpop.xlane.xlu0 %10453  ;;  %v21429_v48 = vpop.permute.xlu1 %10740  ;;  %v10640_v47 = vsel %vm10373_vm3, %v21227_v54, 0.0  ;;  %v11024_v54 = vsel %vm10373_vm3, %v21243_v62, 0.0  ;;  %v10838_v62 = vsel %vm10373_vm3, %v21261_v17, 0.0  ;;  %v10652_v17 = vsel %vm10373_vm3, %v21271_v31, 0.0 }
 0xd79   : > { %v11036_v31 = vsel %vm10373_vm3, %v21287_v6, 0.0  ;;  %v10850_v6 = vsel %vm10373_vm3, %v21313_v16, 0.0  ;;  %v10664_v16 = vsel %vm10373_vm3, %v21331_v26, 0.0 }
 0xd7b   : > { %10620 = vadd.xlane.f32.xlu1 %v10619_v60 }
 0xd7c   : > { %11013 = vadd.xlane.f32.xlu0 %v11012_v22  ;;  %v21437_v60 = vpop.permute.xlu0 %10558  ;;  %v21441_v22 = vpop.permute.xlu1 %10932 }
 0xd7f   : > { %10812 = vadd.xlane.f32.xlu1 %v10811_v34 }
 0xd80   : > { %10635 = vadd.xlane.f32.xlu0 %v10634_v10  ;;  %v21447_v34 = vpop.xlane.xlu1 %10444  ;;  %v21449_v12 = vpop.permute.xlu0 %10750  ;;  %v10823_v10 = vsel %vm10373_vm3, %v21251_v42, 0.0  ;;  %v10637_v42 = vsel %vm10373_vm3, %v21263_v5, 0.0 }
 0xd83   : > { %11004 = vadd.xlane.f32.xlu1 %v11003_v55 }
 0xd84   : > { %10827 = vadd.xlane.f32.xlu0 %v10826_v15  ;;  %v21455_v55 = vpop.permute.xlu1 %10552  ;;  %v21459_v15 = vpop.permute.xlu0 %10942 }
 0xd87   : > { %10626 = vadd.xlane.f32.xlu1 %v10625_v33 }
 0xd88   : > { %11019 = vadd.xlane.f32.xlu0 %v11018_v43  ;;  %v21465_v33 = vpop.xlane.xlu0 %10459  ;;  %v21469_v43 = vpop.permute.xlu1 %10744 }
 0xd8b   : > { %10818 = vadd.xlane.f32.xlu1 %v10817_v9 }
 0xd8c   : > { %10641 = vadd.xlane.f32.xlu0 %v10640_v47  ;;  %v21475_v9 = vpop.permute.xlu0 %10562  ;;  %v21477_v5 = vpop.permute.xlu1 %10936  ;;  %v11021_v47 = vsel %vm10373_vm3, %v21275_v53, 0.0  ;;  %v10835_v53 = vsel %vm10373_vm3, %v21293_v49, 0.0 }
 0xd8f   : > { %11010 = vadd.xlane.f32.xlu1 %v11009_v51 }
 0xd90   : > { %10833 = vadd.xlane.f32.xlu0 %v10832_v13  ;;  %v21483_v51 = vpop.xlane.xlu1 %10450  ;;  %v21487_v13 = vpop.permute.xlu0 %10754 }
 0xd93   : > { %10632 = vadd.xlane.f32.xlu1 %v10631_v11 }
 0xd94   : > { %11025 = vadd.xlane.f32.xlu0 %v11024_v54  ;;  %v21495_v11 = vpop.permute.xlu1 %10556  ;;  %v21497_v54 = vpop.permute.xlu0 %10946 }
 0xd97   : > { %10824 = vadd.xlane.f32.xlu1 %v10823_v10 }
 0xd98   : > { %10647 = vadd.xlane.f32.xlu0 %v10646_v59  ;;  %v21505_v49 = vpop.permute.xlu1 %10748  ;;  %v11042_v59 = vsel %vm10373_vm3, %v21319_v56, 0.0  ;;  %v10856_v56 = vsel %vm10373_vm3, %v21339_v0, 0.0 }
 0xd9b   : > { %11016 = vadd.xlane.f32.xlu1 %v11015_v61 }
 0xd9c   : > { %10839 = vadd.xlane.f32.xlu0 %v10838_v62  ;;  %v21515_v62 = vpop.permute.xlu1 %10940 }
 0xd9f   : > { %10638 = vadd.xlane.f32.xlu1 %v10637_v42 }
 0xda0   : > { %11031 = vadd.xlane.f32.xlu0 %v11030_v4  ;;  %v21521_v40 = vpop.xlane.xlu1 %10456  ;;  %v21528_v4 = vld [vmem:[%s21899_s5 + $0x5] ss:$0 sm:$0xff] }
 0xda3   : > { %10830 = vadd.xlane.f32.xlu1 %v10829_v21 }
 0xda4   : > { %10653 = vadd.xlane.f32.xlu0 %v10652_v17 }
 0xda7   : > { %11022 = vadd.xlane.f32.xlu1 %v11021_v47  ;;  %v11048_v47 = vsel %vm10373_vm3, %v21347_v44, 0.0  ;;  %v10862_v44 = vsel %vm10373_vm3, %v21373_v8, 0.0  ;;  %v11054_v8 = vsel %vm10373_vm3, %v21383_v28, 0.0  ;;  %v11045_v28 = vsel %vm10373_vm3, %v21401_v50, 0.0 }
 0xda8   : > { %10845 = vadd.xlane.f32.xlu0 %v10844_v27  ;;  %v11060_v50 = vsel %vm10373_vm3, %v21421_v63, 0.0  ;;  %v11051_v63 = vsel %vm10373_vm3, %v21441_v22, 0.0  ;;  %v11066_v22 = vsel %vm10373_vm3, %v21459_v15, 0.0  ;;  %v11057_v15 = vsel %vm10373_vm3, %v21477_v5, 0.0 }
 0xda9   : > { %v11072_v5 = vsel %vm10373_vm3, %v21497_v54, 0.0 }
 0xdab   : > { %10644 = vadd.xlane.f32.xlu1 %v10643_v46  ;;  %v21545_v46 = vpop.permute.xlu1 %10560 }
 0xdac   : > { %11037 = vadd.xlane.f32.xlu0 %v11036_v31  ;;  %v10847_v31 = vsel %vm10373_vm3, %v21353_v38, 0.0 }
 0xdaf   : > { %10836 = vadd.xlane.f32.xlu1 %v10835_v53  ;;  %v10670_v53 = vsel %vm10373_vm3, %v21361_v23, 0.0 }
 0xdb0   : > { %10659 = vadd.xlane.f32.xlu0 %v10658_v58  ;;  %v11039_v58 = vsel %vm10373_vm3, %v21365_v24, 0.0 }
 0xdb3   : > { %11028 = vadd.xlane.f32.xlu1 %v11027_v3  ;;  %v21555_v3 = vpop.permute.xlu1 %10752 }
 0xdb4   : > { %10851 = vadd.xlane.f32.xlu0 %v10850_v6 }
 0xdb5   : > { %v21503_v10 = vpop.xlane.xlu0 %10465 }
 0xdb7   : > { %10650 = vadd.xlane.f32.xlu1 %v10649_v57 }
 0xdb8   : > { %11043 = vadd.xlane.f32.xlu0 %v11042_v59  ;;  %v10661_v59 = vsel %vm10373_vm3, %v21379_v36, 0.0 }
 0xdb9   : > { %v10600_v61 = vpop.xlane.xlu0 %10599 }
 0xdba   : > { %v11079_v26 = vsel %vm11078_vm4, %v21123_v37, %v10600_v61  ;;  %v10655_v37 = vsel %vm10373_vm3, %v21345_v20, 0.0 }
 0xdbb   : > { %10842 = vadd.xlane.f32.xlu1 %v10841_v52  ;;  %v10853_v52 = vsel %vm10373_vm3, %v21393_v30, 0.0 }
 0xdbc   : > { %10665 = vadd.xlane.f32.xlu0 %v10664_v16  ;;  %v10676_v16 = vsel %vm10373_vm3, %v21399_v25, 0.0 }
 0xdbd   : > { %v10792_v42 = vpop.xlane.xlu0 %10791 }
 0xdbe   : > { %v11112_v21 = vsel %vm11111_vm5, %v11079_v26, %v10792_v42 }
 0xdbf   : > { %11034 = vadd.xlane.f32.xlu1 %v11033_v14  ;;  %v10868_v14 = vsel %vm10373_vm3, %v21411_v2, 0.0  ;;  %v10859_v2 = vsel %vm10373_vm3, %v21429_v48, 0.0 }
 0xdc0   : > { %10857 = vadd.xlane.f32.xlu0 %v10856_v56 }
 0xdc1   : > { %v10984_v17 = vpop.xlane.xlu0 %10983 }
 0xdc2   : > { %v11145_v0 = vsel %vm11144_vm6, %v11112_v21, %v10984_v17  ;;  %v10667_v21 = vsel %vm10373_vm3, %v21419_v19, 0.0 }
 0xdc3   : > { %v11182_v35 = vadd.f32 %v21528_v4, %v11145_v0  ;;  %10656 = vadd.xlane.f32.xlu1 %v10655_v37  ;;  %v10682_v37 = vsel %vm10373_vm3, %v21437_v60, 0.0 }
 0xdc4   : > { %11049 = vadd.xlane.f32.xlu0 %v11048_v47  ;;  %v10874_v47 = vsel %vm10373_vm3, %v21449_v12, 0.0  ;;  %v10865_v12 = vsel %vm10373_vm3, %v21469_v43, 0.0 }
 0xdc5   : > { %11214 = vst.msk [vmem:[%s21535_s14] sm:$0xff] %vm383_vm1, %v11182_v35  ;;  %v10609_v27 = vpop.xlane.xlu0 %10608 }
 0xdc6   : > { %v11082_v6 = vsel %vm11078_vm4, %v21147_v29, %v10609_v27  ;;  %v21568_v29 = vpop.permute.xlu1 %10944 }
 0xdc7   : > { %10848 = vadd.xlane.f32.xlu1 %v10847_v31 }
 0xdc8   : > { %10671 = vadd.xlane.f32.xlu0 %v10670_v53  ;;  %v10673_v53 = vsel %vm10373_vm3, %v21455_v55, 0.0 }
 0xdc9   : > { %v10801_v20 = vpop.xlane.xlu0 %10800 }
 0xdca   : > { %v11115_v38 = vsel %vm11111_vm5, %v11082_v6, %v10801_v20  ;;  %v21574_v42 = vpop.xlane.xlu1 %10462 }
 0xdcb   : > { %11040 = vadd.xlane.f32.xlu1 %v11039_v58 }
 0xdcc   : > { %10863 = vadd.xlane.f32.xlu0 %v10862_v44  ;;  %v10688_v44 = vsel %vm10373_vm3, %v21475_v9, 0.0 }
 0xdcd   : > { %v10993_v57 = vpop.xlane.xlu0 %10992 }
 0xdce   : > { %v11148_v23 = vsel %vm11144_vm6, %v11115_v38, %v10993_v57  ;;  %v21589_v0 = vpop.permute.xlu1 %10564  ;;  %v10880_v38 = vsel %vm10373_vm3, %v21487_v13, 0.0  ;;  %v23391_v57 = vld [vmem:[#allocation63_spill] sm:$0xff] }
 0xdcf   : > { %v11185_v24 = vadd.f32 %v21528_v4, %v11148_v23  ;;  %10662 = vadd.xlane.f32.xlu1 %v10661_v59 }
 0xdd0   : > { %11055 = vadd.xlane.f32.xlu0 %v11054_v8  ;;  %v10679_v8 = vsel %vm10373_vm3, %v21495_v11, 0.0 }
 0xdd1   : > { %11217 = vst.msk [vmem:[%s21535_s14 + $0x18] sm:$0xff] %vm383_vm1, %v11185_v24  ;;  %v10606_v61 = vpop.xlane.xlu0 %10605 }
 0xdd2   : > { %v11081_v56 = vsel %vm11078_vm4, %v21167_v1, %v10606_v61  ;;  %v21597_v35 = vpop.permute.xlu1 %10756 }
 0xdd3   : > { %10854 = vadd.xlane.f32.xlu1 %v10853_v52 }
 0xdd4   : > { %10677 = vadd.xlane.f32.xlu0 %v10676_v16  ;;  %v10871_v16 = vsel %vm10373_vm3, %v21505_v49, 0.0 }
 0xdd5   : > { %v10798_v36 = vpop.xlane.xlu0 %10797 }
 0xdd6   : > { %v11114_v30 = vsel %vm11111_vm5, %v11081_v56, %v10798_v36  ;;  %v21612_v58 = vpop.permute.xlu1 %10948  ;;  %v23392_v36 = vld [vmem:[#allocation61_spill] sm:$0xff] }
 0xdd7   : > { %11046 = vadd.xlane.f32.xlu1 %v11045_v28 }
 0xdd8   : > { %10869 = vadd.xlane.f32.xlu0 %v10868_v14 }
 0xdd9   : > { %v10990_v26 = vpop.xlane.xlu0 %10989 }
 0xdda   : > { %v11147_v25 = vsel %vm11144_vm6, %v11114_v30, %v10990_v26  ;;  %v11063_v26 = vsel %vm10373_vm3, %v21515_v62, 0.0 }
 0xddb   : > { %v11184_v17 = vadd.f32 %v21528_v4, %v11147_v25  ;;  %10668 = vadd.xlane.f32.xlu1 %v10667_v21  ;;  %v23393_v25 = vld [vmem:[#allocation66_spill] sm:$0xff] }
 0xddc   : > { %11061 = vadd.xlane.f32.xlu0 %v11060_v50 }
 0xddd   : > { %11216 = vst.msk [vmem:[%s21535_s14 + $0x10] sm:$0xff] %vm383_vm1, %v11184_v17  ;;  %v10612_v1 = vpop.xlane.xlu0 %10611 }
 0xdde   : > { %v11083_v27 = vsel %vm11078_vm4, %v21141_v7, %v10612_v1 }
 0xddf   : > { %10860 = vadd.xlane.f32.xlu1 %v10859_v2  ;;  %v10685_v2 = vsel %vm10373_vm3, %v21545_v46, 0.0 }
 0xde0   : > { %10683 = vadd.xlane.f32.xlu0 %v10682_v37 }
 0xde1   : > { %v10804_v19 = vpop.xlane.xlu0 %10803 }
 0xde2   : > { %v11116_v48 = vsel %vm11111_vm5, %v11083_v27, %v10804_v19 }
 0xde3   : > { %11052 = vadd.xlane.f32.xlu1 %v11051_v63  ;;  %v10877_v63 = vsel %vm10373_vm3, %v21555_v3, 0.0 }
 0xde4   : > { %10875 = vadd.xlane.f32.xlu0 %v10874_v47  ;;  %v23394_v47 = vld [vmem:[#allocation67_spill] sm:$0xff] }
 0xde5   : > { %v10996_v31 = vpop.xlane.xlu0 %10995 }
 0xde6   : > { %v11149_v60 = vsel %vm11144_vm6, %v11116_v48, %v10996_v31 }
 0xde7   : > { %v11186_v20 = vadd.f32 %v21528_v4, %v11149_v60  ;;  %10674 = vadd.xlane.f32.xlu1 %v10673_v53 }
 0xde8   : > { %11067 = vadd.xlane.f32.xlu0 %v11066_v22  ;;  %v23395_v22 = vld [vmem:[#allocation28_spill] sm:$0xff] }
 0xde9   : > { %11218 = vst.msk [vmem:[%s21535_s14 + $0x20] sm:$0xff] %vm383_vm1, %v11186_v20  ;;  %v10618_v7 = vpop.xlane.xlu0 %10617  ;;  %v11069_v20 = vsel %vm10373_vm3, %v21568_v29, 0.0 }
 0xdea   : > { %v11085_v23 = vsel %vm11078_vm4, %v23391_v57, %v10618_v7 }
 0xdeb   : > { %10866 = vadd.xlane.f32.xlu1 %v10865_v12 }
 0xdec   : > { %v21620_v55 = vpop.xlane.xlu1 %10468  ;;  %10689 = vadd.xlane.f32.xlu0 %v10688_v44 }
 0xded   : > { %v10810_v6 = vpop.xlane.xlu0 %10809 }
 0xdee   : > { %v11118_v59 = vsel %vm11111_vm5, %v11085_v23, %v10810_v6  ;;  %v10691_v6 = vsel %vm10373_vm3, %v21589_v0, 0.0  ;;  %v10883_v23 = vsel %vm10373_vm3, %v21597_v35, 0.0 }
 0xdef   : > { %11058 = vadd.xlane.f32.xlu1 %v11057_v15 }
 0xdf0   : > { %v10603_v43 = vpop.xlane.xlu1 %10602  ;;  %10881 = vadd.xlane.f32.xlu0 %v10880_v38 }
 0xdf1   : > { %v11002_v9 = vpop.xlane.xlu0 %11001  ;;  %v11080_v28 = vsel %vm11078_vm4, %v23392_v36, %v10603_v43  ;;  %v23396_v43 = vld [vmem:[#allocation18_spill] sm:$0xff] }
 0xdf2   : > { %v11151_v24 = vsel %vm11144_vm6, %v11118_v59, %v11002_v9 }
 0xdf3   : > { %v11188_v61 = vadd.f32 %v21528_v4, %v11151_v24  ;;  %10680 = vadd.xlane.f32.xlu1 %v10679_v8 }
 0xdf4   : > { %v10795_v13 = vpop.xlane.xlu1 %10794  ;;  %11073 = vadd.xlane.f32.xlu0 %v11072_v5 }
 0xdf5   : > { %11220 = vst.msk [vmem:[%s21535_s14 + $0x30] sm:$0xff] %vm383_vm1, %v11188_v61  ;;  %v10624_v52 = vpop.xlane.xlu0 %10623  ;;  %v11113_v11 = vsel %vm11111_vm5, %v11080_v28, %v10795_v13  ;;  %v11075_v61 = vsel %vm10373_vm3, %v21612_v58, 0.0  ;;  %v23397_v13 = vld [vmem:[#allocation71_spill] sm:$0xff] }
 0xdf6   : > { %v11087_v49 = vsel %vm11078_vm4, %v23393_v25, %v10624_v52 }
 0xdf7   : > { %10872 = vadd.xlane.f32.xlu1 %v10871_v16 }
 0xdf8   : > { %v10987_v14 = vpop.xlane.xlu1 %10986 }
 0xdf9   : > { %v11146_v56 = vsel %vm11144_vm6, %v11113_v11, %v10987_v14  ;;  %v10816_v54 = vpop.xlane.xlu0 %10815 }
 0xdfa   : > { %v11183_v30 = vadd.f32 %v21528_v4, %v11146_v56  ;;  %v11120_v17 = vsel %vm11111_vm5, %v11087_v49, %v10816_v54  ;;  %v23398_v56 = vld [vmem:[#allocation19_spill] sm:$0xff] }
 0xdfb   : > { %11064 = vadd.xlane.f32.xlu1 %v11063_v26 }
 0xdfc   : > { %11215 = vst.msk [vmem:[%s21535_s14 + $0x8] sm:$0xff] %vm383_vm1, %v11183_v30  ;;  %v10615_v21 = vpop.xlane.xlu1 %10614 }
 0xdfd   : > { %v11008_v50 = vpop.xlane.xlu0 %11007  ;;  %v11084_v27 = vsel %vm11078_vm4, %v23394_v47, %v10615_v21 }
 0xdfe   : > { %v11153_v1 = vsel %vm11144_vm6, %v11120_v17, %v11008_v50  ;;  %v23399_v17 = vld [vmem:[#allocation40_spill] sm:$0xff] }
 0xdff   : > { %v11190_v37 = vadd.f32 %v21528_v4, %v11153_v1  ;;  %10686 = vadd.xlane.f32.xlu1 %v10685_v2 }
 0xe00   : > { %v10807_v62 = vpop.xlane.xlu1 %10806 }
 0xe01   : > { %11222 = vst.msk [vmem:[%s21535_s14 + $0x40] sm:$0xff] %vm383_vm1, %v11190_v37  ;;  %v10630_v19 = vpop.xlane.xlu0 %10629  ;;  %v11117_v48 = vsel %vm11111_vm5, %v11084_v27, %v10807_v62  ;;  %v23400_v27 = vld [vmem:[#allocation70_spill] sm:$0xff] }
 0xe02   : > { %v11089_v3 = vsel %vm11078_vm4, %v23395_v22, %v10630_v19 }
 0xe03   : > { %10878 = vadd.xlane.f32.xlu1 %v10877_v63 }
 0xe04   : > { %v10999_v31 = vpop.xlane.xlu1 %10998 }
 0xe05   : > { %v11150_v46 = vsel %vm11144_vm6, %v11117_v48, %v10999_v31  ;;  %v10822_v60 = vpop.xlane.xlu0 %10821 }
 0xe06   : > { %v11187_v53 = vadd.f32 %v21528_v4, %v11150_v46  ;;  %v11122_v12 = vsel %vm11111_vm5, %v11089_v3, %v10822_v60 }
 0xe07   : > { %11070 = vadd.xlane.f32.xlu1 %v11069_v20 }
 0xe08   : > { %11219 = vst.msk [vmem:[%s21535_s14 + $0x28] sm:$0xff] %vm383_vm1, %v11187_v53  ;;  %v10621_v7 = vpop.xlane.xlu1 %10620 }
 0xe09   : > { %v11014_v44 = vpop.xlane.xlu0 %11013  ;;  %v11086_v59 = vsel %vm11078_vm4, %v23396_v43, %v10621_v7 }
 0xe0a   : > { %v11155_v15 = vsel %vm11144_vm6, %v11122_v12, %v11014_v44 }
 0xe0b   : > { %v11192_v38 = vadd.f32 %v21528_v4, %v11155_v15  ;;  %10692 = vadd.xlane.f32.xlu1 %v10691_v6 }
 0xe0c   : > { %v10813_v29 = vpop.xlane.xlu1 %10812 }
 0xe0d   : > { %11224 = vst.msk [vmem:[%s21535_s14 + $0x50] sm:$0xff] %vm383_vm1, %v11192_v38  ;;  %v10636_v57 = vpop.xlane.xlu0 %10635  ;;  %v11119_v0 = vsel %vm11111_vm5, %v11086_v59, %v10813_v29 }
 0xe0e   : > { %v11091_v35 = vsel %vm11078_vm4, %v23397_v13, %v10636_v57 }
 0xe0f   : > { %10884 = vadd.xlane.f32.xlu1 %v10883_v23 }
 0xe10   : > { %v11005_v9 = vpop.xlane.xlu1 %11004 }
 0xe11   : > { %v11152_v24 = vsel %vm11144_vm6, %v11119_v0, %v11005_v9  ;;  %v10828_v8 = vpop.xlane.xlu0 %10827 }
 0xe12   : > { %v11189_v5 = vadd.f32 %v21528_v4, %v11152_v24  ;;  %v11124_v16 = vsel %vm11111_vm5, %v11091_v35, %v10828_v8 }
 0xe13   : > { %11076 = vadd.xlane.f32.xlu1 %v11075_v61 }
 0xe14   : > { %11221 = vst.msk [vmem:[%s21535_s14 + $0x38] sm:$0xff] %vm383_vm1, %v11189_v5  ;;  %v10627_v52 = vpop.xlane.xlu1 %10626 }
 0xe15   : > { %v11020_v36 = vpop.xlane.xlu0 %11019  ;;  %v11088_v54 = vsel %vm11078_vm4, %v23398_v56, %v10627_v52 }
 0xe16   : > { %v11157_v28 = vsel %vm11144_vm6, %v11124_v16, %v11020_v36 }
 0xe17   : > { %v11194_v11 = vadd.f32 %v21528_v4, %v11157_v28 }
 0xe18   : > { %v10819_v14 = vpop.xlane.xlu1 %10818 }
 0xe19   : > { %11226 = vst.msk [vmem:[%s21535_s14 + $0x60] sm:$0xff] %vm383_vm1, %v11194_v11  ;;  %v10642_v58 = vpop.xlane.xlu0 %10641  ;;  %v11121_v30 = vsel %vm11111_vm5, %v11088_v54, %v10819_v14 }
 0xe1a   : > { %v11093_v50 = vsel %vm11078_vm4, %v23399_v17, %v10642_v58 }
 0xe1c   : > { %v11011_v26 = vpop.xlane.xlu1 %11010 }
 0xe1d   : > { %v11154_v25 = vsel %vm11144_vm6, %v11121_v30, %v11011_v26  ;;  %v10834_v49 = vpop.xlane.xlu0 %10833 }
 0xe1e   : > { %v11191_v21 = vadd.f32 %v21528_v4, %v11154_v25  ;;  %v11126_v2 = vsel %vm11111_vm5, %v11093_v50, %v10834_v49 }
 0xe20   : > { %11223 = vst.msk [vmem:[%s21535_s14 + $0x48] sm:$0xff] %vm383_vm1, %v11191_v21  ;;  %v10633_v1 = vpop.xlane.xlu1 %10632 }
 0xe21   : > { %v11026_v37 = vpop.xlane.xlu0 %11025  ;;  %v11090_v48 = vsel %vm11078_vm4, %v23400_v27, %v10633_v1 }
 0xe22   : > { %v11159_v62 = vsel %vm11144_vm6, %v11126_v2, %v11026_v37 }
 0xe23   : > { %v11196_v19 = vadd.f32 %v21528_v4, %v11159_v62 }
 0xe24   : > { %v10825_v63 = vpop.xlane.xlu1 %10824 }
 0xe25   : > { %11228 = vst.msk [vmem:[%s21535_s14 + $0x70] sm:$0xff] %vm383_vm1, %v11196_v19  ;;  %v10648_v47 = vpop.xlane.xlu0 %10647  ;;  %v11123_v31 = vsel %vm11111_vm5, %v11090_v48, %v10825_v63 }
 0xe28   : > { %v11017_v46 = vpop.xlane.xlu1 %11016 }
 0xe29   : > { %16582 = shalt.err (!%p16579_p3)
}
 0xe2a   : > { %s16583_s23 = scalar_lea.hbm %s21713_s18, 4096  ;;  %s16587_s9 = scalar_lea.hbm %s21900_s6, 16384 }
 0xe2b   : > { %p16584_p4 = scmp.ne.s32.totalorder %s21713_s18, %s16583_s23  ;;  %p16588_p9 = scmp.lt.u32.totalorder %s21713_s18, %s21900_s6 }
 0xe2c   : > { %p16589_p10 = scmp.lt.u32.totalorder %s16587_s9, %s16583_s23  ;;  %p16591_p12 = scmp.lt.u32.totalorder %s16583_s23, %s21713_s18 }
 0xe2d   : > { %p16585_p7 = pnand %p16584_p4, %p16717_p5 }
 0xe2e   : > { %p16590_p11 = por %p16589_p10, %p16588_p9 }
 0xe2f   : > { %p16586_p8 = pneg %p16585_p7 }
 0xe30   : > { %p16592_p13 = por %p16591_p12, %p16590_p11 }
 0xe32   : > { %p16593_p0 = pnand %p16592_p13, %p16586_p8 }
 0xe34   : > { %16596 = shalt.err (!%p16593_p0)
}
 0xe35   : > { %s16637_s17 = smov 128   ;;  %s16638_s20 = smov 8   ;;  %v11156_v60 = vsel %vm11144_vm6, %v11123_v31, %v11017_v46  ;;  %v10840_v53 = vpop.xlane.xlu0 %10839  ;;  %v23401_v22 = vld [vmem:[#allocation13_spill] sm:$0xff]  ;;  %v10639_v7 = vpop.xlane.xlu1 %10638  ;;  %v23402_v57 = vld [vmem:[#allocation34_spill] sm:$0xff]  ;;  %v23403_v8 = vld [vmem:[#allocation47_spill] sm:$0xff] }
 0xe36   : > { %16269 = dma.vmem_to_hbm [thread:$0]  (%p16717_p5), %s21716_s19, 4096, %s21713_s18, %s21723_s28, %s16637_s17, %s16637_s17, %s16638_s20   ;;  %v11193_v20 = vadd.f32 %v21528_v4, %v11156_v60  ;;  %v11095_v3 = vsel %vm11078_vm4, %v23401_v22, %v10648_v47  ;;  %v11092_v23 = vsel %vm11078_vm4, %v23402_v57, %v10639_v7  ;;  %v23404_v11 = vld [vmem:[#allocation44_spill] sm:$0xff]  ;;  %v23405_v25 = vld [vmem:[#allocation59_spill] sm:$0xff]  ;;  %v23406_v19 = vld [vmem:[#allocation57_spill] sm:$0xff] }
 0xe37   : > { %v11128_v12 = vsel %vm11111_vm5, %v11095_v3, %v10840_v53 }
 0xe38   : > { %11225 = vst.msk [vmem:[%s21535_s14 + $0x58] sm:$0xff] %vm383_vm1, %v11193_v20 }
 0xe39   : > { %v11032_v44 = vpop.xlane.xlu0 %11031  ;;  %v10831_v38 = vpop.xlane.xlu1 %10830 }
 0xe3a   : > { %v11161_v6 = vsel %vm11144_vm6, %v11128_v12, %v11032_v44  ;;  %v11125_v43 = vsel %vm11111_vm5, %v11092_v23, %v10831_v38 }
 0xe3b   : > { %v11198_v15 = vadd.f32 %v21528_v4, %v11161_v6 }
 0xe3d   : > { %11230 = vst.msk [vmem:[%s21535_s14 + $0x80] sm:$0xff] %vm383_vm1, %v11198_v15  ;;  %v10654_v29 = vpop.xlane.xlu0 %10653  ;;  %v11023_v59 = vpop.xlane.xlu1 %11022 }
 0xe3e   : > { %v11158_v0 = vsel %vm11144_vm6, %v11125_v43, %v11023_v59  ;;  %v11097_v61 = vsel %vm11078_vm4, %v23403_v8, %v10654_v29 }
 0xe3f   : > { %v11195_v24 = vadd.f32 %v21528_v4, %v11158_v0 }
 0xe41   : > { %v10846_v9 = vpop.xlane.xlu0 %10845  ;;  %11227 = vst.msk [vmem:[%s21535_s14 + $0x68] sm:$0xff] %vm383_vm1, %v11195_v24  ;;  %v10645_v5 = vpop.xlane.xlu1 %10644 }
 0xe42   : > { %v11130_v13 = vsel %vm11111_vm5, %v11097_v61, %v10846_v9  ;;  %v11094_v14 = vsel %vm11078_vm4, %v23404_v11, %v10645_v5 }
 0xe45   : > { %v11038_v35 = vpop.xlane.xlu0 %11037  ;;  %v10837_v36 = vpop.xlane.xlu1 %10836 }
 0xe46   : > { %v11163_v52 = vsel %vm11144_vm6, %v11130_v13, %v11038_v35  ;;  %v11127_v58 = vsel %vm11111_vm5, %v11094_v14, %v10837_v36 }
 0xe47   : > { %v11200_v16 = vadd.f32 %v21528_v4, %v11163_v52 }
 0xe49   : > { %11232 = vst.msk [vmem:[%s21535_s14 + $0x90] sm:$0xff] %vm383_vm1, %v11200_v16  ;;  %v10660_v28 = vpop.xlane.xlu0 %10659  ;;  %v11029_v56 = vpop.xlane.xlu1 %11028 }
 0xe4a   : > { %v11160_v54 = vsel %vm11144_vm6, %v11127_v58, %v11029_v56  ;;  %v11099_v49 = vsel %vm11078_vm4, %v23405_v25, %v10660_v28 }
 0xe4b   : > { %v11197_v26 = vadd.f32 %v21528_v4, %v11160_v54 }
 0xe4d   : > { %v10852_v30 = vpop.xlane.xlu0 %10851  ;;  %11229 = vst.msk [vmem:[%s21535_s14 + $0x78] sm:$0xff] %vm383_vm1, %v11197_v26  ;;  %v10651_v21 = vpop.xlane.xlu1 %10650 }
 0xe4e   : > { %v11132_v17 = vsel %vm11111_vm5, %v11099_v49, %v10852_v30  ;;  %v11096_v63 = vsel %vm11078_vm4, %v23406_v19, %v10651_v21 }
 0xe51   : > { %v11044_v50 = vpop.xlane.xlu0 %11043  ;;  %v10843_v37 = vpop.xlane.xlu1 %10842 }
 0xe52   : > { %v11165_v1 = vsel %vm11144_vm6, %v11132_v17, %v11044_v50  ;;  %v11129_v47 = vsel %vm11111_vm5, %v11096_v63, %v10843_v37 }
 0xe53   : > { %v11202_v2 = vadd.f32 %v21528_v4, %v11165_v1 }
 0xe55   : > { %11234 = vst.msk [vmem:[%s21535_s14 + $0xa0] sm:$0xff] %vm383_vm1, %v11202_v2  ;;  %v10666_v62 = vpop.xlane.xlu0 %10665  ;;  %v11035_v27 = vpop.xlane.xlu1 %11034 }
 0xe56   : > { %v11162_v48 = vsel %vm11144_vm6, %v11129_v47, %v11035_v27  ;;  %v11101_v60 = vsel %vm11078_vm4, %v21351_v18, %v10666_v62 }
 0xe57   : > { %v11199_v46 = vadd.f32 %v21528_v4, %v11162_v48 }
 0xe59   : > { %v10858_v31 = vpop.xlane.xlu0 %10857  ;;  %11231 = vst.msk [vmem:[%s21535_s14 + $0x88] sm:$0xff] %vm383_vm1, %v11199_v46  ;;  %v10657_v53 = vpop.xlane.xlu1 %10656 }
 0xe5a   : > { %v11134_v20 = vsel %vm11111_vm5, %v11101_v60, %v10858_v31  ;;  %v11098_v6 = vsel %vm11078_vm4, %v21371_v45, %v10657_v53 }
 0xe5d   : > { %v11050_v22 = vpop.xlane.xlu0 %11049  ;;  %v10849_v12 = vpop.xlane.xlu1 %10848 }
 0xe5e   : > { %v11167_v3 = vsel %vm11144_vm6, %v11134_v20, %v11050_v22  ;;  %v11131_v18 = vsel %vm11111_vm5, %v11098_v6, %v10849_v12 }
 0xe5f   : > { %v11204_v7 = vadd.f32 %v21528_v4, %v11167_v3 }
 0xe61   : > { %11236 = vst.msk [vmem:[%s21535_s14 + $0xb0] sm:$0xff] %vm383_vm1, %v11204_v7  ;;  %v10672_v44 = vpop.xlane.xlu0 %10671  ;;  %v11041_v15 = vpop.xlane.xlu1 %11040 }
 0xe62   : > { %v11164_v38 = vsel %vm11144_vm6, %v11131_v18, %v11041_v15  ;;  %v11103_v23 = vsel %vm11078_vm4, %v21389_v39, %v10672_v44 }
 0xe63   : > { %v11201_v57 = vadd.f32 %v21528_v4, %v11164_v38 }
 0xe65   : > { %v10864_v29 = vpop.xlane.xlu0 %10863  ;;  %11233 = vst.msk [vmem:[%s21535_s14 + $0x98] sm:$0xff] %vm383_vm1, %v11201_v57  ;;  %v10663_v43 = vpop.xlane.xlu1 %10662 }
 0xe66   : > { %v11136_v59 = vsel %vm11111_vm5, %v11103_v23, %v10864_v29  ;;  %v11100_v61 = vsel %vm11078_vm4, %v21407_v32, %v10663_v43 }
 0xe69   : > { %v11056_v0 = vpop.xlane.xlu0 %11055  ;;  %v10855_v24 = vpop.xlane.xlu1 %10854 }
 0xe6a   : > { %v11169_v45 = vsel %vm11144_vm6, %v11136_v59, %v11056_v0  ;;  %v11133_v39 = vsel %vm11111_vm5, %v11100_v61, %v10855_v24 }
 0xe6b   : > { %v11206_v9 = vadd.f32 %v21528_v4, %v11169_v45 }
 0xe6d   : > { %11238 = vst.msk [vmem:[%s21535_s14 + $0xc0] sm:$0xff] %vm383_vm1, %v11206_v9  ;;  %v10678_v8 = vpop.xlane.xlu0 %10677  ;;  %v11047_v5 = vpop.xlane.xlu1 %11046 }
 0xe6e   : > { %v11166_v13 = vsel %vm11144_vm6, %v11133_v39, %v11047_v5  ;;  %v11105_v16 = vsel %vm11078_vm4, %v21427_v41, %v10678_v8 }
 0xe6f   : > { %v11203_v52 = vadd.f32 %v21528_v4, %v11166_v13 }
 0xe71   : > { %v10870_v35 = vpop.xlane.xlu0 %10869  ;;  %11235 = vst.msk [vmem:[%s21535_s14 + $0xa8] sm:$0xff] %vm383_vm1, %v11203_v52  ;;  %v10669_v36 = vpop.xlane.xlu1 %10668 }
 0xe72   : > { %v11138_v28 = vsel %vm11111_vm5, %v11105_v16, %v10870_v35  ;;  %v11102_v54 = vsel %vm11078_vm4, %v21447_v34, %v10669_v36 }
 0xe75   : > { %v11062_v11 = vpop.xlane.xlu0 %11061  ;;  %v10861_v58 = vpop.xlane.xlu1 %10860 }
 0xe76   : > { %v11171_v32 = vsel %vm11144_vm6, %v11138_v28, %v11062_v11  ;;  %v11135_v41 = vsel %vm11111_vm5, %v11102_v54, %v10861_v58 }
 0xe77   : > { %v11208_v14 = vadd.f32 %v21528_v4, %v11171_v32 }
 0xe79   : > { %11240 = vst.msk [vmem:[%s21535_s14 + $0xd0] sm:$0xff] %vm383_vm1, %v11208_v14  ;;  %v10684_v56 = vpop.xlane.xlu0 %10683  ;;  %v11053_v30 = vpop.xlane.xlu1 %11052 }
 0xe7a   : > { %v11168_v26 = vsel %vm11144_vm6, %v11135_v41, %v11053_v30  ;;  %v11107_v21 = vsel %vm11078_vm4, %v21465_v33, %v10684_v56 }
 0xe7b   : > { %v11205_v49 = vadd.f32 %v21528_v4, %v11168_v26 }
 0xe7d   : > { %v10876_v25 = vpop.xlane.xlu0 %10875  ;;  %11237 = vst.msk [vmem:[%s21535_s14 + $0xb8] sm:$0xff] %vm383_vm1, %v11205_v49  ;;  %v10675_v17 = vpop.xlane.xlu1 %10674 }
 0xe7e   : > { %v11140_v50 = vsel %vm11111_vm5, %v11107_v21, %v10876_v25  ;;  %v11104_v19 = vsel %vm11078_vm4, %v21483_v51, %v10675_v17 }
 0xe81   : > { %v11068_v1 = vpop.xlane.xlu0 %11067  ;;  %v10867_v37 = vpop.xlane.xlu1 %10866 }
 0xe82   : > { %v11173_v34 = vsel %vm11144_vm6, %v11140_v50, %v11068_v1  ;;  %v11137_v33 = vsel %vm11111_vm5, %v11104_v19, %v10867_v37 }
 0xe83   : > { %v11210_v2 = vadd.f32 %v21528_v4, %v11173_v34 }
 0xe85   : > { %11242 = vst.msk [vmem:[%s21535_s14 + $0xe0] sm:$0xff] %vm383_vm1, %v11210_v2  ;;  %v10690_v62 = vpop.xlane.xlu0 %10689  ;;  %v11059_v63 = vpop.xlane.xlu1 %11058 }
 0xe86   : > { %v11170_v47 = vsel %vm11144_vm6, %v11137_v33, %v11059_v63  ;;  %v11109_v31 = vsel %vm11078_vm4, %v21503_v10, %v10690_v62 }
 0xe87   : > { %v11207_v48 = vadd.f32 %v21528_v4, %v11170_v47 }
 0xe89   : > { %v10882_v27 = vpop.xlane.xlu0 %10881  ;;  %11239 = vst.msk [vmem:[%s21535_s14 + $0xc8] sm:$0xff] %vm383_vm1, %v11207_v48  ;;  %v10681_v46 = vpop.xlane.xlu1 %10680 }
 0xe8a   : > { %v11142_v60 = vsel %vm11111_vm5, %v11109_v31, %v10882_v27  ;;  %v11106_v3 = vsel %vm11078_vm4, %v21521_v40, %v10681_v46 }
 0xe8d   : > { %v11074_v53 = vpop.xlane.xlu0 %11073  ;;  %v10873_v22 = vpop.xlane.xlu1 %10872 }
 0xe8e   : > { %v11175_v51 = vsel %vm11144_vm6, %v11142_v60, %v11074_v53  ;;  %v11139_v7 = vsel %vm11111_vm5, %v11106_v3, %v10873_v22 }
 0xe8f   : > { %v11212_v20 = vadd.f32 %v21528_v4, %v11175_v51 }
 0xe91   : > { %11244 = vst.msk [vmem:[%s21535_s14 + $0xf0] sm:$0xff] %vm383_vm1, %v11212_v20  ;;  %v11065_v10 = vpop.xlane.xlu1 %11064 }
 0xe92   : > { %v11172_v12 = vsel %vm11144_vm6, %v11139_v7, %v11065_v10 }
 0xe93   : > { %v11209_v44 = vadd.f32 %v21528_v4, %v11172_v12 }
 0xe95   : > { %11241 = vst.msk [vmem:[%s21535_s14 + $0xd8] sm:$0xff] %vm383_vm1, %v11209_v44  ;;  %v10687_v6 = vpop.xlane.xlu1 %10686 }
 0xe96   : > { %v11108_v15 = vsel %vm11078_vm4, %v21574_v42, %v10687_v6 }
 0xe99   : > { %v10879_v18 = vpop.xlane.xlu1 %10878 }
 0xe9a   : > { %v11141_v38 = vsel %vm11111_vm5, %v11108_v15, %v10879_v18 }
 0xe9d   : > { %v11071_v29 = vpop.xlane.xlu1 %11070 }
 0xe9e   : > { %v11174_v40 = vsel %vm11144_vm6, %v11141_v38, %v11071_v29 }
 0xe9f   : > { %v11211_v57 = vadd.f32 %v21528_v4, %v11174_v40 }
 0xea1   : > { %11243 = vst.msk [vmem:[%s21535_s14 + $0xe8] sm:$0xff] %vm383_vm1, %v11211_v57  ;;  %v10693_v23 = vpop.xlane.xlu1 %10692 }
 0xea2   : > { %v11110_v59 = vsel %vm11078_vm4, %v21620_v55, %v10693_v23 }
 0xea5   : > { %v10885_v43 = vpop.xlane.xlu1 %10884 }
 0xea6   : > { %v11143_v0 = vsel %vm11111_vm5, %v11110_v59, %v10885_v43 }
 0xea9   : > { %v11077_v45 = vpop.xlane.xlu1 %11076 }
 0xeaa   : > { %v11176_v9 = vsel %vm11144_vm6, %v11143_v0, %v11077_v45 }
 0xeab   : > { %v11213_v42 = vadd.f32 %v21528_v4, %v11176_v9 }
 0xead   : > { %11245 = vst.msk [vmem:[%s21535_s14 + $0xf8] sm:$0xff] %vm383_vm1, %v11213_v42 }
 0xeae PF: > { %p16275_p5 = scmp.ge.s32.totalorder %s16631_s27, 2  ;;  %s11284_s11 = sand.u32 1, %s16619_s24  }
 0xeaf   : > { %s11285_s18 = scalar_lea.sflag [#allocation3], %s11284_s11 }
 0xeb0   : > { %p16272_p1 = pnand %p16275_p5, %p16721_p6 }
 0xeb2   : > { %16614 = dma.done.wait (!%p16272_p1), %s11285_s18, 4096  }
 0xeb3   : > { %16616 = vsyncadd (!%p16272_p1), %s11285_s18, 4294963200  ;;  %p18_p2 = scmp.ge.s32.totalorder %s16704_s30, 6   ;;  %s23407_s24 = smov %s16623_s25 }
 0xeb4   : > { %s23408_s25 = smov %s16627_s26  ;;  %s23409_s26 = smov %s16715_s10 }
 0xeb5   : > { %s23410_s27 = smov %s16704_s30  ;;  %20 = sbr.rel (!%p18_p2) target bundleno = 3 (0x3), region = 96 }
 0xebc   :  { %11298 = vsyncpa [#allocation3], 1 }
 0xebd   :  { %11300 = vsyncpa [#allocation3 + $0x1], 1 }

</bundles_post_ra>
